<compile_context>
chip_gen: v7x
topology: tpu7x:2x2x1
jax: 0.10.0
libtpu: 0.0.40
codegen_flags: <defaults>
</compile_context>

<pallas_src>
from functools import partial

import numpy as np
import jax
import jax.numpy as jnp
from jax.experimental import pallas as pl
from jax.experimental.pallas import tpu as pltpu

# ----------------------------- hyper-parameters (small) -----------------------------
VOCAB = 32
D_MODEL = 32            # encoder_hidden == decoder_hidden
N_HEAD = 2
D_K = D_MODEL // N_HEAD
FFT_FILTER = 64
FFT_K1, FFT_K2 = 9, 1   # FFT-block conv feed-forward kernel sizes
N_ENC_LAYERS = 1
N_DEC_LAYERS = 1
VP_FILTER = 32          # variance predictor filter size
VP_K = 3
N_MEL = 16              # n_mel_channels
POSTNET_DIM = 32
POSTNET_K = 5
POSTNET_LAYERS = 5
N_BINS = 32             # pitch / energy quantization bins
MAX_POS = 64
EPS_LN = 1e-5
EPS_BN = 1e-5

MXU_DTYPE = jnp.bfloat16   # matmul-operand dtype (f32 accumulation everywhere)


# ----------------------------- in-kernel helpers -----------------------------
def _ln2d(x, g, b):
    """LayerNorm over the last dim of a 2-D [rows, C] value (g, b: [1, C])."""
    mean = jnp.mean(x, axis=-1, keepdims=True)
    var = jnp.mean(jnp.square(x - mean), axis=-1, keepdims=True)
    return (x - mean) * jax.lax.rsqrt(var + EPS_LN) * g + b


def _shift_rows(x2, s, seg_len):
    """y[t] = x2[t + s] within each seg_len-row segment, zero outside.

    Static shift implemented with static slices + zero fill (unambiguous
    semantics; equivalent to pltpu.roll + boundary mask).  When the value
    holds several batch segments stacked along rows, a per-row iota mask
    zeroes taps that would leak across segment boundaries.
    """
    R, C = x2.shape
    if s == 0:
        y = x2
    elif s > 0:
        y = jnp.concatenate([x2[s:, :], jnp.zeros((s, C), x2.dtype)], axis=0)
    else:
        y = jnp.concatenate([jnp.zeros((-s, C), x2.dtype), x2[:R + s, :]], axis=0)
    if R != seg_len and s != 0:
        tt = jax.lax.broadcasted_iota(jnp.int32, (R, 1), 0) % seg_len
        valid = jnp.logical_and(tt + s >= 0, tt + s < seg_len)
        y = jnp.where(valid, y, 0.0)
    return y


def _conv1d_same(x2, w, bias, *, K, seg_len):
    """'same' 1-D conv over time: shift-im2col + ONE matmul.

    x2:   [rows, cin] f32 (rows = n_seg * seg_len, time-major per segment)
    w:    [K*cin, cout] bf16 (rows grouped tap-major, matches [K, cin, cout])
    bias: [1, cout] f32
    """
    pad = (K - 1) // 2
    taps = [_shift_rows(x2, k - pad, seg_len) for k in range(K)]
    im2col = taps[0] if K == 1 else jnp.concatenate(taps, axis=-1)
    return jnp.dot(im2col.astype(MXU_DTYPE), w,
                   preferred_element_type=jnp.float32) + bias


def _vp_stack(x2, w1, b1, g1, bb1, w2, b2, g2, bb2, wo, bo, *, K, seg_len):
    """conv -> ReLU -> LN -> conv -> ReLU -> LN -> linear; returns [1, rows]."""
    h = jnp.maximum(_conv1d_same(x2, w1, b1, K=K, seg_len=seg_len), 0.0)
    h = _ln2d(h, g1, bb1)
    h = jnp.maximum(_conv1d_same(h, w2, b2, K=K, seg_len=seg_len), 0.0)
    h = _ln2d(h, g2, bb2)
    # lane-dense prediction head: (1, F) x (F, rows) -> (1, rows)
    return jnp.dot(wo, h.T.astype(MXU_DTYPE),
                   preferred_element_type=jnp.float32) + bo


# ----------------------------- Pallas kernels -----------------------------
def _fft_block_kernel(x_ref, pmq_ref, pmk_ref,
                      wqkv_ref, bqkv_ref, wo_ref, bo_ref,
                      ln1g_ref, ln1b_ref,
                      w1_ref, b1_ref, w2_ref, b2_ref,
                      ln2g_ref, ln2b_ref,
                      o_ref, *, T, H, DK, K1):
    """One batch element of an FFT block: MHA + res/LN + conv-FF + res/LN."""
    D = H * DK
    x2 = x_ref[...]                                                    # (T, D) f32

    qkv = jnp.dot(x2.astype(MXU_DTYPE), wqkv_ref[...],
                  preferred_element_type=jnp.float32) + bqkv_ref[...]  # (T, 3D)

    def heads(m):                                                      # (T, D) -> (H, T, DK)
        return jnp.concatenate([m[:, h * DK:(h + 1) * DK][None] for h in range(H)],
                               axis=0)

    q = heads(qkv[:, 0 * D:1 * D])
    k = heads(qkv[:, 1 * D:2 * D])
    v = heads(qkv[:, 2 * D:3 * D])

    scale = 1.0 / float(np.sqrt(DK))
    # batched over heads: QK^T, softmax, PV each run ONCE
    s = jax.lax.dot_general(q.astype(MXU_DTYPE), k.astype(MXU_DTYPE),
                            (((2,), (2,)), ((0,), (0,))),
                            preferred_element_type=jnp.float32) * scale   # (H, T, T)
    s = s + (pmk_ref[...] - 1.0) * 1e9      # key-pad bias built in-kernel from [1,1,T]
    s = s - jnp.max(s, axis=-1, keepdims=True)
    p = jnp.exp(s)
    p = p * pl.reciprocal(jnp.sum(p, axis=-1, keepdims=True))              # exact
    o = jax.lax.dot_general(p.astype(MXU_DTYPE), v.astype(MXU_DTYPE),
                            (((2,), (1,)), ((0,), (0,))),
                            preferred_element_type=jnp.float32)            # (H, T, DK)
    o2 = jnp.concatenate([o[h] for h in range(H)], axis=-1)                # (T, D)
    attn = jnp.dot(o2.astype(MXU_DTYPE), wo_ref[...],
                   preferred_element_type=jnp.float32) + bo_ref[...]

    pmq = pmq_ref[...]                                                     # (T, 1)
    y = _ln2d(attn + x2, ln1g_ref[...], ln1b_ref[...]) * pmq               # res + LN + mask

    # conv feed-forward: K1-tap 'same' conv -> ReLU -> 1x1 conv
    h1 = jnp.maximum(_conv1d_same(y, w1_ref[...], b1_ref[...], K=K1, seg_len=T), 0.0)
    h2 = jnp.dot(h1.astype(MXU_DTYPE), w2_ref[...],
                 preferred_element_type=jnp.float32) + b2_ref[...]
    o_ref[...] = _ln2d(h2 + y, ln2g_ref[...], ln2b_ref[...]) * pmq


def _duration_kernel(x_ref, pm_ref,
                     w1, b1, g1, bb1, w2, b2, g2, bb2, wo, bo,
                     o_ref, *, T, K):
    pred = _vp_stack(x_ref[...], w1[...], b1[...], g1[...], bb1[...],
                     w2[...], b2[...], g2[...], bb2[...], wo[...], bo[...],
                     K=K, seg_len=T)
    o_ref[...] = pred * pm_ref[...]                       # mask padded positions


def _pitch_energy_kernel(x_ref, prow_ref, erow_ref, pm_ref,
                         pw1, pb1, pg1, pbb1, pw2, pb2, pg2, pbb2, pwo, pbo,
                         ew1, eb1, eg1, ebb1, ew2, eb2, eg2, ebb2, ewo, ebo,
                         xo_ref, pe_ref, *, T, K):
    """pitch predictor -> +pitch emb -> energy predictor -> +energy emb, fused."""
    pm = pm_ref[...]                                       # (1, R)
    x2 = x_ref[...]                                        # (R, D)
    p_pred = _vp_stack(x2, pw1[...], pb1[...], pg1[...], pbb1[...],
                       pw2[...], pb2[...], pg2[...], pbb2[...], pwo[...], pbo[...],
                       K=K, seg_len=T) * pm
    x2 = x2 + prow_ref[...]                                # + gathered pitch emb rows
    e_pred = _vp_stack(x2, ew1[...], eb1[...], eg1[...], ebb1[...],
                       ew2[...], eb2[...], eg2[...], ebb2[...], ewo[...], ebo[...],
                       K=K, seg_len=T) * pm
    xo_ref[...] = x2 + erow_ref[...]                       # + gathered energy emb rows
    pe_ref[...] = jnp.concatenate([p_pred, e_pred], axis=0)   # (2, R) lane-dense


def _mel_postnet_kernel(x_ref, melw_ref, melb_ref,
                        pw0, pb0, pw1, pb1, pw2, pb2, pw3, pb3, pw4, pb4,
                        mel_ref, melp_ref, *, T, K):
    """mel_linear + 5-layer PostNet (BN folded) + residual, one batch element."""
    x2 = x_ref[...]                                        # (T, D)
    mel = jnp.dot(x2.astype(MXU_DTYPE), melw_ref[...],
                  preferred_element_type=jnp.float32) + melb_ref[...]
    mel_ref[...] = mel

    h = mel
    layers = [(pw0, pb0), (pw1, pb1), (pw2, pb2), (pw3, pb3), (pw4, pb4)]
    for i, (w, b) in enumerate(layers):
        h = _conv1d_same(h, w[...], b[...], K=K, seg_len=T)
        if i < len(layers) - 1:
            h = jnp.tanh(h)
    melp_ref[...] = h + mel


# ----------------------------- Pallas wrappers -----------------------------
def _full_spec(shape):
    n = len(shape)

    def idx(b):
        return (0,) * n

    return pl.BlockSpec(shape, idx)


def _cost(args, out_bytes, flops, transcendentals=0):
    in_bytes = sum(int(a.size) * int(a.dtype.itemsize) for a in args)
    return pl.CostEstimate(flops=int(flops), transcendentals=int(transcendentals),
                           bytes_accessed=int(in_bytes + out_bytes))


def fft_block(x2, pm_q, pm_k, lp, *, B, T):
    """x2: [B*T, D] slab.  Grid over B; each step processes one sequence."""
    D = D_MODEL
    R = B * T
    args = (x2, pm_q, pm_k,
            lp["wqkv"], lp["bqkv"], lp["wo"], lp["bo"],
            lp["ln1_g"], lp["ln1_b"],
            lp["ff_w1"], lp["ff_b1"], lp["ff_w2"], lp["ff_b2"],
            lp["ln2_g"], lp["ln2_b"])
    in_specs = [pl.BlockSpec((T, D), lambda b: (b, 0)),
                pl.BlockSpec((T, 1), lambda b: (b, 0)),
                pl.BlockSpec((1, 1, T), lambda b: (b, 0, 0))]
    in_specs += [_full_spec(a.shape) for a in args[3:]]
    flops = (2 * R * D * 3 * D + 4 * B * N_HEAD * T * T * D_K + 2 * R * D * D
             + 2 * R * (FFT_K1 * D) * FFT_FILTER + 2 * R * FFT_FILTER * D)
    return pl.pallas_call(
        partial(_fft_block_kernel, T=T, H=N_HEAD, DK=D_K, K1=FFT_K1),
        grid=(B,),
        out_shape=jax.ShapeDtypeStruct((R, D), jnp.float32),
        in_specs=in_specs,
        out_specs=pl.BlockSpec((T, D), lambda b: (b, 0)),
        compiler_params=pltpu.CompilerParams(
            dimension_semantics=("parallel",),
            vmem_limit_bytes=32 * 1024 * 1024),
        cost_estimate=_cost(args, R * D * 4, flops,
                            transcendentals=B * N_HEAD * T * T + 4 * R),
    )(*args)


def duration_predictor(x2, pm_row, vp, *, B, T):
    R = B * T
    CIN = x2.shape[1]
    args = (x2, pm_row,
            vp["w1"], vp["b1"], vp["ln1_g"], vp["ln1_b"],
            vp["w2"], vp["b2"], vp["ln2_g"], vp["ln2_b"],
            vp["wo"], vp["bo"])
    flops = (2 * R * (VP_K * CIN) * VP_FILTER
             + 2 * R * (VP_K * VP_FILTER) * VP_FILTER + 2 * R * VP_FILTER)
    out = pl.pallas_call(
        partial(_duration_kernel, T=T, K=VP_K),
        grid=(1,),
        out_shape=jax.ShapeDtypeStruct((1, R), jnp.float32),
        in_specs=[_full_spec(a.shape) for a in args],
        out_specs=_full_spec((1, R)),
        compiler_params=pltpu.CompilerParams(dimension_semantics=("arbitrary",)),
        cost_estimate=_cost(args, R * 4, flops),
    )(*args)
    return out.reshape(B, T)


def pitch_energy_adaptor(x2, pitch_rows, energy_rows, pm_row, pvp, evp, *, B, T):
    """Fused pitch VP -> +pitch emb -> energy VP -> +energy emb (one call)."""
    R = B * T
    D = D_MODEL

    def vp_args(vp):
        return (vp["w1"], vp["b1"], vp["ln1_g"], vp["ln1_b"],
                vp["w2"], vp["b2"], vp["ln2_g"], vp["ln2_b"],
                vp["wo"], vp["bo"])

    args = (x2, pitch_rows, energy_rows, pm_row) + vp_args(pvp) + vp_args(evp)
    flops = 2 * (2 * R * (VP_K * D) * VP_FILTER
                 + 2 * R * (VP_K * VP_FILTER) * VP_FILTER + 2 * R * VP_FILTER)
    x_out, pe = pl.pallas_call(
        partial(_pitch_energy_kernel, T=T, K=VP_K),
        grid=(1,),
        out_shape=(jax.ShapeDtypeStruct((R, D), jnp.float32),
                   jax.ShapeDtypeStruct((2, R), jnp.float32)),
        in_specs=[_full_spec(a.shape) for a in args],
        out_specs=(_full_spec((R, D)), _full_spec((2, R))),
        compiler_params=pltpu.CompilerParams(dimension_semantics=("arbitrary",)),
        cost_estimate=_cost(args, R * D * 4 + 2 * R * 4, flops),
    )(*args)
    return x_out, pe[0].reshape(B, T), pe[1].reshape(B, T)


def mel_and_postnet(dec2, mel_w, mel_b, postnet_layers, *, B, T):
    D = D_MODEL
    R = B * T
    args = [dec2, mel_w, mel_b]
    for layer in postnet_layers:
        args += [layer["w"], layer["b"]]
    flops = 2 * R * D * N_MEL + sum(2 * R * int(l["w"].shape[0]) * int(l["w"].shape[1])
                                    for l in postnet_layers)
    mel, melp = pl.pallas_call(
        partial(_mel_postnet_kernel, T=T, K=POSTNET_K),
        grid=(B,),
        out_shape=(jax.ShapeDtypeStruct((R, N_MEL), jnp.float32),
                   jax.ShapeDtypeStruct((R, N_MEL), jnp.float32)),
        in_specs=[pl.BlockSpec((T, D), lambda b: (b, 0))]
                 + [_full_spec(a.shape) for a in args[1:]],
        out_specs=(pl.BlockSpec((T, N_MEL), lambda b: (b, 0)),
                   pl.BlockSpec((T, N_MEL), lambda b: (b, 0))),
        compiler_params=pltpu.CompilerParams(
            dimension_semantics=("parallel",),
            vmem_limit_bytes=32 * 1024 * 1024),
        cost_estimate=_cost(args, 2 * R * N_MEL * 4, flops,
                            transcendentals=(POSTNET_LAYERS - 1) * R * POSTNET_DIM),
    )(*args)
    return mel, melp


# ----------------------------- model pieces (JAX glue) -----------------------------
def length_regulator(x, durations, max_length):
    # TODO(synk): data-dependent expansion (gather) has no clean Pallas equivalent;
    # done in plain JAX with a static max_length.
    B, T, D = x.shape

    def expand_one(xi, di):
        cum = jnp.cumsum(di)
        t = jnp.arange(max_length)
        idx = jnp.clip(jnp.searchsorted(cum, t, side="right"), 0, T - 1)
        valid = (t < cum[-1]).astype(jnp.float32)
        return xi[idx] * valid[:, None]

    return jax.vmap(expand_one)(x, durations)


def encoder(src_seq, src_pos, params):
    B, T = src_seq.shape
    nonpad = (src_seq != 0).astype(jnp.float32)            # [B, T]
    pm_q = nonpad.reshape(B * T, 1)
    pm_k = nonpad.reshape(B, 1, T)
    x = params["src_emb"][src_seq] + params["pos_table"][src_pos]
    x2 = x.reshape(B * T, D_MODEL)
    for lp in params["enc_layers"]:
        x2 = fft_block(x2, pm_q, pm_k, lp, B=B, T=T)
    return x2, nonpad


def decoder(x2, mel_pos, params):
    B, T = mel_pos.shape
    nonpad = (mel_pos != 0).astype(jnp.float32)
    pm_q = nonpad.reshape(B * T, 1)
    pm_k = nonpad.reshape(B, 1, T)
    x2 = x2 + params["pos_table"][mel_pos].reshape(B * T, D_MODEL)
    for lp in params["dec_layers"]:
        x2 = fft_block(x2, pm_q, pm_k, lp, B=B, T=T)
    return x2


def variance_adaptor(enc2, src_nonpad, mel_pos, p, d_target, p_target, e_target,
                     max_length):
    B, T_src = src_nonpad.shape
    d_pred = duration_predictor(enc2, src_nonpad.reshape(1, B * T_src),
                                p["duration"], B=B, T=T_src)
    x = length_regulator(enc2.reshape(B, T_src, D_MODEL), d_target, max_length)
    T_mel = max_length
    mel_nonpad = (mel_pos != 0).astype(jnp.float32)
    # bucketize + embedding gathers stay in plain JAX; gathered rows go into the kernel
    pitch_rows = p["pitch_emb"][jnp.searchsorted(p["pitch_bins"], p_target)]
    energy_rows = p["energy_emb"][jnp.searchsorted(p["energy_bins"], e_target)]
    x_out2, p_pred, e_pred = pitch_energy_adaptor(
        x.reshape(B * T_mel, D_MODEL),
        pitch_rows.reshape(B * T_mel, D_MODEL),
        energy_rows.reshape(B * T_mel, D_MODEL),
        mel_nonpad.reshape(1, B * T_mel),
        p["pitch"], p["energy"], B=B, T=T_mel)
    return x_out2, d_pred, p_pred, e_pred


@partial(jax.jit, static_argnames=("max_length",))
def fastspeech2_forward(params, src_seq, src_pos, mel_pos, d_target, p_target,
                        e_target, *, max_length):
    B = src_seq.shape[0]
    enc2, src_nonpad = encoder(src_seq, src_pos, params)
    va2, d_pred, p_pred, e_pred = variance_adaptor(
        enc2, src_nonpad, mel_pos, params["va"], d_target, p_target, e_target,
        max_length)
    dec2 = decoder(va2, mel_pos, params)
    T_mel = mel_pos.shape[1]
    mel2, melp2 = mel_and_postnet(dec2, params["mel_w"], params["mel_b"],
                                  params["postnet"], B=B, T=T_mel)
    mel = mel2.reshape(B, T_mel, N_MEL)
    mel_postnet = melp2.reshape(B, T_mel, N_MEL)
    return mel, mel_postnet, d_pred, p_pred, e_pred


# ----------------------------- parameter init & packing -----------------------------
def sinusoid_table(n_position, d_model):
    pos = np.arange(n_position)[:, None].astype(np.float64)
    i = np.arange(d_model)[None, :].astype(np.float64)
    angle = pos / np.power(10000.0, 2.0 * (i // 2) / d_model)
    table = np.zeros((n_position, d_model), np.float32)
    table[:, 0::2] = np.sin(angle[:, 0::2])
    table[:, 1::2] = np.cos(angle[:, 1::2])
    table[0] = 0.0  # padding idx
    return jnp.asarray(table)


def init_params(key):
    keys = iter(jax.random.split(key, 256))

    def W(*shape, scale=0.1):
        return jax.random.normal(next(keys), shape, jnp.float32) * scale

    zeros = lambda *s: jnp.zeros(s, jnp.float32)
    ones = lambda *s: jnp.ones(s, jnp.float32)

    def attn_params():
        return dict(wq=W(D_MODEL, D_MODEL), bq=zeros(D_MODEL),
                    wk=W(D_MODEL, D_MODEL), bk=zeros(D_MODEL),
                    wv=W(D_MODEL, D_MODEL), bv=zeros(D_MODEL),
                    wo=W(D_MODEL, D_MODEL), bo=zeros(D_MODEL),
                    ln_g=ones(D_MODEL), ln_b=zeros(D_MODEL))

    def fft_params():
        return dict(attn=attn_params(),
                    ff_w1=W(FFT_K1, D_MODEL, FFT_FILTER), ff_b1=zeros(FFT_FILTER),
                    ff_w2=W(FFT_K2, FFT_FILTER, D_MODEL), ff_b2=zeros(D_MODEL),
                    ff_ln_g=ones(D_MODEL), ff_ln_b=zeros(D_MODEL))

    def vp_params():
        return dict(w1=W(VP_K, D_MODEL, VP_FILTER), b1=zeros(VP_FILTER),
                    ln1_g=ones(VP_FILTER), ln1_b=zeros(VP_FILTER),
                    w2=W(VP_K, VP_FILTER, VP_FILTER), b2=zeros(VP_FILTER),
                    ln2_g=ones(VP_FILTER), ln2_b=zeros(VP_FILTER),
                    wo=W(VP_FILTER, 1), bo=zeros(1))

    postnet_layers = []
    cins = [N_MEL] + [POSTNET_DIM] * (POSTNET_LAYERS - 1)
    couts = [POSTNET_DIM] * (POSTNET_LAYERS - 1) + [N_MEL]
    for ci, co in zip(cins, couts):
        postnet_layers.append(dict(w=W(POSTNET_K, ci, co), b=zeros(co),
                                   bn_g=ones(co), bn_b=zeros(co)))

    return dict(
        src_emb=W(VOCAB, D_MODEL, scale=0.5),
        pos_table=sinusoid_table(MAX_POS, D_MODEL),
        enc_layers=[fft_params() for _ in range(N_ENC_LAYERS)],
        dec_layers=[fft_params() for _ in range(N_DEC_LAYERS)],
        va=dict(duration=vp_params(), pitch=vp_params(), energy=vp_params(),
                pitch_bins=jnp.linspace(0.0, 1.0, N_BINS - 1),
                pitch_emb=W(N_BINS, D_MODEL),
                energy_bins=jnp.linspace(0.0, 1.0, N_BINS - 1),
                energy_emb=W(N_BINS, D_MODEL)),
        mel_w=W(D_MODEL, N_MEL), mel_b=zeros(N_MEL),
        postnet=dict(layers=postnet_layers),
    )


def _bf(w):
    return w.astype(MXU_DTYPE)


def _pack_fft_layer(lp):
    a = lp["attn"]
    return dict(
        wqkv=_bf(jnp.concatenate([a["wq"], a["wk"], a["wv"]], axis=1)),
        bqkv=jnp.concatenate([a["bq"], a["bk"], a["bv"]]).reshape(1, 3 * D_MODEL),
        wo=_bf(a["wo"]), bo=a["bo"].reshape(1, D_MODEL),
        ln1_g=a["ln_g"].reshape(1, D_MODEL), ln1_b=a["ln_b"].reshape(1, D_MODEL),
        ff_w1=_bf(lp["ff_w1"].reshape(FFT_K1 * D_MODEL, FFT_FILTER)),
        ff_b1=lp["ff_b1"].reshape(1, FFT_FILTER),
        ff_w2=_bf(lp["ff_w2"].reshape(FFT_FILTER, D_MODEL)),
        ff_b2=lp["ff_b2"].reshape(1, D_MODEL),
        ln2_g=lp["ff_ln_g"].reshape(1, D_MODEL),
        ln2_b=lp["ff_ln_b"].reshape(1, D_MODEL),
    )


def _pack_vp(vp):
    return dict(
        w1=_bf(vp["w1"].reshape(VP_K * D_MODEL, VP_FILTER)),
        b1=vp["b1"].reshape(1, VP_FILTER),
        ln1_g=vp["ln1_g"].reshape(1, VP_FILTER), ln1_b=vp["ln1_b"].reshape(1, VP_FILTER),
        w2=_bf(vp["w2"].reshape(VP_K * VP_FILTER, VP_FILTER)),
        b2=vp["b2"].reshape(1, VP_FILTER),
        ln2_g=vp["ln2_g"].reshape(1, VP_FILTER), ln2_b=vp["ln2_b"].reshape(1, VP_FILTER),
        wo=_bf(vp["wo"].T),                 # (1, F): lane-dense prediction head
        bo=vp["bo"].reshape(1, 1),
    )


def _pack_postnet_layer(layer):
    # Fold eval-mode BatchNorm (running_mean=0, running_var=1) into the conv.
    scale = layer["bn_g"] / jnp.sqrt(1.0 + EPS_BN)
    K, Cin, Cout = layer["w"].shape
    w = _bf((layer["w"] * scale[None, None, :]).reshape(K * Cin, Cout))
    b = (layer["b"] * scale + layer["bn_b"]).reshape(1, Cout)
    return dict(w=w, b=b)


def pack_params(raw):
    return dict(
        src_emb=raw["src_emb"],
        pos_table=raw["pos_table"],
        enc_layers=[_pack_fft_layer(l) for l in raw["enc_layers"]],
        dec_layers=[_pack_fft_layer(l) for l in raw["dec_layers"]],
        va=dict(duration=_pack_vp(raw["va"]["duration"]),
                pitch=_pack_vp(raw["va"]["pitch"]),
                energy=_pack_vp(raw["va"]["energy"]),
                pitch_bins=raw["va"]["pitch_bins"], pitch_emb=raw["va"]["pitch_emb"],
                energy_bins=raw["va"]["energy_bins"], energy_emb=raw["va"]["energy_emb"]),
        mel_w=_bf(raw["mel_w"]), mel_b=raw["mel_b"].reshape(1, N_MEL),
        postnet=[_pack_postnet_layer(l) for l in raw["postnet"]["layers"]],
    )


# ----------------------------- main -----------------------------
if __name__ == "__main__":
    key = jax.random.PRNGKey(0)
    k_par, k_seq, k_p, k_e = jax.random.split(key, 4)
    params = pack_params(init_params(k_par))

    B, T_SRC, T_MEL = 2, 8, 16
    src_seq = jax.random.randint(k_seq, (B, T_SRC), 1, VOCAB, dtype=jnp.int32)
    src_pos = jnp.tile(jnp.arange(1, T_SRC + 1, dtype=jnp.int32)[None], (B, 1))
    mel_pos = jnp.tile(jnp.arange(1, T_MEL + 1, dtype=jnp.int32)[None], (B, 1))
    d_target = jnp.full((B, T_SRC), 2, jnp.int32)          # sums to T_MEL
    p_target = jax.random.uniform(k_p, (B, T_MEL), jnp.float32)
    e_target = jax.random.uniform(k_e, (B, T_MEL), jnp.float32)

    outs = fastspeech2_forward(params, src_seq, src_pos, mel_pos,
                               d_target, p_target, e_target, max_length=T_MEL)
    outs = jax.block_until_ready(outs)

    mel, mel_postnet, d_pred, p_pred, e_pred = outs
    assert mel.shape == (B, T_MEL, N_MEL)
    assert mel_postnet.shape == (B, T_MEL, N_MEL)
    assert d_pred.shape == (B, T_SRC)
    assert p_pred.shape == (B, T_MEL)
    assert e_pred.shape == (B, T_MEL)
    for o in (mel, mel_postnet, d_pred, p_pred, e_pred):
        assert bool(jnp.all(jnp.isfinite(o)))
    print("KERNEL_OK")
</pallas_src>

<mosaic_0001>
module attributes {stable_mosaic.version = 11 : i64} {
  func.func @_fft_block_kernel(%arg0: i32, %arg1: memref<8x32xf32, #tpu.memory_space<vmem>>, %arg2: memref<8x1xf32, #tpu.memory_space<vmem>>, %arg3: memref<1x1x8xf32, #tpu.memory_space<vmem>>, %arg4: memref<32x96xbf16, #tpu.memory_space<vmem>>, %arg5: memref<1x96xf32, #tpu.memory_space<vmem>>, %arg6: memref<32x32xbf16, #tpu.memory_space<vmem>>, %arg7: memref<1x32xf32, #tpu.memory_space<vmem>>, %arg8: memref<1x32xf32, #tpu.memory_space<vmem>>, %arg9: memref<1x32xf32, #tpu.memory_space<vmem>>, %arg10: memref<288x64xbf16, #tpu.memory_space<vmem>>, %arg11: memref<1x64xf32, #tpu.memory_space<vmem>>, %arg12: memref<64x32xbf16, #tpu.memory_space<vmem>>, %arg13: memref<1x32xf32, #tpu.memory_space<vmem>>, %arg14: memref<1x32xf32, #tpu.memory_space<vmem>>, %arg15: memref<1x32xf32, #tpu.memory_space<vmem>>, %arg16: memref<8x32xf32, #tpu.memory_space<vmem>>) attributes {dimension_semantics = [#tpu.dimension_semantics<parallel>], iteration_bounds = array<i64: 2>, scalar_prefetch = 0 : i64, scratch_operands = 0 : i64, tpu.core_type = #tpu.core_type<tc>, window_params = [{transform_indices = @transform_0, window_bounds = array<i64: 8, 32>}, {transform_indices = @transform_1, window_bounds = array<i64: 8, 1>}, {transform_indices = @transform_2, window_bounds = array<i64: 1, 1, 8>}, {pipeline_mode = #tpu.pipeline_mode<synchronous>, transform_indices = @transform_3, window_bounds = array<i64: 32, 96>}, {pipeline_mode = #tpu.pipeline_mode<synchronous>, transform_indices = @transform_4, window_bounds = array<i64: 1, 96>}, {pipeline_mode = #tpu.pipeline_mode<synchronous>, transform_indices = @transform_5, window_bounds = array<i64: 32, 32>}, {pipeline_mode = #tpu.pipeline_mode<synchronous>, transform_indices = @transform_6, window_bounds = array<i64: 1, 32>}, {pipeline_mode = #tpu.pipeline_mode<synchronous>, transform_indices = @transform_7, window_bounds = array<i64: 1, 32>}, {pipeline_mode = #tpu.pipeline_mode<synchronous>, transform_indices = @transform_8, window_bounds = array<i64: 1, 32>}, {pipeline_mode = #tpu.pipeline_mode<synchronous>, transform_indices = @transform_9, window_bounds = array<i64: 288, 64>}, {pipeline_mode = #tpu.pipeline_mode<synchronous>, transform_indices = @transform_10, window_bounds = array<i64: 1, 64>}, {pipeline_mode = #tpu.pipeline_mode<synchronous>, transform_indices = @transform_11, window_bounds = array<i64: 64, 32>}, {pipeline_mode = #tpu.pipeline_mode<synchronous>, transform_indices = @transform_12, window_bounds = array<i64: 1, 32>}, {pipeline_mode = #tpu.pipeline_mode<synchronous>, transform_indices = @transform_13, window_bounds = array<i64: 1, 32>}, {pipeline_mode = #tpu.pipeline_mode<synchronous>, transform_indices = @transform_14, window_bounds = array<i64: 1, 32>}, {transform_indices = @transform_15, window_bounds = array<i64: 8, 32>}]} {
    %c0 = arith.constant 0 : index
    %c0_0 = arith.constant 0 : index
    %0 = vector.load %arg1[%c0, %c0_0] : memref<8x32xf32, #tpu.memory_space<vmem>>, vector<8x32xf32>
    %1 = arith.truncf %0 : vector<8x32xf32> to vector<8x32xbf16>
    %c0_1 = arith.constant 0 : index
    %c0_2 = arith.constant 0 : index
    %2 = vector.load %arg4[%c0_1, %c0_2] : memref<32x96xbf16, #tpu.memory_space<vmem>>, vector<32x96xbf16>
    %cst = arith.constant dense<0.000000e+00> : vector<8x96xf32>
    %3 = tpu.matmul %1, %2, %cst {dimension_numbers = #tpu.dot_dimension_numbers<[1], [0], [0], [1], [0, 0, 1, 1], [], []>} : vector<8x32xbf16>, vector<32x96xbf16>, vector<8x96xf32> -> vector<8x96xf32>
    %c0_3 = arith.constant 0 : index
    %c0_4 = arith.constant 0 : index
    %4 = vector.load %arg5[%c0_3, %c0_4] : memref<1x96xf32, #tpu.memory_space<vmem>>, vector<1x96xf32>
    %5 = vector.broadcast %4 : vector<1x96xf32> to vector<8x96xf32>
    %6 = arith.addf %3, %5 : vector<8x96xf32>
    %7 = vector.extract_strided_slice %6 {offsets = [0, 0], sizes = [8, 32], strides = [1, 1]} : vector<8x96xf32> to vector<8x32xf32>
    %8 = vector.extract_strided_slice %7 {offsets = [0, 0], sizes = [8, 16], strides = [1, 1]} : vector<8x32xf32> to vector<8x16xf32>
    %9 = vector.shape_cast %8 : vector<8x16xf32> to vector<1x8x16xf32>
    %10 = vector.extract_strided_slice %7 {offsets = [0, 16], sizes = [8, 16], strides = [1, 1]} : vector<8x32xf32> to vector<8x16xf32>
    %11 = vector.shape_cast %10 : vector<8x16xf32> to vector<1x8x16xf32>
    %12 = tpu.concatenate %9, %11 in 0 : vector<1x8x16xf32>, vector<1x8x16xf32> -> vector<2x8x16xf32>
    %13 = vector.extract_strided_slice %6 {offsets = [0, 32], sizes = [8, 32], strides = [1, 1]} : vector<8x96xf32> to vector<8x32xf32>
    %14 = vector.extract_strided_slice %13 {offsets = [0, 0], sizes = [8, 16], strides = [1, 1]} : vector<8x32xf32> to vector<8x16xf32>
    %15 = vector.shape_cast %14 : vector<8x16xf32> to vector<1x8x16xf32>
    %16 = vector.extract_strided_slice %13 {offsets = [0, 16], sizes = [8, 16], strides = [1, 1]} : vector<8x32xf32> to vector<8x16xf32>
    %17 = vector.shape_cast %16 : vector<8x16xf32> to vector<1x8x16xf32>
    %18 = tpu.concatenate %15, %17 in 0 : vector<1x8x16xf32>, vector<1x8x16xf32> -> vector<2x8x16xf32>
    %19 = vector.extract_strided_slice %6 {offsets = [0, 64], sizes = [8, 32], strides = [1, 1]} : vector<8x96xf32> to vector<8x32xf32>
    %20 = vector.extract_strided_slice %19 {offsets = [0, 0], sizes = [8, 16], strides = [1, 1]} : vector<8x32xf32> to vector<8x16xf32>
    %21 = vector.shape_cast %20 : vector<8x16xf32> to vector<1x8x16xf32>
    %22 = vector.extract_strided_slice %19 {offsets = [0, 16], sizes = [8, 16], strides = [1, 1]} : vector<8x32xf32> to vector<8x16xf32>
    %23 = vector.shape_cast %22 : vector<8x16xf32> to vector<1x8x16xf32>
    %24 = tpu.concatenate %21, %23 in 0 : vector<1x8x16xf32>, vector<1x8x16xf32> -> vector<2x8x16xf32>
    %25 = arith.truncf %12 : vector<2x8x16xf32> to vector<2x8x16xbf16>
    %26 = arith.truncf %18 : vector<2x8x16xf32> to vector<2x8x16xbf16>
    %cst_5 = arith.constant dense<0.000000e+00> : vector<2x8x8xf32>
    %27 = tpu.matmul %25, %26, %cst_5 {dimension_numbers = #tpu.dot_dimension_numbers<[2], [2], [1], [1], [0, 0, 0, 1, 1, 1], [0], [0]>} : vector<2x8x16xbf16>, vector<2x8x16xbf16>, vector<2x8x8xf32> -> vector<2x8x8xf32>
    %cst_6 = arith.constant 2.500000e-01 : f32
    %28 = vector.broadcast %cst_6 : f32 to vector<2x8x8xf32>
    %29 = arith.mulf %27, %28 : vector<2x8x8xf32>
    %c0_7 = arith.constant 0 : index
    %c0_8 = arith.constant 0 : index
    %c0_9 = arith.constant 0 : index
    %30 = vector.load %arg3[%c0_7, %c0_8, %c0_9] : memref<1x1x8xf32, #tpu.memory_space<vmem>>, vector<1x1x8xf32>
    %cst_10 = arith.constant 1.000000e+00 : f32
    %31 = vector.broadcast %cst_10 : f32 to vector<1x1x8xf32>
    %32 = arith.subf %30, %31 : vector<1x1x8xf32>
    %cst_11 = arith.constant 1.000000e+09 : f32
    %33 = vector.broadcast %cst_11 : f32 to vector<1x1x8xf32>
    %34 = arith.mulf %32, %33 : vector<1x1x8xf32>
    %35 = vector.broadcast %34 : vector<1x1x8xf32> to vector<2x8x8xf32>
    %36 = arith.addf %29, %35 : vector<2x8x8xf32>
    %cst_12 = arith.constant dense<0xFF800000> : vector<2x8xf32>
    %37 = vector.multi_reduction <maximumf>, %36, %cst_12 [2] : vector<2x8x8xf32> to vector<2x8xf32>
    %38 = vector.shape_cast %37 : vector<2x8xf32> to vector<2x8x1xf32>
    %39 = vector.broadcast %38 : vector<2x8x1xf32> to vector<2x8x8xf32>
    %40 = arith.subf %36, %39 : vector<2x8x8xf32>
    %41 = math.exp %40 : vector<2x8x8xf32>
    %cst_13 = arith.constant dense<0.000000e+00> : vector<2x8xf32>
    %42 = vector.multi_reduction <add>, %41, %cst_13 [2] : vector<2x8x8xf32> to vector<2x8xf32>
    %43 = vector.shape_cast %42 : vector<2x8xf32> to vector<2x8x1xf32>
    %44 = tpu.reciprocal %43 : vector<2x8x1xf32> -> vector<2x8x1xf32>
    %45 = vector.broadcast %44 : vector<2x8x1xf32> to vector<2x8x8xf32>
    %46 = arith.mulf %41, %45 : vector<2x8x8xf32>
    %47 = arith.truncf %46 : vector<2x8x8xf32> to vector<2x8x8xbf16>
    %48 = arith.truncf %24 : vector<2x8x16xf32> to vector<2x8x16xbf16>
    %cst_14 = arith.constant dense<0.000000e+00> : vector<2x8x16xf32>
    %49 = tpu.matmul %47, %48, %cst_14 {dimension_numbers = #tpu.dot_dimension_numbers<[2], [1], [1], [2], [0, 0, 0, 1, 1, 2], [0], [0]>} : vector<2x8x8xbf16>, vector<2x8x16xbf16>, vector<2x8x16xf32> -> vector<2x8x16xf32>
    %50 = vector.extract_strided_slice %49 {offsets = [0, 0, 0], sizes = [1, 8, 16], strides = [1, 1, 1]} : vector<2x8x16xf32> to vector<1x8x16xf32>
    %51 = vector.shape_cast %50 : vector<1x8x16xf32> to vector<8x16xf32>
    %52 = vector.extract_strided_slice %49 {offsets = [1, 0, 0], sizes = [1, 8, 16], strides = [1, 1, 1]} : vector<2x8x16xf32> to vector<1x8x16xf32>
    %53 = vector.shape_cast %52 : vector<1x8x16xf32> to vector<8x16xf32>
    %54 = tpu.concatenate %51, %53 in 1 : vector<8x16xf32>, vector<8x16xf32> -> vector<8x32xf32>
    %55 = arith.truncf %54 : vector<8x32xf32> to vector<8x32xbf16>
    %c0_15 = arith.constant 0 : index
    %c0_16 = arith.constant 0 : index
    %56 = vector.load %arg6[%c0_15, %c0_16] : memref<32x32xbf16, #tpu.memory_space<vmem>>, vector<32x32xbf16>
    %cst_17 = arith.constant dense<0.000000e+00> : vector<8x32xf32>
    %57 = tpu.matmul %55, %56, %cst_17 {dimension_numbers = #tpu.dot_dimension_numbers<[1], [0], [0], [1], [0, 0, 1, 1], [], []>} : vector<8x32xbf16>, vector<32x32xbf16>, vector<8x32xf32> -> vector<8x32xf32>
    %c0_18 = arith.constant 0 : index
    %c0_19 = arith.constant 0 : index
    %58 = vector.load %arg7[%c0_18, %c0_19] : memref<1x32xf32, #tpu.memory_space<vmem>>, vector<1x32xf32>
    %59 = vector.broadcast %58 : vector<1x32xf32> to vector<8x32xf32>
    %60 = arith.addf %57, %59 : vector<8x32xf32>
    %c0_20 = arith.constant 0 : index
    %c0_21 = arith.constant 0 : index
    %61 = vector.load %arg2[%c0_20, %c0_21] : memref<8x1xf32, #tpu.memory_space<vmem>>, vector<8x1xf32>
    %62 = arith.addf %60, %0 : vector<8x32xf32>
    %c0_22 = arith.constant 0 : index
    %c0_23 = arith.constant 0 : index
    %63 = vector.load %arg8[%c0_22, %c0_23] : memref<1x32xf32, #tpu.memory_space<vmem>>, vector<1x32xf32>
    %c0_24 = arith.constant 0 : index
    %c0_25 = arith.constant 0 : index
    %64 = vector.load %arg9[%c0_24, %c0_25] : memref<1x32xf32, #tpu.memory_space<vmem>>, vector<1x32xf32>
    %cst_26 = arith.constant dense<0.000000e+00> : vector<8xf32>
    %65 = vector.multi_reduction <add>, %62, %cst_26 [1] : vector<8x32xf32> to vector<8xf32>
    %66 = vector.shape_cast %65 : vector<8xf32> to vector<8x1xf32>
    %cst_27 = arith.constant 3.200000e+01 : f32
    %67 = vector.broadcast %cst_27 : f32 to vector<8x1xf32>
    %68 = arith.divf %66, %67 : vector<8x1xf32>
    %69 = vector.broadcast %68 : vector<8x1xf32> to vector<8x32xf32>
    %70 = arith.subf %62, %69 : vector<8x32xf32>
    %71 = arith.mulf %70, %70 : vector<8x32xf32>
    %cst_28 = arith.constant dense<0.000000e+00> : vector<8xf32>
    %72 = vector.multi_reduction <add>, %71, %cst_28 [1] : vector<8x32xf32> to vector<8xf32>
    %73 = vector.shape_cast %72 : vector<8xf32> to vector<8x1xf32>
    %cst_29 = arith.constant 3.200000e+01 : f32
    %74 = vector.broadcast %cst_29 : f32 to vector<8x1xf32>
    %75 = arith.divf %73, %74 : vector<8x1xf32>
    %76 = vector.broadcast %68 : vector<8x1xf32> to vector<8x32xf32>
    %77 = arith.subf %62, %76 : vector<8x32xf32>
    %cst_30 = arith.constant 9.99999974E-6 : f32
    %78 = vector.broadcast %cst_30 : f32 to vector<8x1xf32>
    %79 = arith.addf %75, %78 : vector<8x1xf32>
    %80 = math.rsqrt %79 : vector<8x1xf32>
    %81 = vector.broadcast %80 : vector<8x1xf32> to vector<8x32xf32>
    %82 = arith.mulf %77, %81 : vector<8x32xf32>
    %83 = vector.broadcast %63 : vector<1x32xf32> to vector<8x32xf32>
    %84 = arith.mulf %82, %83 : vector<8x32xf32>
    %85 = vector.broadcast %64 : vector<1x32xf32> to vector<8x32xf32>
    %86 = arith.addf %84, %85 : vector<8x32xf32>
    %87 = vector.broadcast %61 : vector<8x1xf32> to vector<8x32xf32>
    %88 = arith.mulf %86, %87 : vector<8x32xf32>
    %c0_31 = arith.constant 0 : index
    %c0_32 = arith.constant 0 : index
    %89 = vector.load %arg10[%c0_31, %c0_32] : memref<288x64xbf16, #tpu.memory_space<vmem>>, vector<288x64xbf16>
    %c0_33 = arith.constant 0 : index
    %c0_34 = arith.constant 0 : index
    %90 = vector.load %arg11[%c0_33, %c0_34] : memref<1x64xf32, #tpu.memory_space<vmem>>, vector<1x64xf32>
    %cst_35 = arith.constant 0.000000e+00 : f32
    %91 = vector.broadcast %cst_35 : f32 to vector<4x32xf32>
    %92 = vector.extract_strided_slice %88 {offsets = [0, 0], sizes = [4, 32], strides = [1, 1]} : vector<8x32xf32> to vector<4x32xf32>
    %93 = tpu.concatenate %91, %92 in 0 : vector<4x32xf32>, vector<4x32xf32> -> vector<8x32xf32>
    %cst_36 = arith.constant 0.000000e+00 : f32
    %94 = vector.broadcast %cst_36 : f32 to vector<3x32xf32>
    %95 = vector.extract_strided_slice %88 {offsets = [0, 0], sizes = [5, 32], strides = [1, 1]} : vector<8x32xf32> to vector<5x32xf32>
    %96 = tpu.concatenate %94, %95 in 0 : vector<3x32xf32>, vector<5x32xf32> -> vector<8x32xf32>
    %cst_37 = arith.constant 0.000000e+00 : f32
    %97 = vector.broadcast %cst_37 : f32 to vector<2x32xf32>
    %98 = vector.extract_strided_slice %88 {offsets = [0, 0], sizes = [6, 32], strides = [1, 1]} : vector<8x32xf32> to vector<6x32xf32>
    %99 = tpu.concatenate %97, %98 in 0 : vector<2x32xf32>, vector<6x32xf32> -> vector<8x32xf32>
    %cst_38 = arith.constant 0.000000e+00 : f32
    %100 = vector.broadcast %cst_38 : f32 to vector<1x32xf32>
    %101 = vector.extract_strided_slice %88 {offsets = [0, 0], sizes = [7, 32], strides = [1, 1]} : vector<8x32xf32> to vector<7x32xf32>
    %102 = tpu.concatenate %100, %101 in 0 : vector<1x32xf32>, vector<7x32xf32> -> vector<8x32xf32>
    %103 = vector.extract_strided_slice %88 {offsets = [1, 0], sizes = [7, 32], strides = [1, 1]} : vector<8x32xf32> to vector<7x32xf32>
    %cst_39 = arith.constant 0.000000e+00 : f32
    %104 = vector.broadcast %cst_39 : f32 to vector<1x32xf32>
    %105 = tpu.concatenate %103, %104 in 0 : vector<7x32xf32>, vector<1x32xf32> -> vector<8x32xf32>
    %106 = vector.extract_strided_slice %88 {offsets = [2, 0], sizes = [6, 32], strides = [1, 1]} : vector<8x32xf32> to vector<6x32xf32>
    %cst_40 = arith.constant 0.000000e+00 : f32
    %107 = vector.broadcast %cst_40 : f32 to vector<2x32xf32>
    %108 = tpu.concatenate %106, %107 in 0 : vector<6x32xf32>, vector<2x32xf32> -> vector<8x32xf32>
    %109 = vector.extract_strided_slice %88 {offsets = [3, 0], sizes = [5, 32], strides = [1, 1]} : vector<8x32xf32> to vector<5x32xf32>
    %cst_41 = arith.constant 0.000000e+00 : f32
    %110 = vector.broadcast %cst_41 : f32 to vector<3x32xf32>
    %111 = tpu.concatenate %109, %110 in 0 : vector<5x32xf32>, vector<3x32xf32> -> vector<8x32xf32>
    %112 = vector.extract_strided_slice %88 {offsets = [4, 0], sizes = [4, 32], strides = [1, 1]} : vector<8x32xf32> to vector<4x32xf32>
    %cst_42 = arith.constant 0.000000e+00 : f32
    %113 = vector.broadcast %cst_42 : f32 to vector<4x32xf32>
    %114 = tpu.concatenate %112, %113 in 0 : vector<4x32xf32>, vector<4x32xf32> -> vector<8x32xf32>
    %115 = tpu.concatenate %93, %96, %99, %102, %88, %105, %108, %111, %114 in 1 : vector<8x32xf32>, vector<8x32xf32>, vector<8x32xf32>, vector<8x32xf32>, vector<8x32xf32>, vector<8x32xf32>, vector<8x32xf32>, vector<8x32xf32>, vector<8x32xf32> -> vector<8x288xf32>
    %116 = arith.truncf %115 : vector<8x288xf32> to vector<8x288xbf16>
    %cst_43 = arith.constant dense<0.000000e+00> : vector<8x64xf32>
    %117 = tpu.matmul %116, %89, %cst_43 {dimension_numbers = #tpu.dot_dimension_numbers<[1], [0], [0], [1], [0, 0, 1, 1], [], []>} : vector<8x288xbf16>, vector<288x64xbf16>, vector<8x64xf32> -> vector<8x64xf32>
    %118 = vector.broadcast %90 : vector<1x64xf32> to vector<8x64xf32>
    %119 = arith.addf %117, %118 : vector<8x64xf32>
    %cst_44 = arith.constant 0.000000e+00 : f32
    %120 = vector.broadcast %cst_44 : f32 to vector<8x64xf32>
    %121 = arith.maximumf %119, %120 : vector<8x64xf32>
    %122 = arith.truncf %121 : vector<8x64xf32> to vector<8x64xbf16>
    %c0_45 = arith.constant 0 : index
    %c0_46 = arith.constant 0 : index
    %123 = vector.load %arg12[%c0_45, %c0_46] : memref<64x32xbf16, #tpu.memory_space<vmem>>, vector<64x32xbf16>
    %cst_47 = arith.constant dense<0.000000e+00> : vector<8x32xf32>
    %124 = tpu.matmul %122, %123, %cst_47 {dimension_numbers = #tpu.dot_dimension_numbers<[1], [0], [0], [1], [0, 0, 1, 1], [], []>} : vector<8x64xbf16>, vector<64x32xbf16>, vector<8x32xf32> -> vector<8x32xf32>
    %c0_48 = arith.constant 0 : index
    %c0_49 = arith.constant 0 : index
    %125 = vector.load %arg13[%c0_48, %c0_49] : memref<1x32xf32, #tpu.memory_space<vmem>>, vector<1x32xf32>
    %126 = vector.broadcast %125 : vector<1x32xf32> to vector<8x32xf32>
    %127 = arith.addf %124, %126 : vector<8x32xf32>
    %128 = arith.addf %127, %88 : vector<8x32xf32>
    %c0_50 = arith.constant 0 : index
    %c0_51 = arith.constant 0 : index
    %129 = vector.load %arg14[%c0_50, %c0_51] : memref<1x32xf32, #tpu.memory_space<vmem>>, vector<1x32xf32>
    %c0_52 = arith.constant 0 : index
    %c0_53 = arith.constant 0 : index
    %130 = vector.load %arg15[%c0_52, %c0_53] : memref<1x32xf32, #tpu.memory_space<vmem>>, vector<1x32xf32>
    %cst_54 = arith.constant dense<0.000000e+00> : vector<8xf32>
    %131 = vector.multi_reduction <add>, %128, %cst_54 [1] : vector<8x32xf32> to vector<8xf32>
    %132 = vector.shape_cast %131 : vector<8xf32> to vector<8x1xf32>
    %cst_55 = arith.constant 3.200000e+01 : f32
    %133 = vector.broadcast %cst_55 : f32 to vector<8x1xf32>
    %134 = arith.divf %132, %133 : vector<8x1xf32>
    %135 = vector.broadcast %134 : vector<8x1xf32> to vector<8x32xf32>
    %136 = arith.subf %128, %135 : vector<8x32xf32>
    %137 = arith.mulf %136, %136 : vector<8x32xf32>
    %cst_56 = arith.constant dense<0.000000e+00> : vector<8xf32>
    %138 = vector.multi_reduction <add>, %137, %cst_56 [1] : vector<8x32xf32> to vector<8xf32>
    %139 = vector.shape_cast %138 : vector<8xf32> to vector<8x1xf32>
    %cst_57 = arith.constant 3.200000e+01 : f32
    %140 = vector.broadcast %cst_57 : f32 to vector<8x1xf32>
    %141 = arith.divf %139, %140 : vector<8x1xf32>
    %142 = vector.broadcast %134 : vector<8x1xf32> to vector<8x32xf32>
    %143 = arith.subf %128, %142 : vector<8x32xf32>
    %cst_58 = arith.constant 9.99999974E-6 : f32
    %144 = vector.broadcast %cst_58 : f32 to vector<8x1xf32>
    %145 = arith.addf %141, %144 : vector<8x1xf32>
    %146 = math.rsqrt %145 : vector<8x1xf32>
    %147 = vector.broadcast %146 : vector<8x1xf32> to vector<8x32xf32>
    %148 = arith.mulf %143, %147 : vector<8x32xf32>
    %149 = vector.broadcast %129 : vector<1x32xf32> to vector<8x32xf32>
    %150 = arith.mulf %148, %149 : vector<8x32xf32>
    %151 = vector.broadcast %130 : vector<1x32xf32> to vector<8x32xf32>
    %152 = arith.addf %150, %151 : vector<8x32xf32>
    %153 = vector.broadcast %61 : vector<8x1xf32> to vector<8x32xf32>
    %154 = arith.mulf %152, %153 : vector<8x32xf32>
    %c0_59 = arith.constant 0 : index
    %c0_60 = arith.constant 0 : index
    %155 = vector.load %arg16[%c0_59, %c0_60] : memref<8x32xf32, #tpu.memory_space<vmem>>, vector<8x32xf32>
    tpu.vector_store %arg16[%c0_59, %c0_60], %154 {strides = array<i32>} : memref<8x32xf32, #tpu.memory_space<vmem>>, vector<8x32xf32>,
    return
  }
  func.func @transform_0(%arg0: i32) -> (i32, i32) {
    %c0_i32 = arith.constant 0 : i32
    %c0_i32_0 = arith.constant 0 : i32
    return %arg0, %c0_i32 : i32, i32
  }
  func.func @transform_1(%arg0: i32) -> (i32, i32) {
    %c0_i32 = arith.constant 0 : i32
    %c0_i32_0 = arith.constant 0 : i32
    return %arg0, %c0_i32 : i32, i32
  }
  func.func @transform_2(%arg0: i32) -> (i32, i32, i32) {
    %c0_i32 = arith.constant 0 : i32
    %c0_i32_0 = arith.constant 0 : i32
    %c0_i32_1 = arith.constant 0 : i32
    return %arg0, %c0_i32, %c0_i32_0 : i32, i32, i32
  }
  func.func @transform_3(%arg0: i32) -> (i32, i32) {
    %c0_i32 = arith.constant 0 : i32
    %c0_i32_0 = arith.constant 0 : i32
    %c0_i32_1 = arith.constant 0 : i32
    return %c0_i32, %c0_i32_0 : i32, i32
  }
  func.func @transform_4(%arg0: i32) -> (i32, i32) {
    %c0_i32 = arith.constant 0 : i32
    %c0_i32_0 = arith.constant 0 : i32
    %c0_i32_1 = arith.constant 0 : i32
    return %c0_i32, %c0_i32_0 : i32, i32
  }
  func.func @transform_5(%arg0: i32) -> (i32, i32) {
    %c0_i32 = arith.constant 0 : i32
    %c0_i32_0 = arith.constant 0 : i32
    %c0_i32_1 = arith.constant 0 : i32
    return %c0_i32, %c0_i32_0 : i32, i32
  }
  func.func @transform_6(%arg0: i32) -> (i32, i32) {
    %c0_i32 = arith.constant 0 : i32
    %c0_i32_0 = arith.constant 0 : i32
    %c0_i32_1 = arith.constant 0 : i32
    return %c0_i32, %c0_i32_0 : i32, i32
  }
  func.func @transform_7(%arg0: i32) -> (i32, i32) {
    %c0_i32 = arith.constant 0 : i32
    %c0_i32_0 = arith.constant 0 : i32
    %c0_i32_1 = arith.constant 0 : i32
    return %c0_i32, %c0_i32_0 : i32, i32
  }
  func.func @transform_8(%arg0: i32) -> (i32, i32) {
    %c0_i32 = arith.constant 0 : i32
    %c0_i32_0 = arith.constant 0 : i32
    %c0_i32_1 = arith.constant 0 : i32
    return %c0_i32, %c0_i32_0 : i32, i32
  }
  func.func @transform_9(%arg0: i32) -> (i32, i32) {
    %c0_i32 = arith.constant 0 : i32
    %c0_i32_0 = arith.constant 0 : i32
    %c0_i32_1 = arith.constant 0 : i32
    return %c0_i32, %c0_i32_0 : i32, i32
  }
  func.func @transform_10(%arg0: i32) -> (i32, i32) {
    %c0_i32 = arith.constant 0 : i32
    %c0_i32_0 = arith.constant 0 : i32
    %c0_i32_1 = arith.constant 0 : i32
    return %c0_i32, %c0_i32_0 : i32, i32
  }
  func.func @transform_11(%arg0: i32) -> (i32, i32) {
    %c0_i32 = arith.constant 0 : i32
    %c0_i32_0 = arith.constant 0 : i32
    %c0_i32_1 = arith.constant 0 : i32
    return %c0_i32, %c0_i32_0 : i32, i32
  }
  func.func @transform_12(%arg0: i32) -> (i32, i32) {
    %c0_i32 = arith.constant 0 : i32
    %c0_i32_0 = arith.constant 0 : i32
    %c0_i32_1 = arith.constant 0 : i32
    return %c0_i32, %c0_i32_0 : i32, i32
  }
  func.func @transform_13(%arg0: i32) -> (i32, i32) {
    %c0_i32 = arith.constant 0 : i32
    %c0_i32_0 = arith.constant 0 : i32
    %c0_i32_1 = arith.constant 0 : i32
    return %c0_i32, %c0_i32_0 : i32, i32
  }
  func.func @transform_14(%arg0: i32) -> (i32, i32) {
    %c0_i32 = arith.constant 0 : i32
    %c0_i32_0 = arith.constant 0 : i32
    %c0_i32_1 = arith.constant 0 : i32
    return %c0_i32, %c0_i32_0 : i32, i32
  }
  func.func @transform_15(%arg0: i32) -> (i32, i32) {
    %c0_i32 = arith.constant 0 : i32
    %c0_i32_0 = arith.constant 0 : i32
    return %arg0, %c0_i32 : i32, i32
  }
}

module attributes {stable_mosaic.version = 11 : i64} {
  func.func @_pitch_energy_kernel(%arg0: i32, %arg1: memref<32x32xf32, #tpu.memory_space<vmem>>, %arg2: memref<32x32xf32, #tpu.memory_space<vmem>>, %arg3: memref<32x32xf32, #tpu.memory_space<vmem>>, %arg4: memref<1x32xf32, #tpu.memory_space<vmem>>, %arg5: memref<96x32xbf16, #tpu.memory_space<vmem>>, %arg6: memref<1x32xf32, #tpu.memory_space<vmem>>, %arg7: memref<1x32xf32, #tpu.memory_space<vmem>>, %arg8: memref<1x32xf32, #tpu.memory_space<vmem>>, %arg9: memref<96x32xbf16, #tpu.memory_space<vmem>>, %arg10: memref<1x32xf32, #tpu.memory_space<vmem>>, %arg11: memref<1x32xf32, #tpu.memory_space<vmem>>, %arg12: memref<1x32xf32, #tpu.memory_space<vmem>>, %arg13: memref<1x32xbf16, #tpu.memory_space<vmem>>, %arg14: memref<1x1xf32, #tpu.memory_space<vmem>>, %arg15: memref<96x32xbf16, #tpu.memory_space<vmem>>, %arg16: memref<1x32xf32, #tpu.memory_space<vmem>>, %arg17: memref<1x32xf32, #tpu.memory_space<vmem>>, %arg18: memref<1x32xf32, #tpu.memory_space<vmem>>, %arg19: memref<96x32xbf16, #tpu.memory_space<vmem>>, %arg20: memref<1x32xf32, #tpu.memory_space<vmem>>, %arg21: memref<1x32xf32, #tpu.memory_space<vmem>>, %arg22: memref<1x32xf32, #tpu.memory_space<vmem>>, %arg23: memref<1x32xbf16, #tpu.memory_space<vmem>>, %arg24: memref<1x1xf32, #tpu.memory_space<vmem>>, %arg25: memref<32x32xf32, #tpu.memory_space<vmem>>, %arg26: memref<2x32xf32, #tpu.memory_space<vmem>>) attributes {dimension_semantics = [#tpu.dimension_semantics<arbitrary>], iteration_bounds = array<i64: 1>, scalar_prefetch = 0 : i64, scratch_operands = 0 : i64, tpu.core_type = #tpu.core_type<tc>, window_params = [{pipeline_mode = #tpu.pipeline_mode<synchronous>, transform_indices = @transform_0, window_bounds = array<i64: 32, 32>}, {pipeline_mode = #tpu.pipeline_mode<synchronous>, transform_indices = @transform_1, window_bounds = array<i64: 32, 32>}, {pipeline_mode = #tpu.pipeline_mode<synchronous>, transform_indices = @transform_2, window_bounds = array<i64: 32, 32>}, {pipeline_mode = #tpu.pipeline_mode<synchronous>, transform_indices = @transform_3, window_bounds = array<i64: 1, 32>}, {pipeline_mode = #tpu.pipeline_mode<synchronous>, transform_indices = @transform_4, window_bounds = array<i64: 96, 32>}, {pipeline_mode = #tpu.pipeline_mode<synchronous>, transform_indices = @transform_5, window_bounds = array<i64: 1, 32>}, {pipeline_mode = #tpu.pipeline_mode<synchronous>, transform_indices = @transform_6, window_bounds = array<i64: 1, 32>}, {pipeline_mode = #tpu.pipeline_mode<synchronous>, transform_indices = @transform_7, window_bounds = array<i64: 1, 32>}, {pipeline_mode = #tpu.pipeline_mode<synchronous>, transform_indices = @transform_8, window_bounds = array<i64: 96, 32>}, {pipeline_mode = #tpu.pipeline_mode<synchronous>, transform_indices = @transform_9, window_bounds = array<i64: 1, 32>}, {pipeline_mode = #tpu.pipeline_mode<synchronous>, transform_indices = @transform_10, window_bounds = array<i64: 1, 32>}, {pipeline_mode = #tpu.pipeline_mode<synchronous>, transform_indices = @transform_11, window_bounds = array<i64: 1, 32>}, {pipeline_mode = #tpu.pipeline_mode<synchronous>, transform_indices = @transform_12, window_bounds = array<i64: 1, 32>}, {pipeline_mode = #tpu.pipeline_mode<synchronous>, transform_indices = @transform_13, window_bounds = array<i64: 1, 1>}, {pipeline_mode = #tpu.pipeline_mode<synchronous>, transform_indices = @transform_14, window_bounds = array<i64: 96, 32>}, {pipeline_mode = #tpu.pipeline_mode<synchronous>, transform_indices = @transform_15, window_bounds = array<i64: 1, 32>}, {pipeline_mode = #tpu.pipeline_mode<synchronous>, transform_indices = @transform_16, window_bounds = array<i64: 1, 32>}, {pipeline_mode = #tpu.pipeline_mode<synchronous>, transform_indices = @transform_17, window_bounds = array<i64: 1, 32>}, {pipeline_mode = #tpu.pipeline_mode<synchronous>, transform_indices = @transform_18, window_bounds = array<i64: 96, 32>}, {pipeline_mode = #tpu.pipeline_mode<synchronous>, transform_indices = @transform_19, window_bounds = array<i64: 1, 32>}, {pipeline_mode = #tpu.pipeline_mode<synchronous>, transform_indices = @transform_20, window_bounds = array<i64: 1, 32>}, {pipeline_mode = #tpu.pipeline_mode<synchronous>, transform_indices = @transform_21, window_bounds = array<i64: 1, 32>}, {pipeline_mode = #tpu.pipeline_mode<synchronous>, transform_indices = @transform_22, window_bounds = array<i64: 1, 32>}, {pipeline_mode = #tpu.pipeline_mode<synchronous>, transform_indices = @transform_23, window_bounds = array<i64: 1, 1>}, {pipeline_mode = #tpu.pipeline_mode<synchronous>, transform_indices = @transform_24, window_bounds = array<i64: 32, 32>}, {pipeline_mode = #tpu.pipeline_mode<synchronous>, transform_indices = @transform_25, window_bounds = array<i64: 2, 32>}]} {
    %c0 = arith.constant 0 : index
    %c0_0 = arith.constant 0 : index
    %0 = vector.load %arg4[%c0, %c0_0] : memref<1x32xf32, #tpu.memory_space<vmem>>, vector<1x32xf32>
    %c0_1 = arith.constant 0 : index
    %c0_2 = arith.constant 0 : index
    %1 = vector.load %arg1[%c0_1, %c0_2] : memref<32x32xf32, #tpu.memory_space<vmem>>, vector<32x32xf32>
    %c0_3 = arith.constant 0 : index
    %c0_4 = arith.constant 0 : index
    %2 = vector.load %arg5[%c0_3, %c0_4] : memref<96x32xbf16, #tpu.memory_space<vmem>>, vector<96x32xbf16>
    %c0_5 = arith.constant 0 : index
    %c0_6 = arith.constant 0 : index
    %3 = vector.load %arg6[%c0_5, %c0_6] : memref<1x32xf32, #tpu.memory_space<vmem>>, vector<1x32xf32>
    %c0_7 = arith.constant 0 : index
    %c0_8 = arith.constant 0 : index
    %4 = vector.load %arg7[%c0_7, %c0_8] : memref<1x32xf32, #tpu.memory_space<vmem>>, vector<1x32xf32>
    %c0_9 = arith.constant 0 : index
    %c0_10 = arith.constant 0 : index
    %5 = vector.load %arg8[%c0_9, %c0_10] : memref<1x32xf32, #tpu.memory_space<vmem>>, vector<1x32xf32>
    %c0_11 = arith.constant 0 : index
    %c0_12 = arith.constant 0 : index
    %6 = vector.load %arg9[%c0_11, %c0_12] : memref<96x32xbf16, #tpu.memory_space<vmem>>, vector<96x32xbf16>
    %c0_13 = arith.constant 0 : index
    %c0_14 = arith.constant 0 : index
    %7 = vector.load %arg10[%c0_13, %c0_14] : memref<1x32xf32, #tpu.memory_space<vmem>>, vector<1x32xf32>
    %c0_15 = arith.constant 0 : index
    %c0_16 = arith.constant 0 : index
    %8 = vector.load %arg11[%c0_15, %c0_16] : memref<1x32xf32, #tpu.memory_space<vmem>>, vector<1x32xf32>
    %c0_17 = arith.constant 0 : index
    %c0_18 = arith.constant 0 : index
    %9 = vector.load %arg12[%c0_17, %c0_18] : memref<1x32xf32, #tpu.memory_space<vmem>>, vector<1x32xf32>
    %c0_19 = arith.constant 0 : index
    %c0_20 = arith.constant 0 : index
    %10 = vector.load %arg13[%c0_19, %c0_20] : memref<1x32xbf16, #tpu.memory_space<vmem>>, vector<1x32xbf16>
    %c0_21 = arith.constant 0 : index
    %c0_22 = arith.constant 0 : index
    %11 = vector.load %arg14[%c0_21, %c0_22] : memref<1x1xf32, #tpu.memory_space<vmem>>, vector<1x1xf32>
    %cst = arith.constant 0.000000e+00 : f32
    %12 = vector.broadcast %cst : f32 to vector<1x32xf32>
    %13 = vector.extract_strided_slice %1 {offsets = [0, 0], sizes = [31, 32], strides = [1, 1]} : vector<32x32xf32> to vector<31x32xf32>
    %14 = tpu.concatenate %12, %13 in 0 : vector<1x32xf32>, vector<31x32xf32> -> vector<32x32xf32>
    %15 = tpu.iota {dimensions = array<i32: 0>} : vector<32x1xi32>
    %c16_i32 = arith.constant 16 : i32
    %c0_i32 = arith.constant 0 : i32
    %16 = arith.cmpi eq, %c16_i32, %c0_i32 : i32
    %c1_i32 = arith.constant 1 : i32
    %17 = arith.select %16, %c1_i32, %c16_i32 : i32
    %18 = vector.broadcast %17 : i32 to vector<32x1xi32>
    %19 = arith.remsi %15, %18 : vector<32x1xi32>
    %c0_i32_23 = arith.constant 0 : i32
    %20 = vector.broadcast %c0_i32_23 : i32 to vector<32x1xi32>
    %21 = arith.cmpi ne, %19, %20 : vector<32x1xi32>
    %c0_i32_24 = arith.constant 0 : i32
    %22 = vector.broadcast %c0_i32_24 : i32 to vector<32x1xi32>
    %23 = arith.cmpi slt, %19, %22 : vector<32x1xi32>
    %c0_i32_25 = arith.constant 0 : i32
    %24 = arith.cmpi slt, %17, %c0_i32_25 : i32
    %25 = vector.broadcast %24 : i1 to vector<32x1xi1>
    %26 = vector.broadcast %25 : vector<32x1xi1> to vector<32x1xi1>
    %27 = arith.xori %23, %26 : vector<32x1xi1>
    %28 = arith.andi %27, %21 : vector<32x1xi1>
    %29 = vector.broadcast %17 : i32 to vector<32x1xi32>
    %30 = arith.addi %19, %29 : vector<32x1xi32>
    %31 = arith.select %28, %30, %19 : vector<32x1xi1>, vector<32x1xi32>
    %c-1_i32 = arith.constant -1 : i32
    %32 = vector.broadcast %c-1_i32 : i32 to vector<32x1xi32>
    %33 = arith.addi %31, %32 : vector<32x1xi32>
    %c0_i32_26 = arith.constant 0 : i32
    %34 = vector.broadcast %c0_i32_26 : i32 to vector<32x1xi32>
    %35 = arith.cmpi sge, %33, %34 : vector<32x1xi32>
    %c-1_i32_27 = arith.constant -1 : i32
    %36 = vector.broadcast %c-1_i32_27 : i32 to vector<32x1xi32>
    %37 = arith.addi %31, %36 : vector<32x1xi32>
    %c16_i32_28 = arith.constant 16 : i32
    %38 = vector.broadcast %c16_i32_28 : i32 to vector<32x1xi32>
    %39 = arith.cmpi slt, %37, %38 : vector<32x1xi32>
    %40 = arith.andi %35, %39 : vector<32x1xi1>
    %cst_29 = arith.constant 0.000000e+00 : f32
    %41 = vector.shape_cast %40 : vector<32x1xi1> to vector<32x1xi1>
    %42 = vector.broadcast %41 : vector<32x1xi1> to vector<32x32xi1>
    %43 = vector.broadcast %cst_29 : f32 to vector<32x32xf32>
    %44 = arith.select %42, %14, %43 : vector<32x32xi1>, vector<32x32xf32>
    %45 = vector.extract_strided_slice %1 {offsets = [1, 0], sizes = [31, 32], strides = [1, 1]} : vector<32x32xf32> to vector<31x32xf32>
    %cst_30 = arith.constant 0.000000e+00 : f32
    %46 = vector.broadcast %cst_30 : f32 to vector<1x32xf32>
    %47 = tpu.concatenate %45, %46 in 0 : vector<31x32xf32>, vector<1x32xf32> -> vector<32x32xf32>
    %48 = tpu.iota {dimensions = array<i32: 0>} : vector<32x1xi32>
    %c16_i32_31 = arith.constant 16 : i32
    %c0_i32_32 = arith.constant 0 : i32
    %49 = arith.cmpi eq, %c16_i32_31, %c0_i32_32 : i32
    %c1_i32_33 = arith.constant 1 : i32
    %50 = arith.select %49, %c1_i32_33, %c16_i32_31 : i32
    %51 = vector.broadcast %50 : i32 to vector<32x1xi32>
    %52 = arith.remsi %48, %51 : vector<32x1xi32>
    %c0_i32_34 = arith.constant 0 : i32
    %53 = vector.broadcast %c0_i32_34 : i32 to vector<32x1xi32>
    %54 = arith.cmpi ne, %52, %53 : vector<32x1xi32>
    %c0_i32_35 = arith.constant 0 : i32
    %55 = vector.broadcast %c0_i32_35 : i32 to vector<32x1xi32>
    %56 = arith.cmpi slt, %52, %55 : vector<32x1xi32>
    %c0_i32_36 = arith.constant 0 : i32
    %57 = arith.cmpi slt, %50, %c0_i32_36 : i32
    %58 = vector.broadcast %57 : i1 to vector<32x1xi1>
    %59 = vector.broadcast %58 : vector<32x1xi1> to vector<32x1xi1>
    %60 = arith.xori %56, %59 : vector<32x1xi1>
    %61 = arith.andi %60, %54 : vector<32x1xi1>
    %62 = vector.broadcast %50 : i32 to vector<32x1xi32>
    %63 = arith.addi %52, %62 : vector<32x1xi32>
    %64 = arith.select %61, %63, %52 : vector<32x1xi1>, vector<32x1xi32>
    %c1_i32_37 = arith.constant 1 : i32
    %65 = vector.broadcast %c1_i32_37 : i32 to vector<32x1xi32>
    %66 = arith.addi %64, %65 : vector<32x1xi32>
    %c0_i32_38 = arith.constant 0 : i32
    %67 = vector.broadcast %c0_i32_38 : i32 to vector<32x1xi32>
    %68 = arith.cmpi sge, %66, %67 : vector<32x1xi32>
    %c1_i32_39 = arith.constant 1 : i32
    %69 = vector.broadcast %c1_i32_39 : i32 to vector<32x1xi32>
    %70 = arith.addi %64, %69 : vector<32x1xi32>
    %c16_i32_40 = arith.constant 16 : i32
    %71 = vector.broadcast %c16_i32_40 : i32 to vector<32x1xi32>
    %72 = arith.cmpi slt, %70, %71 : vector<32x1xi32>
    %73 = arith.andi %68, %72 : vector<32x1xi1>
    %cst_41 = arith.constant 0.000000e+00 : f32
    %74 = vector.shape_cast %73 : vector<32x1xi1> to vector<32x1xi1>
    %75 = vector.broadcast %74 : vector<32x1xi1> to vector<32x32xi1>
    %76 = vector.broadcast %cst_41 : f32 to vector<32x32xf32>
    %77 = arith.select %75, %47, %76 : vector<32x32xi1>, vector<32x32xf32>
    %78 = tpu.concatenate %44, %1, %77 in 1 : vector<32x32xf32>, vector<32x32xf32>, vector<32x32xf32> -> vector<32x96xf32>
    %79 = arith.truncf %78 : vector<32x96xf32> to vector<32x96xbf16>
    %cst_42 = arith.constant dense<0.000000e+00> : vector<32x32xf32>
    %80 = tpu.matmul %79, %2, %cst_42 {dimension_numbers = #tpu.dot_dimension_numbers<[1], [0], [0], [1], [0, 0, 1, 1], [], []>} : vector<32x96xbf16>, vector<96x32xbf16>, vector<32x32xf32> -> vector<32x32xf32>
    %81 = vector.broadcast %3 : vector<1x32xf32> to vector<32x32xf32>
    %82 = arith.addf %80, %81 : vector<32x32xf32>
    %cst_43 = arith.constant 0.000000e+00 : f32
    %83 = vector.broadcast %cst_43 : f32 to vector<32x32xf32>
    %84 = arith.maximumf %82, %83 : vector<32x32xf32>
    %cst_44 = arith.constant dense<0.000000e+00> : vector<32xf32>
    %85 = vector.multi_reduction <add>, %84, %cst_44 [1] : vector<32x32xf32> to vector<32xf32>
    %86 = vector.shape_cast %85 : vector<32xf32> to vector<32x1xf32>
    %cst_45 = arith.constant 3.200000e+01 : f32
    %87 = vector.broadcast %cst_45 : f32 to vector<32x1xf32>
    %88 = arith.divf %86, %87 : vector<32x1xf32>
    %89 = vector.broadcast %88 : vector<32x1xf32> to vector<32x32xf32>
    %90 = arith.subf %84, %89 : vector<32x32xf32>
    %91 = arith.mulf %90, %90 : vector<32x32xf32>
    %cst_46 = arith.constant dense<0.000000e+00> : vector<32xf32>
    %92 = vector.multi_reduction <add>, %91, %cst_46 [1] : vector<32x32xf32> to vector<32xf32>
    %93 = vector.shape_cast %92 : vector<32xf32> to vector<32x1xf32>
    %cst_47 = arith.constant 3.200000e+01 : f32
    %94 = vector.broadcast %cst_47 : f32 to vector<32x1xf32>
    %95 = arith.divf %93, %94 : vector<32x1xf32>
    %96 = vector.broadcast %88 : vector<32x1xf32> to vector<32x32xf32>
    %97 = arith.subf %84, %96 : vector<32x32xf32>
    %cst_48 = arith.constant 9.99999974E-6 : f32
    %98 = vector.broadcast %cst_48 : f32 to vector<32x1xf32>
    %99 = arith.addf %95, %98 : vector<32x1xf32>
    %100 = math.rsqrt %99 : vector<32x1xf32>
    %101 = vector.broadcast %100 : vector<32x1xf32> to vector<32x32xf32>
    %102 = arith.mulf %97, %101 : vector<32x32xf32>
    %103 = vector.broadcast %4 : vector<1x32xf32> to vector<32x32xf32>
    %104 = arith.mulf %102, %103 : vector<32x32xf32>
    %105 = vector.broadcast %5 : vector<1x32xf32> to vector<32x32xf32>
    %106 = arith.addf %104, %105 : vector<32x32xf32>
    %cst_49 = arith.constant 0.000000e+00 : f32
    %107 = vector.broadcast %cst_49 : f32 to vector<1x32xf32>
    %108 = vector.extract_strided_slice %106 {offsets = [0, 0], sizes = [31, 32], strides = [1, 1]} : vector<32x32xf32> to vector<31x32xf32>
    %109 = tpu.concatenate %107, %108 in 0 : vector<1x32xf32>, vector<31x32xf32> -> vector<32x32xf32>
    %110 = tpu.iota {dimensions = array<i32: 0>} : vector<32x1xi32>
    %c16_i32_50 = arith.constant 16 : i32
    %c0_i32_51 = arith.constant 0 : i32
    %111 = arith.cmpi eq, %c16_i32_50, %c0_i32_51 : i32
    %c1_i32_52 = arith.constant 1 : i32
    %112 = arith.select %111, %c1_i32_52, %c16_i32_50 : i32
    %113 = vector.broadcast %112 : i32 to vector<32x1xi32>
    %114 = arith.remsi %110, %113 : vector<32x1xi32>
    %c0_i32_53 = arith.constant 0 : i32
    %115 = vector.broadcast %c0_i32_53 : i32 to vector<32x1xi32>
    %116 = arith.cmpi ne, %114, %115 : vector<32x1xi32>
    %c0_i32_54 = arith.constant 0 : i32
    %117 = vector.broadcast %c0_i32_54 : i32 to vector<32x1xi32>
    %118 = arith.cmpi slt, %114, %117 : vector<32x1xi32>
    %c0_i32_55 = arith.constant 0 : i32
    %119 = arith.cmpi slt, %112, %c0_i32_55 : i32
    %120 = vector.broadcast %119 : i1 to vector<32x1xi1>
    %121 = vector.broadcast %120 : vector<32x1xi1> to vector<32x1xi1>
    %122 = arith.xori %118, %121 : vector<32x1xi1>
    %123 = arith.andi %122, %116 : vector<32x1xi1>
    %124 = vector.broadcast %112 : i32 to vector<32x1xi32>
    %125 = arith.addi %114, %124 : vector<32x1xi32>
    %126 = arith.select %123, %125, %114 : vector<32x1xi1>, vector<32x1xi32>
    %c-1_i32_56 = arith.constant -1 : i32
    %127 = vector.broadcast %c-1_i32_56 : i32 to vector<32x1xi32>
    %128 = arith.addi %126, %127 : vector<32x1xi32>
    %c0_i32_57 = arith.constant 0 : i32
    %129 = vector.broadcast %c0_i32_57 : i32 to vector<32x1xi32>
    %130 = arith.cmpi sge, %128, %129 : vector<32x1xi32>
    %c-1_i32_58 = arith.constant -1 : i32
    %131 = vector.broadcast %c-1_i32_58 : i32 to vector<32x1xi32>
    %132 = arith.addi %126, %131 : vector<32x1xi32>
    %c16_i32_59 = arith.constant 16 : i32
    %133 = vector.broadcast %c16_i32_59 : i32 to vector<32x1xi32>
    %134 = arith.cmpi slt, %132, %133 : vector<32x1xi32>
    %135 = arith.andi %130, %134 : vector<32x1xi1>
    %cst_60 = arith.constant 0.000000e+00 : f32
    %136 = vector.shape_cast %135 : vector<32x1xi1> to vector<32x1xi1>
    %137 = vector.broadcast %136 : vector<32x1xi1> to vector<32x32xi1>
    %138 = vector.broadcast %cst_60 : f32 to vector<32x32xf32>
    %139 = arith.select %137, %109, %138 : vector<32x32xi1>, vector<32x32xf32>
    %140 = vector.extract_strided_slice %106 {offsets = [1, 0], sizes = [31, 32], strides = [1, 1]} : vector<32x32xf32> to vector<31x32xf32>
    %cst_61 = arith.constant 0.000000e+00 : f32
    %141 = vector.broadcast %cst_61 : f32 to vector<1x32xf32>
    %142 = tpu.concatenate %140, %141 in 0 : vector<31x32xf32>, vector<1x32xf32> -> vector<32x32xf32>
    %143 = tpu.iota {dimensions = array<i32: 0>} : vector<32x1xi32>
    %c16_i32_62 = arith.constant 16 : i32
    %c0_i32_63 = arith.constant 0 : i32
    %144 = arith.cmpi eq, %c16_i32_62, %c0_i32_63 : i32
    %c1_i32_64 = arith.constant 1 : i32
    %145 = arith.select %144, %c1_i32_64, %c16_i32_62 : i32
    %146 = vector.broadcast %145 : i32 to vector<32x1xi32>
    %147 = arith.remsi %143, %146 : vector<32x1xi32>
    %c0_i32_65 = arith.constant 0 : i32
    %148 = vector.broadcast %c0_i32_65 : i32 to vector<32x1xi32>
    %149 = arith.cmpi ne, %147, %148 : vector<32x1xi32>
    %c0_i32_66 = arith.constant 0 : i32
    %150 = vector.broadcast %c0_i32_66 : i32 to vector<32x1xi32>
    %151 = arith.cmpi slt, %147, %150 : vector<32x1xi32>
    %c0_i32_67 = arith.constant 0 : i32
    %152 = arith.cmpi slt, %145, %c0_i32_67 : i32
    %153 = vector.broadcast %152 : i1 to vector<32x1xi1>
    %154 = vector.broadcast %153 : vector<32x1xi1> to vector<32x1xi1>
    %155 = arith.xori %151, %154 : vector<32x1xi1>
    %156 = arith.andi %155, %149 : vector<32x1xi1>
    %157 = vector.broadcast %145 : i32 to vector<32x1xi32>
    %158 = arith.addi %147, %157 : vector<32x1xi32>
    %159 = arith.select %156, %158, %147 : vector<32x1xi1>, vector<32x1xi32>
    %c1_i32_68 = arith.constant 1 : i32
    %160 = vector.broadcast %c1_i32_68 : i32 to vector<32x1xi32>
    %161 = arith.addi %159, %160 : vector<32x1xi32>
    %c0_i32_69 = arith.constant 0 : i32
    %162 = vector.broadcast %c0_i32_69 : i32 to vector<32x1xi32>
    %163 = arith.cmpi sge, %161, %162 : vector<32x1xi32>
    %c1_i32_70 = arith.constant 1 : i32
    %164 = vector.broadcast %c1_i32_70 : i32 to vector<32x1xi32>
    %165 = arith.addi %159, %164 : vector<32x1xi32>
    %c16_i32_71 = arith.constant 16 : i32
    %166 = vector.broadcast %c16_i32_71 : i32 to vector<32x1xi32>
    %167 = arith.cmpi slt, %165, %166 : vector<32x1xi32>
    %168 = arith.andi %163, %167 : vector<32x1xi1>
    %cst_72 = arith.constant 0.000000e+00 : f32
    %169 = vector.shape_cast %168 : vector<32x1xi1> to vector<32x1xi1>
    %170 = vector.broadcast %169 : vector<32x1xi1> to vector<32x32xi1>
    %171 = vector.broadcast %cst_72 : f32 to vector<32x32xf32>
    %172 = arith.select %170, %142, %171 : vector<32x32xi1>, vector<32x32xf32>
    %173 = tpu.concatenate %139, %106, %172 in 1 : vector<32x32xf32>, vector<32x32xf32>, vector<32x32xf32> -> vector<32x96xf32>
    %174 = arith.truncf %173 : vector<32x96xf32> to vector<32x96xbf16>
    %cst_73 = arith.constant dense<0.000000e+00> : vector<32x32xf32>
    %175 = tpu.matmul %174, %6, %cst_73 {dimension_numbers = #tpu.dot_dimension_numbers<[1], [0], [0], [1], [0, 0, 1, 1], [], []>} : vector<32x96xbf16>, vector<96x32xbf16>, vector<32x32xf32> -> vector<32x32xf32>
    %176 = vector.broadcast %7 : vector<1x32xf32> to vector<32x32xf32>
    %177 = arith.addf %175, %176 : vector<32x32xf32>
    %cst_74 = arith.constant 0.000000e+00 : f32
    %178 = vector.broadcast %cst_74 : f32 to vector<32x32xf32>
    %179 = arith.maximumf %177, %178 : vector<32x32xf32>
    %cst_75 = arith.constant dense<0.000000e+00> : vector<32xf32>
    %180 = vector.multi_reduction <add>, %179, %cst_75 [1] : vector<32x32xf32> to vector<32xf32>
    %181 = vector.shape_cast %180 : vector<32xf32> to vector<32x1xf32>
    %cst_76 = arith.constant 3.200000e+01 : f32
    %182 = vector.broadcast %cst_76 : f32 to vector<32x1xf32>
    %183 = arith.divf %181, %182 : vector<32x1xf32>
    %184 = vector.broadcast %183 : vector<32x1xf32> to vector<32x32xf32>
    %185 = arith.subf %179, %184 : vector<32x32xf32>
    %186 = arith.mulf %185, %185 : vector<32x32xf32>
    %cst_77 = arith.constant dense<0.000000e+00> : vector<32xf32>
    %187 = vector.multi_reduction <add>, %186, %cst_77 [1] : vector<32x32xf32> to vector<32xf32>
    %188 = vector.shape_cast %187 : vector<32xf32> to vector<32x1xf32>
    %cst_78 = arith.constant 3.200000e+01 : f32
    %189 = vector.broadcast %cst_78 : f32 to vector<32x1xf32>
    %190 = arith.divf %188, %189 : vector<32x1xf32>
    %191 = vector.broadcast %183 : vector<32x1xf32> to vector<32x32xf32>
    %192 = arith.subf %179, %191 : vector<32x32xf32>
    %cst_79 = arith.constant 9.99999974E-6 : f32
    %193 = vector.broadcast %cst_79 : f32 to vector<32x1xf32>
    %194 = arith.addf %190, %193 : vector<32x1xf32>
    %195 = math.rsqrt %194 : vector<32x1xf32>
    %196 = vector.broadcast %195 : vector<32x1xf32> to vector<32x32xf32>
    %197 = arith.mulf %192, %196 : vector<32x32xf32>
    %198 = vector.broadcast %8 : vector<1x32xf32> to vector<32x32xf32>
    %199 = arith.mulf %197, %198 : vector<32x32xf32>
    %200 = vector.broadcast %9 : vector<1x32xf32> to vector<32x32xf32>
    %201 = arith.addf %199, %200 : vector<32x32xf32>
    %202 = tpu.transpose %201, [1, 0] : vector<32x32xf32> -> vector<32x32xf32>
    %203 = arith.truncf %202 : vector<32x32xf32> to vector<32x32xbf16>
    %cst_80 = arith.constant dense<0.000000e+00> : vector<1x32xf32>
    %204 = tpu.matmul %10, %203, %cst_80 {dimension_numbers = #tpu.dot_dimension_numbers<[1], [0], [0], [1], [0, 0, 1, 1], [], []>} : vector<1x32xbf16>, vector<32x32xbf16>, vector<1x32xf32> -> vector<1x32xf32>
    %205 = vector.broadcast %11 : vector<1x1xf32> to vector<1x32xf32>
    %206 = arith.addf %204, %205 : vector<1x32xf32>
    %207 = arith.mulf %206, %0 : vector<1x32xf32>
    %c0_81 = arith.constant 0 : index
    %c0_82 = arith.constant 0 : index
    %208 = vector.load %arg2[%c0_81, %c0_82] : memref<32x32xf32, #tpu.memory_space<vmem>>, vector<32x32xf32>
    %209 = arith.addf %1, %208 : vector<32x32xf32>
    %c0_83 = arith.constant 0 : index
    %c0_84 = arith.constant 0 : index
    %210 = vector.load %arg15[%c0_83, %c0_84] : memref<96x32xbf16, #tpu.memory_space<vmem>>, vector<96x32xbf16>
    %c0_85 = arith.constant 0 : index
    %c0_86 = arith.constant 0 : index
    %211 = vector.load %arg16[%c0_85, %c0_86] : memref<1x32xf32, #tpu.memory_space<vmem>>, vector<1x32xf32>
    %c0_87 = arith.constant 0 : index
    %c0_88 = arith.constant 0 : index
    %212 = vector.load %arg17[%c0_87, %c0_88] : memref<1x32xf32, #tpu.memory_space<vmem>>, vector<1x32xf32>
    %c0_89 = arith.constant 0 : index
    %c0_90 = arith.constant 0 : index
    %213 = vector.load %arg18[%c0_89, %c0_90] : memref<1x32xf32, #tpu.memory_space<vmem>>, vector<1x32xf32>
    %c0_91 = arith.constant 0 : index
    %c0_92 = arith.constant 0 : index
    %214 = vector.load %arg19[%c0_91, %c0_92] : memref<96x32xbf16, #tpu.memory_space<vmem>>, vector<96x32xbf16>
    %c0_93 = arith.constant 0 : index
    %c0_94 = arith.constant 0 : index
    %215 = vector.load %arg20[%c0_93, %c0_94] : memref<1x32xf32, #tpu.memory_space<vmem>>, vector<1x32xf32>
    %c0_95 = arith.constant 0 : index
    %c0_96 = arith.constant 0 : index
    %216 = vector.load %arg21[%c0_95, %c0_96] : memref<1x32xf32, #tpu.memory_space<vmem>>, vector<1x32xf32>
    %c0_97 = arith.constant 0 : index
    %c0_98 = arith.constant 0 : index
    %217 = vector.load %arg22[%c0_97, %c0_98] : memref<1x32xf32, #tpu.memory_space<vmem>>, vector<1x32xf32>
    %c0_99 = arith.constant 0 : index
    %c0_100 = arith.constant 0 : index
    %218 = vector.load %arg23[%c0_99, %c0_100] : memref<1x32xbf16, #tpu.memory_space<vmem>>, vector<1x32xbf16>
    %c0_101 = arith.constant 0 : index
    %c0_102 = arith.constant 0 : index
    %219 = vector.load %arg24[%c0_101, %c0_102] : memref<1x1xf32, #tpu.memory_space<vmem>>, vector<1x1xf32>
    %cst_103 = arith.constant 0.000000e+00 : f32
    %220 = vector.broadcast %cst_103 : f32 to vector<1x32xf32>
    %221 = vector.extract_strided_slice %209 {offsets = [0, 0], sizes = [31, 32], strides = [1, 1]} : vector<32x32xf32> to vector<31x32xf32>
    %222 = tpu.concatenate %220, %221 in 0 : vector<1x32xf32>, vector<31x32xf32> -> vector<32x32xf32>
    %223 = tpu.iota {dimensions = array<i32: 0>} : vector<32x1xi32>
    %c16_i32_104 = arith.constant 16 : i32
    %c0_i32_105 = arith.constant 0 : i32
    %224 = arith.cmpi eq, %c16_i32_104, %c0_i32_105 : i32
    %c1_i32_106 = arith.constant 1 : i32
    %225 = arith.select %224, %c1_i32_106, %c16_i32_104 : i32
    %226 = vector.broadcast %225 : i32 to vector<32x1xi32>
    %227 = arith.remsi %223, %226 : vector<32x1xi32>
    %c0_i32_107 = arith.constant 0 : i32
    %228 = vector.broadcast %c0_i32_107 : i32 to vector<32x1xi32>
    %229 = arith.cmpi ne, %227, %228 : vector<32x1xi32>
    %c0_i32_108 = arith.constant 0 : i32
    %230 = vector.broadcast %c0_i32_108 : i32 to vector<32x1xi32>
    %231 = arith.cmpi slt, %227, %230 : vector<32x1xi32>
    %c0_i32_109 = arith.constant 0 : i32
    %232 = arith.cmpi slt, %225, %c0_i32_109 : i32
    %233 = vector.broadcast %232 : i1 to vector<32x1xi1>
    %234 = vector.broadcast %233 : vector<32x1xi1> to vector<32x1xi1>
    %235 = arith.xori %231, %234 : vector<32x1xi1>
    %236 = arith.andi %235, %229 : vector<32x1xi1>
    %237 = vector.broadcast %225 : i32 to vector<32x1xi32>
    %238 = arith.addi %227, %237 : vector<32x1xi32>
    %239 = arith.select %236, %238, %227 : vector<32x1xi1>, vector<32x1xi32>
    %c-1_i32_110 = arith.constant -1 : i32
    %240 = vector.broadcast %c-1_i32_110 : i32 to vector<32x1xi32>
    %241 = arith.addi %239, %240 : vector<32x1xi32>
    %c0_i32_111 = arith.constant 0 : i32
    %242 = vector.broadcast %c0_i32_111 : i32 to vector<32x1xi32>
    %243 = arith.cmpi sge, %241, %242 : vector<32x1xi32>
    %c-1_i32_112 = arith.constant -1 : i32
    %244 = vector.broadcast %c-1_i32_112 : i32 to vector<32x1xi32>
    %245 = arith.addi %239, %244 : vector<32x1xi32>
    %c16_i32_113 = arith.constant 16 : i32
    %246 = vector.broadcast %c16_i32_113 : i32 to vector<32x1xi32>
    %247 = arith.cmpi slt, %245, %246 : vector<32x1xi32>
    %248 = arith.andi %243, %247 : vector<32x1xi1>
    %cst_114 = arith.constant 0.000000e+00 : f32
    %249 = vector.shape_cast %248 : vector<32x1xi1> to vector<32x1xi1>
    %250 = vector.broadcast %249 : vector<32x1xi1> to vector<32x32xi1>
    %251 = vector.broadcast %cst_114 : f32 to vector<32x32xf32>
    %252 = arith.select %250, %222, %251 : vector<32x32xi1>, vector<32x32xf32>
    %253 = vector.extract_strided_slice %209 {offsets = [1, 0], sizes = [31, 32], strides = [1, 1]} : vector<32x32xf32> to vector<31x32xf32>
    %cst_115 = arith.constant 0.000000e+00 : f32
    %254 = vector.broadcast %cst_115 : f32 to vector<1x32xf32>
    %255 = tpu.concatenate %253, %254 in 0 : vector<31x32xf32>, vector<1x32xf32> -> vector<32x32xf32>
    %256 = tpu.iota {dimensions = array<i32: 0>} : vector<32x1xi32>
    %c16_i32_116 = arith.constant 16 : i32
    %c0_i32_117 = arith.constant 0 : i32
    %257 = arith.cmpi eq, %c16_i32_116, %c0_i32_117 : i32
    %c1_i32_118 = arith.constant 1 : i32
    %258 = arith.select %257, %c1_i32_118, %c16_i32_116 : i32
    %259 = vector.broadcast %258 : i32 to vector<32x1xi32>
    %260 = arith.remsi %256, %259 : vector<32x1xi32>
    %c0_i32_119 = arith.constant 0 : i32
    %261 = vector.broadcast %c0_i32_119 : i32 to vector<32x1xi32>
    %262 = arith.cmpi ne, %260, %261 : vector<32x1xi32>
    %c0_i32_120 = arith.constant 0 : i32
    %263 = vector.broadcast %c0_i32_120 : i32 to vector<32x1xi32>
    %264 = arith.cmpi slt, %260, %263 : vector<32x1xi32>
    %c0_i32_121 = arith.constant 0 : i32
    %265 = arith.cmpi slt, %258, %c0_i32_121 : i32
    %266 = vector.broadcast %265 : i1 to vector<32x1xi1>
    %267 = vector.broadcast %266 : vector<32x1xi1> to vector<32x1xi1>
    %268 = arith.xori %264, %267 : vector<32x1xi1>
    %269 = arith.andi %268, %262 : vector<32x1xi1>
    %270 = vector.broadcast %258 : i32 to vector<32x1xi32>
    %271 = arith.addi %260, %270 : vector<32x1xi32>
    %272 = arith.select %269, %271, %260 : vector<32x1xi1>, vector<32x1xi32>
    %c1_i32_122 = arith.constant 1 : i32
    %273 = vector.broadcast %c1_i32_122 : i32 to vector<32x1xi32>
    %274 = arith.addi %272, %273 : vector<32x1xi32>
    %c0_i32_123 = arith.constant 0 : i32
    %275 = vector.broadcast %c0_i32_123 : i32 to vector<32x1xi32>
    %276 = arith.cmpi sge, %274, %275 : vector<32x1xi32>
    %c1_i32_124 = arith.constant 1 : i32
    %277 = vector.broadcast %c1_i32_124 : i32 to vector<32x1xi32>
    %278 = arith.addi %272, %277 : vector<32x1xi32>
    %c16_i32_125 = arith.constant 16 : i32
    %279 = vector.broadcast %c16_i32_125 : i32 to vector<32x1xi32>
    %280 = arith.cmpi slt, %278, %279 : vector<32x1xi32>
    %281 = arith.andi %276, %280 : vector<32x1xi1>
    %cst_126 = arith.constant 0.000000e+00 : f32
    %282 = vector.shape_cast %281 : vector<32x1xi1> to vector<32x1xi1>
    %283 = vector.broadcast %282 : vector<32x1xi1> to vector<32x32xi1>
    %284 = vector.broadcast %cst_126 : f32 to vector<32x32xf32>
    %285 = arith.select %283, %255, %284 : vector<32x32xi1>, vector<32x32xf32>
    %286 = tpu.concatenate %252, %209, %285 in 1 : vector<32x32xf32>, vector<32x32xf32>, vector<32x32xf32> -> vector<32x96xf32>
    %287 = arith.truncf %286 : vector<32x96xf32> to vector<32x96xbf16>
    %cst_127 = arith.constant dense<0.000000e+00> : vector<32x32xf32>
    %288 = tpu.matmul %287, %210, %cst_127 {dimension_numbers = #tpu.dot_dimension_numbers<[1], [0], [0], [1], [0, 0, 1, 1], [], []>} : vector<32x96xbf16>, vector<96x32xbf16>, vector<32x32xf32> -> vector<32x32xf32>
    %289 = vector.broadcast %211 : vector<1x32xf32> to vector<32x32xf32>
    %290 = arith.addf %288, %289 : vector<32x32xf32>
    %cst_128 = arith.constant 0.000000e+00 : f32
    %291 = vector.broadcast %cst_128 : f32 to vector<32x32xf32>
    %292 = arith.maximumf %290, %291 : vector<32x32xf32>
    %cst_129 = arith.constant dense<0.000000e+00> : vector<32xf32>
    %293 = vector.multi_reduction <add>, %292, %cst_129 [1] : vector<32x32xf32> to vector<32xf32>
    %294 = vector.shape_cast %293 : vector<32xf32> to vector<32x1xf32>
    %cst_130 = arith.constant 3.200000e+01 : f32
    %295 = vector.broadcast %cst_130 : f32 to vector<32x1xf32>
    %296 = arith.divf %294, %295 : vector<32x1xf32>
    %297 = vector.broadcast %296 : vector<32x1xf32> to vector<32x32xf32>
    %298 = arith.subf %292, %297 : vector<32x32xf32>
    %299 = arith.mulf %298, %298 : vector<32x32xf32>
    %cst_131 = arith.constant dense<0.000000e+00> : vector<32xf32>
    %300 = vector.multi_reduction <add>, %299, %cst_131 [1] : vector<32x32xf32> to vector<32xf32>
    %301 = vector.shape_cast %300 : vector<32xf32> to vector<32x1xf32>
    %cst_132 = arith.constant 3.200000e+01 : f32
    %302 = vector.broadcast %cst_132 : f32 to vector<32x1xf32>
    %303 = arith.divf %301, %302 : vector<32x1xf32>
    %304 = vector.broadcast %296 : vector<32x1xf32> to vector<32x32xf32>
    %305 = arith.subf %292, %304 : vector<32x32xf32>
    %cst_133 = arith.constant 9.99999974E-6 : f32
    %306 = vector.broadcast %cst_133 : f32 to vector<32x1xf32>
    %307 = arith.addf %303, %306 : vector<32x1xf32>
    %308 = math.rsqrt %307 : vector<32x1xf32>
    %309 = vector.broadcast %308 : vector<32x1xf32> to vector<32x32xf32>
    %310 = arith.mulf %305, %309 : vector<32x32xf32>
    %311 = vector.broadcast %212 : vector<1x32xf32> to vector<32x32xf32>
    %312 = arith.mulf %310, %311 : vector<32x32xf32>
    %313 = vector.broadcast %213 : vector<1x32xf32> to vector<32x32xf32>
    %314 = arith.addf %312, %313 : vector<32x32xf32>
    %cst_134 = arith.constant 0.000000e+00 : f32
    %315 = vector.broadcast %cst_134 : f32 to vector<1x32xf32>
    %316 = vector.extract_strided_slice %314 {offsets = [0, 0], sizes = [31, 32], strides = [1, 1]} : vector<32x32xf32> to vector<31x32xf32>
    %317 = tpu.concatenate %315, %316 in 0 : vector<1x32xf32>, vector<31x32xf32> -> vector<32x32xf32>
    %318 = tpu.iota {dimensions = array<i32: 0>} : vector<32x1xi32>
    %c16_i32_135 = arith.constant 16 : i32
    %c0_i32_136 = arith.constant 0 : i32
    %319 = arith.cmpi eq, %c16_i32_135, %c0_i32_136 : i32
    %c1_i32_137 = arith.constant 1 : i32
    %320 = arith.select %319, %c1_i32_137, %c16_i32_135 : i32
    %321 = vector.broadcast %320 : i32 to vector<32x1xi32>
    %322 = arith.remsi %318, %321 : vector<32x1xi32>
    %c0_i32_138 = arith.constant 0 : i32
    %323 = vector.broadcast %c0_i32_138 : i32 to vector<32x1xi32>
    %324 = arith.cmpi ne, %322, %323 : vector<32x1xi32>
    %c0_i32_139 = arith.constant 0 : i32
    %325 = vector.broadcast %c0_i32_139 : i32 to vector<32x1xi32>
    %326 = arith.cmpi slt, %322, %325 : vector<32x1xi32>
    %c0_i32_140 = arith.constant 0 : i32
    %327 = arith.cmpi slt, %320, %c0_i32_140 : i32
    %328 = vector.broadcast %327 : i1 to vector<32x1xi1>
    %329 = vector.broadcast %328 : vector<32x1xi1> to vector<32x1xi1>
    %330 = arith.xori %326, %329 : vector<32x1xi1>
    %331 = arith.andi %330, %324 : vector<32x1xi1>
    %332 = vector.broadcast %320 : i32 to vector<32x1xi32>
    %333 = arith.addi %322, %332 : vector<32x1xi32>
    %334 = arith.select %331, %333, %322 : vector<32x1xi1>, vector<32x1xi32>
    %c-1_i32_141 = arith.constant -1 : i32
    %335 = vector.broadcast %c-1_i32_141 : i32 to vector<32x1xi32>
    %336 = arith.addi %334, %335 : vector<32x1xi32>
    %c0_i32_142 = arith.constant 0 : i32
    %337 = vector.broadcast %c0_i32_142 : i32 to vector<32x1xi32>
    %338 = arith.cmpi sge, %336, %337 : vector<32x1xi32>
    %c-1_i32_143 = arith.constant -1 : i32
    %339 = vector.broadcast %c-1_i32_143 : i32 to vector<32x1xi32>
    %340 = arith.addi %334, %339 : vector<32x1xi32>
    %c16_i32_144 = arith.constant 16 : i32
    %341 = vector.broadcast %c16_i32_144 : i32 to vector<32x1xi32>
    %342 = arith.cmpi slt, %340, %341 : vector<32x1xi32>
    %343 = arith.andi %338, %342 : vector<32x1xi1>
    %cst_145 = arith.constant 0.000000e+00 : f32
    %344 = vector.shape_cast %343 : vector<32x1xi1> to vector<32x1xi1>
    %345 = vector.broadcast %344 : vector<32x1xi1> to vector<32x32xi1>
    %346 = vector.broadcast %cst_145 : f32 to vector<32x32xf32>
    %347 = arith.select %345, %317, %346 : vector<32x32xi1>, vector<32x32xf32>
    %348 = vector.extract_strided_slice %314 {offsets = [1, 0], sizes = [31, 32], strides = [1, 1]} : vector<32x32xf32> to vector<31x32xf32>
    %cst_146 = arith.constant 0.000000e+00 : f32
    %349 = vector.broadcast %cst_146 : f32 to vector<1x32xf32>
    %350 = tpu.concatenate %348, %349 in 0 : vector<31x32xf32>, vector<1x32xf32> -> vector<32x32xf32>
    %351 = tpu.iota {dimensions = array<i32: 0>} : vector<32x1xi32>
    %c16_i32_147 = arith.constant 16 : i32
    %c0_i32_148 = arith.constant 0 : i32
    %352 = arith.cmpi eq, %c16_i32_147, %c0_i32_148 : i32
    %c1_i32_149 = arith.constant 1 : i32
    %353 = arith.select %352, %c1_i32_149, %c16_i32_147 : i32
    %354 = vector.broadcast %353 : i32 to vector<32x1xi32>
    %355 = arith.remsi %351, %354 : vector<32x1xi32>
    %c0_i32_150 = arith.constant 0 : i32
    %356 = vector.broadcast %c0_i32_150 : i32 to vector<32x1xi32>
    %357 = arith.cmpi ne, %355, %356 : vector<32x1xi32>
    %c0_i32_151 = arith.constant 0 : i32
    %358 = vector.broadcast %c0_i32_151 : i32 to vector<32x1xi32>
    %359 = arith.cmpi slt, %355, %358 : vector<32x1xi32>
    %c0_i32_152 = arith.constant 0 : i32
    %360 = arith.cmpi slt, %353, %c0_i32_152 : i32
    %361 = vector.broadcast %360 : i1 to vector<32x1xi1>
    %362 = vector.broadcast %361 : vector<32x1xi1> to vector<32x1xi1>
    %363 = arith.xori %359, %362 : vector<32x1xi1>
    %364 = arith.andi %363, %357 : vector<32x1xi1>
    %365 = vector.broadcast %353 : i32 to vector<32x1xi32>
    %366 = arith.addi %355, %365 : vector<32x1xi32>
    %367 = arith.select %364, %366, %355 : vector<32x1xi1>, vector<32x1xi32>
    %c1_i32_153 = arith.constant 1 : i32
    %368 = vector.broadcast %c1_i32_153 : i32 to vector<32x1xi32>
    %369 = arith.addi %367, %368 : vector<32x1xi32>
    %c0_i32_154 = arith.constant 0 : i32
    %370 = vector.broadcast %c0_i32_154 : i32 to vector<32x1xi32>
    %371 = arith.cmpi sge, %369, %370 : vector<32x1xi32>
    %c1_i32_155 = arith.constant 1 : i32
    %372 = vector.broadcast %c1_i32_155 : i32 to vector<32x1xi32>
    %373 = arith.addi %367, %372 : vector<32x1xi32>
    %c16_i32_156 = arith.constant 16 : i32
    %374 = vector.broadcast %c16_i32_156 : i32 to vector<32x1xi32>
    %375 = arith.cmpi slt, %373, %374 : vector<32x1xi32>
    %376 = arith.andi %371, %375 : vector<32x1xi1>
    %cst_157 = arith.constant 0.000000e+00 : f32
    %377 = vector.shape_cast %376 : vector<32x1xi1> to vector<32x1xi1>
    %378 = vector.broadcast %377 : vector<32x1xi1> to vector<32x32xi1>
    %379 = vector.broadcast %cst_157 : f32 to vector<32x32xf32>
    %380 = arith.select %378, %350, %379 : vector<32x32xi1>, vector<32x32xf32>
    %381 = tpu.concatenate %347, %314, %380 in 1 : vector<32x32xf32>, vector<32x32xf32>, vector<32x32xf32> -> vector<32x96xf32>
    %382 = arith.truncf %381 : vector<32x96xf32> to vector<32x96xbf16>
    %cst_158 = arith.constant dense<0.000000e+00> : vector<32x32xf32>
    %383 = tpu.matmul %382, %214, %cst_158 {dimension_numbers = #tpu.dot_dimension_numbers<[1], [0], [0], [1], [0, 0, 1, 1], [], []>} : vector<32x96xbf16>, vector<96x32xbf16>, vector<32x32xf32> -> vector<32x32xf32>
    %384 = vector.broadcast %215 : vector<1x32xf32> to vector<32x32xf32>
    %385 = arith.addf %383, %384 : vector<32x32xf32>
    %cst_159 = arith.constant 0.000000e+00 : f32
    %386 = vector.broadcast %cst_159 : f32 to vector<32x32xf32>
    %387 = arith.maximumf %385, %386 : vector<32x32xf32>
    %cst_160 = arith.constant dense<0.000000e+00> : vector<32xf32>
    %388 = vector.multi_reduction <add>, %387, %cst_160 [1] : vector<32x32xf32> to vector<32xf32>
    %389 = vector.shape_cast %388 : vector<32xf32> to vector<32x1xf32>
    %cst_161 = arith.constant 3.200000e+01 : f32
    %390 = vector.broadcast %cst_161 : f32 to vector<32x1xf32>
    %391 = arith.divf %389, %390 : vector<32x1xf32>
    %392 = vector.broadcast %391 : vector<32x1xf32> to vector<32x32xf32>
    %393 = arith.subf %387, %392 : vector<32x32xf32>
    %394 = arith.mulf %393, %393 : vector<32x32xf32>
    %cst_162 = arith.constant dense<0.000000e+00> : vector<32xf32>
    %395 = vector.multi_reduction <add>, %394, %cst_162 [1] : vector<32x32xf32> to vector<32xf32>
    %396 = vector.shape_cast %395 : vector<32xf32> to vector<32x1xf32>
    %cst_163 = arith.constant 3.200000e+01 : f32
    %397 = vector.broadcast %cst_163 : f32 to vector<32x1xf32>
    %398 = arith.divf %396, %397 : vector<32x1xf32>
    %399 = vector.broadcast %391 : vector<32x1xf32> to vector<32x32xf32>
    %400 = arith.subf %387, %399 : vector<32x32xf32>
    %cst_164 = arith.constant 9.99999974E-6 : f32
    %401 = vector.broadcast %cst_164 : f32 to vector<32x1xf32>
    %402 = arith.addf %398, %401 : vector<32x1xf32>
    %403 = math.rsqrt %402 : vector<32x1xf32>
    %404 = vector.broadcast %403 : vector<32x1xf32> to vector<32x32xf32>
    %405 = arith.mulf %400, %404 : vector<32x32xf32>
    %406 = vector.broadcast %216 : vector<1x32xf32> to vector<32x32xf32>
    %407 = arith.mulf %405, %406 : vector<32x32xf32>
    %408 = vector.broadcast %217 : vector<1x32xf32> to vector<32x32xf32>
    %409 = arith.addf %407, %408 : vector<32x32xf32>
    %410 = tpu.transpose %409, [1, 0] : vector<32x32xf32> -> vector<32x32xf32>
    %411 = arith.truncf %410 : vector<32x32xf32> to vector<32x32xbf16>
    %cst_165 = arith.constant dense<0.000000e+00> : vector<1x32xf32>
    %412 = tpu.matmul %218, %411, %cst_165 {dimension_numbers = #tpu.dot_dimension_numbers<[1], [0], [0], [1], [0, 0, 1, 1], [], []>} : vector<1x32xbf16>, vector<32x32xbf16>, vector<1x32xf32> -> vector<1x32xf32>
    %413 = vector.broadcast %219 : vector<1x1xf32> to vector<1x32xf32>
    %414 = arith.addf %412, %413 : vector<1x32xf32>
    %415 = arith.mulf %414, %0 : vector<1x32xf32>
    %c0_166 = arith.constant 0 : index
    %c0_167 = arith.constant 0 : index
    %416 = vector.load %arg3[%c0_166, %c0_167] : memref<32x32xf32, #tpu.memory_space<vmem>>, vector<32x32xf32>
    %417 = arith.addf %209, %416 : vector<32x32xf32>
    %c0_168 = arith.constant 0 : index
    %c0_169 = arith.constant 0 : index
    %418 = vector.load %arg25[%c0_168, %c0_169] : memref<32x32xf32, #tpu.memory_space<vmem>>, vector<32x32xf32>
    tpu.vector_store %arg25[%c0_168, %c0_169], %417 {strides = array<i32>} : memref<32x32xf32, #tpu.memory_space<vmem>>, vector<32x32xf32>,
    %419 = tpu.concatenate %207, %415 in 0 : vector<1x32xf32>, vector<1x32xf32> -> vector<2x32xf32>
    %c0_170 = arith.constant 0 : index
    %c0_171 = arith.constant 0 : index
    %420 = vector.load %arg26[%c0_170, %c0_171] : memref<2x32xf32, #tpu.memory_space<vmem>>, vector<2x32xf32>
    tpu.vector_store %arg26[%c0_170, %c0_171], %419 {strides = array<i32>} : memref<2x32xf32, #tpu.memory_space<vmem>>, vector<2x32xf32>,
    return
  }
  func.func @transform_0(%arg0: i32) -> (i32, i32) {
    %c0_i32 = arith.constant 0 : i32
    %c0_i32_0 = arith.constant 0 : i32
    %c0_i32_1 = arith.constant 0 : i32
    return %c0_i32, %c0_i32_0 : i32, i32
  }
  func.func @transform_1(%arg0: i32) -> (i32, i32) {
    %c0_i32 = arith.constant 0 : i32
    %c0_i32_0 = arith.constant 0 : i32
    %c0_i32_1 = arith.constant 0 : i32
    return %c0_i32, %c0_i32_0 : i32, i32
  }
  func.func @transform_2(%arg0: i32) -> (i32, i32) {
    %c0_i32 = arith.constant 0 : i32
    %c0_i32_0 = arith.constant 0 : i32
    %c0_i32_1 = arith.constant 0 : i32
    return %c0_i32, %c0_i32_0 : i32, i32
  }
  func.func @transform_3(%arg0: i32) -> (i32, i32) {
    %c0_i32 = arith.constant 0 : i32
    %c0_i32_0 = arith.constant 0 : i32
    %c0_i32_1 = arith.constant 0 : i32
    return %c0_i32, %c0_i32_0 : i32, i32
  }
  func.func @transform_4(%arg0: i32) -> (i32, i32) {
    %c0_i32 = arith.constant 0 : i32
    %c0_i32_0 = arith.constant 0 : i32
    %c0_i32_1 = arith.constant 0 : i32
    return %c0_i32, %c0_i32_0 : i32, i32
  }
  func.func @transform_5(%arg0: i32) -> (i32, i32) {
    %c0_i32 = arith.constant 0 : i32
    %c0_i32_0 = arith.constant 0 : i32
    %c0_i32_1 = arith.constant 0 : i32
    return %c0_i32, %c0_i32_0 : i32, i32
  }
  func.func @transform_6(%arg0: i32) -> (i32, i32) {
    %c0_i32 = arith.constant 0 : i32
    %c0_i32_0 = arith.constant 0 : i32
    %c0_i32_1 = arith.constant 0 : i32
    return %c0_i32, %c0_i32_0 : i32, i32
  }
  func.func @transform_7(%arg0: i32) -> (i32, i32) {
    %c0_i32 = arith.constant 0 : i32
    %c0_i32_0 = arith.constant 0 : i32
    %c0_i32_1 = arith.constant 0 : i32
    return %c0_i32, %c0_i32_0 : i32, i32
  }
  func.func @transform_8(%arg0: i32) -> (i32, i32) {
    %c0_i32 = arith.constant 0 : i32
    %c0_i32_0 = arith.constant 0 : i32
    %c0_i32_1 = arith.constant 0 : i32
    return %c0_i32, %c0_i32_0 : i32, i32
  }
  func.func @transform_9(%arg0: i32) -> (i32, i32) {
    %c0_i32 = arith.constant 0 : i32
    %c0_i32_0 = arith.constant 0 : i32
    %c0_i32_1 = arith.constant 0 : i32
    return %c0_i32, %c0_i32_0 : i32, i32
  }
  func.func @transform_10(%arg0: i32) -> (i32, i32) {
    %c0_i32 = arith.constant 0 : i32
    %c0_i32_0 = arith.constant 0 : i32
    %c0_i32_1 = arith.constant 0 : i32
    return %c0_i32, %c0_i32_0 : i32, i32
  }
  func.func @transform_11(%arg0: i32) -> (i32, i32) {
    %c0_i32 = arith.constant 0 : i32
    %c0_i32_0 = arith.constant 0 : i32
    %c0_i32_1 = arith.constant 0 : i32
    return %c0_i32, %c0_i32_0 : i32, i32
  }
  func.func @transform_12(%arg0: i32) -> (i32, i32) {
    %c0_i32 = arith.constant 0 : i32
    %c0_i32_0 = arith.constant 0 : i32
    %c0_i32_1 = arith.constant 0 : i32
    return %c0_i32, %c0_i32_0 : i32, i32
  }
  func.func @transform_13(%arg0: i32) -> (i32, i32) {
    %c0_i32 = arith.constant 0 : i32
    %c0_i32_0 = arith.constant 0 : i32
    %c0_i32_1 = arith.constant 0 : i32
    return %c0_i32, %c0_i32_0 : i32, i32
  }
  func.func @transform_14(%arg0: i32) -> (i32, i32) {
    %c0_i32 = arith.constant 0 : i32
    %c0_i32_0 = arith.constant 0 : i32
    %c0_i32_1 = arith.constant 0 : i32
    return %c0_i32, %c0_i32_0 : i32, i32
  }
  func.func @transform_15(%arg0: i32) -> (i32, i32) {
    %c0_i32 = arith.constant 0 : i32
    %c0_i32_0 = arith.constant 0 : i32
    %c0_i32_1 = arith.constant 0 : i32
    return %c0_i32, %c0_i32_0 : i32, i32
  }
  func.func @transform_16(%arg0: i32) -> (i32, i32) {
    %c0_i32 = arith.constant 0 : i32
    %c0_i32_0 = arith.constant 0 : i32
    %c0_i32_1 = arith.constant 0 : i32
    return %c0_i32, %c0_i32_0 : i32, i32
  }
  func.func @transform_17(%arg0: i32) -> (i32, i32) {
    %c0_i32 = arith.constant 0 : i32
    %c0_i32_0 = arith.constant 0 : i32
    %c0_i32_1 = arith.constant 0 : i32
    return %c0_i32, %c0_i32_0 : i32, i32
  }
  func.func @transform_18(%arg0: i32) -> (i32, i32) {
    %c0_i32 = arith.constant 0 : i32
    %c0_i32_0 = arith.constant 0 : i32
    %c0_i32_1 = arith.constant 0 : i32
    return %c0_i32, %c0_i32_0 : i32, i32
  }
  func.func @transform_19(%arg0: i32) -> (i32, i32) {
    %c0_i32 = arith.constant 0 : i32
    %c0_i32_0 = arith.constant 0 : i32
    %c0_i32_1 = arith.constant 0 : i32
    return %c0_i32, %c0_i32_0 : i32, i32
  }
  func.func @transform_20(%arg0: i32) -> (i32, i32) {
    %c0_i32 = arith.constant 0 : i32
    %c0_i32_0 = arith.constant 0 : i32
    %c0_i32_1 = arith.constant 0 : i32
    return %c0_i32, %c0_i32_0 : i32, i32
  }
  func.func @transform_21(%arg0: i32) -> (i32, i32) {
    %c0_i32 = arith.constant 0 : i32
    %c0_i32_0 = arith.constant 0 : i32
    %c0_i32_1 = arith.constant 0 : i32
    return %c0_i32, %c0_i32_0 : i32, i32
  }
  func.func @transform_22(%arg0: i32) -> (i32, i32) {
    %c0_i32 = arith.constant 0 : i32
    %c0_i32_0 = arith.constant 0 : i32
    %c0_i32_1 = arith.constant 0 : i32
    return %c0_i32, %c0_i32_0 : i32, i32
  }
  func.func @transform_23(%arg0: i32) -> (i32, i32) {
    %c0_i32 = arith.constant 0 : i32
    %c0_i32_0 = arith.constant 0 : i32
    %c0_i32_1 = arith.constant 0 : i32
    return %c0_i32, %c0_i32_0 : i32, i32
  }
  func.func @transform_24(%arg0: i32) -> (i32, i32) {
    %c0_i32 = arith.constant 0 : i32
    %c0_i32_0 = arith.constant 0 : i32
    %c0_i32_1 = arith.constant 0 : i32
    return %c0_i32, %c0_i32_0 : i32, i32
  }
  func.func @transform_25(%arg0: i32) -> (i32, i32) {
    %c0_i32 = arith.constant 0 : i32
    %c0_i32_0 = arith.constant 0 : i32
    %c0_i32_1 = arith.constant 0 : i32
    return %c0_i32, %c0_i32_0 : i32, i32
  }
}

module attributes {stable_mosaic.version = 11 : i64} {
  func.func @_fft_block_kernel(%arg0: i32, %arg1: memref<16x32xf32, #tpu.memory_space<vmem>>, %arg2: memref<16x1xf32, #tpu.memory_space<vmem>>, %arg3: memref<1x1x16xf32, #tpu.memory_space<vmem>>, %arg4: memref<32x96xbf16, #tpu.memory_space<vmem>>, %arg5: memref<1x96xf32, #tpu.memory_space<vmem>>, %arg6: memref<32x32xbf16, #tpu.memory_space<vmem>>, %arg7: memref<1x32xf32, #tpu.memory_space<vmem>>, %arg8: memref<1x32xf32, #tpu.memory_space<vmem>>, %arg9: memref<1x32xf32, #tpu.memory_space<vmem>>, %arg10: memref<288x64xbf16, #tpu.memory_space<vmem>>, %arg11: memref<1x64xf32, #tpu.memory_space<vmem>>, %arg12: memref<64x32xbf16, #tpu.memory_space<vmem>>, %arg13: memref<1x32xf32, #tpu.memory_space<vmem>>, %arg14: memref<1x32xf32, #tpu.memory_space<vmem>>, %arg15: memref<1x32xf32, #tpu.memory_space<vmem>>, %arg16: memref<16x32xf32, #tpu.memory_space<vmem>>) attributes {dimension_semantics = [#tpu.dimension_semantics<parallel>], iteration_bounds = array<i64: 2>, scalar_prefetch = 0 : i64, scratch_operands = 0 : i64, tpu.core_type = #tpu.core_type<tc>, window_params = [{transform_indices = @transform_0, window_bounds = array<i64: 16, 32>}, {transform_indices = @transform_1, window_bounds = array<i64: 16, 1>}, {transform_indices = @transform_2, window_bounds = array<i64: 1, 1, 16>}, {pipeline_mode = #tpu.pipeline_mode<synchronous>, transform_indices = @transform_3, window_bounds = array<i64: 32, 96>}, {pipeline_mode = #tpu.pipeline_mode<synchronous>, transform_indices = @transform_4, window_bounds = array<i64: 1, 96>}, {pipeline_mode = #tpu.pipeline_mode<synchronous>, transform_indices = @transform_5, window_bounds = array<i64: 32, 32>}, {pipeline_mode = #tpu.pipeline_mode<synchronous>, transform_indices = @transform_6, window_bounds = array<i64: 1, 32>}, {pipeline_mode = #tpu.pipeline_mode<synchronous>, transform_indices = @transform_7, window_bounds = array<i64: 1, 32>}, {pipeline_mode = #tpu.pipeline_mode<synchronous>, transform_indices = @transform_8, window_bounds = array<i64: 1, 32>}, {pipeline_mode = #tpu.pipeline_mode<synchronous>, transform_indices = @transform_9, window_bounds = array<i64: 288, 64>}, {pipeline_mode = #tpu.pipeline_mode<synchronous>, transform_indices = @transform_10, window_bounds = array<i64: 1, 64>}, {pipeline_mode = #tpu.pipeline_mode<synchronous>, transform_indices = @transform_11, window_bounds = array<i64: 64, 32>}, {pipeline_mode = #tpu.pipeline_mode<synchronous>, transform_indices = @transform_12, window_bounds = array<i64: 1, 32>}, {pipeline_mode = #tpu.pipeline_mode<synchronous>, transform_indices = @transform_13, window_bounds = array<i64: 1, 32>}, {pipeline_mode = #tpu.pipeline_mode<synchronous>, transform_indices = @transform_14, window_bounds = array<i64: 1, 32>}, {transform_indices = @transform_15, window_bounds = array<i64: 16, 32>}]} {
    %c0 = arith.constant 0 : index
    %c0_0 = arith.constant 0 : index
    %0 = vector.load %arg1[%c0, %c0_0] : memref<16x32xf32, #tpu.memory_space<vmem>>, vector<16x32xf32>
    %1 = arith.truncf %0 : vector<16x32xf32> to vector<16x32xbf16>
    %c0_1 = arith.constant 0 : index
    %c0_2 = arith.constant 0 : index
    %2 = vector.load %arg4[%c0_1, %c0_2] : memref<32x96xbf16, #tpu.memory_space<vmem>>, vector<32x96xbf16>
    %cst = arith.constant dense<0.000000e+00> : vector<16x96xf32>
    %3 = tpu.matmul %1, %2, %cst {dimension_numbers = #tpu.dot_dimension_numbers<[1], [0], [0], [1], [0, 0, 1, 1], [], []>} : vector<16x32xbf16>, vector<32x96xbf16>, vector<16x96xf32> -> vector<16x96xf32>
    %c0_3 = arith.constant 0 : index
    %c0_4 = arith.constant 0 : index
    %4 = vector.load %arg5[%c0_3, %c0_4] : memref<1x96xf32, #tpu.memory_space<vmem>>, vector<1x96xf32>
    %5 = vector.broadcast %4 : vector<1x96xf32> to vector<16x96xf32>
    %6 = arith.addf %3, %5 : vector<16x96xf32>
    %7 = vector.extract_strided_slice %6 {offsets = [0, 0], sizes = [16, 32], strides = [1, 1]} : vector<16x96xf32> to vector<16x32xf32>
    %8 = vector.extract_strided_slice %7 {offsets = [0, 0], sizes = [16, 16], strides = [1, 1]} : vector<16x32xf32> to vector<16x16xf32>
    %9 = vector.shape_cast %8 : vector<16x16xf32> to vector<1x16x16xf32>
    %10 = vector.extract_strided_slice %7 {offsets = [0, 16], sizes = [16, 16], strides = [1, 1]} : vector<16x32xf32> to vector<16x16xf32>
    %11 = vector.shape_cast %10 : vector<16x16xf32> to vector<1x16x16xf32>
    %12 = tpu.concatenate %9, %11 in 0 : vector<1x16x16xf32>, vector<1x16x16xf32> -> vector<2x16x16xf32>
    %13 = vector.extract_strided_slice %6 {offsets = [0, 32], sizes = [16, 32], strides = [1, 1]} : vector<16x96xf32> to vector<16x32xf32>
    %14 = vector.extract_strided_slice %13 {offsets = [0, 0], sizes = [16, 16], strides = [1, 1]} : vector<16x32xf32> to vector<16x16xf32>
    %15 = vector.shape_cast %14 : vector<16x16xf32> to vector<1x16x16xf32>
    %16 = vector.extract_strided_slice %13 {offsets = [0, 16], sizes = [16, 16], strides = [1, 1]} : vector<16x32xf32> to vector<16x16xf32>
    %17 = vector.shape_cast %16 : vector<16x16xf32> to vector<1x16x16xf32>
    %18 = tpu.concatenate %15, %17 in 0 : vector<1x16x16xf32>, vector<1x16x16xf32> -> vector<2x16x16xf32>
    %19 = vector.extract_strided_slice %6 {offsets = [0, 64], sizes = [16, 32], strides = [1, 1]} : vector<16x96xf32> to vector<16x32xf32>
    %20 = vector.extract_strided_slice %19 {offsets = [0, 0], sizes = [16, 16], strides = [1, 1]} : vector<16x32xf32> to vector<16x16xf32>
    %21 = vector.shape_cast %20 : vector<16x16xf32> to vector<1x16x16xf32>
    %22 = vector.extract_strided_slice %19 {offsets = [0, 16], sizes = [16, 16], strides = [1, 1]} : vector<16x32xf32> to vector<16x16xf32>
    %23 = vector.shape_cast %22 : vector<16x16xf32> to vector<1x16x16xf32>
    %24 = tpu.concatenate %21, %23 in 0 : vector<1x16x16xf32>, vector<1x16x16xf32> -> vector<2x16x16xf32>
    %25 = arith.truncf %12 : vector<2x16x16xf32> to vector<2x16x16xbf16>
    %26 = arith.truncf %18 : vector<2x16x16xf32> to vector<2x16x16xbf16>
    %cst_5 = arith.constant dense<0.000000e+00> : vector<2x16x16xf32>
    %27 = tpu.matmul %25, %26, %cst_5 {dimension_numbers = #tpu.dot_dimension_numbers<[2], [2], [1], [1], [0, 0, 0, 1, 1, 1], [0], [0]>} : vector<2x16x16xbf16>, vector<2x16x16xbf16>, vector<2x16x16xf32> -> vector<2x16x16xf32>
    %cst_6 = arith.constant 2.500000e-01 : f32
    %28 = vector.broadcast %cst_6 : f32 to vector<2x16x16xf32>
    %29 = arith.mulf %27, %28 : vector<2x16x16xf32>
    %c0_7 = arith.constant 0 : index
    %c0_8 = arith.constant 0 : index
    %c0_9 = arith.constant 0 : index
    %30 = vector.load %arg3[%c0_7, %c0_8, %c0_9] : memref<1x1x16xf32, #tpu.memory_space<vmem>>, vector<1x1x16xf32>
    %cst_10 = arith.constant 1.000000e+00 : f32
    %31 = vector.broadcast %cst_10 : f32 to vector<1x1x16xf32>
    %32 = arith.subf %30, %31 : vector<1x1x16xf32>
    %cst_11 = arith.constant 1.000000e+09 : f32
    %33 = vector.broadcast %cst_11 : f32 to vector<1x1x16xf32>
    %34 = arith.mulf %32, %33 : vector<1x1x16xf32>
    %35 = vector.broadcast %34 : vector<1x1x16xf32> to vector<2x16x16xf32>
    %36 = arith.addf %29, %35 : vector<2x16x16xf32>
    %cst_12 = arith.constant dense<0xFF800000> : vector<2x16xf32>
    %37 = vector.multi_reduction <maximumf>, %36, %cst_12 [2] : vector<2x16x16xf32> to vector<2x16xf32>
    %38 = vector.shape_cast %37 : vector<2x16xf32> to vector<2x16x1xf32>
    %39 = vector.broadcast %38 : vector<2x16x1xf32> to vector<2x16x16xf32>
    %40 = arith.subf %36, %39 : vector<2x16x16xf32>
    %41 = math.exp %40 : vector<2x16x16xf32>
    %cst_13 = arith.constant dense<0.000000e+00> : vector<2x16xf32>
    %42 = vector.multi_reduction <add>, %41, %cst_13 [2] : vector<2x16x16xf32> to vector<2x16xf32>
    %43 = vector.shape_cast %42 : vector<2x16xf32> to vector<2x16x1xf32>
    %44 = tpu.reciprocal %43 : vector<2x16x1xf32> -> vector<2x16x1xf32>
    %45 = vector.broadcast %44 : vector<2x16x1xf32> to vector<2x16x16xf32>
    %46 = arith.mulf %41, %45 : vector<2x16x16xf32>
    %47 = arith.truncf %46 : vector<2x16x16xf32> to vector<2x16x16xbf16>
    %48 = arith.truncf %24 : vector<2x16x16xf32> to vector<2x16x16xbf16>
    %cst_14 = arith.constant dense<0.000000e+00> : vector<2x16x16xf32>
    %49 = tpu.matmul %47, %48, %cst_14 {dimension_numbers = #tpu.dot_dimension_numbers<[2], [1], [1], [2], [0, 0, 0, 1, 1, 2], [0], [0]>} : vector<2x16x16xbf16>, vector<2x16x16xbf16>, vector<2x16x16xf32> -> vector<2x16x16xf32>
    %50 = vector.extract_strided_slice %49 {offsets = [0, 0, 0], sizes = [1, 16, 16], strides = [1, 1, 1]} : vector<2x16x16xf32> to vector<1x16x16xf32>
    %51 = vector.shape_cast %50 : vector<1x16x16xf32> to vector<16x16xf32>
    %52 = vector.extract_strided_slice %49 {offsets = [1, 0, 0], sizes = [1, 16, 16], strides = [1, 1, 1]} : vector<2x16x16xf32> to vector<1x16x16xf32>
    %53 = vector.shape_cast %52 : vector<1x16x16xf32> to vector<16x16xf32>
    %54 = tpu.concatenate %51, %53 in 1 : vector<16x16xf32>, vector<16x16xf32> -> vector<16x32xf32>
    %55 = arith.truncf %54 : vector<16x32xf32> to vector<16x32xbf16>
    %c0_15 = arith.constant 0 : index
    %c0_16 = arith.constant 0 : index
    %56 = vector.load %arg6[%c0_15, %c0_16] : memref<32x32xbf16, #tpu.memory_space<vmem>>, vector<32x32xbf16>
    %cst_17 = arith.constant dense<0.000000e+00> : vector<16x32xf32>
    %57 = tpu.matmul %55, %56, %cst_17 {dimension_numbers = #tpu.dot_dimension_numbers<[1], [0], [0], [1], [0, 0, 1, 1], [], []>} : vector<16x32xbf16>, vector<32x32xbf16>, vector<16x32xf32> -> vector<16x32xf32>
    %c0_18 = arith.constant 0 : index
    %c0_19 = arith.constant 0 : index
    %58 = vector.load %arg7[%c0_18, %c0_19] : memref<1x32xf32, #tpu.memory_space<vmem>>, vector<1x32xf32>
    %59 = vector.broadcast %58 : vector<1x32xf32> to vector<16x32xf32>
    %60 = arith.addf %57, %59 : vector<16x32xf32>
    %c0_20 = arith.constant 0 : index
    %c0_21 = arith.constant 0 : index
    %61 = vector.load %arg2[%c0_20, %c0_21] : memref<16x1xf32, #tpu.memory_space<vmem>>, vector<16x1xf32>
    %62 = arith.addf %60, %0 : vector<16x32xf32>
    %c0_22 = arith.constant 0 : index
    %c0_23 = arith.constant 0 : index
    %63 = vector.load %arg8[%c0_22, %c0_23] : memref<1x32xf32, #tpu.memory_space<vmem>>, vector<1x32xf32>
    %c0_24 = arith.constant 0 : index
    %c0_25 = arith.constant 0 : index
    %64 = vector.load %arg9[%c0_24, %c0_25] : memref<1x32xf32, #tpu.memory_space<vmem>>, vector<1x32xf32>
    %cst_26 = arith.constant dense<0.000000e+00> : vector<16xf32>
    %65 = vector.multi_reduction <add>, %62, %cst_26 [1] : vector<16x32xf32> to vector<16xf32>
    %66 = vector.shape_cast %65 : vector<16xf32> to vector<16x1xf32>
    %cst_27 = arith.constant 3.200000e+01 : f32
    %67 = vector.broadcast %cst_27 : f32 to vector<16x1xf32>
    %68 = arith.divf %66, %67 : vector<16x1xf32>
    %69 = vector.broadcast %68 : vector<16x1xf32> to vector<16x32xf32>
    %70 = arith.subf %62, %69 : vector<16x32xf32>
    %71 = arith.mulf %70, %70 : vector<16x32xf32>
    %cst_28 = arith.constant dense<0.000000e+00> : vector<16xf32>
    %72 = vector.multi_reduction <add>, %71, %cst_28 [1] : vector<16x32xf32> to vector<16xf32>
    %73 = vector.shape_cast %72 : vector<16xf32> to vector<16x1xf32>
    %cst_29 = arith.constant 3.200000e+01 : f32
    %74 = vector.broadcast %cst_29 : f32 to vector<16x1xf32>
    %75 = arith.divf %73, %74 : vector<16x1xf32>
    %76 = vector.broadcast %68 : vector<16x1xf32> to vector<16x32xf32>
    %77 = arith.subf %62, %76 : vector<16x32xf32>
    %cst_30 = arith.constant 9.99999974E-6 : f32
    %78 = vector.broadcast %cst_30 : f32 to vector<16x1xf32>
    %79 = arith.addf %75, %78 : vector<16x1xf32>
    %80 = math.rsqrt %79 : vector<16x1xf32>
    %81 = vector.broadcast %80 : vector<16x1xf32> to vector<16x32xf32>
    %82 = arith.mulf %77, %81 : vector<16x32xf32>
    %83 = vector.broadcast %63 : vector<1x32xf32> to vector<16x32xf32>
    %84 = arith.mulf %82, %83 : vector<16x32xf32>
    %85 = vector.broadcast %64 : vector<1x32xf32> to vector<16x32xf32>
    %86 = arith.addf %84, %85 : vector<16x32xf32>
    %87 = vector.broadcast %61 : vector<16x1xf32> to vector<16x32xf32>
    %88 = arith.mulf %86, %87 : vector<16x32xf32>
    %c0_31 = arith.constant 0 : index
    %c0_32 = arith.constant 0 : index
    %89 = vector.load %arg10[%c0_31, %c0_32] : memref<288x64xbf16, #tpu.memory_space<vmem>>, vector<288x64xbf16>
    %c0_33 = arith.constant 0 : index
    %c0_34 = arith.constant 0 : index
    %90 = vector.load %arg11[%c0_33, %c0_34] : memref<1x64xf32, #tpu.memory_space<vmem>>, vector<1x64xf32>
    %cst_35 = arith.constant 0.000000e+00 : f32
    %91 = vector.broadcast %cst_35 : f32 to vector<4x32xf32>
    %92 = vector.extract_strided_slice %88 {offsets = [0, 0], sizes = [12, 32], strides = [1, 1]} : vector<16x32xf32> to vector<12x32xf32>
    %93 = tpu.concatenate %91, %92 in 0 : vector<4x32xf32>, vector<12x32xf32> -> vector<16x32xf32>
    %cst_36 = arith.constant 0.000000e+00 : f32
    %94 = vector.broadcast %cst_36 : f32 to vector<3x32xf32>
    %95 = vector.extract_strided_slice %88 {offsets = [0, 0], sizes = [13, 32], strides = [1, 1]} : vector<16x32xf32> to vector<13x32xf32>
    %96 = tpu.concatenate %94, %95 in 0 : vector<3x32xf32>, vector<13x32xf32> -> vector<16x32xf32>
    %cst_37 = arith.constant 0.000000e+00 : f32
    %97 = vector.broadcast %cst_37 : f32 to vector<2x32xf32>
    %98 = vector.extract_strided_slice %88 {offsets = [0, 0], sizes = [14, 32], strides = [1, 1]} : vector<16x32xf32> to vector<14x32xf32>
    %99 = tpu.concatenate %97, %98 in 0 : vector<2x32xf32>, vector<14x32xf32> -> vector<16x32xf32>
    %cst_38 = arith.constant 0.000000e+00 : f32
    %100 = vector.broadcast %cst_38 : f32 to vector<1x32xf32>
    %101 = vector.extract_strided_slice %88 {offsets = [0, 0], sizes = [15, 32], strides = [1, 1]} : vector<16x32xf32> to vector<15x32xf32>
    %102 = tpu.concatenate %100, %101 in 0 : vector<1x32xf32>, vector<15x32xf32> -> vector<16x32xf32>
    %103 = vector.extract_strided_slice %88 {offsets = [1, 0], sizes = [15, 32], strides = [1, 1]} : vector<16x32xf32> to vector<15x32xf32>
    %cst_39 = arith.constant 0.000000e+00 : f32
    %104 = vector.broadcast %cst_39 : f32 to vector<1x32xf32>
    %105 = tpu.concatenate %103, %104 in 0 : vector<15x32xf32>, vector<1x32xf32> -> vector<16x32xf32>
    %106 = vector.extract_strided_slice %88 {offsets = [2, 0], sizes = [14, 32], strides = [1, 1]} : vector<16x32xf32> to vector<14x32xf32>
    %cst_40 = arith.constant 0.000000e+00 : f32
    %107 = vector.broadcast %cst_40 : f32 to vector<2x32xf32>
    %108 = tpu.concatenate %106, %107 in 0 : vector<14x32xf32>, vector<2x32xf32> -> vector<16x32xf32>
    %109 = vector.extract_strided_slice %88 {offsets = [3, 0], sizes = [13, 32], strides = [1, 1]} : vector<16x32xf32> to vector<13x32xf32>
    %cst_41 = arith.constant 0.000000e+00 : f32
    %110 = vector.broadcast %cst_41 : f32 to vector<3x32xf32>
    %111 = tpu.concatenate %109, %110 in 0 : vector<13x32xf32>, vector<3x32xf32> -> vector<16x32xf32>
    %112 = vector.extract_strided_slice %88 {offsets = [4, 0], sizes = [12, 32], strides = [1, 1]} : vector<16x32xf32> to vector<12x32xf32>
    %cst_42 = arith.constant 0.000000e+00 : f32
    %113 = vector.broadcast %cst_42 : f32 to vector<4x32xf32>
    %114 = tpu.concatenate %112, %113 in 0 : vector<12x32xf32>, vector<4x32xf32> -> vector<16x32xf32>
    %115 = tpu.concatenate %93, %96, %99, %102, %88, %105, %108, %111, %114 in 1 : vector<16x32xf32>, vector<16x32xf32>, vector<16x32xf32>, vector<16x32xf32>, vector<16x32xf32>, vector<16x32xf32>, vector<16x32xf32>, vector<16x32xf32>, vector<16x32xf32> -> vector<16x288xf32>
    %116 = arith.truncf %115 : vector<16x288xf32> to vector<16x288xbf16>
    %cst_43 = arith.constant dense<0.000000e+00> : vector<16x64xf32>
    %117 = tpu.matmul %116, %89, %cst_43 {dimension_numbers = #tpu.dot_dimension_numbers<[1], [0], [0], [1], [0, 0, 1, 1], [], []>} : vector<16x288xbf16>, vector<288x64xbf16>, vector<16x64xf32> -> vector<16x64xf32>
    %118 = vector.broadcast %90 : vector<1x64xf32> to vector<16x64xf32>
    %119 = arith.addf %117, %118 : vector<16x64xf32>
    %cst_44 = arith.constant 0.000000e+00 : f32
    %120 = vector.broadcast %cst_44 : f32 to vector<16x64xf32>
    %121 = arith.maximumf %119, %120 : vector<16x64xf32>
    %122 = arith.truncf %121 : vector<16x64xf32> to vector<16x64xbf16>
    %c0_45 = arith.constant 0 : index
    %c0_46 = arith.constant 0 : index
    %123 = vector.load %arg12[%c0_45, %c0_46] : memref<64x32xbf16, #tpu.memory_space<vmem>>, vector<64x32xbf16>
    %cst_47 = arith.constant dense<0.000000e+00> : vector<16x32xf32>
    %124 = tpu.matmul %122, %123, %cst_47 {dimension_numbers = #tpu.dot_dimension_numbers<[1], [0], [0], [1], [0, 0, 1, 1], [], []>} : vector<16x64xbf16>, vector<64x32xbf16>, vector<16x32xf32> -> vector<16x32xf32>
    %c0_48 = arith.constant 0 : index
    %c0_49 = arith.constant 0 : index
    %125 = vector.load %arg13[%c0_48, %c0_49] : memref<1x32xf32, #tpu.memory_space<vmem>>, vector<1x32xf32>
    %126 = vector.broadcast %125 : vector<1x32xf32> to vector<16x32xf32>
    %127 = arith.addf %124, %126 : vector<16x32xf32>
    %128 = arith.addf %127, %88 : vector<16x32xf32>
    %c0_50 = arith.constant 0 : index
    %c0_51 = arith.constant 0 : index
    %129 = vector.load %arg14[%c0_50, %c0_51] : memref<1x32xf32, #tpu.memory_space<vmem>>, vector<1x32xf32>
    %c0_52 = arith.constant 0 : index
    %c0_53 = arith.constant 0 : index
    %130 = vector.load %arg15[%c0_52, %c0_53] : memref<1x32xf32, #tpu.memory_space<vmem>>, vector<1x32xf32>
    %cst_54 = arith.constant dense<0.000000e+00> : vector<16xf32>
    %131 = vector.multi_reduction <add>, %128, %cst_54 [1] : vector<16x32xf32> to vector<16xf32>
    %132 = vector.shape_cast %131 : vector<16xf32> to vector<16x1xf32>
    %cst_55 = arith.constant 3.200000e+01 : f32
    %133 = vector.broadcast %cst_55 : f32 to vector<16x1xf32>
    %134 = arith.divf %132, %133 : vector<16x1xf32>
    %135 = vector.broadcast %134 : vector<16x1xf32> to vector<16x32xf32>
    %136 = arith.subf %128, %135 : vector<16x32xf32>
    %137 = arith.mulf %136, %136 : vector<16x32xf32>
    %cst_56 = arith.constant dense<0.000000e+00> : vector<16xf32>
    %138 = vector.multi_reduction <add>, %137, %cst_56 [1] : vector<16x32xf32> to vector<16xf32>
    %139 = vector.shape_cast %138 : vector<16xf32> to vector<16x1xf32>
    %cst_57 = arith.constant 3.200000e+01 : f32
    %140 = vector.broadcast %cst_57 : f32 to vector<16x1xf32>
    %141 = arith.divf %139, %140 : vector<16x1xf32>
    %142 = vector.broadcast %134 : vector<16x1xf32> to vector<16x32xf32>
    %143 = arith.subf %128, %142 : vector<16x32xf32>
    %cst_58 = arith.constant 9.99999974E-6 : f32
    %144 = vector.broadcast %cst_58 : f32 to vector<16x1xf32>
    %145 = arith.addf %141, %144 : vector<16x1xf32>
    %146 = math.rsqrt %145 : vector<16x1xf32>
    %147 = vector.broadcast %146 : vector<16x1xf32> to vector<16x32xf32>
    %148 = arith.mulf %143, %147 : vector<16x32xf32>
    %149 = vector.broadcast %129 : vector<1x32xf32> to vector<16x32xf32>
    %150 = arith.mulf %148, %149 : vector<16x32xf32>
    %151 = vector.broadcast %130 : vector<1x32xf32> to vector<16x32xf32>
    %152 = arith.addf %150, %151 : vector<16x32xf32>
    %153 = vector.broadcast %61 : vector<16x1xf32> to vector<16x32xf32>
    %154 = arith.mulf %152, %153 : vector<16x32xf32>
    %c0_59 = arith.constant 0 : index
    %c0_60 = arith.constant 0 : index
    %155 = vector.load %arg16[%c0_59, %c0_60] : memref<16x32xf32, #tpu.memory_space<vmem>>, vector<16x32xf32>
    tpu.vector_store %arg16[%c0_59, %c0_60], %154 {strides = array<i32>} : memref<16x32xf32, #tpu.memory_space<vmem>>, vector<16x32xf32>,
    return
  }
  func.func @transform_0(%arg0: i32) -> (i32, i32) {
    %c0_i32 = arith.constant 0 : i32
    %c0_i32_0 = arith.constant 0 : i32
    return %arg0, %c0_i32 : i32, i32
  }
  func.func @transform_1(%arg0: i32) -> (i32, i32) {
    %c0_i32 = arith.constant 0 : i32
    %c0_i32_0 = arith.constant 0 : i32
    return %arg0, %c0_i32 : i32, i32
  }
  func.func @transform_2(%arg0: i32) -> (i32, i32, i32) {
    %c0_i32 = arith.constant 0 : i32
    %c0_i32_0 = arith.constant 0 : i32
    %c0_i32_1 = arith.constant 0 : i32
    return %arg0, %c0_i32, %c0_i32_0 : i32, i32, i32
  }
  func.func @transform_3(%arg0: i32) -> (i32, i32) {
    %c0_i32 = arith.constant 0 : i32
    %c0_i32_0 = arith.constant 0 : i32
    %c0_i32_1 = arith.constant 0 : i32
    return %c0_i32, %c0_i32_0 : i32, i32
  }
  func.func @transform_4(%arg0: i32) -> (i32, i32) {
    %c0_i32 = arith.constant 0 : i32
    %c0_i32_0 = arith.constant 0 : i32
    %c0_i32_1 = arith.constant 0 : i32
    return %c0_i32, %c0_i32_0 : i32, i32
  }
  func.func @transform_5(%arg0: i32) -> (i32, i32) {
    %c0_i32 = arith.constant 0 : i32
    %c0_i32_0 = arith.constant 0 : i32
    %c0_i32_1 = arith.constant 0 : i32
    return %c0_i32, %c0_i32_0 : i32, i32
  }
  func.func @transform_6(%arg0: i32) -> (i32, i32) {
    %c0_i32 = arith.constant 0 : i32
    %c0_i32_0 = arith.constant 0 : i32
    %c0_i32_1 = arith.constant 0 : i32
    return %c0_i32, %c0_i32_0 : i32, i32
  }
  func.func @transform_7(%arg0: i32) -> (i32, i32) {
    %c0_i32 = arith.constant 0 : i32
    %c0_i32_0 = arith.constant 0 : i32
    %c0_i32_1 = arith.constant 0 : i32
    return %c0_i32, %c0_i32_0 : i32, i32
  }
  func.func @transform_8(%arg0: i32) -> (i32, i32) {
    %c0_i32 = arith.constant 0 : i32
    %c0_i32_0 = arith.constant 0 : i32
    %c0_i32_1 = arith.constant 0 : i32
    return %c0_i32, %c0_i32_0 : i32, i32
  }
  func.func @transform_9(%arg0: i32) -> (i32, i32) {
    %c0_i32 = arith.constant 0 : i32
    %c0_i32_0 = arith.constant 0 : i32
    %c0_i32_1 = arith.constant 0 : i32
    return %c0_i32, %c0_i32_0 : i32, i32
  }
  func.func @transform_10(%arg0: i32) -> (i32, i32) {
    %c0_i32 = arith.constant 0 : i32
    %c0_i32_0 = arith.constant 0 : i32
    %c0_i32_1 = arith.constant 0 : i32
    return %c0_i32, %c0_i32_0 : i32, i32
  }
  func.func @transform_11(%arg0: i32) -> (i32, i32) {
    %c0_i32 = arith.constant 0 : i32
    %c0_i32_0 = arith.constant 0 : i32
    %c0_i32_1 = arith.constant 0 : i32
    return %c0_i32, %c0_i32_0 : i32, i32
  }
  func.func @transform_12(%arg0: i32) -> (i32, i32) {
    %c0_i32 = arith.constant 0 : i32
    %c0_i32_0 = arith.constant 0 : i32
    %c0_i32_1 = arith.constant 0 : i32
    return %c0_i32, %c0_i32_0 : i32, i32
  }
  func.func @transform_13(%arg0: i32) -> (i32, i32) {
    %c0_i32 = arith.constant 0 : i32
    %c0_i32_0 = arith.constant 0 : i32
    %c0_i32_1 = arith.constant 0 : i32
    return %c0_i32, %c0_i32_0 : i32, i32
  }
  func.func @transform_14(%arg0: i32) -> (i32, i32) {
    %c0_i32 = arith.constant 0 : i32
    %c0_i32_0 = arith.constant 0 : i32
    %c0_i32_1 = arith.constant 0 : i32
    return %c0_i32, %c0_i32_0 : i32, i32
  }
  func.func @transform_15(%arg0: i32) -> (i32, i32) {
    %c0_i32 = arith.constant 0 : i32
    %c0_i32_0 = arith.constant 0 : i32
    return %arg0, %c0_i32 : i32, i32
  }
}

module attributes {stable_mosaic.version = 11 : i64} {
  func.func @_mel_postnet_kernel(%arg0: i32, %arg1: memref<16x32xf32, #tpu.memory_space<vmem>>, %arg2: memref<32x16xbf16, #tpu.memory_space<vmem>>, %arg3: memref<1x16xf32, #tpu.memory_space<vmem>>, %arg4: memref<80x32xbf16, #tpu.memory_space<vmem>>, %arg5: memref<1x32xf32, #tpu.memory_space<vmem>>, %arg6: memref<160x32xbf16, #tpu.memory_space<vmem>>, %arg7: memref<1x32xf32, #tpu.memory_space<vmem>>, %arg8: memref<160x32xbf16, #tpu.memory_space<vmem>>, %arg9: memref<1x32xf32, #tpu.memory_space<vmem>>, %arg10: memref<160x32xbf16, #tpu.memory_space<vmem>>, %arg11: memref<1x32xf32, #tpu.memory_space<vmem>>, %arg12: memref<160x16xbf16, #tpu.memory_space<vmem>>, %arg13: memref<1x16xf32, #tpu.memory_space<vmem>>, %arg14: memref<16x16xf32, #tpu.memory_space<vmem>>, %arg15: memref<16x16xf32, #tpu.memory_space<vmem>>) attributes {dimension_semantics = [#tpu.dimension_semantics<parallel>], iteration_bounds = array<i64: 2>, scalar_prefetch = 0 : i64, scratch_operands = 0 : i64, tpu.core_type = #tpu.core_type<tc>, window_params = [{transform_indices = @transform_0, window_bounds = array<i64: 16, 32>}, {pipeline_mode = #tpu.pipeline_mode<synchronous>, transform_indices = @transform_1, window_bounds = array<i64: 32, 16>}, {pipeline_mode = #tpu.pipeline_mode<synchronous>, transform_indices = @transform_2, window_bounds = array<i64: 1, 16>}, {pipeline_mode = #tpu.pipeline_mode<synchronous>, transform_indices = @transform_3, window_bounds = array<i64: 80, 32>}, {pipeline_mode = #tpu.pipeline_mode<synchronous>, transform_indices = @transform_4, window_bounds = array<i64: 1, 32>}, {pipeline_mode = #tpu.pipeline_mode<synchronous>, transform_indices = @transform_5, window_bounds = array<i64: 160, 32>}, {pipeline_mode = #tpu.pipeline_mode<synchronous>, transform_indices = @transform_6, window_bounds = array<i64: 1, 32>}, {pipeline_mode = #tpu.pipeline_mode<synchronous>, transform_indices = @transform_7, window_bounds = array<i64: 160, 32>}, {pipeline_mode = #tpu.pipeline_mode<synchronous>, transform_indices = @transform_8, window_bounds = array<i64: 1, 32>}, {pipeline_mode = #tpu.pipeline_mode<synchronous>, transform_indices = @transform_9, window_bounds = array<i64: 160, 32>}, {pipeline_mode = #tpu.pipeline_mode<synchronous>, transform_indices = @transform_10, window_bounds = array<i64: 1, 32>}, {pipeline_mode = #tpu.pipeline_mode<synchronous>, transform_indices = @transform_11, window_bounds = array<i64: 160, 16>}, {pipeline_mode = #tpu.pipeline_mode<synchronous>, transform_indices = @transform_12, window_bounds = array<i64: 1, 16>}, {transform_indices = @transform_13, window_bounds = array<i64: 16, 16>}, {transform_indices = @transform_14, window_bounds = array<i64: 16, 16>}]} {
    %c0 = arith.constant 0 : index
    %c0_0 = arith.constant 0 : index
    %0 = vector.load %arg1[%c0, %c0_0] : memref<16x32xf32, #tpu.memory_space<vmem>>, vector<16x32xf32>
    %1 = arith.truncf %0 : vector<16x32xf32> to vector<16x32xbf16>
    %c0_1 = arith.constant 0 : index
    %c0_2 = arith.constant 0 : index
    %2 = vector.load %arg2[%c0_1, %c0_2] : memref<32x16xbf16, #tpu.memory_space<vmem>>, vector<32x16xbf16>
    %cst = arith.constant dense<0.000000e+00> : vector<16x16xf32>
    %3 = tpu.matmul %1, %2, %cst {dimension_numbers = #tpu.dot_dimension_numbers<[1], [0], [0], [1], [0, 0, 1, 1], [], []>} : vector<16x32xbf16>, vector<32x16xbf16>, vector<16x16xf32> -> vector<16x16xf32>
    %c0_3 = arith.constant 0 : index
    %c0_4 = arith.constant 0 : index
    %4 = vector.load %arg3[%c0_3, %c0_4] : memref<1x16xf32, #tpu.memory_space<vmem>>, vector<1x16xf32>
    %5 = vector.broadcast %4 : vector<1x16xf32> to vector<16x16xf32>
    %6 = arith.addf %3, %5 : vector<16x16xf32>
    %c0_5 = arith.constant 0 : index
    %c0_6 = arith.constant 0 : index
    %7 = vector.load %arg14[%c0_5, %c0_6] : memref<16x16xf32, #tpu.memory_space<vmem>>, vector<16x16xf32>
    tpu.vector_store %arg14[%c0_5, %c0_6], %6 {strides = array<i32>} : memref<16x16xf32, #tpu.memory_space<vmem>>, vector<16x16xf32>,
    %c0_7 = arith.constant 0 : index
    %c0_8 = arith.constant 0 : index
    %8 = vector.load %arg4[%c0_7, %c0_8] : memref<80x32xbf16, #tpu.memory_space<vmem>>, vector<80x32xbf16>
    %c0_9 = arith.constant 0 : index
    %c0_10 = arith.constant 0 : index
    %9 = vector.load %arg5[%c0_9, %c0_10] : memref<1x32xf32, #tpu.memory_space<vmem>>, vector<1x32xf32>
    %cst_11 = arith.constant 0.000000e+00 : f32
    %10 = vector.broadcast %cst_11 : f32 to vector<2x16xf32>
    %11 = vector.extract_strided_slice %6 {offsets = [0, 0], sizes = [14, 16], strides = [1, 1]} : vector<16x16xf32> to vector<14x16xf32>
    %12 = tpu.concatenate %10, %11 in 0 : vector<2x16xf32>, vector<14x16xf32> -> vector<16x16xf32>
    %cst_12 = arith.constant 0.000000e+00 : f32
    %13 = vector.broadcast %cst_12 : f32 to vector<1x16xf32>
    %14 = vector.extract_strided_slice %6 {offsets = [0, 0], sizes = [15, 16], strides = [1, 1]} : vector<16x16xf32> to vector<15x16xf32>
    %15 = tpu.concatenate %13, %14 in 0 : vector<1x16xf32>, vector<15x16xf32> -> vector<16x16xf32>
    %16 = vector.extract_strided_slice %6 {offsets = [1, 0], sizes = [15, 16], strides = [1, 1]} : vector<16x16xf32> to vector<15x16xf32>
    %cst_13 = arith.constant 0.000000e+00 : f32
    %17 = vector.broadcast %cst_13 : f32 to vector<1x16xf32>
    %18 = tpu.concatenate %16, %17 in 0 : vector<15x16xf32>, vector<1x16xf32> -> vector<16x16xf32>
    %19 = vector.extract_strided_slice %6 {offsets = [2, 0], sizes = [14, 16], strides = [1, 1]} : vector<16x16xf32> to vector<14x16xf32>
    %cst_14 = arith.constant 0.000000e+00 : f32
    %20 = vector.broadcast %cst_14 : f32 to vector<2x16xf32>
    %21 = tpu.concatenate %19, %20 in 0 : vector<14x16xf32>, vector<2x16xf32> -> vector<16x16xf32>
    %22 = tpu.concatenate %12, %15, %6, %18, %21 in 1 : vector<16x16xf32>, vector<16x16xf32>, vector<16x16xf32>, vector<16x16xf32>, vector<16x16xf32> -> vector<16x80xf32>
    %23 = arith.truncf %22 : vector<16x80xf32> to vector<16x80xbf16>
    %cst_15 = arith.constant dense<0.000000e+00> : vector<16x32xf32>
    %24 = tpu.matmul %23, %8, %cst_15 {dimension_numbers = #tpu.dot_dimension_numbers<[1], [0], [0], [1], [0, 0, 1, 1], [], []>} : vector<16x80xbf16>, vector<80x32xbf16>, vector<16x32xf32> -> vector<16x32xf32>
    %25 = vector.broadcast %9 : vector<1x32xf32> to vector<16x32xf32>
    %26 = arith.addf %24, %25 : vector<16x32xf32>
    %27 = math.tanh %26 : vector<16x32xf32>
    %c0_16 = arith.constant 0 : index
    %c0_17 = arith.constant 0 : index
    %28 = vector.load %arg6[%c0_16, %c0_17] : memref<160x32xbf16, #tpu.memory_space<vmem>>, vector<160x32xbf16>
    %c0_18 = arith.constant 0 : index
    %c0_19 = arith.constant 0 : index
    %29 = vector.load %arg7[%c0_18, %c0_19] : memref<1x32xf32, #tpu.memory_space<vmem>>, vector<1x32xf32>
    %cst_20 = arith.constant 0.000000e+00 : f32
    %30 = vector.broadcast %cst_20 : f32 to vector<2x32xf32>
    %31 = vector.extract_strided_slice %27 {offsets = [0, 0], sizes = [14, 32], strides = [1, 1]} : vector<16x32xf32> to vector<14x32xf32>
    %32 = tpu.concatenate %30, %31 in 0 : vector<2x32xf32>, vector<14x32xf32> -> vector<16x32xf32>
    %cst_21 = arith.constant 0.000000e+00 : f32
    %33 = vector.broadcast %cst_21 : f32 to vector<1x32xf32>
    %34 = vector.extract_strided_slice %27 {offsets = [0, 0], sizes = [15, 32], strides = [1, 1]} : vector<16x32xf32> to vector<15x32xf32>
    %35 = tpu.concatenate %33, %34 in 0 : vector<1x32xf32>, vector<15x32xf32> -> vector<16x32xf32>
    %36 = vector.extract_strided_slice %27 {offsets = [1, 0], sizes = [15, 32], strides = [1, 1]} : vector<16x32xf32> to vector<15x32xf32>
    %cst_22 = arith.constant 0.000000e+00 : f32
    %37 = vector.broadcast %cst_22 : f32 to vector<1x32xf32>
    %38 = tpu.concatenate %36, %37 in 0 : vector<15x32xf32>, vector<1x32xf32> -> vector<16x32xf32>
    %39 = vector.extract_strided_slice %27 {offsets = [2, 0], sizes = [14, 32], strides = [1, 1]} : vector<16x32xf32> to vector<14x32xf32>
    %cst_23 = arith.constant 0.000000e+00 : f32
    %40 = vector.broadcast %cst_23 : f32 to vector<2x32xf32>
    %41 = tpu.concatenate %39, %40 in 0 : vector<14x32xf32>, vector<2x32xf32> -> vector<16x32xf32>
    %42 = tpu.concatenate %32, %35, %27, %38, %41 in 1 : vector<16x32xf32>, vector<16x32xf32>, vector<16x32xf32>, vector<16x32xf32>, vector<16x32xf32> -> vector<16x160xf32>
    %43 = arith.truncf %42 : vector<16x160xf32> to vector<16x160xbf16>
    %cst_24 = arith.constant dense<0.000000e+00> : vector<16x32xf32>
    %44 = tpu.matmul %43, %28, %cst_24 {dimension_numbers = #tpu.dot_dimension_numbers<[1], [0], [0], [1], [0, 0, 1, 1], [], []>} : vector<16x160xbf16>, vector<160x32xbf16>, vector<16x32xf32> -> vector<16x32xf32>
    %45 = vector.broadcast %29 : vector<1x32xf32> to vector<16x32xf32>
    %46 = arith.addf %44, %45 : vector<16x32xf32>
    %47 = math.tanh %46 : vector<16x32xf32>
    %c0_25 = arith.constant 0 : index
    %c0_26 = arith.constant 0 : index
    %48 = vector.load %arg8[%c0_25, %c0_26] : memref<160x32xbf16, #tpu.memory_space<vmem>>, vector<160x32xbf16>
    %c0_27 = arith.constant 0 : index
    %c0_28 = arith.constant 0 : index
    %49 = vector.load %arg9[%c0_27, %c0_28] : memref<1x32xf32, #tpu.memory_space<vmem>>, vector<1x32xf32>
    %cst_29 = arith.constant 0.000000e+00 : f32
    %50 = vector.broadcast %cst_29 : f32 to vector<2x32xf32>
    %51 = vector.extract_strided_slice %47 {offsets = [0, 0], sizes = [14, 32], strides = [1, 1]} : vector<16x32xf32> to vector<14x32xf32>
    %52 = tpu.concatenate %50, %51 in 0 : vector<2x32xf32>, vector<14x32xf32> -> vector<16x32xf32>
    %cst_30 = arith.constant 0.000000e+00 : f32
    %53 = vector.broadcast %cst_30 : f32 to vector<1x32xf32>
    %54 = vector.extract_strided_slice %47 {offsets = [0, 0], sizes = [15, 32], strides = [1, 1]} : vector<16x32xf32> to vector<15x32xf32>
    %55 = tpu.concatenate %53, %54 in 0 : vector<1x32xf32>, vector<15x32xf32> -> vector<16x32xf32>
    %56 = vector.extract_strided_slice %47 {offsets = [1, 0], sizes = [15, 32], strides = [1, 1]} : vector<16x32xf32> to vector<15x32xf32>
    %cst_31 = arith.constant 0.000000e+00 : f32
    %57 = vector.broadcast %cst_31 : f32 to vector<1x32xf32>
    %58 = tpu.concatenate %56, %57 in 0 : vector<15x32xf32>, vector<1x32xf32> -> vector<16x32xf32>
    %59 = vector.extract_strided_slice %47 {offsets = [2, 0], sizes = [14, 32], strides = [1, 1]} : vector<16x32xf32> to vector<14x32xf32>
    %cst_32 = arith.constant 0.000000e+00 : f32
    %60 = vector.broadcast %cst_32 : f32 to vector<2x32xf32>
    %61 = tpu.concatenate %59, %60 in 0 : vector<14x32xf32>, vector<2x32xf32> -> vector<16x32xf32>
    %62 = tpu.concatenate %52, %55, %47, %58, %61 in 1 : vector<16x32xf32>, vector<16x32xf32>, vector<16x32xf32>, vector<16x32xf32>, vector<16x32xf32> -> vector<16x160xf32>
    %63 = arith.truncf %62 : vector<16x160xf32> to vector<16x160xbf16>
    %cst_33 = arith.constant dense<0.000000e+00> : vector<16x32xf32>
    %64 = tpu.matmul %63, %48, %cst_33 {dimension_numbers = #tpu.dot_dimension_numbers<[1], [0], [0], [1], [0, 0, 1, 1], [], []>} : vector<16x160xbf16>, vector<160x32xbf16>, vector<16x32xf32> -> vector<16x32xf32>
    %65 = vector.broadcast %49 : vector<1x32xf32> to vector<16x32xf32>
    %66 = arith.addf %64, %65 : vector<16x32xf32>
    %67 = math.tanh %66 : vector<16x32xf32>
    %c0_34 = arith.constant 0 : index
    %c0_35 = arith.constant 0 : index
    %68 = vector.load %arg10[%c0_34, %c0_35] : memref<160x32xbf16, #tpu.memory_space<vmem>>, vector<160x32xbf16>
    %c0_36 = arith.constant 0 : index
    %c0_37 = arith.constant 0 : index
    %69 = vector.load %arg11[%c0_36, %c0_37] : memref<1x32xf32, #tpu.memory_space<vmem>>, vector<1x32xf32>
    %cst_38 = arith.constant 0.000000e+00 : f32
    %70 = vector.broadcast %cst_38 : f32 to vector<2x32xf32>
    %71 = vector.extract_strided_slice %67 {offsets = [0, 0], sizes = [14, 32], strides = [1, 1]} : vector<16x32xf32> to vector<14x32xf32>
    %72 = tpu.concatenate %70, %71 in 0 : vector<2x32xf32>, vector<14x32xf32> -> vector<16x32xf32>
    %cst_39 = arith.constant 0.000000e+00 : f32
    %73 = vector.broadcast %cst_39 : f32 to vector<1x32xf32>
    %74 = vector.extract_strided_slice %67 {offsets = [0, 0], sizes = [15, 32], strides = [1, 1]} : vector<16x32xf32> to vector<15x32xf32>
    %75 = tpu.concatenate %73, %74 in 0 : vector<1x32xf32>, vector<15x32xf32> -> vector<16x32xf32>
    %76 = vector.extract_strided_slice %67 {offsets = [1, 0], sizes = [15, 32], strides = [1, 1]} : vector<16x32xf32> to vector<15x32xf32>
    %cst_40 = arith.constant 0.000000e+00 : f32
    %77 = vector.broadcast %cst_40 : f32 to vector<1x32xf32>
    %78 = tpu.concatenate %76, %77 in 0 : vector<15x32xf32>, vector<1x32xf32> -> vector<16x32xf32>
    %79 = vector.extract_strided_slice %67 {offsets = [2, 0], sizes = [14, 32], strides = [1, 1]} : vector<16x32xf32> to vector<14x32xf32>
    %cst_41 = arith.constant 0.000000e+00 : f32
    %80 = vector.broadcast %cst_41 : f32 to vector<2x32xf32>
    %81 = tpu.concatenate %79, %80 in 0 : vector<14x32xf32>, vector<2x32xf32> -> vector<16x32xf32>
    %82 = tpu.concatenate %72, %75, %67, %78, %81 in 1 : vector<16x32xf32>, vector<16x32xf32>, vector<16x32xf32>, vector<16x32xf32>, vector<16x32xf32> -> vector<16x160xf32>
    %83 = arith.truncf %82 : vector<16x160xf32> to vector<16x160xbf16>
    %cst_42 = arith.constant dense<0.000000e+00> : vector<16x32xf32>
    %84 = tpu.matmul %83, %68, %cst_42 {dimension_numbers = #tpu.dot_dimension_numbers<[1], [0], [0], [1], [0, 0, 1, 1], [], []>} : vector<16x160xbf16>, vector<160x32xbf16>, vector<16x32xf32> -> vector<16x32xf32>
    %85 = vector.broadcast %69 : vector<1x32xf32> to vector<16x32xf32>
    %86 = arith.addf %84, %85 : vector<16x32xf32>
    %87 = math.tanh %86 : vector<16x32xf32>
    %c0_43 = arith.constant 0 : index
    %c0_44 = arith.constant 0 : index
    %88 = vector.load %arg12[%c0_43, %c0_44] : memref<160x16xbf16, #tpu.memory_space<vmem>>, vector<160x16xbf16>
    %c0_45 = arith.constant 0 : index
    %c0_46 = arith.constant 0 : index
    %89 = vector.load %arg13[%c0_45, %c0_46] : memref<1x16xf32, #tpu.memory_space<vmem>>, vector<1x16xf32>
    %cst_47 = arith.constant 0.000000e+00 : f32
    %90 = vector.broadcast %cst_47 : f32 to vector<2x32xf32>
    %91 = vector.extract_strided_slice %87 {offsets = [0, 0], sizes = [14, 32], strides = [1, 1]} : vector<16x32xf32> to vector<14x32xf32>
    %92 = tpu.concatenate %90, %91 in 0 : vector<2x32xf32>, vector<14x32xf32> -> vector<16x32xf32>
    %cst_48 = arith.constant 0.000000e+00 : f32
    %93 = vector.broadcast %cst_48 : f32 to vector<1x32xf32>
    %94 = vector.extract_strided_slice %87 {offsets = [0, 0], sizes = [15, 32], strides = [1, 1]} : vector<16x32xf32> to vector<15x32xf32>
    %95 = tpu.concatenate %93, %94 in 0 : vector<1x32xf32>, vector<15x32xf32> -> vector<16x32xf32>
    %96 = vector.extract_strided_slice %87 {offsets = [1, 0], sizes = [15, 32], strides = [1, 1]} : vector<16x32xf32> to vector<15x32xf32>
    %cst_49 = arith.constant 0.000000e+00 : f32
    %97 = vector.broadcast %cst_49 : f32 to vector<1x32xf32>
    %98 = tpu.concatenate %96, %97 in 0 : vector<15x32xf32>, vector<1x32xf32> -> vector<16x32xf32>
    %99 = vector.extract_strided_slice %87 {offsets = [2, 0], sizes = [14, 32], strides = [1, 1]} : vector<16x32xf32> to vector<14x32xf32>
    %cst_50 = arith.constant 0.000000e+00 : f32
    %100 = vector.broadcast %cst_50 : f32 to vector<2x32xf32>
    %101 = tpu.concatenate %99, %100 in 0 : vector<14x32xf32>, vector<2x32xf32> -> vector<16x32xf32>
    %102 = tpu.concatenate %92, %95, %87, %98, %101 in 1 : vector<16x32xf32>, vector<16x32xf32>, vector<16x32xf32>, vector<16x32xf32>, vector<16x32xf32> -> vector<16x160xf32>
    %103 = arith.truncf %102 : vector<16x160xf32> to vector<16x160xbf16>
    %cst_51 = arith.constant dense<0.000000e+00> : vector<16x16xf32>
    %104 = tpu.matmul %103, %88, %cst_51 {dimension_numbers = #tpu.dot_dimension_numbers<[1], [0], [0], [1], [0, 0, 1, 1], [], []>} : vector<16x160xbf16>, vector<160x16xbf16>, vector<16x16xf32> -> vector<16x16xf32>
    %105 = vector.broadcast %89 : vector<1x16xf32> to vector<16x16xf32>
    %106 = arith.addf %104, %105 : vector<16x16xf32>
    %107 = arith.addf %106, %6 : vector<16x16xf32>
    %c0_52 = arith.constant 0 : index
    %c0_53 = arith.constant 0 : index
    %108 = vector.load %arg15[%c0_52, %c0_53] : memref<16x16xf32, #tpu.memory_space<vmem>>, vector<16x16xf32>
    tpu.vector_store %arg15[%c0_52, %c0_53], %107 {strides = array<i32>} : memref<16x16xf32, #tpu.memory_space<vmem>>, vector<16x16xf32>,
    return
  }
  func.func @transform_0(%arg0: i32) -> (i32, i32) {
    %c0_i32 = arith.constant 0 : i32
    %c0_i32_0 = arith.constant 0 : i32
    return %arg0, %c0_i32 : i32, i32
  }
  func.func @transform_1(%arg0: i32) -> (i32, i32) {
    %c0_i32 = arith.constant 0 : i32
    %c0_i32_0 = arith.constant 0 : i32
    %c0_i32_1 = arith.constant 0 : i32
    return %c0_i32, %c0_i32_0 : i32, i32
  }
  func.func @transform_2(%arg0: i32) -> (i32, i32) {
    %c0_i32 = arith.constant 0 : i32
    %c0_i32_0 = arith.constant 0 : i32
    %c0_i32_1 = arith.constant 0 : i32
    return %c0_i32, %c0_i32_0 : i32, i32
  }
  func.func @transform_3(%arg0: i32) -> (i32, i32) {
    %c0_i32 = arith.constant 0 : i32
    %c0_i32_0 = arith.constant 0 : i32
    %c0_i32_1 = arith.constant 0 : i32
    return %c0_i32, %c0_i32_0 : i32, i32
  }
  func.func @transform_4(%arg0: i32) -> (i32, i32) {
    %c0_i32 = arith.constant 0 : i32
    %c0_i32_0 = arith.constant 0 : i32
    %c0_i32_1 = arith.constant 0 : i32
    return %c0_i32, %c0_i32_0 : i32, i32
  }
  func.func @transform_5(%arg0: i32) -> (i32, i32) {
    %c0_i32 = arith.constant 0 : i32
    %c0_i32_0 = arith.constant 0 : i32
    %c0_i32_1 = arith.constant 0 : i32
    return %c0_i32, %c0_i32_0 : i32, i32
  }
  func.func @transform_6(%arg0: i32) -> (i32, i32) {
    %c0_i32 = arith.constant 0 : i32
    %c0_i32_0 = arith.constant 0 : i32
    %c0_i32_1 = arith.constant 0 : i32
    return %c0_i32, %c0_i32_0 : i32, i32
  }
  func.func @transform_7(%arg0: i32) -> (i32, i32) {
    %c0_i32 = arith.constant 0 : i32
    %c0_i32_0 = arith.constant 0 : i32
    %c0_i32_1 = arith.constant 0 : i32
    return %c0_i32, %c0_i32_0 : i32, i32
  }
  func.func @transform_8(%arg0: i32) -> (i32, i32) {
    %c0_i32 = arith.constant 0 : i32
    %c0_i32_0 = arith.constant 0 : i32
    %c0_i32_1 = arith.constant 0 : i32
    return %c0_i32, %c0_i32_0 : i32, i32
  }
  func.func @transform_9(%arg0: i32) -> (i32, i32) {
    %c0_i32 = arith.constant 0 : i32
    %c0_i32_0 = arith.constant 0 : i32
    %c0_i32_1 = arith.constant 0 : i32
    return %c0_i32, %c0_i32_0 : i32, i32
  }
  func.func @transform_10(%arg0: i32) -> (i32, i32) {
    %c0_i32 = arith.constant 0 : i32
    %c0_i32_0 = arith.constant 0 : i32
    %c0_i32_1 = arith.constant 0 : i32
    return %c0_i32, %c0_i32_0 : i32, i32
  }
  func.func @transform_11(%arg0: i32) -> (i32, i32) {
    %c0_i32 = arith.constant 0 : i32
    %c0_i32_0 = arith.constant 0 : i32
    %c0_i32_1 = arith.constant 0 : i32
    return %c0_i32, %c0_i32_0 : i32, i32
  }
  func.func @transform_12(%arg0: i32) -> (i32, i32) {
    %c0_i32 = arith.constant 0 : i32
    %c0_i32_0 = arith.constant 0 : i32
    %c0_i32_1 = arith.constant 0 : i32
    return %c0_i32, %c0_i32_0 : i32, i32
  }
  func.func @transform_13(%arg0: i32) -> (i32, i32) {
    %c0_i32 = arith.constant 0 : i32
    %c0_i32_0 = arith.constant 0 : i32
    return %arg0, %c0_i32 : i32, i32
  }
  func.func @transform_14(%arg0: i32) -> (i32, i32) {
    %c0_i32 = arith.constant 0 : i32
    %c0_i32_0 = arith.constant 0 : i32
    return %arg0, %c0_i32 : i32, i32
  }
}

module attributes {stable_mosaic.version = 11 : i64} {
  func.func @_duration_kernel(%arg0: i32, %arg1: memref<16x32xf32, #tpu.memory_space<vmem>>, %arg2: memref<1x16xf32, #tpu.memory_space<vmem>>, %arg3: memref<96x32xbf16, #tpu.memory_space<vmem>>, %arg4: memref<1x32xf32, #tpu.memory_space<vmem>>, %arg5: memref<1x32xf32, #tpu.memory_space<vmem>>, %arg6: memref<1x32xf32, #tpu.memory_space<vmem>>, %arg7: memref<96x32xbf16, #tpu.memory_space<vmem>>, %arg8: memref<1x32xf32, #tpu.memory_space<vmem>>, %arg9: memref<1x32xf32, #tpu.memory_space<vmem>>, %arg10: memref<1x32xf32, #tpu.memory_space<vmem>>, %arg11: memref<1x32xbf16, #tpu.memory_space<vmem>>, %arg12: memref<1x1xf32, #tpu.memory_space<vmem>>, %arg13: memref<1x16xf32, #tpu.memory_space<vmem>>) attributes {dimension_semantics = [#tpu.dimension_semantics<arbitrary>], iteration_bounds = array<i64: 1>, scalar_prefetch = 0 : i64, scratch_operands = 0 : i64, tpu.core_type = #tpu.core_type<tc>, window_params = [{pipeline_mode = #tpu.pipeline_mode<synchronous>, transform_indices = @transform_0, window_bounds = array<i64: 16, 32>}, {pipeline_mode = #tpu.pipeline_mode<synchronous>, transform_indices = @transform_1, window_bounds = array<i64: 1, 16>}, {pipeline_mode = #tpu.pipeline_mode<synchronous>, transform_indices = @transform_2, window_bounds = array<i64: 96, 32>}, {pipeline_mode = #tpu.pipeline_mode<synchronous>, transform_indices = @transform_3, window_bounds = array<i64: 1, 32>}, {pipeline_mode = #tpu.pipeline_mode<synchronous>, transform_indices = @transform_4, window_bounds = array<i64: 1, 32>}, {pipeline_mode = #tpu.pipeline_mode<synchronous>, transform_indices = @transform_5, window_bounds = array<i64: 1, 32>}, {pipeline_mode = #tpu.pipeline_mode<synchronous>, transform_indices = @transform_6, window_bounds = array<i64: 96, 32>}, {pipeline_mode = #tpu.pipeline_mode<synchronous>, transform_indices = @transform_7, window_bounds = array<i64: 1, 32>}, {pipeline_mode = #tpu.pipeline_mode<synchronous>, transform_indices = @transform_8, window_bounds = array<i64: 1, 32>}, {pipeline_mode = #tpu.pipeline_mode<synchronous>, transform_indices = @transform_9, window_bounds = array<i64: 1, 32>}, {pipeline_mode = #tpu.pipeline_mode<synchronous>, transform_indices = @transform_10, window_bounds = array<i64: 1, 32>}, {pipeline_mode = #tpu.pipeline_mode<synchronous>, transform_indices = @transform_11, window_bounds = array<i64: 1, 1>}, {pipeline_mode = #tpu.pipeline_mode<synchronous>, transform_indices = @transform_12, window_bounds = array<i64: 1, 16>}]} {
    %c0 = arith.constant 0 : index
    %c0_0 = arith.constant 0 : index
    %0 = vector.load %arg1[%c0, %c0_0] : memref<16x32xf32, #tpu.memory_space<vmem>>, vector<16x32xf32>
    %c0_1 = arith.constant 0 : index
    %c0_2 = arith.constant 0 : index
    %1 = vector.load %arg3[%c0_1, %c0_2] : memref<96x32xbf16, #tpu.memory_space<vmem>>, vector<96x32xbf16>
    %c0_3 = arith.constant 0 : index
    %c0_4 = arith.constant 0 : index
    %2 = vector.load %arg4[%c0_3, %c0_4] : memref<1x32xf32, #tpu.memory_space<vmem>>, vector<1x32xf32>
    %c0_5 = arith.constant 0 : index
    %c0_6 = arith.constant 0 : index
    %3 = vector.load %arg5[%c0_5, %c0_6] : memref<1x32xf32, #tpu.memory_space<vmem>>, vector<1x32xf32>
    %c0_7 = arith.constant 0 : index
    %c0_8 = arith.constant 0 : index
    %4 = vector.load %arg6[%c0_7, %c0_8] : memref<1x32xf32, #tpu.memory_space<vmem>>, vector<1x32xf32>
    %c0_9 = arith.constant 0 : index
    %c0_10 = arith.constant 0 : index
    %5 = vector.load %arg7[%c0_9, %c0_10] : memref<96x32xbf16, #tpu.memory_space<vmem>>, vector<96x32xbf16>
    %c0_11 = arith.constant 0 : index
    %c0_12 = arith.constant 0 : index
    %6 = vector.load %arg8[%c0_11, %c0_12] : memref<1x32xf32, #tpu.memory_space<vmem>>, vector<1x32xf32>
    %c0_13 = arith.constant 0 : index
    %c0_14 = arith.constant 0 : index
    %7 = vector.load %arg9[%c0_13, %c0_14] : memref<1x32xf32, #tpu.memory_space<vmem>>, vector<1x32xf32>
    %c0_15 = arith.constant 0 : index
    %c0_16 = arith.constant 0 : index
    %8 = vector.load %arg10[%c0_15, %c0_16] : memref<1x32xf32, #tpu.memory_space<vmem>>, vector<1x32xf32>
    %c0_17 = arith.constant 0 : index
    %c0_18 = arith.constant 0 : index
    %9 = vector.load %arg11[%c0_17, %c0_18] : memref<1x32xbf16, #tpu.memory_space<vmem>>, vector<1x32xbf16>
    %c0_19 = arith.constant 0 : index
    %c0_20 = arith.constant 0 : index
    %10 = vector.load %arg12[%c0_19, %c0_20] : memref<1x1xf32, #tpu.memory_space<vmem>>, vector<1x1xf32>
    %cst = arith.constant 0.000000e+00 : f32
    %11 = vector.broadcast %cst : f32 to vector<1x32xf32>
    %12 = vector.extract_strided_slice %0 {offsets = [0, 0], sizes = [15, 32], strides = [1, 1]} : vector<16x32xf32> to vector<15x32xf32>
    %13 = tpu.concatenate %11, %12 in 0 : vector<1x32xf32>, vector<15x32xf32> -> vector<16x32xf32>
    %14 = tpu.iota {dimensions = array<i32: 0>} : vector<16x1xi32>
    %c8_i32 = arith.constant 8 : i32
    %c0_i32 = arith.constant 0 : i32
    %15 = arith.cmpi eq, %c8_i32, %c0_i32 : i32
    %c1_i32 = arith.constant 1 : i32
    %16 = arith.select %15, %c1_i32, %c8_i32 : i32
    %17 = vector.broadcast %16 : i32 to vector<16x1xi32>
    %18 = arith.remsi %14, %17 : vector<16x1xi32>
    %c0_i32_21 = arith.constant 0 : i32
    %19 = vector.broadcast %c0_i32_21 : i32 to vector<16x1xi32>
    %20 = arith.cmpi ne, %18, %19 : vector<16x1xi32>
    %c0_i32_22 = arith.constant 0 : i32
    %21 = vector.broadcast %c0_i32_22 : i32 to vector<16x1xi32>
    %22 = arith.cmpi slt, %18, %21 : vector<16x1xi32>
    %c0_i32_23 = arith.constant 0 : i32
    %23 = arith.cmpi slt, %16, %c0_i32_23 : i32
    %24 = vector.broadcast %23 : i1 to vector<16x1xi1>
    %25 = vector.broadcast %24 : vector<16x1xi1> to vector<16x1xi1>
    %26 = arith.xori %22, %25 : vector<16x1xi1>
    %27 = arith.andi %26, %20 : vector<16x1xi1>
    %28 = vector.broadcast %16 : i32 to vector<16x1xi32>
    %29 = arith.addi %18, %28 : vector<16x1xi32>
    %30 = arith.select %27, %29, %18 : vector<16x1xi1>, vector<16x1xi32>
    %c-1_i32 = arith.constant -1 : i32
    %31 = vector.broadcast %c-1_i32 : i32 to vector<16x1xi32>
    %32 = arith.addi %30, %31 : vector<16x1xi32>
    %c0_i32_24 = arith.constant 0 : i32
    %33 = vector.broadcast %c0_i32_24 : i32 to vector<16x1xi32>
    %34 = arith.cmpi sge, %32, %33 : vector<16x1xi32>
    %c-1_i32_25 = arith.constant -1 : i32
    %35 = vector.broadcast %c-1_i32_25 : i32 to vector<16x1xi32>
    %36 = arith.addi %30, %35 : vector<16x1xi32>
    %c8_i32_26 = arith.constant 8 : i32
    %37 = vector.broadcast %c8_i32_26 : i32 to vector<16x1xi32>
    %38 = arith.cmpi slt, %36, %37 : vector<16x1xi32>
    %39 = arith.andi %34, %38 : vector<16x1xi1>
    %cst_27 = arith.constant 0.000000e+00 : f32
    %40 = vector.shape_cast %39 : vector<16x1xi1> to vector<16x1xi1>
    %41 = vector.broadcast %40 : vector<16x1xi1> to vector<16x32xi1>
    %42 = vector.broadcast %cst_27 : f32 to vector<16x32xf32>
    %43 = arith.select %41, %13, %42 : vector<16x32xi1>, vector<16x32xf32>
    %44 = vector.extract_strided_slice %0 {offsets = [1, 0], sizes = [15, 32], strides = [1, 1]} : vector<16x32xf32> to vector<15x32xf32>
    %cst_28 = arith.constant 0.000000e+00 : f32
    %45 = vector.broadcast %cst_28 : f32 to vector<1x32xf32>
    %46 = tpu.concatenate %44, %45 in 0 : vector<15x32xf32>, vector<1x32xf32> -> vector<16x32xf32>
    %47 = tpu.iota {dimensions = array<i32: 0>} : vector<16x1xi32>
    %c8_i32_29 = arith.constant 8 : i32
    %c0_i32_30 = arith.constant 0 : i32
    %48 = arith.cmpi eq, %c8_i32_29, %c0_i32_30 : i32
    %c1_i32_31 = arith.constant 1 : i32
    %49 = arith.select %48, %c1_i32_31, %c8_i32_29 : i32
    %50 = vector.broadcast %49 : i32 to vector<16x1xi32>
    %51 = arith.remsi %47, %50 : vector<16x1xi32>
    %c0_i32_32 = arith.constant 0 : i32
    %52 = vector.broadcast %c0_i32_32 : i32 to vector<16x1xi32>
    %53 = arith.cmpi ne, %51, %52 : vector<16x1xi32>
    %c0_i32_33 = arith.constant 0 : i32
    %54 = vector.broadcast %c0_i32_33 : i32 to vector<16x1xi32>
    %55 = arith.cmpi slt, %51, %54 : vector<16x1xi32>
    %c0_i32_34 = arith.constant 0 : i32
    %56 = arith.cmpi slt, %49, %c0_i32_34 : i32
    %57 = vector.broadcast %56 : i1 to vector<16x1xi1>
    %58 = vector.broadcast %57 : vector<16x1xi1> to vector<16x1xi1>
    %59 = arith.xori %55, %58 : vector<16x1xi1>
    %60 = arith.andi %59, %53 : vector<16x1xi1>
    %61 = vector.broadcast %49 : i32 to vector<16x1xi32>
    %62 = arith.addi %51, %61 : vector<16x1xi32>
    %63 = arith.select %60, %62, %51 : vector<16x1xi1>, vector<16x1xi32>
    %c1_i32_35 = arith.constant 1 : i32
    %64 = vector.broadcast %c1_i32_35 : i32 to vector<16x1xi32>
    %65 = arith.addi %63, %64 : vector<16x1xi32>
    %c0_i32_36 = arith.constant 0 : i32
    %66 = vector.broadcast %c0_i32_36 : i32 to vector<16x1xi32>
    %67 = arith.cmpi sge, %65, %66 : vector<16x1xi32>
    %c1_i32_37 = arith.constant 1 : i32
    %68 = vector.broadcast %c1_i32_37 : i32 to vector<16x1xi32>
    %69 = arith.addi %63, %68 : vector<16x1xi32>
    %c8_i32_38 = arith.constant 8 : i32
    %70 = vector.broadcast %c8_i32_38 : i32 to vector<16x1xi32>
    %71 = arith.cmpi slt, %69, %70 : vector<16x1xi32>
    %72 = arith.andi %67, %71 : vector<16x1xi1>
    %cst_39 = arith.constant 0.000000e+00 : f32
    %73 = vector.shape_cast %72 : vector<16x1xi1> to vector<16x1xi1>
    %74 = vector.broadcast %73 : vector<16x1xi1> to vector<16x32xi1>
    %75 = vector.broadcast %cst_39 : f32 to vector<16x32xf32>
    %76 = arith.select %74, %46, %75 : vector<16x32xi1>, vector<16x32xf32>
    %77 = tpu.concatenate %43, %0, %76 in 1 : vector<16x32xf32>, vector<16x32xf32>, vector<16x32xf32> -> vector<16x96xf32>
    %78 = arith.truncf %77 : vector<16x96xf32> to vector<16x96xbf16>
    %cst_40 = arith.constant dense<0.000000e+00> : vector<16x32xf32>
    %79 = tpu.matmul %78, %1, %cst_40 {dimension_numbers = #tpu.dot_dimension_numbers<[1], [0], [0], [1], [0, 0, 1, 1], [], []>} : vector<16x96xbf16>, vector<96x32xbf16>, vector<16x32xf32> -> vector<16x32xf32>
    %80 = vector.broadcast %2 : vector<1x32xf32> to vector<16x32xf32>
    %81 = arith.addf %79, %80 : vector<16x32xf32>
    %cst_41 = arith.constant 0.000000e+00 : f32
    %82 = vector.broadcast %cst_41 : f32 to vector<16x32xf32>
    %83 = arith.maximumf %81, %82 : vector<16x32xf32>
    %cst_42 = arith.constant dense<0.000000e+00> : vector<16xf32>
    %84 = vector.multi_reduction <add>, %83, %cst_42 [1] : vector<16x32xf32> to vector<16xf32>
    %85 = vector.shape_cast %84 : vector<16xf32> to vector<16x1xf32>
    %cst_43 = arith.constant 3.200000e+01 : f32
    %86 = vector.broadcast %cst_43 : f32 to vector<16x1xf32>
    %87 = arith.divf %85, %86 : vector<16x1xf32>
    %88 = vector.broadcast %87 : vector<16x1xf32> to vector<16x32xf32>
    %89 = arith.subf %83, %88 : vector<16x32xf32>
    %90 = arith.mulf %89, %89 : vector<16x32xf32>
    %cst_44 = arith.constant dense<0.000000e+00> : vector<16xf32>
    %91 = vector.multi_reduction <add>, %90, %cst_44 [1] : vector<16x32xf32> to vector<16xf32>
    %92 = vector.shape_cast %91 : vector<16xf32> to vector<16x1xf32>
    %cst_45 = arith.constant 3.200000e+01 : f32
    %93 = vector.broadcast %cst_45 : f32 to vector<16x1xf32>
    %94 = arith.divf %92, %93 : vector<16x1xf32>
    %95 = vector.broadcast %87 : vector<16x1xf32> to vector<16x32xf32>
    %96 = arith.subf %83, %95 : vector<16x32xf32>
    %cst_46 = arith.constant 9.99999974E-6 : f32
    %97 = vector.broadcast %cst_46 : f32 to vector<16x1xf32>
    %98 = arith.addf %94, %97 : vector<16x1xf32>
    %99 = math.rsqrt %98 : vector<16x1xf32>
    %100 = vector.broadcast %99 : vector<16x1xf32> to vector<16x32xf32>
    %101 = arith.mulf %96, %100 : vector<16x32xf32>
    %102 = vector.broadcast %3 : vector<1x32xf32> to vector<16x32xf32>
    %103 = arith.mulf %101, %102 : vector<16x32xf32>
    %104 = vector.broadcast %4 : vector<1x32xf32> to vector<16x32xf32>
    %105 = arith.addf %103, %104 : vector<16x32xf32>
    %cst_47 = arith.constant 0.000000e+00 : f32
    %106 = vector.broadcast %cst_47 : f32 to vector<1x32xf32>
    %107 = vector.extract_strided_slice %105 {offsets = [0, 0], sizes = [15, 32], strides = [1, 1]} : vector<16x32xf32> to vector<15x32xf32>
    %108 = tpu.concatenate %106, %107 in 0 : vector<1x32xf32>, vector<15x32xf32> -> vector<16x32xf32>
    %109 = tpu.iota {dimensions = array<i32: 0>} : vector<16x1xi32>
    %c8_i32_48 = arith.constant 8 : i32
    %c0_i32_49 = arith.constant 0 : i32
    %110 = arith.cmpi eq, %c8_i32_48, %c0_i32_49 : i32
    %c1_i32_50 = arith.constant 1 : i32
    %111 = arith.select %110, %c1_i32_50, %c8_i32_48 : i32
    %112 = vector.broadcast %111 : i32 to vector<16x1xi32>
    %113 = arith.remsi %109, %112 : vector<16x1xi32>
    %c0_i32_51 = arith.constant 0 : i32
    %114 = vector.broadcast %c0_i32_51 : i32 to vector<16x1xi32>
    %115 = arith.cmpi ne, %113, %114 : vector<16x1xi32>
    %c0_i32_52 = arith.constant 0 : i32
    %116 = vector.broadcast %c0_i32_52 : i32 to vector<16x1xi32>
    %117 = arith.cmpi slt, %113, %116 : vector<16x1xi32>
    %c0_i32_53 = arith.constant 0 : i32
    %118 = arith.cmpi slt, %111, %c0_i32_53 : i32
    %119 = vector.broadcast %118 : i1 to vector<16x1xi1>
    %120 = vector.broadcast %119 : vector<16x1xi1> to vector<16x1xi1>
    %121 = arith.xori %117, %120 : vector<16x1xi1>
    %122 = arith.andi %121, %115 : vector<16x1xi1>
    %123 = vector.broadcast %111 : i32 to vector<16x1xi32>
    %124 = arith.addi %113, %123 : vector<16x1xi32>
    %125 = arith.select %122, %124, %113 : vector<16x1xi1>, vector<16x1xi32>
    %c-1_i32_54 = arith.constant -1 : i32
    %126 = vector.broadcast %c-1_i32_54 : i32 to vector<16x1xi32>
    %127 = arith.addi %125, %126 : vector<16x1xi32>
    %c0_i32_55 = arith.constant 0 : i32
    %128 = vector.broadcast %c0_i32_55 : i32 to vector<16x1xi32>
    %129 = arith.cmpi sge, %127, %128 : vector<16x1xi32>
    %c-1_i32_56 = arith.constant -1 : i32
    %130 = vector.broadcast %c-1_i32_56 : i32 to vector<16x1xi32>
    %131 = arith.addi %125, %130 : vector<16x1xi32>
    %c8_i32_57 = arith.constant 8 : i32
    %132 = vector.broadcast %c8_i32_57 : i32 to vector<16x1xi32>
    %133 = arith.cmpi slt, %131, %132 : vector<16x1xi32>
    %134 = arith.andi %129, %133 : vector<16x1xi1>
    %cst_58 = arith.constant 0.000000e+00 : f32
    %135 = vector.shape_cast %134 : vector<16x1xi1> to vector<16x1xi1>
    %136 = vector.broadcast %135 : vector<16x1xi1> to vector<16x32xi1>
    %137 = vector.broadcast %cst_58 : f32 to vector<16x32xf32>
    %138 = arith.select %136, %108, %137 : vector<16x32xi1>, vector<16x32xf32>
    %139 = vector.extract_strided_slice %105 {offsets = [1, 0], sizes = [15, 32], strides = [1, 1]} : vector<16x32xf32> to vector<15x32xf32>
    %cst_59 = arith.constant 0.000000e+00 : f32
    %140 = vector.broadcast %cst_59 : f32 to vector<1x32xf32>
    %141 = tpu.concatenate %139, %140 in 0 : vector<15x32xf32>, vector<1x32xf32> -> vector<16x32xf32>
    %142 = tpu.iota {dimensions = array<i32: 0>} : vector<16x1xi32>
    %c8_i32_60 = arith.constant 8 : i32
    %c0_i32_61 = arith.constant 0 : i32
    %143 = arith.cmpi eq, %c8_i32_60, %c0_i32_61 : i32
    %c1_i32_62 = arith.constant 1 : i32
    %144 = arith.select %143, %c1_i32_62, %c8_i32_60 : i32
    %145 = vector.broadcast %144 : i32 to vector<16x1xi32>
    %146 = arith.remsi %142, %145 : vector<16x1xi32>
    %c0_i32_63 = arith.constant 0 : i32
    %147 = vector.broadcast %c0_i32_63 : i32 to vector<16x1xi32>
    %148 = arith.cmpi ne, %146, %147 : vector<16x1xi32>
    %c0_i32_64 = arith.constant 0 : i32
    %149 = vector.broadcast %c0_i32_64 : i32 to vector<16x1xi32>
    %150 = arith.cmpi slt, %146, %149 : vector<16x1xi32>
    %c0_i32_65 = arith.constant 0 : i32
    %151 = arith.cmpi slt, %144, %c0_i32_65 : i32
    %152 = vector.broadcast %151 : i1 to vector<16x1xi1>
    %153 = vector.broadcast %152 : vector<16x1xi1> to vector<16x1xi1>
    %154 = arith.xori %150, %153 : vector<16x1xi1>
    %155 = arith.andi %154, %148 : vector<16x1xi1>
    %156 = vector.broadcast %144 : i32 to vector<16x1xi32>
    %157 = arith.addi %146, %156 : vector<16x1xi32>
    %158 = arith.select %155, %157, %146 : vector<16x1xi1>, vector<16x1xi32>
    %c1_i32_66 = arith.constant 1 : i32
    %159 = vector.broadcast %c1_i32_66 : i32 to vector<16x1xi32>
    %160 = arith.addi %158, %159 : vector<16x1xi32>
    %c0_i32_67 = arith.constant 0 : i32
    %161 = vector.broadcast %c0_i32_67 : i32 to vector<16x1xi32>
    %162 = arith.cmpi sge, %160, %161 : vector<16x1xi32>
    %c1_i32_68 = arith.constant 1 : i32
    %163 = vector.broadcast %c1_i32_68 : i32 to vector<16x1xi32>
    %164 = arith.addi %158, %163 : vector<16x1xi32>
    %c8_i32_69 = arith.constant 8 : i32
    %165 = vector.broadcast %c8_i32_69 : i32 to vector<16x1xi32>
    %166 = arith.cmpi slt, %164, %165 : vector<16x1xi32>
    %167 = arith.andi %162, %166 : vector<16x1xi1>
    %cst_70 = arith.constant 0.000000e+00 : f32
    %168 = vector.shape_cast %167 : vector<16x1xi1> to vector<16x1xi1>
    %169 = vector.broadcast %168 : vector<16x1xi1> to vector<16x32xi1>
    %170 = vector.broadcast %cst_70 : f32 to vector<16x32xf32>
    %171 = arith.select %169, %141, %170 : vector<16x32xi1>, vector<16x32xf32>
    %172 = tpu.concatenate %138, %105, %171 in 1 : vector<16x32xf32>, vector<16x32xf32>, vector<16x32xf32> -> vector<16x96xf32>
    %173 = arith.truncf %172 : vector<16x96xf32> to vector<16x96xbf16>
    %cst_71 = arith.constant dense<0.000000e+00> : vector<16x32xf32>
    %174 = tpu.matmul %173, %5, %cst_71 {dimension_numbers = #tpu.dot_dimension_numbers<[1], [0], [0], [1], [0, 0, 1, 1], [], []>} : vector<16x96xbf16>, vector<96x32xbf16>, vector<16x32xf32> -> vector<16x32xf32>
    %175 = vector.broadcast %6 : vector<1x32xf32> to vector<16x32xf32>
    %176 = arith.addf %174, %175 : vector<16x32xf32>
    %cst_72 = arith.constant 0.000000e+00 : f32
    %177 = vector.broadcast %cst_72 : f32 to vector<16x32xf32>
    %178 = arith.maximumf %176, %177 : vector<16x32xf32>
    %cst_73 = arith.constant dense<0.000000e+00> : vector<16xf32>
    %179 = vector.multi_reduction <add>, %178, %cst_73 [1] : vector<16x32xf32> to vector<16xf32>
    %180 = vector.shape_cast %179 : vector<16xf32> to vector<16x1xf32>
    %cst_74 = arith.constant 3.200000e+01 : f32
    %181 = vector.broadcast %cst_74 : f32 to vector<16x1xf32>
    %182 = arith.divf %180, %181 : vector<16x1xf32>
    %183 = vector.broadcast %182 : vector<16x1xf32> to vector<16x32xf32>
    %184 = arith.subf %178, %183 : vector<16x32xf32>
    %185 = arith.mulf %184, %184 : vector<16x32xf32>
    %cst_75 = arith.constant dense<0.000000e+00> : vector<16xf32>
    %186 = vector.multi_reduction <add>, %185, %cst_75 [1] : vector<16x32xf32> to vector<16xf32>
    %187 = vector.shape_cast %186 : vector<16xf32> to vector<16x1xf32>
    %cst_76 = arith.constant 3.200000e+01 : f32
    %188 = vector.broadcast %cst_76 : f32 to vector<16x1xf32>
    %189 = arith.divf %187, %188 : vector<16x1xf32>
    %190 = vector.broadcast %182 : vector<16x1xf32> to vector<16x32xf32>
    %191 = arith.subf %178, %190 : vector<16x32xf32>
    %cst_77 = arith.constant 9.99999974E-6 : f32
    %192 = vector.broadcast %cst_77 : f32 to vector<16x1xf32>
    %193 = arith.addf %189, %192 : vector<16x1xf32>
    %194 = math.rsqrt %193 : vector<16x1xf32>
    %195 = vector.broadcast %194 : vector<16x1xf32> to vector<16x32xf32>
    %196 = arith.mulf %191, %195 : vector<16x32xf32>
    %197 = vector.broadcast %7 : vector<1x32xf32> to vector<16x32xf32>
    %198 = arith.mulf %196, %197 : vector<16x32xf32>
    %199 = vector.broadcast %8 : vector<1x32xf32> to vector<16x32xf32>
    %200 = arith.addf %198, %199 : vector<16x32xf32>
    %201 = tpu.transpose %200, [1, 0] : vector<16x32xf32> -> vector<32x16xf32>
    %202 = arith.truncf %201 : vector<32x16xf32> to vector<32x16xbf16>
    %cst_78 = arith.constant dense<0.000000e+00> : vector<1x16xf32>
    %203 = tpu.matmul %9, %202, %cst_78 {dimension_numbers = #tpu.dot_dimension_numbers<[1], [0], [0], [1], [0, 0, 1, 1], [], []>} : vector<1x32xbf16>, vector<32x16xbf16>, vector<1x16xf32> -> vector<1x16xf32>
    %204 = vector.broadcast %10 : vector<1x1xf32> to vector<1x16xf32>
    %205 = arith.addf %203, %204 : vector<1x16xf32>
    %c0_79 = arith.constant 0 : index
    %c0_80 = arith.constant 0 : index
    %206 = vector.load %arg2[%c0_79, %c0_80] : memref<1x16xf32, #tpu.memory_space<vmem>>, vector<1x16xf32>
    %207 = arith.mulf %205, %206 : vector<1x16xf32>
    %c0_81 = arith.constant 0 : index
    %c0_82 = arith.constant 0 : index
    %208 = vector.load %arg13[%c0_81, %c0_82] : memref<1x16xf32, #tpu.memory_space<vmem>>, vector<1x16xf32>
    tpu.vector_store %arg13[%c0_81, %c0_82], %207 {strides = array<i32>} : memref<1x16xf32, #tpu.memory_space<vmem>>, vector<1x16xf32>,
    return
  }
  func.func @transform_0(%arg0: i32) -> (i32, i32) {
    %c0_i32 = arith.constant 0 : i32
    %c0_i32_0 = arith.constant 0 : i32
    %c0_i32_1 = arith.constant 0 : i32
    return %c0_i32, %c0_i32_0 : i32, i32
  }
  func.func @transform_1(%arg0: i32) -> (i32, i32) {
    %c0_i32 = arith.constant 0 : i32
    %c0_i32_0 = arith.constant 0 : i32
    %c0_i32_1 = arith.constant 0 : i32
    return %c0_i32, %c0_i32_0 : i32, i32
  }
  func.func @transform_2(%arg0: i32) -> (i32, i32) {
    %c0_i32 = arith.constant 0 : i32
    %c0_i32_0 = arith.constant 0 : i32
    %c0_i32_1 = arith.constant 0 : i32
    return %c0_i32, %c0_i32_0 : i32, i32
  }
  func.func @transform_3(%arg0: i32) -> (i32, i32) {
    %c0_i32 = arith.constant 0 : i32
    %c0_i32_0 = arith.constant 0 : i32
    %c0_i32_1 = arith.constant 0 : i32
    return %c0_i32, %c0_i32_0 : i32, i32
  }
  func.func @transform_4(%arg0: i32) -> (i32, i32) {
    %c0_i32 = arith.constant 0 : i32
    %c0_i32_0 = arith.constant 0 : i32
    %c0_i32_1 = arith.constant 0 : i32
    return %c0_i32, %c0_i32_0 : i32, i32
  }
  func.func @transform_5(%arg0: i32) -> (i32, i32) {
    %c0_i32 = arith.constant 0 : i32
    %c0_i32_0 = arith.constant 0 : i32
    %c0_i32_1 = arith.constant 0 : i32
    return %c0_i32, %c0_i32_0 : i32, i32
  }
  func.func @transform_6(%arg0: i32) -> (i32, i32) {
    %c0_i32 = arith.constant 0 : i32
    %c0_i32_0 = arith.constant 0 : i32
    %c0_i32_1 = arith.constant 0 : i32
    return %c0_i32, %c0_i32_0 : i32, i32
  }
  func.func @transform_7(%arg0: i32) -> (i32, i32) {
    %c0_i32 = arith.constant 0 : i32
    %c0_i32_0 = arith.constant 0 : i32
    %c0_i32_1 = arith.constant 0 : i32
    return %c0_i32, %c0_i32_0 : i32, i32
  }
  func.func @transform_8(%arg0: i32) -> (i32, i32) {
    %c0_i32 = arith.constant 0 : i32
    %c0_i32_0 = arith.constant 0 : i32
    %c0_i32_1 = arith.constant 0 : i32
    return %c0_i32, %c0_i32_0 : i32, i32
  }
  func.func @transform_9(%arg0: i32) -> (i32, i32) {
    %c0_i32 = arith.constant 0 : i32
    %c0_i32_0 = arith.constant 0 : i32
    %c0_i32_1 = arith.constant 0 : i32
    return %c0_i32, %c0_i32_0 : i32, i32
  }
  func.func @transform_10(%arg0: i32) -> (i32, i32) {
    %c0_i32 = arith.constant 0 : i32
    %c0_i32_0 = arith.constant 0 : i32
    %c0_i32_1 = arith.constant 0 : i32
    return %c0_i32, %c0_i32_0 : i32, i32
  }
  func.func @transform_11(%arg0: i32) -> (i32, i32) {
    %c0_i32 = arith.constant 0 : i32
    %c0_i32_0 = arith.constant 0 : i32
    %c0_i32_1 = arith.constant 0 : i32
    return %c0_i32, %c0_i32_0 : i32, i32
  }
  func.func @transform_12(%arg0: i32) -> (i32, i32) {
    %c0_i32 = arith.constant 0 : i32
    %c0_i32_0 = arith.constant 0 : i32
    %c0_i32_1 = arith.constant 0 : i32
    return %c0_i32, %c0_i32_0 : i32, i32
  }
}

</mosaic_0001>

<bundles_post_ra>
// kernel: custom-call.4
= control target key start
LH: loop header
LB: loop body
LE: loop exit
PB: predicated region body
PF: predicated region fallthrough
CT: control target
= control target key end

     0   :  { %s6_s0 = inlined_call_operand.vmem [shape: u32[2,16], index: 0, kind: output, shape index: {}]  }

// kernel: squeeze.21
= control target key start
LH: loop header
LB: loop body
LE: loop exit
PB: predicated region body
PF: predicated region fallthrough
CT: control target
= control target key end

     0   :  { %vm7_vm0 = vcmask 130048   ;;  %s39_s0 = inlined_call_operand.vmem [shape: s32[32], index: 0, kind: input, shape index: {}]   ;;  %s40_s1 = inlined_call_operand.vmem [shape: s32[2,16], index: 1, kind: output, shape index: {}]  }
   0x1   :  { %v4_v0 = vld [vmem:[%s39_s0] sm:$0x1]  ;;  %s22_s0 = smov 112  }
   0x2   :  { %5 = vst [vmem:[#allocation1] sm:$0x1] %v4_v0 }
   0x9   :  { %v9_v1 = vld [vmem:[#allocation1] sm:$0x1]  }
   0xa   :  { %v6_v2 = vld [vmem:[#allocation1] sm:$0x1]   ;;  %10 = vrot.lane.b32.xlu0 %v9_v1, %s22_s0 }
   0xb   :  { %8 = vst.msk [vmem:[#allocation0] sm:$0x1] %vm7_vm0, %v6_v2  }
  0x7c   :  { %v11_v3 = vpop.permute.xlu0 %10  }
  0x7d   :  { %14 = vst.msk [vmem:[#allocation0 + $0x1] sm:$0x1] %vm7_vm0, %v11_v3  }
  0x84   :  { %v18_v4 = vld [vmem:[#allocation0] sm:$0x3] }
  0x85   :  { %20 = vst [vmem:[%s40_s1] sm:$0x3] %v18_v4 }

// kernel: ne.2
= control target key start
LH: loop header
LB: loop body
LE: loop exit
PB: predicated region body
PF: predicated region fallthrough
CT: control target
= control target key end

     0   :  { %v15_v2 = vmov 0   ;;  %s40_s0 = inlined_call_operand.vmem [shape: f32[2,16], index: 0, kind: input, shape index: {}, may-alias: {0,1}]   ;;  %s41_s1 = inlined_call_operand.vmem [shape: f32[2,16], index: 1, kind: input, shape index: {}, may-alias: {0,1}]   ;;  %s42_s2 = inlined_call_operand.vmem [shape: pred[2,16], index: 2, kind: output, shape index: {}]  }
   0x1   :  { %v3_v0 = vld [vmem:[%s40_s0] sm:$0x3] }
   0x2   :  { %v4_v1 = vld [vmem:[%s41_s1] sm:$0x3] }
   0x3   :  { %vm7_vm0 = vcmp.ne.f32.partialorder %v3_v0, %v4_v1 }
   0x4   :  { %v8_v3 = vsel %vm7_vm0, 1, %v15_v2 }
   0x5   :  { %v10_v4 = vpack.c.b16 %v15_v2, %v8_v3 }
   0x7   :  { %v11_v5 = vpack.c.b8 %v15_v2, %v10_v4 }
   0x9   :  { %13 = vst [vmem:[%s42_s2] sm:$0x1] %v11_v5 }

// kernel: squeeze.22
= control target key start
LH: loop header
LB: loop body
LE: loop exit
PB: predicated region body
PF: predicated region fallthrough
CT: control target
= control target key end

     0   :  { %vm7_vm0 = vcmask 130048   ;;  %s39_s0 = inlined_call_operand.vmem [shape: f32[32], index: 0, kind: input, shape index: {}]   ;;  %s40_s1 = inlined_call_operand.vmem [shape: f32[2,16], index: 1, kind: output, shape index: {}]  }
   0x1   :  { %v4_v0 = vld [vmem:[%s39_s0] sm:$0x1]  ;;  %s22_s0 = smov 112  }
   0x2   :  { %5 = vst [vmem:[#allocation1] sm:$0x1] %v4_v0 }
   0x9   :  { %v9_v1 = vld [vmem:[#allocation1] sm:$0x1]  }
   0xa   :  { %v6_v2 = vld [vmem:[#allocation1] sm:$0x1]   ;;  %10 = vrot.lane.b32.xlu0 %v9_v1, %s22_s0 }
   0xb   :  { %8 = vst.msk [vmem:[#allocation0] sm:$0x1] %vm7_vm0, %v6_v2  }
  0x7c   :  { %v11_v3 = vpop.permute.xlu0 %10  }
  0x7d   :  { %14 = vst.msk [vmem:[#allocation0 + $0x1] sm:$0x1] %vm7_vm0, %v11_v3  }
  0x84   :  { %v18_v4 = vld [vmem:[#allocation0] sm:$0x3] }
  0x85   :  { %20 = vst [vmem:[%s40_s1] sm:$0x3] %v18_v4 }

// kernel: fastspeech2_forward.5
= control target key start
LH: loop header
LB: loop body
LE: loop exit
PB: predicated region body
PF: predicated region fallthrough
CT: control target
= control target key end

     0   :  { %s1753_s18 = smov 0   ;;  %s1981_s0 = inlined_call_operand.vmem [shape: f32[16,32], index: 0, kind: input, shape index: {}]   ;;  %s1982_s1 = inlined_call_operand.vmem [shape: f32[16,1], index: 1, kind: input, shape index: {}]   ;;  %s1983_s2 = inlined_call_operand.vmem [shape: f32[2,1,8], index: 2, kind: input, shape index: {}]   ;;  %s1984_s3 = inlined_call_operand.vmem [shape: bf16[32,96], index: 3, kind: input, shape index: {}]   ;;  %s1985_s4 = inlined_call_operand.vmem [shape: f32[1,96], index: 4, kind: input, shape index: {}]   ;;  %s1986_s5 = inlined_call_operand.vmem [shape: bf16[32,32], index: 5, kind: input, shape index: {}]   ;;  %s1987_s6 = inlined_call_operand.vmem [shape: f32[1,32], index: 6, kind: input, shape index: {}]   ;;  %s1988_s7 = inlined_call_operand.vmem [shape: f32[1,32], index: 7, kind: input, shape index: {}]   ;;  %s1989_s8 = inlined_call_operand.vmem [shape: f32[1,32], index: 8, kind: input, shape index: {}]   ;;  %s1990_s9 = inlined_call_operand.vmem [shape: bf16[288,64], index: 9, kind: input, shape index: {}]   ;;  %s1991_s10 = inlined_call_operand.vmem [shape: f32[1,64], index: 10, kind: input, shape index: {}]   ;;  %s1992_s11 = inlined_call_operand.vmem [shape: bf16[64,32], index: 11, kind: input, shape index: {}]   ;;  %s1993_s12 = inlined_call_operand.vmem [shape: f32[1,32], index: 12, kind: input, shape index: {}]   ;;  %s1994_s13 = inlined_call_operand.vmem [shape: f32[1,32], index: 13, kind: input, shape index: {}]   ;;  %s1995_s14 = inlined_call_operand.vmem [shape: f32[1,32], index: 14, kind: input, shape index: {}]   ;;  %s1996_s15 = inlined_call_operand.vmem [shape: f32[16,32], index: 15, kind: output, shape index: {}]  }
   0x1 LB: > { %s1429_s19 = sadd.s32 4294967295, %s1663_s18   ;;  %p1433_p0 = scmp.ge.s32.totalorder %s1663_s18, 1  ;;  %s1663_s18 = sphi %s1753_s18, %s25_s18  }
   0x2   : > { %p453_p1 = scmp.lt.s32.totalorder %s1663_s18, 3 }
   0x4   : > { %p454_p2 = pnand %p1433_p0, %p453_p1 }
   0x5   : > { %v1619_v0 = vld [vmem:[%s1984_s3] sm:$0xff] (!%p454_p2)   ;;  %v1665_v1 = vmov (!%p454_p2), 0.0   ;;  %v1620_v2 = vld [vmem:[%s1984_s3 + $0x8] sm:$0xff] (!%p454_p2)   ;;  %vm1666_vm0 = vmmov (!%p454_p2), 0   ;;  %p506_p3 = scmp.lt.s32.totalorder (!%p454_p2), %s1429_s19, 1  ;;  %vm547_vm1 = vcmask (!%p454_p2), 261120   ;;  %v702_v18 = vlaneseq (!%p454_p2) }
   0x6   : > { %457 = sbr.rel (%p454_p2) target bundleno = 2751 (0xabf), region = 80  ;;  %1526 = vmatprep.subr.bf16.mxu0 (!%p454_p2), %v1665_v1  ;;  %1534 = vmatprep.subr.bf16.mxu1 (!%p454_p2), %v1665_v1  ;;  %v1437_v5 = vld [vmem:[%s1985_s4] ss:$0 sm:$0xff] (!%p454_p2)  ;;  %s1667_s30 = smov (!%p454_p2), 112   ;;  %vm600_vm2 = vcmask (!%p454_p2), 130048   ;;  %vm709_vm3 = vcmask (!%p454_p2), 64512  }
   0x7   : > { %1527 = vmatpush3.bf16.msra.mxu0 (!%p454_p2), %v1619_v0  ;;  %1530 = vmatprep.mubr.msk.bf16.mxu0 (!%p454_p2), %vm1666_vm0, %v1665_v1  ;;  %s1668_s16 = smov (!%p454_p2), 96   ;;  %v703_v21 = vshrl.u32 (!%p454_p2), %v702_v18, 7  ;;  %vm739_vm4 = vcmask (!%p454_p2), 1043456   ;;  %v1621_v61 = vld [vmem:[%s1986_s5] sm:$0xff] (!%p454_p2)   ;;  %v1622_v62 = vld [vmem:[%s1986_s5 + $0x8] sm:$0xff] (!%p454_p2)   ;;  %vm988_vm5 = vcmask (!%p454_p2), 1041408  }
   0x8   : > { %1528 = vmatprep.subr.bf16.mxu0 (!%p454_p2), %v1665_v1  ;;  %1536 = vmatprep.mubr.msk.bf16.mxu1 (!%p454_p2), %vm1666_vm0, %v1665_v1  ;;  %vm1000_vm6 = vcmask (!%p454_p2), 1045504   ;;  %vm984_vm7 = vcmask (!%p454_p2), 1042432   ;;  %vm996_vm8 = vcmask (!%p454_p2), 1046528   ;;  %vm992_vm9 = vcmask (!%p454_p2), 1040384   ;;  %s1672_s29 = smov (!%p454_p2), 32  }
   0x9   : > { %v704_v23 = vsub.s32 (!%p454_p2), 0, %v703_v21  ;;  %vm1004_vm10 = vcmask (!%p454_p2), 1044480   ;;  %vm1032_vm11 = vcmask (!%p454_p2), 523264   ;;  %vm1034_vm12 = vcmask (!%p454_p2), 785408  }
   0xb   : > { %1529 = vmatpush3.bf16.msra.mxu0 (!%p454_p2), %v1620_v2 }
   0xc   : > { %1540 = vmatprep.subr.bf16.mxu0 (!%p454_p2), %v1665_v1 }
   0xd   : > { %s1998_s19 = smov (!%p506_p3, %s1429_s19), 1 }
   0xe   : > { %s1777_s24 = sshll.u32 %s1998_s19, 3  ;;  %s516_s21 = scalar_lea.vmem %s1983_s2, %s1998_s19 }
   0xf   : > { %s509_s27 = scalar_lea.vmem %s1981_s0, %s1777_s24  ;;  %v698_v19 = vld [vmem:[%s516_s21] sm:$0x1]  ;;  %s1669_s19 = smov 64  }
  0x10   : > { %v1784_v3 = vld [vmem:[%s509_s27] sm:$0xff]  ;;  %v1443_v20 = vadd.f32 -1.0, %v698_v19  ;;  %s1670_s27 = smov 16   ;;  %s513_s20 = scalar_lea.vmem %s1982_s1, %s1777_s24 }
  0x11   : > { %v523_v4 = vpack.c.bf16 %v1784_v3, %v1784_v3  ;;  %v903_v21 = vld [vmem:[%s513_s20] sm:$0xff]  ;;  %s520_s21 = scalar_lea.vmem %s1996_s15, %s1777_s24 }
  0x12   : > { %v700_v22 = vmul.f32 1e+09, %v1443_v20  ;;  %v1671_v20 = vmov 0  }
  0x13   : > { %1531 = vmatmul.mubr.msk.bf16.vlgmr.msra.gmra.mrb[0].mxu0 %vm547_vm1, %v523_v4  ;;  %1602 = vset.pattern.permute.xlu1 %v1671_v20 }
  0x14   : > { %1542 = vmatprep.mubr.msk.bf16.mxu0 %vm1666_vm0, %v1665_v1  ;;  %v705_v24 = vrot.slane %v700_v22, %v704_v23  ;;  %1618 = vset.pattern.permute.xlu0 %v1671_v20 }
  0xe6   : > { %v585_v6 = vpop.f32.mrb[0].mxu0 }
  0xe7   : > { %v586_v7 = vadd.f32 %v1437_v5, %v585_v6  ;;  %v1532_v8 = vpop.f32.mrb[1].mxu0 }
  0xe8   : > { %v588_v9 = vpop.f32.mrb[2].mxu0 }
  0xe9   : > { %v1794_v10 = vpack.c.bf16 %v586_v7, %v586_v7  ;;  %592 = vrot.lane.b32.xlu0 %v586_v7, %s1667_s30  ;;  %v1533_v11 = vpop.f32.mrb[3].mxu0 }
  0xeb   : > { %598 = vrot.lane.b32.xlu1 %v1794_v10, %s1668_s16 }
 0x15b   : > { %v593_v12 = vpop.permute.xlu0 %592 }
 0x15c   : > { %v596_v13 = vpack.c.bf16 %v593_v12, %v593_v12  ;;  %v1446_v12 = vld [vmem:[%s1987_s6] ss:$0 sm:$0xff] }
 0x15d   : > { %v599_v14 = vpop.permute.xlu1 %598 }
 0x15e   : > { %648 = vrot.lane.b32.xlu0 %v596_v13, %s1668_s16  ;;  %v605_v15 = vsel %vm600_vm2, %v599_v14, 0 }
 0x15f   : > { %1535 = vmatpush3.bf16.xpose.msra.mxu1 %v605_v15 }
 0x160   : > { %1546 = vmatprep.subr.bf16.mxu1 %v1665_v1 }
 0x166   : > { %1537 = vmatmul.mubr.msk.bf16.vlgmr.msra.gmra.mrb[0].mxu1 %vm600_vm2, %v1794_v10 }
 0x167   : > { %1548 = vmatprep.mubr.msk.bf16.mxu1 %vm1666_vm0, %v1665_v1 }
 0x1d0   : > { %v649_v16 = vpop.permute.xlu0 %648 }
 0x1d1   : > { %v654_v17 = vsel %vm600_vm2, %v649_v16, 0 }
 0x1d2   : > { %1541 = vmatpush3.bf16.xpose.msra.mxu0 %v654_v17 }
 0x1d3   : > { %1552 = vmatprep.subr.bf16.mxu0 %v1665_v1 }
 0x1d9   : > { %1543 = vmatmul.mubr.msk.bf16.vlgmr.msra.gmra.mrb[4].mxu0 %vm600_vm2, %v596_v13 }
 0x1da   : > { %1554 = vmatprep.mubr.msk.bf16.mxu0 %vm1666_vm0, %v1665_v1 }
 0x239   : > { %v641_v25 = vpop.f32.mrb[0].mxu1 }
 0x23a   : > { %v696_v26 = vmul.f32 0.25, %v641_v25  ;;  %v1538_v27 = vpop.f32.mrb[1].mxu1 }
 0x23b   : > { %v644_v28 = vpop.f32.mrb[2].mxu1  ;;  %v1624_v27 = vld [vmem:[%s1990_s9 + $0x88] sm:$0xff]  }
 0x23c   : > { %v1539_v29 = vpop.f32.mrb[3].mxu1  ;;  %v707_v30 = vadd.f32 %v705_v24, %v696_v26  ;;  %v1625_v28 = vld [vmem:[%s1990_s9 + $0x40] sm:$0xff]  }
 0x23d   : > { %v1626_v29 = vld [vmem:[%s1990_s9] sm:$0xff]  }
 0x23e   : > { %v710_v31 = vsel %vm709_vm3, %v707_v30, -inf }
 0x23f   : > { %711 = vmax.xlane.f32.xlu0 %v710_v31  ;;  %v1628_v31 = vld [vmem:[%s1990_s9 + $0x8] sm:$0xff]  }
 0x2ac   : > { %v690_v32 = vpop.f32.mrb[4].mxu0 }
 0x2ad   : > { %v697_v33 = vmul.f32 0.25, %v690_v32  ;;  %v1544_v34 = vpop.f32.mrb[5].mxu0  ;;  %v1629_v32 = vld [vmem:[%s1990_s9 + $0x50] sm:$0xff]  }
 0x2ae   : > { %v693_v35 = vpop.f32.mrb[6].mxu0  ;;  %v1631_v34 = vld [vmem:[%s1990_s9 + $0x58] sm:$0xff]  }
 0x2af   : > { %v1545_v36 = vpop.f32.mrb[7].mxu0  ;;  %v708_v37 = vadd.f32 %v705_v24, %v697_v33  ;;  %v1630_v33 = vld [vmem:[%s1990_s9 + $0x10] sm:$0xff]   ;;  %v1632_v35 = vld [vmem:[%s1990_s9 + $0x18] sm:$0xff]  }
 0x2b0   : > { %v1633_v36 = vld [vmem:[%s1990_s9 + $0x60] sm:$0xff]  }
 0x2b1   : > { %v713_v38 = vsel %vm709_vm3, %v708_v37, -inf }
 0x2b2   : > { %714 = vmax.xlane.f32.xlu1 %v713_v38  ;;  %v1635_v38 = vld [vmem:[%s1990_s9 + $0x68] sm:$0xff]  }
 0x2c3   : > { %783 = vrot.lane.b32.xlu1 %v596_v13, %s1669_s19 }
 0x2cc   : > { %v712_v39 = vpop.xlane.xlu0 %711 }
 0x2cd   : > { %v716_v40 = vsub.f32 %v707_v30, %v712_v39  ;;  %v1627_v30 = vld [vmem:[%s1990_s9 + $0x48] sm:$0xff]  }
 0x2ce   : > { %v1636_v39 = vld [vmem:[%s1990_s9 + $0x28] sm:$0xff]  }
 0x2cf   : > { %v718_v43 = vmul.f32 1.442695, %v716_v40 }
 0x33f   : > { %v715_v41 = vpop.xlane.xlu1 %714 }
 0x340   : > { %v717_v42 = vsub.f32 %v708_v37, %v715_v41  ;;  %v1634_v37 = vld [vmem:[%s1990_s9 + $0x20] sm:$0xff]  }
 0x342   : > { %v720_v44 = vmul.f32 1.442695, %v717_v42 }
 0x343   : > { %v784_v45 = vpop.permute.xlu1 %783 }
 0x344   : > { %1645 = vpow2.f32 %v720_v44  ;;  %v789_v46 = vsel %vm739_vm4, %v784_v45, 0  ;;  %v1450_v44 = vld [vmem:[%s1988_s7] ss:$0 sm:$0xff] }
 0x345   : > { %1553 = vmatpush3.bf16.msra.mxu0 %v789_v46  ;;  %1647 = vpow2.f32 %v718_v43  ;;  %v1451_v46 = vld [vmem:[%s1989_s8] ss:$0 sm:$0xff] }
 0x346   : > { %1496 = vmatprep.subr.bf16.mxu0 %v1625_v28 }
 0x34e   : > { %v1646_v47 = vpop.eup %1645 }
 0x34f   : > { %v725_v48 = vsel %vm709_vm3, %v1646_v47, 0.0  ;;  %v1648_v49 = vpop.eup %1647 }
 0x350   : > { %726 = vadd.xlane.f32.xlu0 %v725_v48  ;;  %v722_v50 = vsel %vm709_vm3, %v1648_v49, 0.0  ;;  %v1637_v48 = vld [vmem:[%s1990_s9 + $0x70] sm:$0xff]  }
 0x354   : > { %723 = vadd.xlane.f32.xlu0 %v722_v50 }
 0x36a   : > { %734 = vrot.lane.b32.xlu0 %v1794_v10, %s1669_s19 }
 0x3dd   : > { %v727_v51 = vpop.xlane.xlu0 %726 }
 0x3de   : > { %1649 = vrcp.f32 %v727_v51 }
 0x3e1   : > { %v724_v52 = vpop.xlane.xlu0 %723 }
 0x3e2   : > { %1651 = vrcp.f32 %v724_v52 }
 0x3e5   : > { %v735_v53 = vpop.permute.xlu0 %734 }
 0x3e6   : > { %v741_v54 = vsel %vm739_vm4, %v735_v53, 0  ;;  %v1639_v53 = vld [vmem:[%s1990_s9 + $0x78] sm:$0xff]  }
 0x3e7   : > { %1547 = vmatpush3.bf16.msra.mxu1 %v741_v54  ;;  %v1640_v54 = vld [vmem:[%s1990_s9 + $0x38] sm:$0xff]  }
 0x3e8   : > { %v1650_v55 = vpop.eup %1649  ;;  %1558 = vmatprep.subr.bf16.mxu1 %v1665_v1 }
 0x3e9   : > { %v731_v56 = vmul.f32 %v1650_v55, %v1646_v47 }
 0x3eb   : > { %v733_v57 = vpack.c.bf16 %v731_v56, %v731_v56 }
 0x3ec   : > { %v1652_v58 = vpop.eup %1651 }
 0x3ed   : > { %v730_v59 = vmul.f32 %v1652_v58, %v1648_v49  ;;  %1555 = vmatmul.mubr.msk.bf16.vlgmr.msra.gmra.mrb[8].mxu0 %vm709_vm3, %v733_v57  ;;  %v1638_v49 = vld [vmem:[%s1990_s9 + $0x30] sm:$0xff]  }
 0x3ee   : > { %1497 = vmatpush3.bf16.msra.mxu0 %v1626_v29  ;;  %v1642_v29 = vld [vmem:[%s1992_s11 + $0x8] sm:$0xff]  }
 0x3ef   : > { %v732_v60 = vpack.c.bf16 %v730_v59, %v730_v59  ;;  %1498 = vmatprep.subr.bf16.mxu0 %v1627_v30 }
 0x3f1   : > { %1549 = vmatmul.mubr.msk.bf16.vlgmr.msra.gmra.mrb[4].mxu1 %vm709_vm3, %v732_v60 }
 0x3f2   : > { %1562 = vmatprep.mubr.msk.bf16.mxu1 %vm1666_vm0, %v1665_v1  ;;  %1559 = vmatpush3.bf16.msra.mxu1 %v1621_v61 }
 0x3f3   : > { %1560 = vmatprep.subr.bf16.mxu1 %v1665_v1  ;;  %1499 = vmatpush3.bf16.msra.mxu0 %v1628_v31 }
 0x3f4   : > { %1500 = vmatprep.subr.bf16.mxu0 %v1629_v32  ;;  %v1643_v32 = vld [vmem:[%s1992_s11 + $0x10] sm:$0xff]  }
 0x3f6   : > { %1561 = vmatpush3.bf16.msra.mxu1 %v1622_v62 }
 0x3f7   : > { %1566 = vmatprep.subr.bf16.mxu1 %v1665_v1  ;;  %1501 = vmatpush3.bf16.msra.mxu0 %v1630_v33 }
 0x3f8   : > { %1502 = vmatprep.subr.bf16.mxu0 %v1631_v34 }
 0x3fb   : > { %1503 = vmatpush3.bf16.msra.mxu0 %v1632_v35  ;;  %v1644_v35 = vld [vmem:[%s1992_s11 + $0x18] sm:$0xff]  }
 0x3fc   : > { %1504 = vmatprep.subr.bf16.mxu0 %v1633_v36 }
 0x3ff   : > { %1505 = vmatpush3.bf16.msra.mxu0 %v1634_v37  ;;  %v1452_v37 = vld [vmem:[%s1991_s10] ss:$0 sm:$0xff] }
 0x400   : > { %1506 = vmatprep.subr.bf16.mxu0 %v1635_v38 }
 0x403   : > { %1507 = vmatpush3.bf16.msra.mxu0 %v1636_v39 }
 0x404   : > { %1508 = vmatprep.subr.bf16.mxu0 %v1637_v48 }
 0x407   : > { %1509 = vmatpush3.bf16.msra.mxu0 %v1638_v49 }
 0x408   : > { %1510 = vmatprep.subr.bf16.mxu0 %v1639_v53 }
 0x40b   : > { %1511 = vmatpush3.bf16.msra.mxu0 %v1640_v54 }
 0x4c0   : > { %v825_v63 = vpop.f32.mrb[8].mxu0 }
 0x4c1   : > { %832 = vrot.lane.b32.xlu1 %v825_v63, %s1670_s27  ;;  %v1556_v0 = vpop.f32.mrb[9].mxu0 }
 0x4c2   : > { %v828_v2 = vpop.f32.mrb[10].mxu0 }
 0x4c3   : > { %v1557_v4 = vpop.f32.mrb[11].mxu0 }
 0x4c4   : > { %v777_v5 = vpop.f32.mrb[4].mxu1 }
 0x4c5   : > { %v1550_v6 = vpop.f32.mrb[5].mxu1 }
 0x4c6   : > { %v780_v7 = vpop.f32.mrb[6].mxu1 }
 0x4c7   : > { %v1551_v8 = vpop.f32.mrb[7].mxu1 }
 0x533   : > { %v833_v9 = vpop.permute.xlu1 %832 }
 0x534   : > { %v835_v10 = vsel %vm600_vm2, %v777_v5, %v833_v9 }
 0x535   : > { %v836_v11 = vpack.c.bf16 %v835_v10, %v835_v10 }
 0x537   : > { %1563 = vmatmul.mubr.msk.bf16.vlgmr.msra.gmra.mrb[8].mxu1 %vm547_vm1, %v836_v11  ;;  %v1641_v11 = vld [vmem:[%s1992_s11] sm:$0xff]  }
 0x538   : > { %1570 = vmatprep.mubr.msk.bf16.mxu1 %vm1666_vm0, %v1665_v1 }
 0x60a   : > { %v897_v13 = vpop.f32.mrb[8].mxu1 }
 0x60b   : > { %v898_v14 = vadd.f32 %v1446_v12, %v897_v13  ;;  %v1564_v15 = vpop.f32.mrb[9].mxu1 }
 0x60c   : > { %v900_v16 = vpop.f32.mrb[10].mxu1 }
 0x60d   : > { %v1565_v17 = vpop.f32.mrb[11].mxu1  ;;  %v904_v18 = vadd.f32 %v898_v14, %v1784_v3  ;;  %v1623_v3 = vld [vmem:[%s1990_s9 + $0x80] sm:$0xff]  }
 0x60e   : > { %1567 = vmatpush3.bf16.msra.mxu1 %v1623_v3 }
 0x60f   : > { %v907_v19 = vsel %vm547_vm1, %v904_v18, 0.0  ;;  %1568 = vmatprep.subr.bf16.mxu1 %v1665_v1 }
 0x610   : > { %908 = vadd.xlane.f32.xlu1 %v907_v19 }
 0x612   : > { %1569 = vmatpush3.bf16.msra.mxu1 %v1624_v27 }
 0x613   : > { %1574 = vmatprep.subr.bf16.mxu1 %v1665_v1 }
 0x621   : > { %937 = vperm.xlu1 %1602, %v903_v21  }
 0x69d   : > { %v909_v22 = vpop.xlane.xlu1 %908 }
 0x69e   : > { %v911_v23 = vmul.f32 0.03125, %v909_v22 }
 0x6a0   : > { %v912_v24 = vsub.f32 %v904_v18, %v911_v23 }
 0x6a1   : > { %v1906_v50 = vpop.permute.xlu1 %937 }
 0x6a2   : > { %v913_v25 = vmul.f32 %v912_v24, %v912_v24 }
 0x6a4   : > { %v914_v26 = vsel %vm547_vm1, %v913_v25, 0.0 }
 0x6a5   : > { %915 = vadd.xlane.f32.xlu0 %v914_v26 }
 0x732   : > { %v916_v40 = vpop.xlane.xlu0 %915 }
 0x733   : > { %v917_v41 = vmul.f32 0.03125, %v916_v40 }
 0x735   : > { %v918_v42 = vadd.f32 1e-05, %v917_v41 }
 0x737   : > { %1653 = vrsqrt.f32 %v918_v42 }
 0x741   : > { %v1654_v43 = vpop.eup %1653 }
 0x742   : > { %v920_v45 = vmul.f32 %v1654_v43, %v912_v24 }
 0x744   : > { %v927_v47 = vmul.f32 %v1450_v44, %v920_v45 }
 0x746   : > { %v934_v51 = vadd.f32 %v1451_v46, %v927_v47 }
 0x748   : > { %v1909_v52 = vmul.f32 %v1906_v50, %v934_v51 }
 0x74a   : > { %v986_v55 = vrot.slane %v1909_v52, 6  ;;  %v998_v56 = vrot.slane %v1909_v52, 2  ;;  %v982_v57 = vrot.slane %v1909_v52, 5  ;;  %v994_v58 = vrot.slane %v1909_v52, 1 }
 0x74b   : > { %v979_v59 = vrot.slane %v1909_v52, 4  ;;  %v990_v60 = vrot.slane %v1909_v52, 7  ;;  %v1002_v61 = vrot.slane %v1909_v52, 3 }
 0x74c   : > { %v989_v62 = vsel %vm988_vm5, 0.0, %v986_v55  ;;  %v1001_v63 = vsel %vm1000_vm6, %v998_v56, 0.0  ;;  %v985_v0 = vsel %vm984_vm7, 0.0, %v982_v57  ;;  %v997_v2 = vsel %vm996_vm8, %v994_v58, 0.0 }
 0x74d   : > { %v1608_v4 = vpack.i.bf16 %v989_v62, %v1001_v63  ;;  %v1603_v5 = vpack.i.bf16 %v985_v0, %v997_v2  ;;  %v1006_v6 = vsel %vm739_vm4, %v979_v59, 0.0  ;;  %v993_v8 = vsel %vm992_vm9, 0.0, %v990_v60  ;;  %v1479_v2 = vld [vmem:[%s1995_s14] ss:$0 sm:$0xff] }
 0x74e   : > { %v1041_v7 = vpack.c.bf16 %v1006_v6, %v1006_v6  ;;  %v1005_v9 = vsel %vm1004_vm10, %v1002_v61, 0.0  ;;  %v981_v18 = vsel %vm739_vm4, 0.0, %v979_v59 }
 0x74f   : > { %1609 = vrot.lane.b32.xlu1 %v1608_v4, %s1669_s19  ;;  %1604 = vrot.lane.b32.xlu0 %v1603_v5, %s1672_s29  ;;  %v1613_v10 = vpack.i.bf16 %v993_v8, %v1005_v9 }
 0x750   : > { %1571 = vmatmul.mubr.msk.bf16.vlgmr.msra.gmra.mrb[12].mxu1 %vm547_vm1, %v1041_v7 }
 0x751   : > { %1582 = vmatprep.mubr.msk.bf16.mxu1 %vm1666_vm0, %v1665_v1  ;;  %1575 = vmatpush3.bf16.msra.mxu1 %v1641_v11 }
 0x752   : > { %1576 = vmatprep.subr.bf16.mxu1 %v1665_v1 }
 0x753   : > { %1614 = vrot.lane.b32.xlu1 %v1613_v10, %s1668_s16 }
 0x755   : > { %1577 = vmatpush3.bf16.msra.mxu1 %v1642_v29 }
 0x756   : > { %1578 = vmatprep.subr.bf16.mxu1 %v1665_v1 }
 0x759   : > { %1579 = vmatpush3.bf16.msra.mxu1 %v1643_v32 }
 0x75a   : > { %1580 = vmatprep.subr.bf16.mxu1 %v1665_v1  ;;  %v1472_v1 = vld [vmem:[%s1993_s12] ss:$0 sm:$0xff] }
 0x75d   : > { %1581 = vmatpush3.bf16.msra.mxu1 %v1644_v35 }
 0x7c1   : > { %v1610_v12 = vpop.permute.xlu1 %1609  ;;  %v1605_v13 = vpop.permute.xlu0 %1604 }
 0x7c2   : > { %v1607_v14 = vunpack.i.h.bf16 %v1605_v13  ;;  %v1606_v15 = vunpack.i.l.bf16 %v1605_v13  ;;  %v1612_v16 = vunpack.i.h.bf16 %v1610_v12  ;;  %v1611_v17 = vunpack.i.l.bf16 %v1610_v12 }
 0x7c4   : > { %v1031_v19 = vsel %vm547_vm1, %v981_v18, %v1607_v14  ;;  %v1036_v20 = vsel %vm547_vm1, %v1909_v52, %v1606_v15 }
 0x7c5   : > { %v1615_v21 = vpop.permute.xlu1 %1614  ;;  %v1033_v24 = vsel %vm1032_vm11, %v1031_v19, %v1612_v16  ;;  %v1037_v25 = vsel %vm1032_vm11, %v1036_v20, %v1611_v17 }
 0x7c6   : > { %v1617_v22 = vunpack.i.h.bf16 %v1615_v21  ;;  %v1616_v23 = vunpack.i.l.bf16 %v1615_v21 }
 0x7c8   : > { %v1035_v26 = vsel %vm1034_vm12, %v1033_v24, %v1617_v22  ;;  %v1038_v3 = vsel %vm1034_vm12, %v1037_v25, %v1616_v23 }
 0x7c9   : > { %v1039_v27 = vpack.c.bf16 %v1035_v26, %v1035_v26  ;;  %v1040_v28 = vpack.c.bf16 %v1038_v3, %v1038_v3 }
 0x7cb   : > { %1191 = vmatprep.mubr.bf16.mxu0 %v1040_v28 }
 0x7cc   : > { %1192 = vmatmul.mubr.bf16.vlgmr.msra.gmra.mrb[12].mxu0 %v1039_v27 }
 0x823   : > { %v1233_v30 = vpop.f32.mrb[12].mxu1 }
 0x824   : > { %v1572_v31 = vpop.f32.mrb[13].mxu1 }
 0x825   : > { %v1236_v33 = vpop.f32.mrb[14].mxu1 }
 0x826   : > { %v1573_v34 = vpop.f32.mrb[15].mxu1 }
 0x89f   : > { %v1512_v36 = vpop.f32.mrb[12].mxu0 }
 0x8a0   : > { %v1513_v38 = vpop.f32.mrb[13].mxu0 }
 0x8a1   : > { %v1514_v39 = vadd.f32 %v1513_v38, %v1512_v36  ;;  %v1515_v40 = vpop.f32.mrb[14].mxu0 }
 0x8a2   : > { %v1516_v41 = vpop.f32.mrb[15].mxu0 }
 0x8a3   : > { %v1194_v42 = vadd.f32 %v1514_v39, %v1452_v37 }
 0x8a5   : > { %v1234_v43 = vadd.f32 %v1233_v30, %v1194_v42 }
 0x8a7   : > { %v1239_v44 = vmax.f32 %v1234_v43, 0.0 }
 0x8a9   : > { %v1240_v45 = vpack.c.bf16 %v1239_v44, %v1239_v44 }
 0x8ab   : > { %1583 = vmatmul.mubr.msk.bf16.vlgmr.msra.gmra.mrb[16].mxu1 %vm1032_vm11, %v1240_v45 }
 0x97e   : > { %v1317_v46 = vpop.f32.mrb[16].mxu1 }
 0x97f   : > { %v1318_v47 = vadd.f32 %v1472_v1, %v1317_v46  ;;  %v1584_v48 = vpop.f32.mrb[17].mxu1 }
 0x980   : > { %v1320_v49 = vpop.f32.mrb[18].mxu1 }
 0x981   : > { %v1585_v51 = vpop.f32.mrb[19].mxu1  ;;  %v1323_v53 = vadd.f32 %v1318_v47, %v1909_v52  ;;  %v1478_v52 = vld [vmem:[%s1994_s13] ss:$0 sm:$0xff] }
 0x983   : > { %v1326_v54 = vsel %vm547_vm1, %v1323_v53, 0.0 }
 0x984   : > { %1327 = vadd.xlane.f32.xlu0 %v1326_v54 }
 0xa11   : > { %v1328_v55 = vpop.xlane.xlu0 %1327 }
 0xa12   : > { %v1329_v56 = vmul.f32 0.03125, %v1328_v55 }
 0xa14   : > { %v1330_v57 = vsub.f32 %v1323_v53, %v1329_v56 }
 0xa16   : > { %v1331_v58 = vmul.f32 %v1330_v57, %v1330_v57 }
 0xa18   : > { %v1332_v59 = vsel %vm547_vm1, %v1331_v58, 0.0 }
 0xa19   : > { %1333 = vadd.xlane.f32.xlu1 %v1332_v59 }
 0xaa6   : > { %v1334_v60 = vpop.xlane.xlu1 %1333 }
 0xaa7   : > { %v1335_v61 = vmul.f32 0.03125, %v1334_v60 }
 0xaa9   : > { %v1336_v62 = vadd.f32 1e-05, %v1335_v61 }
 0xaab   : > { %1655 = vrsqrt.f32 %v1336_v62 }
 0xab5   : > { %v1656_v63 = vpop.eup %1655 }
 0xab6   : > { %v1338_v0 = vmul.f32 %v1656_v63, %v1330_v57 }
 0xab8   : > { %v1345_v4 = vmul.f32 %v1478_v52, %v1338_v0 }
 0xaba   : > { %v1352_v5 = vadd.f32 %v1479_v2, %v1345_v4 }
 0xabc   : > { %v1353_v6 = vmul.f32 %v1352_v5, %v1906_v50 }
 0xabe   : > { %1354 = vst.msk [vmem:[%s520_s21] sm:$0xff] %vm547_vm1, %v1353_v6 }
 0xabf PF: > { %s25_s18 = sadd.s32 1, %s1663_s18  }
 0xac0   : > { %p22_p4 = scmp.ge.s32.totalorder %s25_s18, 4  }
 0xac2   :  { %24 = sbr.rel (!%p22_p4) target bundleno = 1 (0x1), region = 116 }

// kernel: squeeze.6
= control target key start
LH: loop header
LB: loop body
LE: loop exit
PB: predicated region body
PF: predicated region fallthrough
CT: control target
= control target key end

     0   :  { %s85_s0 = inlined_call_operand.vmem [shape: f32[32], index: 0, kind: input, shape index: {}]   ;;  %s86_s1 = inlined_call_operand.hbm [shape: f32[2,16], index: 1, kind: output, shape index: {}]  }
   0x1   :  { %v5_v0 = vld [vmem:[%s85_s0] sm:$0x1] }
   0x2   :  { %2 = vsyncpa [#allocation1], 0  ;;  %6 = vst [vmem:[#allocation3] sm:$0x1] %v5_v0  ;;  %vm8_vm0 = vcmask 130048   ;;  %s58_s0 = smov 112  }
   0x3   :  { %s59_s8 = smov [#allocation0]  }
   0x4   :  { %s26_s9 = sshll.u32 %s59_s8, 4  ;;  %s27_s9 = int_to_ptr.vmem [resolvable:$true] %s26_s9 }
   0x5   :  { %s34_s10 = scalar_lea.vmem %s27_s9, 32  ;;  %p39_p1 = scmp.lt.s32.totalorder %s27_s9, %s27_s9 }
   0x6   :  { %p35_p0 = scmp.ne.s32.totalorder %s27_s9, %s34_s10  ;;  %p40_p2 = scmp.lt.s32.totalorder %s34_s10, %s34_s10 }
   0x8   :  { %p41_p3 = por %p40_p2, %p39_p1 }
   0x9   :  { %v10_v1 = vld [vmem:[#allocation3] sm:$0x1]  }
   0xa   :  { %v7_v2 = vld [vmem:[#allocation3] sm:$0x1]   ;;  %11 = vrot.lane.b32.xlu0 %v10_v1, %s58_s0  ;;  %p42_p4 = pnand %p41_p3, %p35_p0 }
   0xb   :  { %9 = vst.msk [vmem:[#allocation2] sm:$0x1] %vm8_vm0, %v7_v2  }
  0x7c   :  { %v12_v3 = vpop.permute.xlu0 %11  }
  0x7d   :  { %15 = vst.msk [vmem:[#allocation2 + $0x1] sm:$0x1] %vm8_vm0, %v12_v3  }
  0x84   :  { %v19_v4 = vld [vmem:[#allocation2] sm:$0x3] }
  0x85   :  { %21 = vst [vmem:[#allocation0] sm:$0x3] %v19_v4 }
  0x86   :  { %45 = shalt.err (!%p42_p4)
}
  0x87   :  { %s46_s13 = scalar_lea.hbm %s86_s1, 32 }
  0x88   :  { %p47_p5 = scmp.ne.s32.totalorder %s86_s1, %s46_s13  ;;  %p50_p6 = scmp.lt.u32.totalorder %s46_s13, %s86_s1 }
  0x8a   :  { %p52_p7 = pnand %p50_p6, %p47_p5 }
  0x8c   :  { %55 = shalt.err (!%p52_p7)
}
  0x8d   :  { %29 = dma.vmem_to_hbm [thread:$0]  %s27_s9, 32, %s86_s1, [#allocation1]  }
  0x8e   :  { %56 = dma.done.wait [#allocation1], 32  }
  0x8f   :  { %57 = vsyncadd [#allocation1], 4294967264 }
  0x90   :  { %31 = vsyncpa [#allocation1], 1 }

// kernel: fastspeech2_forward.8
= control target key start
LH: loop header
LB: loop body
LE: loop exit
PB: predicated region body
PF: predicated region fallthrough
CT: control target
= control target key end

     0   :  { %s1932_s18 = smov 0   ;;  %s2205_s0 = inlined_call_operand.vmem [shape: f32[32,32], index: 0, kind: input, shape index: {}]   ;;  %s2206_s1 = inlined_call_operand.vmem [shape: f32[32,1], index: 1, kind: input, shape index: {}]   ;;  %s2207_s2 = inlined_call_operand.vmem [shape: f32[2,1,16], index: 2, kind: input, shape index: {}]   ;;  %s2208_s3 = inlined_call_operand.vmem [shape: bf16[32,96], index: 3, kind: input, shape index: {}]   ;;  %s2209_s4 = inlined_call_operand.vmem [shape: f32[1,96], index: 4, kind: input, shape index: {}]   ;;  %s2210_s5 = inlined_call_operand.vmem [shape: bf16[32,32], index: 5, kind: input, shape index: {}]   ;;  %s2211_s6 = inlined_call_operand.vmem [shape: f32[1,32], index: 6, kind: input, shape index: {}]   ;;  %s2212_s7 = inlined_call_operand.vmem [shape: f32[1,32], index: 7, kind: input, shape index: {}]   ;;  %s2213_s8 = inlined_call_operand.vmem [shape: f32[1,32], index: 8, kind: input, shape index: {}]   ;;  %s2214_s9 = inlined_call_operand.vmem [shape: bf16[288,64], index: 9, kind: input, shape index: {}]   ;;  %s2215_s10 = inlined_call_operand.vmem [shape: f32[1,64], index: 10, kind: input, shape index: {}]   ;;  %s2216_s11 = inlined_call_operand.vmem [shape: bf16[64,32], index: 11, kind: input, shape index: {}]   ;;  %s2217_s12 = inlined_call_operand.vmem [shape: f32[1,32], index: 12, kind: input, shape index: {}]   ;;  %s2218_s13 = inlined_call_operand.vmem [shape: f32[1,32], index: 13, kind: input, shape index: {}]   ;;  %s2219_s14 = inlined_call_operand.vmem [shape: f32[1,32], index: 14, kind: input, shape index: {}]   ;;  %s2220_s15 = inlined_call_operand.vmem [shape: f32[32,32], index: 15, kind: output, shape index: {}]  }
   0x1 LB: > { %s1938_s19 = sadd.s32 4294967295, %s1842_s18   ;;  %p1572_p0 = scmp.ge.s32.totalorder %s1842_s18, 1  ;;  %s1842_s18 = sphi %s1932_s18, %s25_s18  }
   0x2   : > { %p457_p1 = scmp.lt.s32.totalorder %s1842_s18, 3 }
   0x4   : > { %p458_p2 = pnand %p1572_p0, %p457_p1 }
   0x5   : > { %v1786_v0 = vld [vmem:[%s2208_s3] sm:$0xff] (!%p458_p2)   ;;  %v1844_v1 = vmov (!%p458_p2), 0.0   ;;  %v1787_v2 = vld [vmem:[%s2208_s3 + $0x8] sm:$0xff] (!%p458_p2)   ;;  %vm1845_vm0 = vmmov (!%p458_p2), 0   ;;  %s1573_s24 = sshll.u32 (!%p458_p2), %s1938_s19, 1  ;;  %vm561_vm1 = vcmask (!%p458_p2), 261120   ;;  %v725_v27 = vlaneseq (!%p458_p2) }
   0x6   : > { %461 = sbr.rel (%p458_p2) target bundleno = 2788 (0xae4), region = 80  ;;  %1668 = vmatprep.subr.bf16.mxu0 (!%p458_p2), %v1844_v1  ;;  %1676 = vmatprep.subr.bf16.mxu1 (!%p458_p2), %v1844_v1  ;;  %p514_p3 = scmp.lt.s32.totalorder (!%p458_p2), %s1573_s24, 3  ;;  %v1579_v6 = vld [vmem:[%s2209_s4] ss:$0 sm:$0xff] (!%p458_p2)  ;;  %vm619_vm2 = vcmask (!%p458_p2), 130048   ;;  %vm1052_vm3 = vcmask (!%p458_p2), 1043456  }
   0x7   : > { %1669 = vmatpush3.bf16.msra.mxu0 (!%p458_p2), %v1786_v0  ;;  %1672 = vmatprep.mubr.msk.bf16.mxu0 (!%p458_p2), %vm1845_vm0, %v1844_v1  ;;  %s1846_s16 = smov (!%p458_p2), 112   ;;  %s1847_s17 = smov (!%p458_p2), 96   ;;  %v726_v30 = vshrl.u32 (!%p458_p2), %v725_v27, 7  ;;  %vm1077_vm4 = vcmask (!%p458_p2), 1046528   ;;  %vm1059_vm5 = vcmask (!%p458_p2), 1042432   ;;  %vm1083_vm6 = vcmask (!%p458_p2), 1045504  }
   0x8   : > { %1670 = vmatprep.subr.bf16.mxu0 (!%p458_p2), %v1844_v1  ;;  %1678 = vmatprep.mubr.msk.bf16.mxu1 (!%p458_p2), %vm1845_vm0, %v1844_v1  ;;  %p525_p4 = scmp.lt.s32.totalorder (!%p458_p2), %s1938_s19, 1  ;;  %s1851_s29 = smov (!%p458_p2), 32   ;;  %vm1065_vm7 = vcmask (!%p458_p2), 1041408   ;;  %vm1089_vm8 = vcmask (!%p458_p2), 1044480   ;;  %vm1071_vm9 = vcmask (!%p458_p2), 1040384   ;;  %vm1141_vm10 = vcmask (!%p458_p2), 523264  }
   0x9   : > { %v727_v32 = vsub.s32 (!%p458_p2), 0, %v726_v30  ;;  %vm1144_vm11 = vcmask (!%p458_p2), 785408  }
   0xb   : > { %1671 = vmatpush3.bf16.msra.mxu0 (!%p458_p2), %v1787_v2 }
   0xc   : > { %1682 = vmatprep.subr.bf16.mxu0 (!%p458_p2), %v1844_v1 }
   0xd   : > { %s2222_s24 = smov (!%p514_p3, %s1573_s24), 3  ;;  %s2224_s19 = smov (!%p525_p4, %s1938_s19), 1 }
   0xe   : > { %s1956_s25 = sshll.u32 %s2222_s24, 3  ;;  %s527_s22 = scalar_lea.vmem %s2207_s2, %s2224_s19 }
   0xf   : > { %s517_s28 = scalar_lea.vmem %s2205_s0, %s1956_s25  ;;  %v721_v28 = vld [vmem:[%s527_s22] sm:$0x1]  ;;  %s1848_s19 = smov 64  }
  0x10   : > { %v1963_v3 = vld [vmem:[%s517_s28] sm:$0xff]  ;;  %v1965_v4 = vld [vmem:[%s517_s28 + $0x8] sm:$0xff]  ;;  %v1585_v29 = vadd.f32 -1.0, %v721_v28  ;;  %s1849_s28 = smov 16   ;;  %s523_s21 = scalar_lea.vmem %s2206_s1, %s1956_s25 }
  0x11   : > { %v537_v5 = vpack.c.bf16 %v1965_v4, %v1963_v3  ;;  %s532_s22 = scalar_lea.vmem %s2220_s15, %s1956_s25 }
  0x12   : > { %v723_v31 = vmul.f32 1e+09, %v1585_v29 }
  0x13   : > { %1673 = vmatmul.mubr.msk.bf16.vlgmr.msra.gmra.mrb[0].mxu0 %vm561_vm1, %v537_v5 }
  0x14   : > { %1684 = vmatprep.mubr.msk.bf16.mxu0 %vm1845_vm0, %v1844_v1  ;;  %v728_v37 = vrot.slane %v723_v31, %v727_v32 }
  0xe6   : > { %v599_v7 = vpop.f32.mrb[0].mxu0 }
  0xe7   : > { %v1674_v8 = vpop.f32.mrb[1].mxu0  ;;  %v600_v10 = vadd.f32 %v1579_v6, %v599_v7 }
  0xe8   : > { %v602_v9 = vpop.f32.mrb[2].mxu0 }
  0xe9   : > { %v603_v11 = vadd.f32 %v1579_v6, %v602_v9  ;;  %v1675_v12 = vpop.f32.mrb[3].mxu0 }
  0xeb   : > { %v1975_v13 = vpack.c.bf16 %v603_v11, %v600_v10  ;;  %v1744_v14 = vpack.i.bf16 %v603_v11, %v600_v10 }
  0xed   : > { %1745 = vrot.lane.b32.xlu0 %v1744_v14, %s1846_s16  ;;  %617 = vrot.lane.b32.xlu1 %v1975_v13, %s1847_s17 }
 0x15f   : > { %v1746_v15 = vpop.permute.xlu0 %1745  ;;  %v618_v16 = vpop.permute.xlu1 %617 }
 0x160   : > { %v1748_v17 = vunpack.i.h.bf16 %v1746_v15  ;;  %v1747_v18 = vunpack.i.l.bf16 %v1746_v15  ;;  %v624_v19 = vsel %vm619_vm2, %v618_v16, 0 }
 0x161   : > { %1677 = vmatpush3.bf16.xpose.msra.mxu1 %v624_v19 }
 0x162   : > { %v1980_v20 = vpack.c.bf16 %v1748_v17, %v1747_v18  ;;  %1688 = vmatprep.subr.bf16.mxu1 %v1844_v1 }
 0x164   : > { %668 = vrot.lane.b32.xlu0 %v1980_v20, %s1847_s17 }
 0x168   : > { %1679 = vmatmul.mubr.msk.bf16.vlgmr.msra.gmra.mrb[0].mxu1 %vm619_vm2, %v1975_v13 }
 0x169   : > { %1690 = vmatprep.mubr.msk.bf16.mxu1 %vm1845_vm0, %v1844_v1 }
 0x1d6   : > { %v669_v21 = vpop.permute.xlu0 %668 }
 0x1d7   : > { %v674_v22 = vsel %vm619_vm2, %v669_v21, 0 }
 0x1d8   : > { %1683 = vmatpush3.bf16.xpose.msra.mxu0 %v674_v22 }
 0x1d9   : > { %1694 = vmatprep.subr.bf16.mxu0 %v1844_v1 }
 0x1df   : > { %1685 = vmatmul.mubr.msk.bf16.vlgmr.msra.gmra.mrb[4].mxu0 %vm619_vm2, %v1980_v20 }
 0x1e0   : > { %1696 = vmatprep.mubr.msk.bf16.mxu0 %vm1845_vm0, %v1844_v1 }
 0x23b   : > { %v660_v23 = vpop.f32.mrb[0].mxu1 }
 0x23c   : > { %v1680_v24 = vpop.f32.mrb[1].mxu1  ;;  %v717_v39 = vmul.f32 0.25, %v660_v23 }
 0x23d   : > { %v663_v25 = vpop.f32.mrb[2].mxu1 }
 0x23e   : > { %v1681_v26 = vpop.f32.mrb[3].mxu1  ;;  %v718_v34 = vmul.f32 0.25, %v663_v25  ;;  %v730_v47 = vadd.f32 %v728_v37, %v717_v39  ;;  %v1788_v25 = vld [vmem:[%s2210_s5] sm:$0xff]  }
 0x23f   : > { %v1789_v26 = vld [vmem:[%s2210_s5 + $0x8] sm:$0xff]  }
 0x240   : > { %v731_v45 = vadd.f32 %v728_v37, %v718_v34  ;;  %v734_v49 = vsel %vm619_vm2, %v730_v47, -inf }
 0x242   : > { %v737_v48 = vsel %vm619_vm2, %v731_v45, -inf }
 0x2b2   : > { %v710_v33 = vpop.f32.mrb[4].mxu0 }
 0x2b3   : > { %v719_v35 = vmul.f32 0.25, %v710_v33  ;;  %v1686_v36 = vpop.f32.mrb[5].mxu0 }
 0x2b4   : > { %v713_v38 = vpop.f32.mrb[6].mxu0 }
 0x2b5   : > { %v720_v40 = vmul.f32 0.25, %v713_v38  ;;  %v1687_v41 = vpop.f32.mrb[7].mxu0  ;;  %v732_v42 = vadd.f32 %v728_v37, %v719_v35 }
 0x2b7   : > { %v740_v43 = vsel %vm619_vm2, %v732_v42, -inf  ;;  %v733_v44 = vadd.f32 %v728_v37, %v720_v40 }
 0x2b8   : > { %741 = vmax.xlane.f32.xlu1 %v740_v43 }
 0x2b9   : > { %v743_v46 = vsel %vm619_vm2, %v733_v44, -inf }
 0x2ba   : > { %744 = vmax.xlane.f32.xlu0 %v743_v46 }
 0x2bc   : > { %738 = vmax.xlane.f32.xlu1 %v737_v48 }
 0x2be   : > { %735 = vmax.xlane.f32.xlu0 %v734_v49 }
 0x345   : > { %v742_v50 = vpop.xlane.xlu1 %741 }
 0x346   : > { %v748_v51 = vsub.f32 %v732_v42, %v742_v50  ;;  %v1588_v42 = vld [vmem:[%s2211_s6] ss:$0 sm:$0xff] }
 0x347   : > { %v745_v52 = vpop.xlane.xlu0 %744 }
 0x348   : > { %v754_v53 = vmul.f32 1.442695, %v748_v51  ;;  %v749_v54 = vsub.f32 %v733_v44, %v745_v52 }
 0x349   : > { %v739_v55 = vpop.xlane.xlu1 %738 }
 0x34a   : > { %1812 = vpow2.f32 %v754_v53  ;;  %v756_v56 = vmul.f32 1.442695, %v749_v54  ;;  %v747_v57 = vsub.f32 %v731_v45, %v739_v55  ;;  %v1850_v53 = vmov 0   ;;  %v952_v54 = vld [vmem:[%s523_s21] sm:$0xff] }
 0x34b   : > { %v736_v58 = vpop.xlane.xlu0 %735  ;;  %1754 = vset.pattern.permute.xlu1 %v1850_v53  ;;  %1755 = vset.pattern.permute.xlu0 %v1850_v53  ;;  %v1803_v53 = vld [vmem:[%s2214_s9 + $0x28] sm:$0xff]  }
 0x34c   : > { %1814 = vpow2.f32 %v756_v56  ;;  %v746_v59 = vsub.f32 %v730_v47, %v736_v58  ;;  %v752_v60 = vmul.f32 1.442695, %v747_v57 }
 0x34e   : > { %v750_v61 = vmul.f32 1.442695, %v746_v59 }
 0x350   : > { %1816 = vpow2.f32 %v750_v61 }
 0x351   : > { %1818 = vpow2.f32 %v752_v60 }
 0x354   : > { %v1813_v62 = vpop.eup %1812 }
 0x355   : > { %v764_v63 = vsel %vm619_vm2, %v1813_v62, 0.0 }
 0x356   : > { %v1815_v0 = vpop.eup %1814  ;;  %765 = vadd.xlane.f32.xlu0 %v764_v63  ;;  %v953_v63 = vld [vmem:[%s523_s21 + $0x8] sm:$0xff] }
 0x357   : > { %v767_v2 = vsel %vm619_vm2, %v1815_v0, 0.0 }
 0x358   : > { %768 = vadd.xlane.f32.xlu1 %v767_v2  ;;  %v1791_v2 = vld [vmem:[%s2214_s9 + $0x88] sm:$0xff]  }
 0x35a   : > { %v1817_v5 = vpop.eup %1816 }
 0x35b   : > { %v758_v6 = vsel %vm619_vm2, %v1817_v5, 0.0  ;;  %v1819_v7 = vpop.eup %1818 }
 0x35c   : > { %759 = vadd.xlane.f32.xlu1 %v758_v6  ;;  %v761_v8 = vsel %vm619_vm2, %v1819_v7, 0.0  ;;  %v1793_v6 = vld [vmem:[%s2214_s9] sm:$0xff]  }
 0x360   : > { %762 = vadd.xlane.f32.xlu1 %v761_v8  ;;  %v1795_v8 = vld [vmem:[%s2214_s9 + $0x8] sm:$0xff]  }
 0x36c   : > { %827 = vrot.lane.b32.xlu0 %v1980_v20, %s1848_s19 }
 0x371   : > { %780 = vrot.lane.b32.xlu1 %v1975_v13, %s1848_s19 }
 0x3e3   : > { %v766_v9 = vpop.xlane.xlu0 %765 }
 0x3e4   : > { %1820 = vrcp.f32 %v766_v9 }
 0x3e5   : > { %v769_v10 = vpop.xlane.xlu1 %768 }
 0x3e6   : > { %1822 = vrcp.f32 %v769_v10 }
 0x3e7   : > { %v828_v11 = vpop.permute.xlu0 %827 }
 0x3e8   : > { %1695 = vmatpush3.bf16.msra.mxu0 %v828_v11 }
 0x3e9   : > { %v760_v12 = vpop.xlane.xlu1 %759 }
 0x3ea   : > { %1824 = vrcp.f32 %v760_v12 }
 0x3ed   : > { %v763_v14 = vpop.xlane.xlu1 %762 }
 0x3ee   : > { %v1821_v15 = vpop.eup %1820  ;;  %1826 = vrcp.f32 %v763_v14 }
 0x3ef   : > { %v776_v17 = vmul.f32 %v1821_v15, %v1813_v62 }
 0x3f0   : > { %v1823_v16 = vpop.eup %1822 }
 0x3f1   : > { %v777_v18 = vmul.f32 %v1823_v16, %v1815_v0  ;;  %v781_v19 = vpop.permute.xlu1 %780  ;;  %v1790_v0 = vld [vmem:[%s2214_s9 + $0x80] sm:$0xff]  }
 0x3f2   : > { %1689 = vmatpush3.bf16.msra.mxu1 %v781_v19  ;;  %v1593_v19 = vld [vmem:[%s2213_s8] ss:$0 sm:$0xff] }
 0x3f3   : > { %v779_v20 = vpack.c.bf16 %v777_v18, %v776_v17  ;;  %1700 = vmatprep.subr.bf16.mxu1 %v1844_v1  ;;  %v1592_v17 = vld [vmem:[%s2212_s7] ss:$0 sm:$0xff] }
 0x3f4   : > { %v1825_v13 = vpop.eup %1824 }
 0x3f5   : > { %1697 = vmatmul.mubr.msk.bf16.vlgmr.msra.gmra.mrb[8].mxu0 %vm619_vm2, %v779_v20  ;;  %v774_v22 = vmul.f32 %v1825_v13, %v1817_v5  ;;  %v1792_v5 = vld [vmem:[%s2214_s9 + $0x40] sm:$0xff]  }
 0x3f6   : > { %1638 = vmatprep.subr.bf16.mxu0 %v1792_v5  ;;  %v1807_v5 = vld [vmem:[%s2214_s9 + $0x38] sm:$0xff]  }
 0x3f7   : > { %1639 = vmatpush3.bf16.msra.mxu0 %v1793_v6 }
 0x3f8   : > { %v1827_v21 = vpop.eup %1826 }
 0x3f9   : > { %v775_v23 = vmul.f32 %v1827_v21, %v1819_v7  ;;  %v1794_v7 = vld [vmem:[%s2214_s9 + $0x48] sm:$0xff]  }
 0x3fa   : > { %1640 = vmatprep.subr.bf16.mxu0 %v1794_v7 }
 0x3fb   : > { %v778_v24 = vpack.c.bf16 %v775_v23, %v774_v22  ;;  %1641 = vmatpush3.bf16.msra.mxu0 %v1795_v8 }
 0x3fd   : > { %1691 = vmatmul.mubr.msk.bf16.vlgmr.msra.gmra.mrb[4].mxu1 %vm619_vm2, %v778_v24 }
 0x3fe   : > { %1704 = vmatprep.mubr.msk.bf16.mxu1 %vm1845_vm0, %v1844_v1  ;;  %1701 = vmatpush3.bf16.msra.mxu1 %v1788_v25 }
 0x3ff   : > { %1702 = vmatprep.subr.bf16.mxu1 %v1844_v1 }
 0x402   : > { %1703 = vmatpush3.bf16.msra.mxu1 %v1789_v26  ;;  %v1796_v26 = vld [vmem:[%s2214_s9 + $0x50] sm:$0xff]  }
 0x403   : > { %1708 = vmatprep.subr.bf16.mxu1 %v1844_v1  ;;  %1642 = vmatprep.subr.bf16.mxu0 %v1796_v26 }
 0x4c8   : > { %v867_v27 = vpop.f32.mrb[8].mxu0 }
 0x4c9   : > { %v1698_v28 = vpop.f32.mrb[9].mxu0 }
 0x4ca   : > { %v870_v29 = vpop.f32.mrb[10].mxu0 }
 0x4cb   : > { %v1749_v30 = vpack.i.bf16 %v870_v29, %v867_v27  ;;  %v1699_v31 = vpop.f32.mrb[11].mxu0  ;;  %v1797_v27 = vld [vmem:[%s2214_s9 + $0x10] sm:$0xff]  }
 0x4cc   : > { %1643 = vmatpush3.bf16.msra.mxu0 %v1797_v27 }
 0x4cd   : > { %1750 = vrot.lane.b32.xlu0 %v1749_v30, %s1849_s28 }
 0x4d0   : > { %v820_v32 = vpop.f32.mrb[4].mxu1 }
 0x4d1   : > { %v1692_v33 = vpop.f32.mrb[5].mxu1 }
 0x4d2   : > { %v823_v34 = vpop.f32.mrb[6].mxu1  ;;  %v1798_v33 = vld [vmem:[%s2214_s9 + $0x58] sm:$0xff]  }
 0x4d3   : > { %v1693_v35 = vpop.f32.mrb[7].mxu1  ;;  %1644 = vmatprep.subr.bf16.mxu0 %v1798_v33 }
 0x53f   : > { %v1751_v36 = vpop.permute.xlu0 %1750 }
 0x540   : > { %v1753_v37 = vunpack.i.h.bf16 %v1751_v36  ;;  %v1752_v38 = vunpack.i.l.bf16 %v1751_v36 }
 0x542   : > { %v883_v39 = vsel %vm619_vm2, %v823_v34, %v1753_v37  ;;  %v882_v40 = vsel %vm619_vm2, %v820_v32, %v1752_v38  ;;  %v1799_v34 = vld [vmem:[%s2214_s9 + $0x18] sm:$0xff]  }
 0x543   : > { %v884_v41 = vpack.c.bf16 %v883_v39, %v882_v40  ;;  %1645 = vmatpush3.bf16.msra.mxu0 %v1799_v34 }
 0x545   : > { %1705 = vmatmul.mubr.msk.bf16.vlgmr.msra.gmra.mrb[8].mxu1 %vm561_vm1, %v884_v41 }
 0x546   : > { %1712 = vmatprep.mubr.msk.bf16.mxu1 %vm1845_vm0, %v1844_v1  ;;  %1709 = vmatpush3.bf16.msra.mxu1 %v1790_v0  ;;  %v1806_v0 = vld [vmem:[%s2214_s9 + $0x78] sm:$0xff]  }
 0x547   : > { %1710 = vmatprep.subr.bf16.mxu1 %v1844_v1 }
 0x54a   : > { %1711 = vmatpush3.bf16.msra.mxu1 %v1791_v2 }
 0x54b   : > { %1716 = vmatprep.subr.bf16.mxu1 %v1844_v1 }
 0x618   : > { %v945_v43 = vpop.f32.mrb[8].mxu1 }
 0x619   : > { %v946_v44 = vadd.f32 %v1588_v42, %v945_v43  ;;  %v1706_v45 = vpop.f32.mrb[9].mxu1 }
 0x61a   : > { %v948_v46 = vpop.f32.mrb[10].mxu1  ;;  %v1801_v45 = vld [vmem:[%s2214_s9 + $0x20] sm:$0xff]  }
 0x61b   : > { %v949_v47 = vadd.f32 %v1588_v42, %v948_v46  ;;  %v1707_v48 = vpop.f32.mrb[11].mxu1  ;;  %v954_v49 = vadd.f32 %v946_v44, %v1963_v3  ;;  %v1800_v44 = vld [vmem:[%s2214_s9 + $0x60] sm:$0xff]  }
 0x61c   : > { %1646 = vmatprep.subr.bf16.mxu0 %v1800_v44 }
 0x61d   : > { %v958_v50 = vsel %vm561_vm1, %v954_v49, 0.0  ;;  %v955_v51 = vadd.f32 %v949_v47, %v1965_v4  ;;  %1647 = vmatpush3.bf16.msra.mxu0 %v1801_v45 }
 0x61e   : > { %959 = vadd.xlane.f32.xlu0 %v958_v50 }
 0x61f   : > { %v961_v52 = vsel %vm561_vm1, %v955_v51, 0.0 }
 0x620   : > { %962 = vadd.xlane.f32.xlu1 %v961_v52  ;;  %v1802_v52 = vld [vmem:[%s2214_s9 + $0x68] sm:$0xff]  }
 0x621   : > { %1648 = vmatprep.subr.bf16.mxu0 %v1802_v52 }
 0x622   : > { %1649 = vmatpush3.bf16.msra.mxu0 %v1803_v53 }
 0x631   : > { %1003 = vperm.xlu1 %1754, %v952_v54  }
 0x6ab   : > { %v960_v55 = vpop.xlane.xlu0 %959 }
 0x6ac   : > { %v965_v56 = vmul.f32 0.03125, %v960_v55 }
 0x6ad   : > { %v963_v3 = vpop.xlane.xlu1 %962 }
 0x6ae   : > { %v967_v57 = vsub.f32 %v954_v49, %v965_v56  ;;  %v966_v58 = vmul.f32 0.03125, %v963_v3 }
 0x6b0   : > { %v968_v59 = vsub.f32 %v955_v51, %v966_v58  ;;  %v969_v4 = vmul.f32 %v967_v57, %v967_v57 }
 0x6b1   : > { %v2069_v21 = vpop.permute.xlu1 %1003 }
 0x6b2   : > { %v971_v60 = vsel %vm561_vm1, %v969_v4, 0.0  ;;  %v970_v61 = vmul.f32 %v968_v59, %v968_v59 }
 0x6b3   : > { %972 = vadd.xlane.f32.xlu0 %v971_v60 }
 0x6b4   : > { %v974_v62 = vsel %vm561_vm1, %v970_v61, 0.0 }
 0x6b7   : > { %975 = vadd.xlane.f32.xlu0 %v974_v62 }
 0x6cd   : > { %1008 = vperm.xlu0 %1755, %v953_v63  }
 0x740   : > { %v973_v9 = vpop.xlane.xlu0 %972 }
 0x741   : > { %v977_v10 = vmul.f32 0.03125, %v973_v9 }
 0x743   : > { %v979_v11 = vadd.f32 1e-05, %v977_v10 }
 0x744   : > { %v976_v12 = vpop.xlane.xlu0 %975 }
 0x745   : > { %1828 = vrsqrt.f32 %v979_v11  ;;  %v978_v14 = vmul.f32 0.03125, %v976_v12 }
 0x747   : > { %v980_v15 = vadd.f32 1e-05, %v978_v14 }
 0x749   : > { %1830 = vrsqrt.f32 %v980_v15  ;;  %v1808_v15 = vld [vmem:[%s2216_s11] sm:$0xff]  }
 0x74c   : > { %v2080_v28 = vpop.permute.xlu0 %1008 }
 0x74f   : > { %v1829_v16 = vpop.eup %1828 }
 0x750   : > { %v983_v18 = vmul.f32 %v1829_v16, %v967_v57  ;;  %v1804_v57 = vld [vmem:[%s2214_s9 + $0x70] sm:$0xff]  }
 0x751   : > { %1650 = vmatprep.subr.bf16.mxu0 %v1804_v57 }
 0x752   : > { %v991_v20 = vmul.f32 %v1592_v17, %v983_v18 }
 0x753   : > { %v1831_v13 = vpop.eup %1830 }
 0x754   : > { %v999_v22 = vadd.f32 %v1593_v19, %v991_v20  ;;  %v984_v23 = vmul.f32 %v1831_v13, %v968_v59  ;;  %v1805_v59 = vld [vmem:[%s2214_s9 + $0x30] sm:$0xff]  }
 0x755   : > { %1651 = vmatpush3.bf16.msra.mxu0 %v1805_v59 }
 0x756   : > { %v2072_v24 = vmul.f32 %v2069_v21, %v999_v22  ;;  %v992_v25 = vmul.f32 %v1592_v17, %v984_v23  ;;  %1652 = vmatprep.subr.bf16.mxu0 %v1806_v0 }
 0x758   : > { %v1000_v29 = vadd.f32 %v1593_v19, %v992_v25  ;;  %v1053_v30 = vrot.slane %v2072_v24, 4  ;;  %v1078_v35 = vrot.slane %v2072_v24, 1  ;;  %v1060_v39 = vrot.slane %v2072_v24, 5 }
 0x759   : > { %v1084_v51 = vrot.slane %v2072_v24, 2  ;;  %v1066_v58 = vrot.slane %v2072_v24, 6  ;;  %v1090_v63 = vrot.slane %v2072_v24, 3  ;;  %v1072_v9 = vrot.slane %v2072_v24, 7  ;;  %1653 = vmatpush3.bf16.msra.mxu0 %v1807_v5 }
 0x75a   : > { %v2084_v31 = vmul.f32 %v2080_v28, %v1000_v29  ;;  %v2087_v32 = vsel %vm1052_vm3, 0.0, %v1053_v30  ;;  %v1064_v50 = vsel %vm1059_vm5, 0.0, %v1060_v39 }
 0x75b   : > { %v1070_v62 = vsel %vm1065_vm7, 0.0, %v1066_v58  ;;  %v1076_v12 = vsel %vm1071_vm9, 0.0, %v1072_v9 }
 0x75c   : > { %v1079_v36 = vrot.slane %v2084_v31, 1  ;;  %v1054_v37 = vrot.slane %v2084_v31, 4  ;;  %v1061_v38 = vrot.slane %v2084_v31, 5  ;;  %v1085_v49 = vrot.slane %v2084_v31, 2 }
 0x75d   : > { %v1067_v3 = vrot.slane %v2084_v31, 6  ;;  %v1091_v61 = vrot.slane %v2084_v31, 3  ;;  %v1073_v8 = vrot.slane %v2084_v31, 7 }
 0x75e   : > { %v1080_v40 = vsel %vm1077_vm4, %v1078_v35, %v1079_v36  ;;  %v1082_v41 = vsel %vm1077_vm4, %v1079_v36, 0.0  ;;  %v2101_v42 = vsel %vm1052_vm3, %v1053_v30, %v1054_v37  ;;  %v1096_v43 = vsel %vm1052_vm3, %v1054_v37, 0.0 }
 0x75f   : > { %v1756_v46 = vpack.i.bf16 %v1082_v41, %v1080_v40  ;;  %v1155_v47 = vpack.c.bf16 %v1096_v43, %v2101_v42  ;;  %v1062_v48 = vsel %vm1059_vm5, %v1060_v39, %v1061_v38  ;;  %v1086_v55 = vsel %vm1083_vm6, %v1084_v51, %v1085_v49 }
 0x760   : > { %v1761_v54 = vpack.i.bf16 %v1062_v48, %v1064_v50  ;;  %v1088_v56 = vsel %vm1083_vm6, %v1085_v49, 0.0  ;;  %v1068_v60 = vsel %vm1065_vm7, %v1066_v58, %v1067_v3  ;;  %v1092_v6 = vsel %vm1089_vm8, %v1090_v63, %v1091_v61  ;;  %v1811_v3 = vld [vmem:[%s2216_s11 + $0x18] sm:$0xff]   ;;  %v1594_v58 = vld [vmem:[%s2215_s10] ss:$0 sm:$0xff] }
 0x761   : > { %1757 = vrot.lane.b32.xlu1 %v1756_v46, %s1851_s29  ;;  %1713 = vmatmul.mubr.msk.bf16.vlgmr.msra.gmra.mrb[12].mxu1 %vm561_vm1, %v1155_v47  ;;  %v1766_v4 = vpack.i.bf16 %v1088_v56, %v1086_v55  ;;  %v1771_v2 = vpack.i.bf16 %v1068_v60, %v1070_v62  ;;  %v1094_v7 = vsel %vm1089_vm8, %v1091_v61, 0.0  ;;  %v1074_v11 = vsel %vm1071_vm9, %v1072_v9, %v1073_v8  ;;  %v1810_v56 = vld [vmem:[%s2216_s11 + $0x10] sm:$0xff]   ;;  %v1614_v8 = vld [vmem:[%s2217_s12] ss:$0 sm:$0xff] }
 0x762   : > { %1724 = vmatprep.mubr.msk.bf16.mxu1 %vm1845_vm0, %v1844_v1  ;;  %v1776_v10 = vpack.i.bf16 %v1094_v7, %v1092_v6  ;;  %v1781_v14 = vpack.i.bf16 %v1074_v11, %v1076_v12  ;;  %1717 = vmatpush3.bf16.msra.mxu1 %v1808_v15 }
 0x763   : > { %1718 = vmatprep.subr.bf16.mxu1 %v1844_v1 }
 0x765   : > { %1762 = vrot.lane.b32.xlu1 %v1761_v54, %s1851_s29 }
 0x769   : > { %1767 = vrot.lane.b32.xlu1 %v1766_v4, %s1848_s19 }
 0x76d   : > { %1772 = vrot.lane.b32.xlu1 %v1771_v2, %s1848_s19 }
 0x771   : > { %1777 = vrot.lane.b32.xlu1 %v1776_v10, %s1847_s17 }
 0x775   : > { %1782 = vrot.lane.b32.xlu1 %v1781_v14, %s1847_s17 }
 0x7d3   : > { %v1758_v16 = vpop.permute.xlu1 %1757 }
 0x7d4   : > { %v1760_v19 = vunpack.i.h.bf16 %v1758_v16  ;;  %v1759_v20 = vunpack.i.l.bf16 %v1758_v16 }
 0x7d6   : > { %v1148_v25 = vsel %vm561_vm1, %v2084_v31, %v1760_v19  ;;  %v1147_v26 = vsel %vm561_vm1, %v2072_v24, %v1759_v20 }
 0x7d7   : > { %v1763_v17 = vpop.permute.xlu1 %1762 }
 0x7d8   : > { %v1765_v29 = vunpack.i.h.bf16 %v1763_v17  ;;  %v1764_v30 = vunpack.i.l.bf16 %v1763_v17 }
 0x7da   : > { %v1139_v44 = vsel %vm561_vm1, %v2087_v32, %v1764_v30  ;;  %v1140_v45 = vsel %vm561_vm1, %v2101_v42, %v1765_v29  ;;  %v1809_v42 = vld [vmem:[%s2216_s11 + $0x8] sm:$0xff]  }
 0x7db   : > { %v1768_v18 = vpop.permute.xlu1 %1767  ;;  %1719 = vmatpush3.bf16.msra.mxu1 %v1809_v42 }
 0x7dc   : > { %v1770_v22 = vunpack.i.h.bf16 %v1768_v18  ;;  %v1769_v23 = vunpack.i.l.bf16 %v1768_v18  ;;  %1720 = vmatprep.subr.bf16.mxu1 %v1844_v1 }
 0x7de   : > { %v1150_v35 = vsel %vm1141_vm10, %v1148_v25, %v1770_v22  ;;  %v1149_v36 = vsel %vm1141_vm10, %v1147_v26, %v1769_v23 }
 0x7df   : > { %v1773_v13 = vpop.permute.xlu1 %1772  ;;  %1721 = vmatpush3.bf16.msra.mxu1 %v1810_v56 }
 0x7e0   : > { %v1775_v37 = vunpack.i.h.bf16 %v1773_v13  ;;  %v1774_v38 = vunpack.i.l.bf16 %v1773_v13  ;;  %1722 = vmatprep.subr.bf16.mxu1 %v1844_v1 }
 0x7e2   : > { %v1142_v48 = vsel %vm1141_vm10, %v1139_v44, %v1774_v38  ;;  %v1143_v49 = vsel %vm1141_vm10, %v1140_v45, %v1775_v37 }
 0x7e3   : > { %v1778_v27 = vpop.permute.xlu1 %1777  ;;  %1723 = vmatpush3.bf16.msra.mxu1 %v1811_v3 }
 0x7e4   : > { %v1780_v33 = vunpack.i.h.bf16 %v1778_v27  ;;  %v1779_v34 = vunpack.i.l.bf16 %v1778_v27 }
 0x7e6   : > { %v1151_v39 = vsel %vm1144_vm11, %v1149_v36, %v1779_v34  ;;  %v1152_v40 = vsel %vm1144_vm11, %v1150_v35, %v1780_v33 }
 0x7e7   : > { %v1783_v41 = vpop.permute.xlu1 %1782  ;;  %v1154_v43 = vpack.c.bf16 %v1152_v40, %v1151_v39  ;;  %v1620_v39 = vld [vmem:[%s2218_s13] ss:$0 sm:$0xff] }
 0x7e8   : > { %v1785_v46 = vunpack.i.h.bf16 %v1783_v41  ;;  %v1784_v47 = vunpack.i.l.bf16 %v1783_v41 }
 0x7e9   : > { %1305 = vmatprep.mubr.bf16.mxu0 %v1154_v43  ;;  %v1621_v43 = vld [vmem:[%s2219_s14] ss:$0 sm:$0xff] }
 0x7ea   : > { %v1145_v50 = vsel %vm1144_vm11, %v1142_v48, %v1784_v47  ;;  %v1146_v51 = vsel %vm1144_vm11, %v1143_v49, %v1785_v46 }
 0x7eb   : > { %v1153_v52 = vpack.c.bf16 %v1146_v51, %v1145_v50 }
 0x7ed   : > { %1306 = vmatmul.mubr.bf16.vlgmr.msra.gmra.mrb[12].mxu0 %v1153_v52 }
 0x834   : > { %v1348_v53 = vpop.f32.mrb[12].mxu1 }
 0x835   : > { %v1714_v54 = vpop.f32.mrb[13].mxu1 }
 0x836   : > { %v1351_v55 = vpop.f32.mrb[14].mxu1 }
 0x837   : > { %v1715_v32 = vpop.f32.mrb[15].mxu1 }
 0x8c0   : > { %v1654_v57 = vpop.f32.mrb[12].mxu0 }
 0x8c1   : > { %v1655_v59 = vpop.f32.mrb[13].mxu0 }
 0x8c2   : > { %v1656_v4 = vadd.f32 %v1655_v59, %v1654_v57  ;;  %v1657_v60 = vpop.f32.mrb[14].mxu0 }
 0x8c3   : > { %v1658_v61 = vpop.f32.mrb[15].mxu0 }
 0x8c4   : > { %v1308_v62 = vadd.f32 %v1656_v4, %v1594_v58  ;;  %v1659_v63 = vadd.f32 %v1658_v61, %v1657_v60 }
 0x8c6   : > { %v1349_v0 = vadd.f32 %v1348_v53, %v1308_v62  ;;  %v1311_v2 = vadd.f32 %v1659_v63, %v1594_v58 }
 0x8c8   : > { %v1352_v5 = vadd.f32 %v1351_v55, %v1311_v2  ;;  %v1355_v1 = vmax.f32 %v1349_v0, 0.0 }
 0x8ca   : > { %v1356_v6 = vmax.f32 %v1352_v5, 0.0 }
 0x8cc   : > { %v1357_v7 = vpack.c.bf16 %v1356_v6, %v1355_v1 }
 0x8ce   : > { %1725 = vmatmul.mubr.msk.bf16.vlgmr.msra.gmra.mrb[16].mxu1 %vm1141_vm10, %v1357_v7 }
 0x9a1   : > { %v1434_v9 = vpop.f32.mrb[16].mxu1 }
 0x9a2   : > { %v1435_v10 = vadd.f32 %v1614_v8, %v1434_v9  ;;  %v1726_v11 = vpop.f32.mrb[17].mxu1 }
 0x9a3   : > { %v1437_v12 = vpop.f32.mrb[18].mxu1 }
 0x9a4   : > { %v1438_v14 = vadd.f32 %v1614_v8, %v1437_v12  ;;  %v1727_v15 = vpop.f32.mrb[19].mxu1  ;;  %v1441_v16 = vadd.f32 %v1435_v10, %v2072_v24 }
 0x9a6   : > { %v1445_v17 = vsel %vm561_vm1, %v1441_v16, 0.0  ;;  %v1442_v18 = vadd.f32 %v1438_v14, %v2084_v31 }
 0x9a7   : > { %1446 = vadd.xlane.f32.xlu1 %v1445_v17 }
 0x9a8   : > { %v1448_v19 = vsel %vm561_vm1, %v1442_v18, 0.0 }
 0x9a9   : > { %1449 = vadd.xlane.f32.xlu0 %v1448_v19 }
 0xa34   : > { %v1447_v20 = vpop.xlane.xlu1 %1446 }
 0xa35   : > { %v1451_v13 = vmul.f32 0.03125, %v1447_v20 }
 0xa36   : > { %v1450_v22 = vpop.xlane.xlu0 %1449 }
 0xa37   : > { %v1453_v23 = vsub.f32 %v1441_v16, %v1451_v13  ;;  %v1452_v25 = vmul.f32 0.03125, %v1450_v22 }
 0xa39   : > { %v1454_v26 = vsub.f32 %v1442_v18, %v1452_v25  ;;  %v1455_v27 = vmul.f32 %v1453_v23, %v1453_v23 }
 0xa3b   : > { %v1457_v29 = vsel %vm561_vm1, %v1455_v27, 0.0  ;;  %v1456_v30 = vmul.f32 %v1454_v26, %v1454_v26 }
 0xa3c   : > { %1458 = vadd.xlane.f32.xlu1 %v1457_v29 }
 0xa3d   : > { %v1460_v24 = vsel %vm561_vm1, %v1456_v30, 0.0 }
 0xa3e   : > { %1461 = vadd.xlane.f32.xlu0 %v1460_v24 }
 0xac9   : > { %v1459_v33 = vpop.xlane.xlu1 %1458 }
 0xaca   : > { %v1463_v31 = vmul.f32 0.03125, %v1459_v33 }
 0xacb   : > { %v1462_v34 = vpop.xlane.xlu0 %1461 }
 0xacc   : > { %v1465_v35 = vadd.f32 1e-05, %v1463_v31  ;;  %v1464_v36 = vmul.f32 0.03125, %v1462_v34 }
 0xace   : > { %1832 = vrsqrt.f32 %v1465_v35  ;;  %v1466_v37 = vadd.f32 1e-05, %v1464_v36 }
 0xad0   : > { %1834 = vrsqrt.f32 %v1466_v37 }
 0xad8   : > { %v1833_v38 = vpop.eup %1832 }
 0xad9   : > { %v1469_v40 = vmul.f32 %v1833_v38, %v1453_v23 }
 0xada   : > { %v1835_v41 = vpop.eup %1834 }
 0xadb   : > { %v1477_v44 = vmul.f32 %v1620_v39, %v1469_v40  ;;  %v1470_v45 = vmul.f32 %v1835_v41, %v1454_v26 }
 0xadd   : > { %v1485_v46 = vadd.f32 %v1621_v43, %v1477_v44  ;;  %v1478_v47 = vmul.f32 %v1620_v39, %v1470_v45 }
 0xadf   : > { %v1487_v48 = vmul.f32 %v1485_v46, %v2069_v21  ;;  %v1486_v49 = vadd.f32 %v1621_v43, %v1478_v47 }
 0xae1   : > { %1489 = vst.msk [vmem:[%s532_s22] sm:$0xff] %vm561_vm1, %v1487_v48  ;;  %v1488_v50 = vmul.f32 %v1486_v49, %v2080_v28 }
 0xae3   : > { %1490 = vst.msk [vmem:[%s532_s22 + $0x8] sm:$0xff] %vm561_vm1, %v1488_v50 }
 0xae4 PF: > { %s25_s18 = sadd.s32 1, %s1842_s18  }
 0xae5   : > { %p22_p5 = scmp.ge.s32.totalorder %s25_s18, 4  }
 0xae7   :  { %24 = sbr.rel (!%p22_p5) target bundleno = 1 (0x1), region = 116 }

// kernel: fastspeech2_forward.7
= control target key start
LH: loop header
LB: loop body
LE: loop exit
PB: predicated region body
PF: predicated region fallthrough
CT: control target
= control target key end

     0   :  { %v138_v0 = vlaneseq  ;;  %vm288_vm0 = vcmask 261120   ;;  %vm219_vm1 = vcmask 1046528   ;;  %vm125_vm2 = vcmask 1040384   ;;  %s1763_s27 = smov 32   ;;  %s2374_s0 = inlined_call_operand.vmem [shape: f32[32,32], index: 0, kind: input, shape index: {}]   ;;  %s2375_s1 = inlined_call_operand.vmem [shape: f32[32,32], index: 1, kind: input, shape index: {}]   ;;  %s2376_s2 = inlined_call_operand.vmem [shape: f32[32,32], index: 2, kind: input, shape index: {}]   ;;  %s2377_s4 = inlined_call_operand.vmem [shape: bf16[96,32], index: 4, kind: input, shape index: {}]   ;;  %s2378_s24 = inlined_call_operand.vmem [shape: f32[32,32], index: 24, kind: output, shape index: {0}]   ;;  %s2379_s5 = inlined_call_operand.vmem [shape: f32[1,32], index: 5, kind: input, shape index: {}]   ;;  %s2380_s8 = inlined_call_operand.vmem [shape: bf16[96,32], index: 8, kind: input, shape index: {}]   ;;  %s2381_s6 = inlined_call_operand.vmem [shape: f32[1,32], index: 6, kind: input, shape index: {}]   ;;  %s2382_s7 = inlined_call_operand.vmem [shape: f32[1,32], index: 7, kind: input, shape index: {}]   ;;  %s2383_s14 = inlined_call_operand.vmem [shape: bf16[96,32], index: 14, kind: input, shape index: {}]   ;;  %s2384_s9 = inlined_call_operand.vmem [shape: f32[1,32], index: 9, kind: input, shape index: {}]   ;;  %s2385_s15 = inlined_call_operand.vmem [shape: f32[1,32], index: 15, kind: input, shape index: {}]   ;;  %s2386_s10 = inlined_call_operand.vmem [shape: f32[1,32], index: 10, kind: input, shape index: {}]   ;;  %s2387_s11 = inlined_call_operand.vmem [shape: f32[1,32], index: 11, kind: input, shape index: {}]   ;;  %s2388_s16 = inlined_call_operand.vmem [shape: f32[1,32], index: 16, kind: input, shape index: {}]   ;;  %s2389_s17 = inlined_call_operand.vmem [shape: f32[1,32], index: 17, kind: input, shape index: {}]   ;;  %s2390_s18 = inlined_call_operand.vmem [shape: bf16[96,32], index: 18, kind: input, shape index: {}]   ;;  %s2391_s12 = inlined_call_operand.vmem [shape: bf16[1,32], index: 12, kind: input, shape index: {}]   ;;  %s2392_s23 = inlined_call_operand.<no memory space> [shape: f32[1,1], index: 23, kind: input, shape index: {}]   ;;  %s2393_s13 = inlined_call_operand.<no memory space> [shape: f32[1,1], index: 13, kind: input, shape index: {}]   ;;  %s2394_s19 = inlined_call_operand.vmem [shape: f32[1,32], index: 19, kind: input, shape index: {}]   ;;  %s2395_s20 = inlined_call_operand.vmem [shape: f32[1,32], index: 20, kind: input, shape index: {}]   ;;  %s2396_s21 = inlined_call_operand.vmem [shape: f32[1,32], index: 21, kind: input, shape index: {}]   ;;  %s2397_s22 = inlined_call_operand.vmem [shape: bf16[1,32], index: 22, kind: input, shape index: {}]   ;;  %s2398_s3 = inlined_call_operand.vmem [shape: f32[1,32], index: 3, kind: input, shape index: {}]   ;;  %s2399_s25 = inlined_call_operand.vmem [shape: f32[2,32], index: 25, kind: output, shape index: {1}]  }
   0x1   :  { %2407 = sst [smem:[#allocation4_spill]] %s2374_s0  ;;  %vm293_vm7 = vcmask 523264   ;;  %vm342_vm8 = vcmask 785408   ;;  %vm1766_vm9 = vmmov 0   ;;  %vm1446_vm10 = vcmask 254976  }
   0x2   :  { %2408 = sst [smem:[#allocation5_spill]] %s2375_s1  ;;  %v1935_v13 = vshrl.u32 %v138_v0, 7 }
   0x3   :  { %2409 = sst [smem:[#allocation6_spill]] %s2376_s2  ;;  %s2418_s1 = sld [smem:[#allocation5_spill]] }
   0x4   :  { %2410 = sst [smem:[#allocation7_spill]] %s2377_s4  ;;  %s2419_s28 = sld [smem:[#allocation6_spill]]  ;;  %v140_v22 = vadd.s32 8, %v1935_v13  ;;  %v142_v23 = vadd.s32 24, %v1935_v13  ;;  %v141_v43 = vadd.s32 16, %v1935_v13  ;;  %v147_v44 = vand.u32 15, %v1935_v13 }
   0x5   :  { %2411 = sst [smem:[#allocation8_spill]] %s2378_s24 }
   0x6   :  { %2412 = sst [smem:[#allocation9_spill]] %s2379_s5  ;;  %s2421_s24 = sld [smem:[#allocation8_spill]]  ;;  %v154_v27 = vand.u32 15, %v140_v22  ;;  %v168_v28 = vand.u32 15, %v142_v23  ;;  %v161_v45 = vand.u32 15, %v141_v43  ;;  %v2003_v46 = vadd.s32 4294967295, %v147_v44 }
   0x7   :  { %2413 = sst [smem:[#allocation10_spill]] %s2380_s8  ;;  %s2417_s8 = sld [smem:[#allocation4_spill]] }
   0x8   :  { %2414 = sst [smem:[#allocation11_spill]] %s2381_s6  ;;  %v1977_v31 = vadd.s32 1, %v154_v27  ;;  %v1980_v33 = vadd.s32 1, %v168_v28  ;;  %v2006_v49 = vadd.s32 4294967295, %v161_v45  ;;  %vm195_vm5 = vcmp.ge.s32.totalorder %v2003_v46, 0  ;;  %s2422_s30 = sld [smem:[#allocation9_spill]] }
   0x9   :  { %2415 = sst [smem:[#allocation12_spill]] %s2382_s7  ;;  %v809_v3 = vld [vmem:[%s2418_s1] sm:$0xff]  ;;  %v810_v5 = vld [vmem:[%s2418_s1 + $0x8] sm:$0xff]  ;;  %s2420_s7 = sld [smem:[#allocation7_spill]] }
   0xa   :  { %2416 = sst [smem:[#allocation13_spill]] %s2383_s14  ;;  %v1430_v6 = vld [vmem:[%s2419_s28] sm:$0xff]  ;;  %v1431_v7 = vld [vmem:[%s2419_s28 + $0x8] sm:$0xff]  ;;  %vm241_vm3 = vcmp.lt.s32.totalorder %v1977_v31, 16  ;;  %vm243_vm4 = vcmp.lt.s32.totalorder %v1980_v33, 16  ;;  %vm197_vm6 = vcmp.ge.s32.totalorder %v2006_v49, 0 }
   0xb   :  { %s2423_s14 = sld [smem:[#allocation10_spill]]  ;;  %s2425_s26 = sld [smem:[#allocation12_spill]]  ;;  %v1730_v49 = vld [vmem:[%s2390_s18 + $0x28] sm:$0xff]  }
   0xd   :  { %v1901_v1 = vld [vmem:[%s2417_s8] sm:$0xff]  ;;  %v1906_v2 = vld [vmem:[%s2417_s8 + $0x8] sm:$0xff]  ;;  %v1933_v12 = vld [vmem:[%s2417_s8 + $0x10] sm:$0xff] }
   0xe   :  { %v127_v4 = vrot.slane %v1906_v2, 7  ;;  %v1625_v8 = vpack.i.bf16 %v1906_v2, %v1901_v1  ;;  %v126_v9 = vrot.slane %v1901_v1, 7  ;;  %v1925_v10 = vadd.f32 %v809_v3, %v1901_v1  ;;  %v1941_v15 = vld [vmem:[%s2417_s8 + $0x18] sm:$0xff]  ;;  %s1764_s8 = smov 64  }
   0xf   :  { %v1928_v11 = vadd.f32 %v810_v5, %v1906_v2  ;;  %v220_v14 = vrot.slane %v1901_v1, 1  ;;  %v1707_v16 = vld [vmem:[%s2420_s7] sm:$0xff]   ;;  %v221_v18 = vrot.slane %v1906_v2, 1  ;;  %v223_v19 = vrot.slane %v1933_v12, 1  ;;  %v1708_v25 = vld [vmem:[%s2420_s7 + $0x8] sm:$0xff]   ;;  %v1709_v29 = vld [vmem:[%s2420_s7 + $0x10] sm:$0xff]  }
  0x10   :  { %1626 = vrot.lane.b32.xlu0 %v1625_v8, %s1763_s27  ;;  %v1434_v17 = vadd.f32 %v1430_v6, %v1925_v10  ;;  %v1630_v20 = vpack.i.bf16 %v1941_v15, %v1933_v12  ;;  %1540 = vmatprep.subr.bf16.mxu0 %v1707_v16  ;;  %v225_v24 = vrot.slane %v1941_v15, 1  ;;  %v128_v26 = vsel %vm125_vm2, %v126_v9, %v127_v4  ;;  %v1710_v35 = vld [vmem:[%s2420_s7 + $0x18] sm:$0xff]   ;;  %v1711_v41 = vld [vmem:[%s2420_s7 + $0x20] sm:$0xff]   ;;  %v1712_v42 = vld [vmem:[%s2420_s7 + $0x28] sm:$0xff]   ;;  %s2426_s7 = sld [smem:[#allocation13_spill]] }
  0x11   :  { %v1435_v21 = vadd.f32 %v1431_v7, %v1928_v11  ;;  %1541 = vmatpush3.bf16.msra.mxu0 %v1707_v16  ;;  %v224_v30 = vsel %vm219_vm1, %v221_v18, %v223_v19  ;;  %v222_v34 = vsel %vm219_vm1, %v220_v14, %v221_v18  ;;  %v129_v48 = vrot.slane %v1933_v12, 7  ;;  %v1456_v18 = vld [vmem:[%s2422_s30] ss:$0 sm:$0xff] }
  0x12   :  { %1438 = vst.msk [vmem:[%s2421_s24] sm:$0xff] %vm288_vm0, %v1434_v17  ;;  %1542 = vmatprep.subr.bf16.mxu0 %v1708_v25  ;;  %v231_v32 = vsel %vm219_vm1, %v225_v24, 0.0  ;;  %v257_v36 = vsel %vm241_vm3, %v224_v30, 0.0  ;;  %v226_v37 = vsel %vm219_vm1, %v223_v19, %v225_v24  ;;  %v137_v50 = vsel %vm125_vm2, 0.0, %v126_v9 }
  0x13   :  { %1439 = vst.msk [vmem:[%s2421_s24 + $0x8] sm:$0xff] %vm288_vm0, %v1435_v21  ;;  %v259_v38 = vsel %vm243_vm4, %v231_v32, 0.0  ;;  %v1635_v39 = vpack.i.bf16 %v257_v36, %v222_v34  ;;  %v131_v53 = vrot.slane %v1941_v15, 7  ;;  %v215_v55 = vsel %vm195_vm5, %v137_v50, 0.0 }
  0x14   :  { %1631 = vrot.lane.b32.xlu0 %v1630_v20, %s1763_s27  ;;  %v1640_v40 = vpack.i.bf16 %v259_v38, %v226_v37  ;;  %v130_v56 = vsel %vm125_vm2, %v127_v4, %v129_v48 }
  0x15   :  { %1543 = vmatpush3.bf16.msra.mxu0 %v1708_v25  ;;  %1636 = vrot.lane.b32.xlu1 %v1635_v39, %s1764_s8  ;;  %v132_v0 = vsel %vm125_vm2, %v129_v48, %v131_v53  ;;  %v217_v1 = vsel %vm197_vm6, %v130_v56, 0.0 }
  0x16   :  { %1544 = vmatprep.subr.bf16.mxu0 %v1709_v29 }
  0x19   :  { %1545 = vmatpush3.bf16.msra.mxu0 %v1709_v29  ;;  %1641 = vrot.lane.b32.xlu1 %v1640_v40, %s1764_s8 }
  0x1a   :  { %1546 = vmatprep.subr.bf16.mxu0 %v1710_v35 }
  0x1d   :  { %1547 = vmatpush3.bf16.msra.mxu0 %v1710_v35 }
  0x1e   :  { %1548 = vmatprep.subr.bf16.mxu0 %v1711_v41 }
  0x21   :  { %1549 = vmatpush3.bf16.msra.mxu0 %v1711_v41 }
  0x22   :  { %1550 = vmatprep.subr.bf16.mxu0 %v1712_v42 }
  0x25   :  { %1551 = vmatpush3.bf16.msra.mxu0 %v1712_v42 }
  0x82   :  { %v1627_v47 = vpop.permute.xlu0 %1626 }
  0x83   :  { %v1629_v51 = vunpack.i.h.bf16 %v1627_v47  ;;  %v1628_v52 = vunpack.i.l.bf16 %v1627_v47 }
  0x85   :  { %v289_v60 = vsel %vm288_vm0, %v215_v55, %v1628_v52  ;;  %v290_v61 = vsel %vm288_vm0, %v128_v26, %v1629_v51 }
  0x86   :  { %v1632_v54 = vpop.permute.xlu0 %1631 }
  0x87   :  { %v1637_v57 = vpop.permute.xlu1 %1636  ;;  %v1634_v58 = vunpack.i.h.bf16 %v1632_v54  ;;  %v1633_v59 = vunpack.i.l.bf16 %v1632_v54 }
  0x88   :  { %v1639_v62 = vunpack.i.h.bf16 %v1637_v57  ;;  %v1638_v63 = vunpack.i.l.bf16 %v1637_v57 }
  0x89   :  { %v292_v4 = vsel %vm288_vm0, %v132_v0, %v1634_v58  ;;  %v291_v5 = vsel %vm288_vm0, %v217_v1, %v1633_v59  ;;  %v811_v59 = vld [vmem:[%s2418_s1 + $0x10] sm:$0xff]  ;;  %v1433_v0 = vld [vmem:[%s2419_s28 + $0x18] sm:$0xff] }
  0x8a   :  { %v294_v2 = vsel %vm293_vm7, %v289_v60, %v1638_v63  ;;  %v295_v3 = vsel %vm293_vm7, %v290_v61, %v1639_v62  ;;  %v812_v60 = vld [vmem:[%s2418_s1 + $0x18] sm:$0xff]  ;;  %v1432_v61 = vld [vmem:[%s2419_s28 + $0x10] sm:$0xff]  ;;  %v2061_v62 = vadd.f32 %v811_v59, %v1933_v12  ;;  %v1713_v12 = vld [vmem:[%s2423_s14] sm:$0xff]   ;;  %s2424_s1 = sld [smem:[#allocation11_spill]] }
  0x8b   :  { %v1642_v6 = vpop.permute.xlu1 %1641  ;;  %v298_v7 = vpack.c.bf16 %v295_v3, %v294_v2  ;;  %v2064_v63 = vadd.f32 %v812_v60, %v1941_v15  ;;  %v1714_v15 = vld [vmem:[%s2423_s14 + $0x8] sm:$0xff]   ;;  %1556 = vmatprep.subr.bf16.mxu1 %v1713_v12  ;;  %v1715_v3 = vld [vmem:[%s2423_s14 + $0x10] sm:$0xff]  }
  0x8c   :  { %v1644_v8 = vunpack.i.h.bf16 %v1642_v6  ;;  %v1643_v9 = vunpack.i.l.bf16 %v1642_v6  ;;  %v1436_v2 = vadd.f32 %v1432_v61, %v2061_v62  ;;  %1557 = vmatpush3.bf16.msra.mxu1 %v1713_v12  ;;  %v1665_v12 = vpack.i.bf16 %v1928_v11, %v1925_v10 }
  0x8d   :  { %1552 = vmatprep.mubr.msk.bf16.mxu0 %vm342_vm8, %v298_v7  ;;  %v1437_v1 = vadd.f32 %v1433_v0, %v2064_v63  ;;  %1558 = vmatprep.subr.bf16.mxu1 %v1714_v15  ;;  %v2116_v0 = vld [vmem:[%s2426_s7] sm:$0xff]  }
  0x8e   :  { %v297_v14 = vsel %vm293_vm7, %v292_v4, %v1644_v8  ;;  %v296_v16 = vsel %vm293_vm7, %v291_v5, %v1643_v9  ;;  %1440 = vst.msk [vmem:[%s2421_s24 + $0x10] sm:$0xff] %vm288_vm0, %v1436_v2 }
  0x8f   :  { %v299_v17 = vpack.c.bf16 %v297_v14, %v296_v16  ;;  %1441 = vst.msk [vmem:[%s2421_s24 + $0x18] sm:$0xff] %vm288_vm0, %v1437_v1 }
  0x90   :  { %1559 = vmatpush3.bf16.msra.mxu1 %v1714_v15 }
  0x91   :  { %1553 = vmatmul.mubr.msk.bf16.vlgmr.msra.gmra.mrb[0].mxu0 %vm342_vm8, %v299_v17  ;;  %1560 = vmatprep.subr.bf16.mxu1 %v1715_v3 }
  0x94   :  { %1561 = vmatpush3.bf16.msra.mxu1 %v1715_v3 }
 0x164   :  { %v1554_v19 = vpop.f32.mrb[0].mxu0 }
 0x165   :  { %v392_v20 = vadd.f32 %v1554_v19, %v1456_v18  ;;  %v383_v21 = vpop.f32.mrb[1].mxu0 }
 0x166   :  { %v384_v22 = vadd.f32 %v1456_v18, %v383_v21  ;;  %v1555_v23 = vpop.f32.mrb[2].mxu0 }
 0x167   :  { %v400_v24 = vmax.f32 %v392_v20, 0.0  ;;  %v386_v25 = vpop.f32.mrb[3].mxu0  ;;  %v395_v29 = vadd.f32 %v1555_v23, %v1456_v18 }
 0x168   :  { %v398_v26 = vmax.f32 %v384_v22, 0.0  ;;  %v387_v27 = vadd.f32 %v1456_v18, %v386_v25  ;;  %v1465_v22 = vld [vmem:[%s2424_s1] ss:$0 sm:$0xff]  ;;  %v1716_v25 = vld [vmem:[%s2423_s14 + $0x18] sm:$0xff]  }
 0x169   :  { %v408_v28 = vsel %vm288_vm0, %v400_v24, 0.0  ;;  %v401_v34 = vmax.f32 %v395_v29, 0.0  ;;  %1562 = vmatprep.subr.bf16.mxu1 %v1716_v25 }
 0x16a   :  { %v399_v30 = vmax.f32 %v387_v27, 0.0  ;;  %409 = vadd.xlane.f32.xlu1 %v408_v28  ;;  %v402_v32 = vsel %vm288_vm0, %v398_v26, 0.0  ;;  %v1466_v27 = vld [vmem:[%s2425_s26] ss:$0 sm:$0xff]  ;;  %1563 = vmatpush3.bf16.msra.mxu1 %v1716_v25  ;;  %v854_v25 = vrot.slane %v1928_v11, 7 }
 0x16b   :  { %403 = vadd.xlane.f32.xlu0 %v402_v32  ;;  %v411_v36 = vsel %vm288_vm0, %v401_v34, 0.0  ;;  %v1717_v32 = vld [vmem:[%s2423_s14 + $0x20] sm:$0xff]  }
 0x16c   :  { %v405_v35 = vsel %vm288_vm0, %v399_v30, 0.0  ;;  %1564 = vmatprep.subr.bf16.mxu1 %v1717_v32 }
 0x16e   :  { %1565 = vmatpush3.bf16.msra.mxu1 %v1717_v32 }
 0x16f   :  { %406 = vadd.xlane.f32.xlu0 %v405_v35 }
 0x173   :  { %412 = vadd.xlane.f32.xlu0 %v411_v36 }
 0x1f7   :  { %v410_v37 = vpop.xlane.xlu1 %409 }
 0x1f8   :  { %v417_v38 = vmul.f32 0.03125, %v410_v37  ;;  %v404_v39 = vpop.xlane.xlu0 %403 }
 0x1f9   :  { %v415_v41 = vmul.f32 0.03125, %v404_v39 }
 0x1fa   :  { %v421_v40 = vsub.f32 %v400_v24, %v417_v38 }
 0x1fb   :  { %v2040_v47 = vsub.f32 %v398_v26, %v415_v41 }
 0x1fc   :  { %v407_v42 = vpop.xlane.xlu0 %406  ;;  %v425_v43 = vmul.f32 %v421_v40, %v421_v40 }
 0x1fd   :  { %v416_v44 = vmul.f32 0.03125, %v407_v42  ;;  %v423_v55 = vmul.f32 %v2040_v47, %v2040_v47 }
 0x1fe   :  { %v433_v45 = vsel %vm288_vm0, %v425_v43, 0.0  ;;  %v1718_v43 = vld [vmem:[%s2423_s14 + $0x28] sm:$0xff]  }
 0x1ff   :  { %v420_v48 = vsub.f32 %v399_v30, %v416_v44  ;;  %434 = vadd.xlane.f32.xlu0 %v433_v45  ;;  %v427_v57 = vsel %vm288_vm0, %v423_v55, 0.0  ;;  %1566 = vmatprep.subr.bf16.mxu1 %v1718_v43 }
 0x200   :  { %v413_v50 = vpop.xlane.xlu0 %412  ;;  %1567 = vmatpush3.bf16.msra.mxu1 %v1718_v43 }
 0x201   :  { %v418_v51 = vmul.f32 0.03125, %v413_v50  ;;  %v424_v52 = vmul.f32 %v420_v48, %v420_v48  ;;  %v872_v50 = vrot.slane %v2061_v62, 1  ;;  %1580 = vmatprep.subr.bf16.mxu1 %v2116_v0 }
 0x203   :  { %v2042_v53 = vsub.f32 %v401_v34, %v418_v51  ;;  %v430_v54 = vsel %vm288_vm0, %v424_v52, 0.0 }
 0x204   :  { %431 = vadd.xlane.f32.xlu1 %v430_v54  ;;  %v869_v54 = vrot.slane %v1925_v10, 1 }
 0x205   :  { %v426_v56 = vmul.f32 %v2042_v53, %v2042_v53 }
 0x207   :  { %v436_v58 = vsel %vm288_vm0, %v426_v56, 0.0 }
 0x208   :  { %428 = vadd.xlane.f32.xlu1 %v427_v57  ;;  %437 = vadd.xlane.f32.xlu0 %v436_v58 }
 0x28c   :  { %v435_v4 = vpop.xlane.xlu0 %434 }
 0x28d   :  { %v441_v5 = vmul.f32 0.03125, %v435_v4 }
 0x28f   :  { %v445_v6 = vadd.f32 1e-05, %v441_v5  ;;  %v874_v5 = vrot.slane %v2064_v63, 1 }
 0x291   :  { %1731 = vrsqrt.f32 %v445_v6  ;;  %v432_v7 = vpop.xlane.xlu1 %431 }
 0x292   :  { %v440_v8 = vmul.f32 0.03125, %v432_v7 }
 0x294   :  { %v444_v9 = vadd.f32 1e-05, %v440_v8 }
 0x295   :  { %v429_v14 = vpop.xlane.xlu1 %428  ;;  %v438_v16 = vpop.xlane.xlu0 %437 }
 0x296   :  { %1733 = vrsqrt.f32 %v444_v9  ;;  %v439_v17 = vmul.f32 0.03125, %v429_v14  ;;  %v442_v18 = vmul.f32 0.03125, %v438_v16 }
 0x298   :  { %v443_v19 = vadd.f32 1e-05, %v439_v17  ;;  %v446_v20 = vadd.f32 1e-05, %v442_v18  ;;  %v880_v18 = vsel %vm219_vm1, %v874_v5, 0.0 }
 0x29a   :  { %1735 = vrsqrt.f32 %v443_v19  ;;  %v1670_v19 = vpack.i.bf16 %v2064_v63, %v2061_v62 }
 0x29b   :  { %v1732_v21 = vpop.eup %1731  ;;  %1737 = vrsqrt.f32 %v446_v20  ;;  %v875_v20 = vsel %vm219_vm1, %v872_v50, %v874_v5  ;;  %v856_v5 = vrot.slane %v2061_v62, 7 }
 0x29c   :  { %v453_v23 = vmul.f32 %v1732_v21, %v421_v40  ;;  %v884_v21 = vsel %vm243_vm4, %v880_v18, 0.0 }
 0x29e   :  { %v463_v24 = vmul.f32 %v1465_v22, %v453_v23  ;;  %v853_v23 = vrot.slane %v1925_v10, 7 }
 0x2a0   :  { %v1734_v26 = vpop.eup %1733  ;;  %v473_v30 = vadd.f32 %v1466_v27, %v463_v24 }
 0x2a1   :  { %v452_v28 = vmul.f32 %v1734_v26, %v420_v48  ;;  %v870_v48 = vrot.slane %v1928_v11, 1 }
 0x2a2   :  { %v482_v42 = vrot.slane %v473_v30, 7  ;;  %v498_v45 = vrot.slane %v473_v30, 1 }
 0x2a3   :  { %v462_v29 = vmul.f32 %v1465_v22, %v452_v28  ;;  %v873_v60 = vsel %vm219_vm1, %v870_v48, %v872_v50  ;;  %v871_v8 = vsel %vm219_vm1, %v869_v54, %v870_v48  ;;  %v864_v28 = vsel %vm125_vm2, 0.0, %v853_v23 }
 0x2a4   :  { %v1736_v34 = vpop.eup %1735  ;;  %v882_v9 = vsel %vm241_vm3, %v873_v60, 0.0 }
 0x2a5   :  { %v1738_v35 = vpop.eup %1737  ;;  %v451_v36 = vmul.f32 %v1736_v34, %v2040_v47  ;;  %v472_v37 = vadd.f32 %v1466_v27, %v462_v29  ;;  %v1675_v16 = vpack.i.bf16 %v882_v9, %v871_v8  ;;  %v858_v8 = vrot.slane %v2064_v63, 7 }
 0x2a6   :  { %v454_v38 = vmul.f32 %v1738_v35, %v2042_v53  ;;  %v855_v35 = vsel %vm125_vm2, %v853_v23, %v854_v25 }
 0x2a7   :  { %v461_v39 = vmul.f32 %v1465_v22, %v451_v36  ;;  %v480_v40 = vrot.slane %v472_v37, 7  ;;  %v496_v41 = vrot.slane %v472_v37, 1  ;;  %v865_v36 = vsel %vm195_vm5, %v864_v28, 0.0 }
 0x2a8   :  { %v464_v44 = vmul.f32 %v1465_v22, %v454_v38  ;;  %v1680_v22 = vpack.i.bf16 %v884_v21, %v875_v20 }
 0x2a9   :  { %v471_v47 = vadd.f32 %v1466_v27, %v461_v39  ;;  %v2108_v51 = vsel %vm125_vm2, %v480_v40, %v482_v42  ;;  %v499_v53 = vsel %vm219_vm1, %v496_v41, %v498_v45 }
 0x2aa   :  { %v474_v52 = vadd.f32 %v1466_v27, %v464_v44  ;;  %v508_v2 = vsel %vm241_vm3, %v499_v53, 0.0  ;;  %v493_v48 = vsel %vm197_vm6, %v2108_v51, 0.0 }
 0x2ab   :  { %v1650_v55 = vpack.i.bf16 %v472_v37, %v471_v47  ;;  %v495_v56 = vrot.slane %v471_v47, 1  ;;  %v479_v57 = vrot.slane %v471_v47, 7 }
 0x2ac   :  { %v1645_v58 = vpack.i.bf16 %v474_v52, %v473_v30  ;;  %v500_v59 = vrot.slane %v474_v52, 1  ;;  %v484_v61 = vrot.slane %v474_v52, 7 }
 0x2ad   :  { %1651 = vrot.lane.b32.xlu1 %v1650_v55, %s1763_s27  ;;  %v497_v1 = vsel %vm219_vm1, %v495_v56, %v496_v41  ;;  %v481_v15 = vsel %vm125_vm2, %v479_v57, %v480_v40  ;;  %v490_v27 = vsel %vm125_vm2, 0.0, %v479_v57 }
 0x2ae   :  { %1646 = vrot.lane.b32.xlu0 %v1645_v58, %s1763_s27  ;;  %v1655_v3 = vpack.i.bf16 %v508_v2, %v497_v1  ;;  %v506_v4 = vsel %vm219_vm1, %v500_v59, 0.0  ;;  %v485_v6 = vsel %vm125_vm2, %v482_v42, %v484_v61  ;;  %v501_v14 = vsel %vm219_vm1, %v498_v45, %v500_v59  ;;  %v1720_v2 = vld [vmem:[%s2426_s7 + $0x8] sm:$0xff]  }
 0x2af   :  { %v510_v7 = vsel %vm243_vm4, %v506_v4, 0.0  ;;  %v491_v34 = vsel %vm195_vm5, %v490_v27, 0.0  ;;  %v1721_v4 = vld [vmem:[%s2426_s7 + $0x10] sm:$0xff]  }
 0x2b0   :  { %v1660_v17 = vpack.i.bf16 %v510_v7, %v501_v14  ;;  %v1722_v7 = vld [vmem:[%s2426_s7 + $0x18] sm:$0xff]  }
 0x2b1   :  { %1656 = vrot.lane.b32.xlu1 %v1655_v3, %s1764_s8 }
 0x2b2   :  { %1666 = vrot.lane.b32.xlu0 %v1665_v12, %s1763_s27 }
 0x2b5   :  { %1661 = vrot.lane.b32.xlu1 %v1660_v17, %s1764_s8  ;;  %v859_v17 = vsel %vm125_vm2, %v856_v5, %v858_v8 }
 0x2b6   :  { %1676 = vrot.lane.b32.xlu0 %v1675_v16, %s1764_s8  ;;  %v1723_v16 = vld [vmem:[%s2426_s7 + $0x20] sm:$0xff]  }
 0x2b9   :  { %1671 = vrot.lane.b32.xlu1 %v1670_v19, %s1763_s27 }
 0x2bd   :  { %1681 = vrot.lane.b32.xlu1 %v1680_v22, %s1764_s8  ;;  %v1724_v22 = vld [vmem:[%s2426_s7 + $0x28] sm:$0xff]  }
 0x31f   :  { %v1652_v24 = vpop.permute.xlu1 %1651 }
 0x320   :  { %v1647_v26 = vpop.permute.xlu0 %1646  ;;  %v1654_v29 = vunpack.i.h.bf16 %v1652_v24  ;;  %v1653_v30 = vunpack.i.l.bf16 %v1652_v24 }
 0x321   :  { %v1649_v10 = vunpack.i.h.bf16 %v1647_v26  ;;  %v1648_v37 = vunpack.i.l.bf16 %v1647_v26  ;;  %v1467_v26 = vld [vmem:[%s2384_s9] ss:$0 sm:$0xff] }
 0x322   :  { %v539_v40 = vsel %vm288_vm0, %v491_v34, %v1653_v30  ;;  %v540_v41 = vsel %vm288_vm0, %v481_v15, %v1654_v29 }
 0x323   :  { %v1657_v32 = vpop.permute.xlu1 %1656  ;;  %v541_v57 = vsel %vm288_vm0, %v493_v48, %v1648_v37  ;;  %v542_v58 = vsel %vm288_vm0, %v485_v6, %v1649_v10 }
 0x324   :  { %v1659_v38 = vunpack.i.h.bf16 %v1657_v32  ;;  %v1658_v11 = vunpack.i.l.bf16 %v1657_v32  ;;  %v1667_v39 = vpop.permute.xlu0 %1666 }
 0x325   :  { %v1669_v42 = vunpack.i.h.bf16 %v1667_v39  ;;  %v1668_v43 = vunpack.i.l.bf16 %v1667_v39 }
 0x326   :  { %v543_v44 = vsel %vm293_vm7, %v539_v40, %v1658_v11  ;;  %v544_v45 = vsel %vm293_vm7, %v540_v41, %v1659_v38 }
 0x327   :  { %v1662_v50 = vpop.permute.xlu1 %1661  ;;  %v547_v47 = vpack.c.bf16 %v544_v45, %v543_v44  ;;  %v914_v54 = vsel %vm288_vm0, %v855_v35, %v1669_v42  ;;  %v913_v55 = vsel %vm288_vm0, %v865_v36, %v1668_v43  ;;  %v1479_v43 = vld [vmem:[%s2385_s15] ss:$0 sm:$0xff] }
 0x328   :  { %v1664_v52 = vunpack.i.h.bf16 %v1662_v50  ;;  %v1663_v53 = vunpack.i.l.bf16 %v1662_v50  ;;  %v1677_v56 = vpop.permute.xlu0 %1676 }
 0x329   :  { %1568 = vmatprep.mubr.msk.bf16.mxu1 %vm342_vm8, %v547_v47  ;;  %v1679_v59 = vunpack.i.h.bf16 %v1677_v56  ;;  %v1678_v60 = vunpack.i.l.bf16 %v1677_v56 }
 0x32a   :  { %v545_v61 = vsel %vm293_vm7, %v541_v57, %v1663_v53  ;;  %v546_v51 = vsel %vm293_vm7, %v542_v58, %v1664_v52 }
 0x32b   :  { %v548_v1 = vpack.c.bf16 %v546_v51, %v545_v61  ;;  %v917_v12 = vsel %vm293_vm7, %v913_v55, %v1678_v60  ;;  %v918_v15 = vsel %vm293_vm7, %v914_v54, %v1679_v59  ;;  %v1672_v6 = vpop.permute.xlu1 %1671 }
 0x32c   :  { %v921_v3 = vpack.c.bf16 %v918_v15, %v917_v12  ;;  %v1674_v9 = vunpack.i.h.bf16 %v1672_v6  ;;  %v1673_v14 = vunpack.i.l.bf16 %v1672_v6 }
 0x32d   :  { %1569 = vmatmul.mubr.msk.bf16.vlgmr.msra.gmra.mrb[0].mxu1 %vm342_vm8, %v548_v1 }
 0x32e   :  { %1581 = vmatpush3.bf16.msra.mxu1 %v2116_v0  ;;  %1592 = vmatprep.mubr.msk.bf16.mxu1 %vm342_vm8, %v921_v3  ;;  %v857_v0 = vsel %vm125_vm2, %v854_v25, %v856_v5  ;;  %v916_v63 = vsel %vm288_vm0, %v859_v17, %v1674_v9 }
 0x32f   :  { %1582 = vmatprep.subr.bf16.mxu1 %v1720_v2  ;;  %v1682_v62 = vpop.permute.xlu1 %1681  ;;  %v867_v18 = vsel %vm197_vm6, %v857_v0, 0.0 }
 0x330   :  { %v1684_v19 = vunpack.i.h.bf16 %v1682_v62  ;;  %v1683_v20 = vunpack.i.l.bf16 %v1682_v62  ;;  %v915_v21 = vsel %vm288_vm0, %v867_v18, %v1673_v14 }
 0x332   :  { %1583 = vmatpush3.bf16.msra.mxu1 %v1720_v2  ;;  %v919_v23 = vsel %vm293_vm7, %v915_v21, %v1683_v20  ;;  %v920_v24 = vsel %vm293_vm7, %v916_v63, %v1684_v19 }
 0x333   :  { %1584 = vmatprep.subr.bf16.mxu1 %v1721_v4  ;;  %v922_v25 = vpack.c.bf16 %v920_v24, %v919_v23 }
 0x336   :  { %1585 = vmatpush3.bf16.msra.mxu1 %v1721_v4 }
 0x337   :  { %1586 = vmatprep.subr.bf16.mxu1 %v1722_v7 }
 0x33a   :  { %1587 = vmatpush3.bf16.msra.mxu1 %v1722_v7 }
 0x33b   :  { %1588 = vmatprep.subr.bf16.mxu1 %v1723_v16 }
 0x33e   :  { %1589 = vmatpush3.bf16.msra.mxu1 %v1723_v16 }
 0x33f   :  { %1590 = vmatprep.subr.bf16.mxu1 %v1724_v22 }
 0x342   :  { %1591 = vmatpush3.bf16.msra.mxu1 %v1724_v22 }
 0x345   :  { %1593 = vmatmul.mubr.msk.bf16.vlgmr.msra.gmra.mrb[4].mxu1 %vm342_vm8, %v922_v25 }
 0x400   :  { %v1570_v27 = vpop.f32.mrb[0].mxu1 }
 0x401   :  { %v631_v28 = vpop.f32.mrb[1].mxu1  ;;  %v640_v29 = vadd.f32 %v1570_v27, %v1467_v26 }
 0x402   :  { %v632_v30 = vadd.f32 %v1467_v26, %v631_v28  ;;  %v1571_v32 = vpop.f32.mrb[2].mxu1 }
 0x403   :  { %v634_v34 = vpop.f32.mrb[3].mxu1  ;;  %v648_v10 = vmax.f32 %v640_v29, 0.0  ;;  %v643_v37 = vadd.f32 %v1571_v32, %v1467_v26 }
 0x404   :  { %v646_v35 = vmax.f32 %v632_v30, 0.0  ;;  %v635_v36 = vadd.f32 %v1467_v26, %v634_v34 }
 0x405   :  { %v649_v40 = vmax.f32 %v643_v37, 0.0  ;;  %v656_v41 = vsel %vm288_vm0, %v648_v10, 0.0 }
 0x406   :  { %v647_v38 = vmax.f32 %v635_v36, 0.0  ;;  %v650_v11 = vsel %vm288_vm0, %v646_v35, 0.0 }
 0x407   :  { %651 = vadd.xlane.f32.xlu0 %v650_v11  ;;  %v659_v42 = vsel %vm288_vm0, %v649_v40, 0.0 }
 0x408   :  { %v653_v39 = vsel %vm288_vm0, %v647_v38, 0.0 }
 0x409   :  { %654 = vadd.xlane.f32.xlu1 %v653_v39 }
 0x40b   :  { %657 = vadd.xlane.f32.xlu0 %v656_v41 }
 0x40f   :  { %660 = vadd.xlane.f32.xlu0 %v659_v42 }
 0x418   :  { %v1594_v44 = vpop.f32.mrb[4].mxu1 }
 0x419   :  { %v1014_v45 = vadd.f32 %v1594_v44, %v1479_v43  ;;  %v1005_v48 = vpop.f32.mrb[5].mxu1 }
 0x41a   :  { %v1006_v50 = vadd.f32 %v1479_v43, %v1005_v48  ;;  %v1595_v47 = vpop.f32.mrb[6].mxu1 }
 0x41b   :  { %v1022_v52 = vmax.f32 %v1014_v45, 0.0  ;;  %v1017_v53 = vadd.f32 %v1595_v47, %v1479_v43  ;;  %v1008_v54 = vpop.f32.mrb[7].mxu1 }
 0x41c   :  { %v1009_v55 = vadd.f32 %v1479_v43, %v1008_v54  ;;  %v1020_v58 = vmax.f32 %v1006_v50, 0.0 }
 0x41d   :  { %v1023_v56 = vmax.f32 %v1017_v53, 0.0  ;;  %v1030_v57 = vsel %vm288_vm0, %v1022_v52, 0.0 }
 0x41e   :  { %v1021_v59 = vmax.f32 %v1009_v55, 0.0  ;;  %1031 = vadd.xlane.f32.xlu0 %v1030_v57  ;;  %v1024_v51 = vsel %vm288_vm0, %v1020_v58, 0.0  ;;  %v1476_v57 = vld [vmem:[%s2386_s10] ss:$0 sm:$0xff] }
 0x41f   :  { %v1033_v60 = vsel %vm288_vm0, %v1023_v56, 0.0 }
 0x420   :  { %v1027_v61 = vsel %vm288_vm0, %v1021_v59, 0.0 }
 0x421   :  { %1028 = vadd.xlane.f32.xlu1 %v1027_v61 }
 0x422   :  { %1034 = vadd.xlane.f32.xlu0 %v1033_v60  ;;  %v1477_v60 = vld [vmem:[%s2387_s11] ss:$0 sm:$0xff] }
 0x425   :  { %1025 = vadd.xlane.f32.xlu1 %v1024_v51 }
 0x494   :  { %v652_v1 = vpop.xlane.xlu0 %651 }
 0x495   :  { %v662_v2 = vmul.f32 0.03125, %v652_v1 }
 0x496   :  { %v655_v12 = vpop.xlane.xlu1 %654 }
 0x497   :  { %v2216_v15 = vsub.f32 %v646_v35, %v662_v2  ;;  %v663_v3 = vmul.f32 0.03125, %v655_v12 }
 0x498   :  { %v658_v4 = vpop.xlane.xlu0 %657 }
 0x499   :  { %v2218_v5 = vsub.f32 %v647_v38, %v663_v3  ;;  %v664_v6 = vmul.f32 0.03125, %v658_v4  ;;  %v670_v7 = vmul.f32 %v2216_v15, %v2216_v15 }
 0x49b   :  { %v2222_v8 = vsub.f32 %v648_v10, %v664_v6  ;;  %v674_v0 = vsel %vm288_vm0, %v670_v7, 0.0  ;;  %v671_v9 = vmul.f32 %v2218_v5, %v2218_v5 }
 0x49c   :  { %675 = vadd.xlane.f32.xlu1 %v674_v0  ;;  %v661_v14 = vpop.xlane.xlu0 %660 }
 0x49d   :  { %v665_v16 = vmul.f32 0.03125, %v661_v14  ;;  %v677_v62 = vsel %vm288_vm0, %v671_v9, 0.0  ;;  %v672_v17 = vmul.f32 %v2222_v8, %v2222_v8 }
 0x49e   :  { %678 = vadd.xlane.f32.xlu0 %v677_v62 }
 0x49f   :  { %v2230_v18 = vsub.f32 %v649_v40, %v665_v16  ;;  %v680_v19 = vsel %vm288_vm0, %v672_v17, 0.0 }
 0x4a0   :  { %681 = vadd.xlane.f32.xlu1 %v680_v19 }
 0x4a1   :  { %v673_v20 = vmul.f32 %v2230_v18, %v2230_v18 }
 0x4a3   :  { %v683_v63 = vsel %vm288_vm0, %v673_v20, 0.0 }
 0x4a4   :  { %684 = vadd.xlane.f32.xlu0 %v683_v63  ;;  %v1765_v63 = vmov 0.0  }
 0x4a5   :  { %1572 = vmatprep.subr.bf16.mxu0 %v1765_v63  ;;  %1612 = vmatprep.subr.bf16.mxu1 %v1765_v63 }
 0x4a6   :  { %1576 = vmatprep.mubr.msk.bf16.mxu0 %vm1766_vm9, %v1765_v63  ;;  %1616 = vmatprep.mubr.msk.bf16.mxu1 %vm1766_vm9, %v1765_v63 }
 0x4ab   :  { %v1032_v21 = vpop.xlane.xlu0 %1031 }
 0x4ac   :  { %v1038_v22 = vmul.f32 0.03125, %v1032_v21 }
 0x4ae   :  { %v2236_v23 = vsub.f32 %v1022_v52, %v1038_v22  ;;  %v1029_v24 = vpop.xlane.xlu1 %1028 }
 0x4af   :  { %v1037_v25 = vmul.f32 0.03125, %v1029_v24  ;;  %v1035_v26 = vpop.xlane.xlu0 %1034 }
 0x4b0   :  { %v1039_v27 = vmul.f32 0.03125, %v1035_v26  ;;  %v1046_v28 = vmul.f32 %v2236_v23, %v2236_v23 }
 0x4b1   :  { %v2240_v29 = vsub.f32 %v1021_v59, %v1037_v25 }
 0x4b2   :  { %v2242_v30 = vsub.f32 %v1023_v56, %v1039_v27  ;;  %v1026_v32 = vpop.xlane.xlu1 %1025  ;;  %v1054_v34 = vsel %vm288_vm0, %v1046_v28, 0.0  ;;  %v1488_v27 = vld [vmem:[%s2388_s16] ss:$0 sm:$0xff] }
 0x4b3   :  { %v1036_v35 = vmul.f32 0.03125, %v1026_v32  ;;  %1055 = vadd.xlane.f32.xlu0 %v1054_v34  ;;  %v1045_v36 = vmul.f32 %v2240_v29, %v2240_v29  ;;  %v1489_v34 = vld [vmem:[%s2389_s17] ss:$0 sm:$0xff] }
 0x4b4   :  { %v1047_v10 = vmul.f32 %v2242_v30, %v2242_v30 }
 0x4b5   :  { %v2249_v37 = vsub.f32 %v1020_v58, %v1036_v35  ;;  %v1051_v38 = vsel %vm288_vm0, %v1045_v36, 0.0 }
 0x4b6   :  { %1052 = vadd.xlane.f32.xlu1 %v1051_v38  ;;  %v1057_v11 = vsel %vm288_vm0, %v1047_v10, 0.0 }
 0x4b7   :  { %1058 = vadd.xlane.f32.xlu0 %v1057_v11  ;;  %v1044_v39 = vmul.f32 %v2249_v37, %v2249_v37 }
 0x4b9   :  { %v1048_v40 = vsel %vm288_vm0, %v1044_v39, 0.0 }
 0x4ba   :  { %1049 = vadd.xlane.f32.xlu1 %v1048_v40 }
 0x529   :  { %v676_v41 = vpop.xlane.xlu1 %675 }
 0x52a   :  { %v686_v42 = vmul.f32 0.03125, %v676_v41 }
 0x52b   :  { %v679_v43 = vpop.xlane.xlu0 %678 }
 0x52c   :  { %v690_v44 = vadd.f32 1e-05, %v686_v42  ;;  %v687_v45 = vmul.f32 0.03125, %v679_v43 }
 0x52d   :  { %v682_v48 = vpop.xlane.xlu1 %681 }
 0x52e   :  { %1739 = vrsqrt.f32 %v690_v44  ;;  %v691_v50 = vadd.f32 1e-05, %v687_v45  ;;  %v688_v47 = vmul.f32 0.03125, %v682_v48 }
 0x530   :  { %1741 = vrsqrt.f32 %v691_v50  ;;  %v692_v52 = vadd.f32 1e-05, %v688_v47 }
 0x531   :  { %v685_v53 = vpop.xlane.xlu0 %684 }
 0x532   :  { %1743 = vrsqrt.f32 %v692_v52  ;;  %v689_v54 = vmul.f32 0.03125, %v685_v53 }
 0x534   :  { %v693_v55 = vadd.f32 1e-05, %v689_v54 }
 0x536   :  { %1745 = vrsqrt.f32 %v693_v55 }
 0x538   :  { %v1740_v56 = vpop.eup %1739 }
 0x539   :  { %v698_v58 = vmul.f32 %v1740_v56, %v2216_v15 }
 0x53a   :  { %v1742_v59 = vpop.eup %1741 }
 0x53b   :  { %v708_v61 = vmul.f32 %v1476_v57, %v698_v58  ;;  %v699_v51 = vmul.f32 %v1742_v59, %v2218_v5 }
 0x53c   :  { %v1744_v1 = vpop.eup %1743 }
 0x53d   :  { %v718_v2 = vadd.f32 %v1477_v60, %v708_v61  ;;  %v709_v12 = vmul.f32 %v1476_v57, %v699_v51  ;;  %v700_v3 = vmul.f32 %v1744_v1, %v2222_v8 }
 0x53f   :  { %722 = vxpose.xlu1.b32.start [1/4] (short) (narrow) %v718_v2, 32  ;;  %v719_v0 = vadd.f32 %v1477_v60, %v709_v12  ;;  %v710_v9 = vmul.f32 %v1476_v57, %v700_v3 }
 0x540   :  { %v1746_v4 = vpop.eup %1745  ;;  %v1056_v6 = vpop.xlane.xlu0 %1055 }
 0x541   :  { %v1062_v7 = vmul.f32 0.03125, %v1056_v6  ;;  %v701_v15 = vmul.f32 %v1746_v4, %v2230_v18  ;;  %v720_v19 = vadd.f32 %v1477_v60, %v710_v9  ;;  %v1725_v9 = vld [vmem:[%s2390_s18] sm:$0xff]  }
 0x543   :  { %v1066_v14 = vadd.f32 1e-05, %v1062_v7  ;;  %v1053_v16 = vpop.xlane.xlu1 %1052  ;;  %723 = vxpose.xlu1.b32.cont [2/4] (short) (narrow) %v719_v0, 32  ;;  %v711_v20 = vmul.f32 %v1476_v57, %v701_v15 }
 0x544   :  { %v1061_v62 = vmul.f32 0.03125, %v1053_v16  ;;  %v1059_v17 = vpop.xlane.xlu0 %1058  ;;  %v1726_v16 = vld [vmem:[%s2390_s18 + $0x8] sm:$0xff]  }
 0x545   :  { %1747 = vrsqrt.f32 %v1066_v14  ;;  %v1063_v5 = vmul.f32 0.03125, %v1059_v17  ;;  %v721_v24 = vadd.f32 %v1477_v60, %v711_v20  ;;  %v119_v14 = vld [vmem:[%s2391_s12] sm:$0x1]  ;;  %v1727_v17 = vld [vmem:[%s2390_s18 + $0x10] sm:$0xff]  }
 0x546   :  { %v1065_v8 = vadd.f32 1e-05, %v1061_v62 }
 0x547   :  { %v1067_v21 = vadd.f32 1e-05, %v1063_v5  ;;  %v1050_v22 = vpop.xlane.xlu1 %1049  ;;  %724 = vxpose.xlu1.b32.cont [3/4] (short) (narrow) %v720_v19, 32 }
 0x548   :  { %1749 = vrsqrt.f32 %v1065_v8  ;;  %v1060_v18 = vmul.f32 0.03125, %v1050_v22 }
 0x549   :  { %1751 = vrsqrt.f32 %v1067_v21 }
 0x54a   :  { %v1064_v25 = vadd.f32 1e-05, %v1060_v18 }
 0x54b   :  { %725 = vxpose.xlu1.b32.end [4/4] (short) (narrow) %v721_v24, 32  ;;  %v1728_v24 = vld [vmem:[%s2390_s18 + $0x18] sm:$0xff]  }
 0x54c   :  { %1753 = vrsqrt.f32 %v1064_v25 }
 0x54f   :  { %v1748_v26 = vpop.eup %1747 }
 0x550   :  { %v1074_v28 = vmul.f32 %v1748_v26, %v2236_v23 }
 0x552   :  { %v1750_v32 = vpop.eup %1749  ;;  %v1084_v35 = vmul.f32 %v1488_v27, %v1074_v28 }
 0x553   :  { %v1752_v36 = vpop.eup %1751  ;;  %v1073_v10 = vmul.f32 %v1750_v32, %v2240_v29 }
 0x554   :  { %v1075_v38 = vmul.f32 %v1752_v36, %v2242_v30  ;;  %v1094_v11 = vadd.f32 %v1489_v34, %v1084_v35 }
 0x555   :  { %v1083_v39 = vmul.f32 %v1488_v27, %v1073_v10 }
 0x556   :  { %v1754_v40 = vpop.eup %1753  ;;  %v1085_v23 = vmul.f32 %v1488_v27, %v1075_v38  ;;  %v1103_v48 = vrot.slane %v1094_v11, 7  ;;  %v1119_v29 = vrot.slane %v1094_v11, 1 }
 0x557   :  { %v1072_v41 = vmul.f32 %v1754_v40, %v2249_v37  ;;  %v1093_v42 = vadd.f32 %v1489_v34, %v1083_v39 }
 0x558   :  { %v1095_v43 = vadd.f32 %v1489_v34, %v1085_v23 }
 0x559   :  { %v1082_v44 = vmul.f32 %v1488_v27, %v1072_v41  ;;  %v1101_v45 = vrot.slane %v1093_v42, 7  ;;  %v1117_v47 = vrot.slane %v1093_v42, 1 }
 0x55a   :  { %v1685_v50 = vpack.i.bf16 %v1095_v43, %v1094_v11  ;;  %v1105_v52 = vrot.slane %v1095_v43, 7  ;;  %v1121_v30 = vrot.slane %v1095_v43, 1  ;;  %v1729_v11 = vld [vmem:[%s2390_s18 + $0x20] sm:$0xff]   ;;  %v1767_v43 = vmov 0  }
 0x55b   :  { %v1092_v53 = vadd.f32 %v1489_v34, %v1082_v44  ;;  %v1104_v54 = vsel %vm125_vm2, %v1101_v45, %v1103_v48  ;;  %v1120_v37 = vsel %vm219_vm1, %v1117_v47, %v1119_v29  ;;  %v33_v44 = vstv %s2392_s23 }
 0x55c   :  { %1686 = vrot.lane.b32.xlu0 %v1685_v50, %s1763_s27  ;;  %v1106_v57 = vsel %vm125_vm2, %v1103_v48, %v1105_v52  ;;  %v1127_v60 = vsel %vm219_vm1, %v1121_v30, 0.0  ;;  %v1129_v51 = vsel %vm241_vm3, %v1120_v37, 0.0  ;;  %v1122_v2 = vsel %vm219_vm1, %v1119_v29, %v1121_v30  ;;  %34 = vst [vmem:[#allocation3] sm:$0x1] %v33_v44 }
 0x55d   :  { %v1690_v55 = vpack.i.bf16 %v1093_v42, %v1092_v53  ;;  %v1116_v56 = vrot.slane %v1092_v53, 1  ;;  %v1100_v58 = vrot.slane %v1092_v53, 7  ;;  %v1131_v12 = vsel %vm243_vm4, %v1127_v60, 0.0  ;;  %v1490_v53 = vld [vmem:[%s2394_s19] ss:$0 sm:$0xff] }
 0x55e   :  { %v1700_v3 = vpack.i.bf16 %v1131_v12, %v1122_v2  ;;  %v1114_v36 = vsel %vm197_vm6, %v1104_v54, 0.0 }
 0x55f   :  { %v1118_v59 = vsel %vm219_vm1, %v1116_v56, %v1117_v47  ;;  %v1102_v61 = vsel %vm125_vm2, %v1100_v58, %v1101_v45  ;;  %v1111_v5 = vsel %vm125_vm2, 0.0, %v1100_v58  ;;  %v31_v45 = vstv %s2393_s13 }
 0x560   :  { %1691 = vrot.lane.b32.xlu0 %v1690_v55, %s1763_s27  ;;  %v1695_v1 = vpack.i.bf16 %v1129_v51, %v1118_v59  ;;  %v1112_v21 = vsel %vm195_vm5, %v1111_v5, 0.0  ;;  %32 = vst [vmem:[#allocation2] sm:$0x1] %v31_v45 }
 0x564   :  { %1696 = vrot.lane.b32.xlu0 %v1695_v1, %s1764_s8 }
 0x568   :  { %1701 = vrot.lane.b32.xlu0 %v1700_v3, %s1764_s8 }
 0x569   :  { %1705 = vset.pattern.permute.xlu1 %v1767_v43 }
 0x5bf   :  { %v738_v4 = vpop.trf.xlu1 }
 0x5c3   :  { %v739_v6 = vpop.trf.xlu1 }
 0x5c4   :  { %v754_v7 = vpack.c.bf16 %v739_v6, %v738_v4  ;;  %v848_v4 = vld [vmem:[#allocation3] sm:$0x1]  ;;  %v120_v6 = vld [vmem:[#allocation2] sm:$0x1] }
 0x5c6   :  { %1573 = vmatpush3.bf16.msra.mxu0 %v754_v7 }
 0x5c7   :  { %v740_v0 = vpop.trf.xlu1  ;;  %1574 = vmatprep.subr.bf16.mxu0 %v1765_v63 }
 0x5cb   :  { %v741_v31 = vpop.trf.xlu1 }
 0x5cc   :  { %v755_v15 = vpack.c.bf16 %v741_v31, %v740_v0 }
 0x5ce   :  { %v1687_v33 = vpop.permute.xlu0 %1686  ;;  %1575 = vmatpush3.bf16.msra.mxu0 %v755_v15 }
 0x5cf   :  { %1596 = vmatprep.subr.bf16.mxu0 %v1725_v9  ;;  %v1689_v25 = vunpack.i.h.bf16 %v1687_v33  ;;  %v1688_v26 = vunpack.i.l.bf16 %v1687_v33 }
 0x5d1   :  { %1577 = vmatmul.mubr.msk.bf16.vlgmr.msra.gmra.mrb[4].mxu0 %vm288_vm0, %v119_v14  ;;  %v1162_v39 = vsel %vm288_vm0, %v1114_v36, %v1688_v26  ;;  %v1163_v40 = vsel %vm288_vm0, %v1106_v57, %v1689_v25 }
 0x5d2   :  { %v1692_v62 = vpop.permute.xlu0 %1691  ;;  %1597 = vmatpush3.bf16.msra.mxu0 %v1725_v9 }
 0x5d3   :  { %1598 = vmatprep.subr.bf16.mxu0 %v1726_v16  ;;  %v1694_v19 = vunpack.i.h.bf16 %v1692_v62  ;;  %v1693_v20 = vunpack.i.l.bf16 %v1692_v62 }
 0x5d5   :  { %v1161_v27 = vsel %vm288_vm0, %v1102_v61, %v1694_v19  ;;  %v1160_v28 = vsel %vm288_vm0, %v1112_v21, %v1693_v20 }
 0x5d6   :  { %v1697_v8 = vpop.permute.xlu0 %1696  ;;  %1599 = vmatpush3.bf16.msra.mxu0 %v1726_v16 }
 0x5d7   :  { %v1699_v22 = vunpack.i.h.bf16 %v1697_v8  ;;  %v1698_v18 = vunpack.i.l.bf16 %v1697_v8  ;;  %1600 = vmatprep.subr.bf16.mxu0 %v1727_v17 }
 0x5d9   :  { %v1164_v32 = vsel %vm293_vm7, %v1160_v28, %v1698_v18  ;;  %v1165_v34 = vsel %vm293_vm7, %v1161_v27, %v1699_v22 }
 0x5da   :  { %v1168_v35 = vpack.c.bf16 %v1165_v34, %v1164_v32  ;;  %v1702_v46 = vpop.permute.xlu0 %1701  ;;  %1601 = vmatpush3.bf16.msra.mxu0 %v1727_v17 }
 0x5db   :  { %v1704_v10 = vunpack.i.h.bf16 %v1702_v46  ;;  %v1703_v38 = vunpack.i.l.bf16 %v1702_v46  ;;  %1602 = vmatprep.subr.bf16.mxu0 %v1728_v24 }
 0x5dc   :  { %1608 = vmatprep.mubr.msk.bf16.mxu0 %vm342_vm8, %v1168_v35 }
 0x5dd   :  { %v1166_v23 = vsel %vm293_vm7, %v1162_v39, %v1703_v38  ;;  %v1167_v41 = vsel %vm293_vm7, %v1163_v40, %v1704_v10 }
 0x5de   :  { %v1169_v42 = vpack.c.bf16 %v1167_v41, %v1166_v23  ;;  %1603 = vmatpush3.bf16.msra.mxu0 %v1728_v24 }
 0x5df   :  { %1604 = vmatprep.subr.bf16.mxu0 %v1729_v11 }
 0x5e2   :  { %1605 = vmatpush3.bf16.msra.mxu0 %v1729_v11 }
 0x5e3   :  { %1606 = vmatprep.subr.bf16.mxu0 %v1730_v49 }
 0x5e6   :  { %1607 = vmatpush3.bf16.msra.mxu0 %v1730_v49  ;;  %v1499_v49 = vld [vmem:[%s2395_s20] ss:$0 sm:$0xff] }
 0x5e9   :  { %1609 = vmatmul.mubr.msk.bf16.vlgmr.msra.gmra.mrb[8].mxu0 %vm342_vm8, %v1169_v42 }
 0x6a4   :  { %v2340_v48 = vpop.f32.mrb[4].mxu0 }
 0x6a5   :  { %v1578_v50 = vpop.f32.mrb[5].mxu0 }
 0x6a6   :  { %v805_v47 = vpop.f32.mrb[6].mxu0  ;;  %v1500_v50 = vld [vmem:[%s2396_s21] ss:$0 sm:$0xff] }
 0x6a7   :  { %v1579_v52 = vpop.f32.mrb[7].mxu0 }
 0x6bc   :  { %v1610_v54 = vpop.f32.mrb[8].mxu0 }
 0x6bd   :  { %v1252_v29 = vpop.f32.mrb[9].mxu0  ;;  %v1261_v30 = vadd.f32 %v1610_v54, %v1490_v53 }
 0x6be   :  { %v1253_v55 = vadd.f32 %v1490_v53, %v1252_v29  ;;  %v1611_v56 = vpop.f32.mrb[10].mxu0 }
 0x6bf   :  { %v1255_v57 = vpop.f32.mrb[11].mxu0  ;;  %v1269_v59 = vmax.f32 %v1261_v30, 0.0  ;;  %v1264_v60 = vadd.f32 %v1611_v56, %v1490_v53 }
 0x6c0   :  { %v1267_v37 = vmax.f32 %v1253_v55, 0.0  ;;  %v1256_v58 = vadd.f32 %v1490_v53, %v1255_v57 }
 0x6c1   :  { %v1270_v2 = vmax.f32 %v1264_v60, 0.0  ;;  %v1277_v12 = vsel %vm288_vm0, %v1269_v59, 0.0 }
 0x6c2   :  { %v1268_v61 = vmax.f32 %v1256_v58, 0.0  ;;  %v1271_v51 = vsel %vm288_vm0, %v1267_v37, 0.0 }
 0x6c3   :  { %1272 = vadd.xlane.f32.xlu0 %v1271_v51  ;;  %v1280_v3 = vsel %vm288_vm0, %v1270_v2, 0.0 }
 0x6c4   :  { %v1274_v1 = vsel %vm288_vm0, %v1268_v61, 0.0 }
 0x6c5   :  { %1275 = vadd.xlane.f32.xlu1 %v1274_v1 }
 0x6c7   :  { %1278 = vadd.xlane.f32.xlu0 %v1277_v12  ;;  %v847_v12 = vld [vmem:[%s2397_s22] sm:$0x1] }
 0x6cb   :  { %1281 = vadd.xlane.f32.xlu0 %v1280_v3 }
 0x6d6   :  { %1379 = vperm.xlu1 %1705, %v848_v4   ;;  %v763_v4 = vsub.s32 0, %v1935_v13 }
 0x6da   :  { %758 = vperm.xlu1 %1705, %v120_v6  }
 0x750   :  { %v1273_v7 = vpop.xlane.xlu0 %1272 }
 0x751   :  { %v1283_v0 = vmul.f32 0.03125, %v1273_v7 }
 0x752   :  { %v1276_v31 = vpop.xlane.xlu1 %1275 }
 0x753   :  { %v1287_v33 = vsub.f32 %v1267_v37, %v1283_v0  ;;  %v1284_v14 = vmul.f32 0.03125, %v1276_v31 }
 0x754   :  { %v1279_v9 = vpop.xlane.xlu0 %1278 }
 0x755   :  { %v1285_v15 = vmul.f32 0.03125, %v1279_v9  ;;  %v1288_v5 = vsub.f32 %v1268_v61, %v1284_v14  ;;  %v1291_v8 = vmul.f32 %v1287_v33, %v1287_v33 }
 0x756   :  { %v1380_v3 = vpop.permute.xlu1 %1379 }
 0x757   :  { %v1289_v16 = vsub.f32 %v1269_v59, %v1285_v15  ;;  %v1295_v22 = vsel %vm288_vm0, %v1291_v8, 0.0  ;;  %v1292_v18 = vmul.f32 %v1288_v5, %v1288_v5  ;;  %v1385_v7 = vrot.slane %v1380_v3, %v763_v4  ;;  %v84_v15 = vld [vmem:[%s2398_s3] sm:$0x1] }
 0x758   :  { %v1282_v62 = vpop.xlane.xlu0 %1281 }
 0x759   :  { %v1293_v17 = vmul.f32 %v1289_v16, %v1289_v16  ;;  %v1286_v19 = vmul.f32 0.03125, %v1282_v62  ;;  %v1298_v24 = vsel %vm288_vm0, %v1292_v18, 0.0 }
 0x75b   :  { %v1301_v20 = vsel %vm288_vm0, %v1293_v17, 0.0  ;;  %v1290_v21 = vsub.f32 %v1270_v2, %v1286_v19 }
 0x75c   :  { %1302 = vadd.xlane.f32.xlu0 %v1301_v20 }
 0x75d   :  { %v1294_v25 = vmul.f32 %v1290_v21, %v1290_v21 }
 0x75f   :  { %v1304_v26 = vsel %vm288_vm0, %v1294_v25, 0.0 }
 0x760   :  { %1296 = vadd.xlane.f32.xlu0 %v1295_v22 }
 0x764   :  { %1299 = vadd.xlane.f32.xlu0 %v1298_v24 }
 0x768   :  { %1305 = vadd.xlane.f32.xlu0 %v1304_v26 }
 0x7e9   :  { %v1303_v27 = vpop.xlane.xlu0 %1302 }
 0x7ea   :  { %v1309_v28 = vmul.f32 0.03125, %v1303_v27 }
 0x7ec   :  { %v1313_v35 = vadd.f32 1e-05, %v1309_v28 }
 0x7ed   :  { %v1297_v32 = vpop.xlane.xlu0 %1296 }
 0x7ee   :  { %v1307_v34 = vmul.f32 0.03125, %v1297_v32 }
 0x7f0   :  { %v1311_v46 = vadd.f32 1e-05, %v1307_v34 }
 0x7f1   :  { %v1300_v36 = vpop.xlane.xlu0 %1299 }
 0x7f2   :  { %1755 = vrsqrt.f32 %v1311_v46  ;;  %v1308_v10 = vmul.f32 0.03125, %v1300_v36 }
 0x7f3   :  { %1757 = vrsqrt.f32 %v1313_v35 }
 0x7f4   :  { %v1312_v38 = vadd.f32 1e-05, %v1308_v10 }
 0x7f5   :  { %v1306_v11 = vpop.xlane.xlu0 %1305 }
 0x7f6   :  { %1759 = vrsqrt.f32 %v1312_v38  ;;  %v1310_v39 = vmul.f32 0.03125, %v1306_v11 }
 0x7f8   :  { %v1314_v40 = vadd.f32 1e-05, %v1310_v39 }
 0x7fa   :  { %1761 = vrsqrt.f32 %v1314_v40 }
 0x7fc   :  { %v1756_v23 = vpop.eup %1755 }
 0x7fd   :  { %v1319_v41 = vmul.f32 %v1756_v23, %v1287_v33  ;;  %v1758_v42 = vpop.eup %1757 }
 0x7fe   :  { %v1321_v53 = vmul.f32 %v1758_v42, %v1289_v16 }
 0x7ff   :  { %v1329_v44 = vmul.f32 %v1499_v49, %v1319_v41 }
 0x800   :  { %v1760_v45 = vpop.eup %1759  ;;  %v1331_v55 = vmul.f32 %v1499_v49, %v1321_v53 }
 0x801   :  { %v1339_v47 = vadd.f32 %v1500_v50, %v1329_v44  ;;  %v1320_v52 = vmul.f32 %v1760_v45, %v1288_v5 }
 0x802   :  { %v1341_v57 = vadd.f32 %v1500_v50, %v1331_v55 }
 0x803   :  { %1343 = vxpose.xlu0.b32.start [1/4] (short) (narrow) %v1339_v47, 32  ;;  %v1330_v54 = vmul.f32 %v1499_v49, %v1320_v52 }
 0x804   :  { %v1762_v29 = vpop.eup %1761 }
 0x805   :  { %v1340_v30 = vadd.f32 %v1500_v50, %v1330_v54  ;;  %v1322_v56 = vmul.f32 %v1762_v29, %v1290_v21 }
 0x807   :  { %1344 = vxpose.xlu0.b32.cont [2/4] (short) (narrow) %v1340_v30, 32  ;;  %v1332_v37 = vmul.f32 %v1499_v49, %v1322_v56 }
 0x809   :  { %v1342_v58 = vadd.f32 %v1500_v50, %v1332_v37 }
 0x80b   :  { %1345 = vxpose.xlu0.b32.cont [3/4] (short) (narrow) %v1341_v57, 32 }
 0x80f   :  { %1346 = vxpose.xlu0.b32.end [4/4] (short) (narrow) %v1342_v58, 32 }
 0x838   :  { %1706 = vset.pattern.permute.xlu0 %v1767_v43  ;;  %v759_v43 = vpop.permute.xlu1 %758 }
 0x839   :  { %v764_v6 = vrot.slane %v759_v43, %v763_v4 }
 0x83b   :  { %v803_v31 = vadd.f32 %v2340_v48, %v764_v6 }
 0x83d   :  { %v808_v62 = vmul.f32 %v803_v31, %v84_v15 }
 0x883   :  { %v1359_v59 = vpop.trf.xlu0 }
 0x887   :  { %v1360_v60 = vpop.trf.xlu0 }
 0x888   :  { %v1375_v61 = vpack.c.bf16 %v1360_v60, %v1359_v59 }
 0x88a   :  { %1613 = vmatpush3.bf16.msra.mxu1 %v1375_v61 }
 0x88b   :  { %v1361_v51 = vpop.trf.xlu0  ;;  %1614 = vmatprep.subr.bf16.mxu1 %v1765_v63 }
 0x88f   :  { %v1362_v1 = vpop.trf.xlu0 }
 0x890   :  { %v1376_v2 = vpack.c.bf16 %v1362_v1, %v1361_v51 }
 0x892   :  { %1615 = vmatpush3.bf16.msra.mxu1 %v1376_v2 }
 0x895   :  { %1617 = vmatmul.mubr.msk.bf16.vlgmr.msra.gmra.mrb[8].mxu1 %vm288_vm0, %v847_v12 }
 0x968   :  { %v1423_v0 = vpop.f32.mrb[8].mxu1 }
 0x969   :  { %v1424_v9 = vadd.f32 %v1423_v0, %v1385_v7  ;;  %v1618_v63 = vpop.f32.mrb[9].mxu1 }
 0x96a   :  { %v1426_v33 = vpop.f32.mrb[10].mxu1 }
 0x96b   :  { %v1429_v14 = vmul.f32 %v1424_v9, %v84_v15  ;;  %v1619_v16 = vpop.f32.mrb[11].mxu1 }
 0x96d   :  { %v1443_v17 = vrot.slane %v1429_v14, 7 }
 0x96f   :  { %v1445_v13 = vsel %vm125_vm2, %v808_v62, %v1443_v17 }
 0x970   :  { %1447 = vst.msk [vmem:[%s2399_s25] sm:$0x3] %vm1446_vm10, %v1445_v13 }

// kernel: fastspeech2_forward.6
= control target key start
LH: loop header
LB: loop body
LE: loop exit
PB: predicated region body
PF: predicated region fallthrough
CT: control target
= control target key end

     0   :  { %v87_v0 = vlaneseq  ;;  %vm80_vm0 = vcmask 1040384   ;;  %v688_v3 = vmov 0.0   ;;  %s689_s27 = smov 32   ;;  %vm128_vm1 = vcmask 1046528   ;;  %s691_s15 = smov 64   ;;  %s914_s0 = inlined_call_operand.vmem [shape: f32[16,32], index: 0, kind: input, shape index: {}]   ;;  %s915_s2 = inlined_call_operand.vmem [shape: bf16[96,32], index: 2, kind: input, shape index: {}]   ;;  %s916_s3 = inlined_call_operand.vmem [shape: f32[1,32], index: 3, kind: input, shape index: {}]   ;;  %s917_s6 = inlined_call_operand.vmem [shape: bf16[96,32], index: 6, kind: input, shape index: {}]   ;;  %s918_s4 = inlined_call_operand.vmem [shape: f32[1,32], index: 4, kind: input, shape index: {}]   ;;  %s919_s5 = inlined_call_operand.vmem [shape: f32[1,32], index: 5, kind: input, shape index: {}]   ;;  %s920_s7 = inlined_call_operand.vmem [shape: f32[1,32], index: 7, kind: input, shape index: {}]   ;;  %s921_s8 = inlined_call_operand.vmem [shape: f32[1,32], index: 8, kind: input, shape index: {}]   ;;  %s922_s9 = inlined_call_operand.vmem [shape: f32[1,32], index: 9, kind: input, shape index: {}]   ;;  %s923_s11 = inlined_call_operand.<no memory space> [shape: f32[1,1], index: 11, kind: input, shape index: {}]   ;;  %s924_s10 = inlined_call_operand.vmem [shape: bf16[1,32], index: 10, kind: input, shape index: {}]   ;;  %s925_s1 = inlined_call_operand.vmem [shape: f32[1,16], index: 1, kind: input, shape index: {}]   ;;  %s926_s12 = inlined_call_operand.vmem [shape: f32[1,16], index: 12, kind: output, shape index: {}]  }
   0x1   :  { %v44_v1 = vld [vmem:[%s914_s0] sm:$0xff]  ;;  %v45_v2 = vld [vmem:[%s914_s0 + $0x8] sm:$0xff]  ;;  %601 = vmatprep.subr.bf16.mxu0 %v688_v3  ;;  %617 = vmatprep.subr.bf16.mxu1 %v688_v3  ;;  %vm690_vm2 = vmmov 0   ;;  %v670_v18 = vld [vmem:[%s915_s2 + $0x10] sm:$0xff]   ;;  %vm163_vm7 = vcmask 261120   ;;  %vm166_vm8 = vcmask 523264  }
   0x2   :  { %v82_v4 = vrot.slane %v45_v2, 7  ;;  %v130_v5 = vrot.slane %v45_v2, 1  ;;  %v646_v6 = vpack.i.bf16 %v45_v2, %v44_v1  ;;  %v81_v7 = vrot.slane %v44_v1, 7  ;;  %v668_v8 = vld [vmem:[%s915_s2] sm:$0xff]   ;;  %v669_v11 = vld [vmem:[%s915_s2 + $0x8] sm:$0xff]   ;;  %613 = vmatprep.mubr.msk.bf16.mxu0 %vm690_vm2, %v688_v3  ;;  %629 = vmatprep.mubr.msk.bf16.mxu1 %vm690_vm2, %v688_v3  ;;  %v671_v23 = vld [vmem:[%s915_s2 + $0x18] sm:$0xff]  }
   0x3   :  { %v129_v9 = vrot.slane %v44_v1, 1  ;;  %v769_v10 = vshrl.u32 %v87_v0, 7  ;;  %602 = vmatpush3.bf16.msra.mxu0 %v668_v8  ;;  %v672_v25 = vld [vmem:[%s915_s2 + $0x20] sm:$0xff]   ;;  %v673_v26 = vld [vmem:[%s915_s2 + $0x28] sm:$0xff]   ;;  %vm212_vm9 = vcmask 785408   ;;  %v676_v2 = vld [vmem:[%s917_s6 + $0x10] sm:$0xff]  }
   0x4   :  { %647 = vrot.lane.b32.xlu0 %v646_v6, %s689_s27  ;;  %v83_v12 = vsel %vm80_vm0, %v81_v7, %v82_v4  ;;  %603 = vmatprep.subr.bf16.mxu0 %v688_v3  ;;  %v134_v19 = vsel %vm128_vm1, %v130_v5, 0.0  ;;  %v86_v30 = vsel %vm80_vm0, 0.0, %v81_v7  ;;  %v563_v43 = vld [vmem:[%s916_s3] ss:$0 sm:$0xff]  ;;  %v675_v1 = vld [vmem:[%s917_s6 + $0x8] sm:$0xff]   ;;  %v677_v4 = vld [vmem:[%s917_s6 + $0x18] sm:$0xff]  }
   0x5   :  { %v89_v13 = vadd.s32 8, %v769_v10  ;;  %v94_v14 = vand.u32 7, %v769_v10  ;;  %v131_v16 = vsel %vm128_vm1, %v129_v9, %v130_v5  ;;  %v674_v0 = vld [vmem:[%s917_s6] sm:$0xff]   ;;  %vm557_vm10 = vcmask 122880  }
   0x6   :  { %618 = vmatpush3.bf16.msra.mxu1 %v674_v0 }
   0x7   :  { %v101_v15 = vand.u32 7, %v89_v13  ;;  %v780_v17 = vadd.s32 1, %v94_v14  ;;  %604 = vmatpush3.bf16.msra.mxu0 %v669_v11  ;;  %v813_v27 = vadd.s32 4294967295, %v94_v14  ;;  %619 = vmatprep.subr.bf16.mxu1 %v688_v3  ;;  %v571_v13 = vld [vmem:[%s918_s4] ss:$0 sm:$0xff] }
   0x8   :  { %605 = vmatprep.subr.bf16.mxu0 %v688_v3  ;;  %v678_v14 = vld [vmem:[%s917_s6 + $0x20] sm:$0xff]  }
   0x9   :  { %v790_v20 = vadd.s32 1, %v101_v15  ;;  %vm139_vm3 = vcmp.lt.s32.totalorder %v780_v17, 8  ;;  %v815_v28 = vadd.s32 4294967295, %v101_v15  ;;  %vm116_vm5 = vcmp.ge.s32.totalorder %v813_v27, 0  ;;  %v573_v27 = vld [vmem:[%s920_s7] ss:$0 sm:$0xff] }
   0xa   :  { %v147_v21 = vsel %vm139_vm3, %v131_v16, 0.0  ;;  %v126_v33 = vsel %vm116_vm5, %v86_v30, 0.0  ;;  %620 = vmatpush3.bf16.msra.mxu1 %v675_v1  ;;  %v572_v16 = vld [vmem:[%s919_s5] ss:$0 sm:$0xff] }
   0xb   :  { %vm140_vm4 = vcmp.lt.s32.totalorder %v790_v20, 8  ;;  %606 = vmatpush3.bf16.msra.mxu0 %v670_v18  ;;  %vm117_vm6 = vcmp.ge.s32.totalorder %v815_v28, 0  ;;  %621 = vmatprep.subr.bf16.mxu1 %v688_v3 }
   0xc   :  { %v148_v22 = vsel %vm140_vm4, %v134_v19, 0.0  ;;  %607 = vmatprep.subr.bf16.mxu0 %v688_v3  ;;  %v127_v34 = vsel %vm117_vm6, %v83_v12, 0.0 }
   0xd   :  { %v651_v24 = vpack.i.bf16 %v148_v22, %v147_v21  ;;  %v679_v21 = vld [vmem:[%s917_s6 + $0x28] sm:$0xff]  }
   0xe   :  { %622 = vmatpush3.bf16.msra.mxu1 %v676_v2 }
   0xf   :  { %652 = vrot.lane.b32.xlu0 %v651_v24, %s691_s15  ;;  %608 = vmatpush3.bf16.msra.mxu0 %v671_v23 }
  0x10   :  { %609 = vmatprep.subr.bf16.mxu0 %v688_v3  ;;  %623 = vmatprep.subr.bf16.mxu1 %v688_v3 }
  0x12   :  { %624 = vmatpush3.bf16.msra.mxu1 %v677_v4 }
  0x13   :  { %610 = vmatpush3.bf16.msra.mxu0 %v672_v25  ;;  %625 = vmatprep.subr.bf16.mxu1 %v688_v3 }
  0x14   :  { %611 = vmatprep.subr.bf16.mxu0 %v688_v3 }
  0x16   :  { %626 = vmatpush3.bf16.msra.mxu1 %v678_v14 }
  0x17   :  { %612 = vmatpush3.bf16.msra.mxu0 %v673_v26  ;;  %627 = vmatprep.subr.bf16.mxu1 %v688_v3 }
  0x18   :  { %633 = vmatprep.subr.bf16.mxu0 %v688_v3 }
  0x1a   :  { %628 = vmatpush3.bf16.msra.mxu1 %v679_v21 }
  0x76   :  { %v648_v29 = vpop.permute.xlu0 %647 }
  0x77   :  { %v650_v31 = vunpack.i.h.bf16 %v648_v29  ;;  %v649_v32 = vunpack.i.l.bf16 %v648_v29 }
  0x79   :  { %v164_v38 = vsel %vm163_vm7, %v126_v33, %v649_v32  ;;  %v165_v39 = vsel %vm163_vm7, %v127_v34, %v650_v31 }
  0x81   :  { %v653_v35 = vpop.permute.xlu0 %652 }
  0x82   :  { %v655_v36 = vunpack.i.h.bf16 %v653_v35  ;;  %v654_v37 = vunpack.i.l.bf16 %v653_v35 }
  0x84   :  { %v167_v40 = vsel %vm166_vm8, %v164_v38, %v654_v37  ;;  %v168_v41 = vsel %vm166_vm8, %v165_v39, %v655_v36 }
  0x85   :  { %v169_v42 = vpack.c.bf16 %v168_v41, %v167_v40 }
  0x87   :  { %614 = vmatmul.mubr.msk.bf16.vlgmr.msra.gmra.mrb[0].mxu0 %vm212_vm9, %v169_v42 }
  0x88   :  { %637 = vmatprep.mubr.msk.bf16.mxu0 %vm690_vm2, %v688_v3 }
 0x15a   :  { %v250_v44 = vpop.f32.mrb[0].mxu0 }
 0x15b   :  { %v251_v45 = vadd.f32 %v563_v43, %v250_v44  ;;  %v615_v46 = vpop.f32.mrb[1].mxu0 }
 0x15c   :  { %v253_v47 = vpop.f32.mrb[2].mxu0 }
 0x15d   :  { %v257_v48 = vmax.f32 %v251_v45, 0.0  ;;  %v254_v49 = vadd.f32 %v563_v43, %v253_v47  ;;  %v616_v50 = vpop.f32.mrb[3].mxu0 }
 0x15f   :  { %v258_v51 = vmax.f32 %v254_v49, 0.0  ;;  %v259_v52 = vsel %vm163_vm7, %v257_v48, 0.0 }
 0x160   :  { %260 = vadd.xlane.f32.xlu1 %v259_v52 }
 0x161   :  { %v262_v53 = vsel %vm163_vm7, %v258_v51, 0.0 }
 0x164   :  { %263 = vadd.xlane.f32.xlu1 %v262_v53 }
 0x1ed   :  { %v261_v54 = vpop.xlane.xlu1 %260 }
 0x1ee   :  { %v266_v55 = vmul.f32 0.03125, %v261_v54 }
 0x1f0   :  { %v268_v56 = vsub.f32 %v257_v48, %v266_v55 }
 0x1f1   :  { %v264_v57 = vpop.xlane.xlu1 %263 }
 0x1f2   :  { %v267_v58 = vmul.f32 0.03125, %v264_v57  ;;  %v270_v59 = vmul.f32 %v268_v56, %v268_v56 }
 0x1f4   :  { %v269_v60 = vsub.f32 %v258_v51, %v267_v58  ;;  %v272_v61 = vsel %vm163_vm7, %v270_v59, 0.0 }
 0x1f5   :  { %273 = vadd.xlane.f32.xlu0 %v272_v61 }
 0x1f6   :  { %v271_v62 = vmul.f32 %v269_v60, %v269_v60 }
 0x1f8   :  { %v275_v63 = vsel %vm163_vm7, %v271_v62, 0.0 }
 0x1f9   :  { %276 = vadd.xlane.f32.xlu1 %v275_v63 }
 0x282   :  { %v274_v5 = vpop.xlane.xlu0 %273 }
 0x283   :  { %v278_v6 = vmul.f32 0.03125, %v274_v5 }
 0x285   :  { %v280_v7 = vadd.f32 1e-05, %v278_v6 }
 0x286   :  { %v277_v8 = vpop.xlane.xlu1 %276 }
 0x287   :  { %680 = vrsqrt.f32 %v280_v7  ;;  %v279_v9 = vmul.f32 0.03125, %v277_v8 }
 0x289   :  { %v281_v11 = vadd.f32 1e-05, %v279_v9 }
 0x28b   :  { %682 = vrsqrt.f32 %v281_v11 }
 0x291   :  { %v681_v12 = vpop.eup %680 }
 0x292   :  { %v284_v15 = vmul.f32 %v681_v12, %v268_v56 }
 0x294   :  { %v292_v18 = vmul.f32 %v571_v13, %v284_v15  ;;  %v581_v15 = vld [vmem:[%s921_s8] ss:$0 sm:$0xff] }
 0x295   :  { %v683_v19 = vpop.eup %682 }
 0x296   :  { %v285_v22 = vmul.f32 %v683_v19, %v269_v60  ;;  %v300_v23 = vadd.f32 %v572_v16, %v292_v18  ;;  %v582_v18 = vld [vmem:[%s922_s9] ss:$0 sm:$0xff] }
 0x298   :  { %v293_v24 = vmul.f32 %v571_v13, %v285_v22  ;;  %v312_v26 = vrot.slane %v300_v23, 1  ;;  %v304_v32 = vrot.slane %v300_v23, 7 }
 0x29a   :  { %v301_v25 = vadd.f32 %v572_v16, %v293_v24  ;;  %v309_v40 = vsel %vm80_vm0, 0.0, %v304_v32 }
 0x29b   :  { %v310_v44 = vsel %vm116_vm5, %v309_v40, 0.0 }
 0x29c   :  { %v656_v29 = vpack.i.bf16 %v301_v25, %v300_v23  ;;  %v305_v30 = vrot.slane %v301_v25, 7  ;;  %v313_v31 = vrot.slane %v301_v25, 1 }
 0x29e   :  { %657 = vrot.lane.b32.xlu1 %v656_v29, %s689_s27  ;;  %v314_v33 = vsel %vm128_vm1, %v312_v26, %v313_v31  ;;  %v317_v34 = vsel %vm128_vm1, %v313_v31, 0.0  ;;  %v306_v35 = vsel %vm80_vm0, %v304_v32, %v305_v30  ;;  %v692_v26 = vmov 0  }
 0x29f   :  { %v318_v36 = vsel %vm139_vm3, %v314_v33, 0.0  ;;  %v319_v37 = vsel %vm140_vm4, %v317_v34, 0.0  ;;  %v311_v45 = vsel %vm117_vm6, %v306_v35, 0.0  ;;  %666 = vset.pattern.permute.xlu1 %v692_v26  ;;  %v17_v29 = vstv %s923_s11 }
 0x2a0   :  { %v661_v38 = vpack.i.bf16 %v319_v37, %v318_v36  ;;  %18 = vst [vmem:[#allocation2] sm:$0x1] %v17_v29  ;;  %v76_v37 = vld [vmem:[%s924_s10] sm:$0x1] }
 0x2a2   :  { %662 = vrot.lane.b32.xlu1 %v661_v38, %s691_s15  ;;  %v510_v38 = vsub.s32 0, %v769_v10 }
 0x2a7   :  { %v77_v30 = vld [vmem:[#allocation2] sm:$0x1] }
 0x310   :  { %v658_v39 = vpop.permute.xlu1 %657 }
 0x311   :  { %v660_v41 = vunpack.i.h.bf16 %v658_v39  ;;  %v659_v42 = vunpack.i.l.bf16 %v658_v39 }
 0x313   :  { %v334_v20 = vsel %vm163_vm7, %v310_v44, %v659_v42  ;;  %v335_v47 = vsel %vm163_vm7, %v311_v45, %v660_v41  ;;  %v555_v42 = vld [vmem:[%s925_s1] sm:$0x1] }
 0x314   :  { %v663_v43 = vpop.permute.xlu1 %662 }
 0x315   :  { %v665_v17 = vunpack.i.h.bf16 %v663_v43  ;;  %v664_v46 = vunpack.i.l.bf16 %v663_v43 }
 0x317   :  { %v336_v48 = vsel %vm166_vm8, %v334_v20, %v664_v46  ;;  %v337_v49 = vsel %vm166_vm8, %v335_v47, %v665_v17 }
 0x318   :  { %v338_v50 = vpack.c.bf16 %v337_v49, %v336_v48 }
 0x31a   :  { %630 = vmatmul.mubr.msk.bf16.vlgmr.msra.gmra.mrb[0].mxu1 %vm212_vm9, %v338_v50 }
 0x3ed   :  { %v418_v51 = vpop.f32.mrb[0].mxu1 }
 0x3ee   :  { %v419_v28 = vadd.f32 %v573_v27, %v418_v51  ;;  %v631_v52 = vpop.f32.mrb[1].mxu1 }
 0x3ef   :  { %v421_v53 = vpop.f32.mrb[2].mxu1 }
 0x3f0   :  { %v425_v54 = vmax.f32 %v419_v28, 0.0  ;;  %v422_v55 = vadd.f32 %v573_v27, %v421_v53  ;;  %v632_v56 = vpop.f32.mrb[3].mxu1 }
 0x3f2   :  { %v426_v57 = vmax.f32 %v422_v55, 0.0  ;;  %v427_v58 = vsel %vm163_vm7, %v425_v54, 0.0 }
 0x3f3   :  { %428 = vadd.xlane.f32.xlu1 %v427_v58 }
 0x3f4   :  { %v430_v59 = vsel %vm163_vm7, %v426_v57, 0.0 }
 0x3f5   :  { %431 = vadd.xlane.f32.xlu0 %v430_v59 }
 0x404   :  { %505 = vperm.xlu1 %666, %v77_v30  }
 0x480   :  { %v429_v60 = vpop.xlane.xlu1 %428 }
 0x481   :  { %v433_v61 = vmul.f32 0.03125, %v429_v60 }
 0x482   :  { %v432_v62 = vpop.xlane.xlu0 %431 }
 0x483   :  { %v435_v63 = vsub.f32 %v425_v54, %v433_v61  ;;  %v434_v0 = vmul.f32 0.03125, %v432_v62 }
 0x484   :  { %v506_v39 = vpop.permute.xlu1 %505 }
 0x485   :  { %v436_v1 = vsub.f32 %v426_v57, %v434_v0  ;;  %v437_v2 = vmul.f32 %v435_v63, %v435_v63  ;;  %v511_v40 = vrot.slane %v506_v39, %v510_v38 }
 0x487   :  { %v439_v4 = vsel %vm163_vm7, %v437_v2, 0.0  ;;  %v438_v5 = vmul.f32 %v436_v1, %v436_v1 }
 0x488   :  { %440 = vadd.xlane.f32.xlu0 %v439_v4 }
 0x489   :  { %v442_v6 = vsel %vm163_vm7, %v438_v5, 0.0 }
 0x48c   :  { %443 = vadd.xlane.f32.xlu0 %v442_v6 }
 0x515   :  { %v441_v7 = vpop.xlane.xlu0 %440 }
 0x516   :  { %v445_v8 = vmul.f32 0.03125, %v441_v7 }
 0x518   :  { %v447_v9 = vadd.f32 1e-05, %v445_v8 }
 0x519   :  { %v444_v11 = vpop.xlane.xlu0 %443 }
 0x51a   :  { %684 = vrsqrt.f32 %v447_v9  ;;  %v446_v12 = vmul.f32 0.03125, %v444_v11 }
 0x51c   :  { %v448_v13 = vadd.f32 1e-05, %v446_v12 }
 0x51e   :  { %686 = vrsqrt.f32 %v448_v13 }
 0x524   :  { %v685_v14 = vpop.eup %684 }
 0x525   :  { %v451_v16 = vmul.f32 %v685_v14, %v435_v63 }
 0x527   :  { %v459_v19 = vmul.f32 %v581_v15, %v451_v16 }
 0x528   :  { %v687_v21 = vpop.eup %686 }
 0x529   :  { %v467_v22 = vadd.f32 %v582_v18, %v459_v19  ;;  %v452_v23 = vmul.f32 %v687_v21, %v436_v1 }
 0x52b   :  { %469 = vxpose.xlu0.b32.start [1/2] (short) (narrow) %v467_v22, 32  ;;  %v460_v24 = vmul.f32 %v581_v15, %v452_v23 }
 0x52d   :  { %v468_v25 = vadd.f32 %v582_v18, %v460_v24 }
 0x52f   :  { %470 = vxpose.xlu0.b32.end [2/2] (short) (narrow) %v468_v25, 32 }
 0x558   :  { %667 = vset.pattern.permute.xlu0 %v692_v26 }
 0x5ab   :  { %v485_v31 = vpop.trf.xlu0 }
 0x5af   :  { %v486_v32 = vpop.trf.xlu0 }
 0x5b0   :  { %v501_v33 = vpack.c.bf16 %v486_v32, %v485_v31 }
 0x5b2   :  { %634 = vmatpush3.bf16.msra.mxu0 %v501_v33 }
 0x5b3   :  { %v487_v34 = vpop.trf.xlu0  ;;  %635 = vmatprep.subr.bf16.mxu0 %v688_v3 }
 0x5b7   :  { %v488_v35 = vpop.trf.xlu0 }
 0x5b8   :  { %v502_v36 = vpack.c.bf16 %v488_v35, %v487_v34 }
 0x5ba   :  { %636 = vmatpush3.bf16.msra.mxu0 %v502_v36 }
 0x5bd   :  { %638 = vmatmul.mubr.msk.bf16.vlgmr.msra.gmra.mrb[4].mxu0 %vm163_vm7, %v76_v37 }
 0x690   :  { %v549_v41 = vpop.f32.mrb[4].mxu0 }
 0x691   :  { %v550_v43 = vadd.f32 %v549_v41, %v511_v40  ;;  %v639_v3 = vpop.f32.mrb[5].mxu0 }
 0x692   :  { %v552_v44 = vpop.f32.mrb[6].mxu0 }
 0x693   :  { %v556_v45 = vmul.f32 %v555_v42, %v550_v43  ;;  %v640_v17 = vpop.f32.mrb[7].mxu0 }
 0x695   :  { %558 = vst.msk [vmem:[%s926_s12] sm:$0x1] %vm557_vm10, %v556_v45 }

// kernel: fastspeech2_forward.9
= control target key start
LH: loop header
LB: loop body
LE: loop exit
PB: predicated region body
PF: predicated region fallthrough
CT: control target
= control target key end

     0   :  { %s2542_s0 = inlined_call_operand.vmem [shape: f32[32,32], index: 0, kind: input, shape index: {}]   ;;  %s2543_s1 = inlined_call_operand.vmem [shape: bf16[32,16], index: 1, kind: input, shape index: {}]   ;;  %s2544_s2 = inlined_call_operand.vmem [shape: f32[1,16], index: 2, kind: input, shape index: {}]   ;;  %s2545_s3 = inlined_call_operand.vmem [shape: bf16[80,32], index: 3, kind: input, shape index: {}]   ;;  %s2546_s4 = inlined_call_operand.vmem [shape: f32[1,32], index: 4, kind: input, shape index: {}]   ;;  %s2547_s5 = inlined_call_operand.vmem [shape: bf16[160,32], index: 5, kind: input, shape index: {}]   ;;  %s2548_s6 = inlined_call_operand.vmem [shape: f32[1,32], index: 6, kind: input, shape index: {}]   ;;  %s2549_s7 = inlined_call_operand.vmem [shape: bf16[160,32], index: 7, kind: input, shape index: {}]   ;;  %s2550_s8 = inlined_call_operand.vmem [shape: f32[1,32], index: 8, kind: input, shape index: {}]   ;;  %s2551_s9 = inlined_call_operand.vmem [shape: bf16[160,32], index: 9, kind: input, shape index: {}]   ;;  %s2552_s10 = inlined_call_operand.vmem [shape: f32[1,32], index: 10, kind: input, shape index: {}]   ;;  %s2553_s11 = inlined_call_operand.vmem [shape: bf16[160,16], index: 11, kind: input, shape index: {}]   ;;  %s2554_s12 = inlined_call_operand.vmem [shape: f32[1,16], index: 12, kind: input, shape index: {}]   ;;  %s2555_s13 = inlined_call_operand.hbm [shape: f32[32,16], index: 13, kind: output, shape index: {0}]   ;;  %s2556_s14 = inlined_call_operand.hbm [shape: f32[32,16], index: 14, kind: output, shape index: {1}]  }
   0x1   :  { %2564 = sst [smem:[#allocation9_spill]] %s2542_s0 }
   0x2   :  { %2565 = sst [smem:[#allocation10_spill]] %s2543_s1 }
   0x3   :  { %2566 = sst [smem:[#allocation11_spill]] %s2544_s2 }
   0x4   :  { %2567 = sst [smem:[#allocation12_spill]] %s2545_s3 }
   0x5   :  { %2568 = sst [smem:[#allocation13_spill]] %s2546_s4 }
   0x6   :  { %20 = vsyncpa [#allocation3], 0 }
   0x7   :  { %22 = vsyncpa [#allocation3 + $0x1], 0 }
   0x8   :  { %23 = vsyncpa [#allocation5], 0 }
   0x9   :  { %25 = vsyncpa [#allocation5 + $0x1], 0  ;;  %s2075_s29 = smov 0   ;;  %s2077_s30 = smov 0  }
   0xa   :  { %s2079_s15 = smov 0   ;;  %s2081_s16 = smov 0  }
   0xb LB: > { %s2096_s17 = sadd.s32 4294967295, %s1986_s16   ;;  %s1587_s18 = sadd.s32 4294967294, %s1986_s16   ;;  %s1986_s16 = sphi %s2081_s16, %s2585_s16   ;;  %s1982_s15 = sphi %s2079_s15, %s2584_s15   ;;  %s1978_s30 = sphi %s2077_s30, %s2583_s30   ;;  %s1974_s29 = sphi %s2075_s29, %s2582_s29  }
   0xc   : > { %s2100_s19 = sadd.s32 1, %s1986_s16   ;;  %s316_s20 = sadd.s32 1, %s1982_s15 }
   0xd   : > { %s313_s21 = ssub.s32 %s1986_s16, %s2100_s19  ;;  %p326_p0 = scmp.ne.s32.totalorder %s1982_s15, %s1978_s30 }
   0xe   : > { %p314_p1 = scmp.eq.s32.totalorder %s313_s21, 0  ;;  %p327_p2 = scmp.eq.s32.totalorder %s2096_s17, 1 }
   0xf   : > { %p332_p3 = scmp.ne.s32.totalorder %s1978_s30, %s1974_s29  ;;  %p333_p4 = scmp.eq.s32.totalorder %s1587_s18, 1 }
  0x10   : > { %s2111_s22 = scalar_select %p314_p1, %s1982_s15, %s316_s20  }
  0x11   : > { %p2113_p5 = por %p327_p2, %p326_p0  ;;  %p2117_p6 = por %p333_p4, %p332_p3 }
  0x12   : > { %2569 = sst [smem:[#allocation8_spill]] %s2111_s22  ;;  %p1590_p7 = scmp.ge.s32.totalorder %s1986_s16, 1 }
  0x13   : > { %p422_p8 = scmp.lt.s32.totalorder %s1986_s16, 3 }
  0x15   : > { %p423_p9 = pnand %p1590_p7, %p422_p8 }
  0x16   : > { %s2572_s1 = sld [smem:[#allocation10_spill]] (!%p423_p9)  ;;  %v1988_v1 = vmov (!%p423_p9), 0.0   ;;  %vm1989_vm0 = vmmov (!%p423_p9), 0   ;;  %s1593_s18 = sshll.u32 (!%p423_p9), %s2096_s17, 1  ;;  %vm508_vm1 = vcmask (!%p423_p9), 261120   ;;  %vm553_vm2 = vcmask (!%p423_p9), 130048  }
  0x17   : > { %426 = sbr.rel (%p423_p9) target bundleno = 2039 (0x7f7), region = 72  ;;  %1673 = vmatprep.subr.bf16.mxu0 (!%p423_p9), %v1988_v1  ;;  %1681 = vmatprep.subr.bf16.mxu1 (!%p423_p9), %v1988_v1  ;;  %p474_p10 = scmp.lt.s32.totalorder (!%p423_p9), %s1593_s18, 3  ;;  %vm582_vm3 = vcmask (!%p423_p9), 1046528   ;;  %vm576_vm4 = vcmask (!%p423_p9), 1040384   ;;  %vm588_vm5 = vcmask (!%p423_p9), 1045504   ;;  %vm569_vm6 = vcmask (!%p423_p9), 1041408  }
  0x18   : > { %1677 = vmatprep.mubr.msk.bf16.mxu0 (!%p423_p9), %vm1989_vm0, %v1988_v1  ;;  %1691 = vmatprep.mubr.msk.bf16.mxu1 (!%p423_p9), %vm1989_vm0, %v1988_v1  ;;  %s2573_s0 = sld [smem:[#allocation9_spill]] (!%p423_p9)  ;;  %s2574_s3 = sld [smem:[#allocation12_spill]] (!%p423_p9)  ;;  %vm625_vm7 = vcmask (!%p423_p9), 392192   ;;  %vm628_vm8 = vcmask (!%p423_p9), 523264   ;;  %vm668_vm9 = vcmask (!%p423_p9), 654336   ;;  %v1836_v59 = vld [vmem:[%s2547_s5] sm:$0xff] (!%p423_p9)  }
  0x19   : > { %s2575_s2 = sld [smem:[#allocation11_spill]] (!%p423_p9)  ;;  %s1991_s27 = smov (!%p423_p9), 16   ;;  %v1994_v60 = vmov (!%p423_p9), 0   ;;  %v1837_v61 = vld [vmem:[%s2547_s5 + $0x8] sm:$0xff] (!%p423_p9)   ;;  %v1838_v62 = vld [vmem:[%s2547_s5 + $0x10] sm:$0xff] (!%p423_p9)   ;;  %v1839_v63 = vld [vmem:[%s2547_s5 + $0x18] sm:$0xff] (!%p423_p9)  }
  0x1a   : > { %s2558_s22 = smov (!%p423_p9), 32   ;;  %s2576_s4 = sld [smem:[#allocation13_spill]] (!%p423_p9)  ;;  %vm784_vm10 = vcmask (!%p423_p9), 785408  }
  0x1b   : > { %s2577_s21 = smov (!%p423_p9), 64  }
  0x1c   : > { %v1829_v0 = vld [vmem:[%s2572_s1] sm:$0xff] (!%p423_p9)   ;;  %v1830_v2 = vld [vmem:[%s2572_s1 + $0x8] sm:$0xff] (!%p423_p9)   ;;  %s2560_s1 = smov (!%p423_p9), 64  }
  0x1d   : > { %1674 = vmatpush3.bf16.msra.mxu0 (!%p423_p9), %v1829_v0  ;;  %v1840_v0 = vld [vmem:[%s2547_s5 + $0x20] sm:$0xff] (!%p423_p9)  }
  0x1e   : > { %1675 = vmatprep.subr.bf16.mxu0 %v1988_v1  ;;  %s2587_s18 = smov (!%p474_p10, %s1593_s18), 3  ;;  %v1831_v6 = vld [vmem:[%s2574_s3] sm:$0xff]   ;;  %v1832_v7 = vld [vmem:[%s2574_s3 + $0x8] sm:$0xff]   ;;  %v1833_v8 = vld [vmem:[%s2574_s3 + $0x10] sm:$0xff]  }
  0x1f   : > { %s1594_s20 = sshll.u32 %s2587_s18, 3  ;;  %1682 = vmatpush3.bf16.msra.mxu1 %v1831_v6  ;;  %s2141_s18 = sand.u32 1, %s1978_s30   ;;  %v1595_v9 = vld [vmem:[%s2575_s2] ss:$0 sm:$0xff]  ;;  %v1834_v11 = vld [vmem:[%s2574_s3 + $0x18] sm:$0xff]  }
  0x20   : > { %s477_s26 = scalar_lea.vmem %s2573_s0, %s1594_s20  ;;  %1683 = vmatprep.subr.bf16.mxu1 %v1988_v1  ;;  %s2557_s25 = sshll.u32 %s2141_s18, 4  ;;  %v1835_v18 = vld [vmem:[%s2574_s3 + $0x20] sm:$0xff]  }
  0x21   : > { %1676 = vmatpush3.bf16.msra.mxu0 %v1830_v2  ;;  %v482_v3 = vld [vmem:[%s477_s26] sm:$0xff]  ;;  %v483_v4 = vld [vmem:[%s477_s26 + $0x8] sm:$0xff]  ;;  %s2160_s28 = scalar_lea.vmem [#allocation2], %s2557_s25  ;;  %s1990_s26 = smov 48   ;;  %v1842_v2 = vld [vmem:[%s2547_s5 + $0x30] sm:$0xff]  }
  0x22   : > { %v484_v5 = vpack.c.bf16 %v483_v4, %v482_v3  ;;  %858 = vmatprep.subr.bf16.mxu0 %v1994_v60  ;;  %v1599_v3 = vld [vmem:[%s2576_s4] ss:$0 sm:$0xff]  ;;  %s2579_s3 = smov 96   ;;  %s1477_s4 = sshll.u32 %s2160_s28, 4  ;;  %s2451_s4 = int_to_ptr.vmem [resolvable:$true] %s1477_s4 }
  0x23   : > { %1684 = vmatpush3.bf16.msra.mxu1 %v1832_v7  ;;  %s1892_s2 = scalar_lea.vmem %s2451_s4, 256 }
  0x24   : > { %1678 = vmatmul.mubr.msk.bf16.vlgmr.msra.gmra.mrb[0].mxu0 %vm508_vm1, %v484_v5  ;;  %1685 = vmatprep.subr.bf16.mxu1 %v1988_v1  ;;  %p1893_p11 = scmp.ne.s32.totalorder %s2451_s4, %s1892_s2 }
  0x25   : > { %859 = vmatpush1.bf16.msra.mxu0 %v1836_v59  ;;  %v1852_v59 = vld [vmem:[%s2549_s7 + $0x30] sm:$0xff]  }
  0x26   : > { %860 = vmatprep.subr.bf16.mxu0 %v1994_v60  ;;  %p1894_p12 = pnand %p1893_p11, %p2113_p5 }
  0x27   : > { %1686 = vmatpush3.bf16.msra.mxu1 %v1833_v8 }
  0x28   : > { %1687 = vmatprep.subr.bf16.mxu1 %v1988_v1  ;;  %p1895_p13 = pneg %p1894_p12 }
  0x29   : > { %861 = vmatpush1.bf16.msra.mxu0 %v1837_v61  ;;  %v1606_v61 = vld [vmem:[%s2548_s6] ss:$0 sm:$0xff] }
  0x2a   : > { %862 = vmatprep.subr.bf16.mxu0 %v1994_v60 }
  0x2b   : > { %1688 = vmatpush3.bf16.msra.mxu1 %v1834_v11  ;;  %v1844_v11 = vld [vmem:[%s2547_s5 + $0x40] sm:$0xff]  }
  0x2c   : > { %1689 = vmatprep.subr.bf16.mxu1 %v1988_v1  ;;  %v1841_v1 = vld [vmem:[%s2547_s5 + $0x28] sm:$0xff]  }
  0x2d   : > { %863 = vmatpush1.bf16.msra.mxu0 %v1838_v62 }
  0x2e   : > { %864 = vmatprep.subr.bf16.mxu0 %v1994_v60 }
  0x2f   : > { %1690 = vmatpush3.bf16.msra.mxu1 %v1835_v18 }
  0x30   : > { %1043 = vmatprep.subr.bf16.mxu1 %v1994_v60 }
  0x31   : > { %865 = vmatpush1.bf16.msra.mxu0 %v1839_v63 }
  0x32   : > { %866 = vmatprep.subr.bf16.mxu0 %v1994_v60 }
  0x35   : > { %867 = vmatpush1.bf16.msra.mxu0 %v1840_v0 }
  0x36   : > { %868 = vmatprep.subr.bf16.mxu0 %v1994_v60 }
  0x39   : > { %869 = vmatpush1.bf16.msra.mxu0 %v1841_v1 }
  0x3a   : > { %870 = vmatprep.subr.bf16.mxu0 %v1994_v60 }
  0x3d   : > { %871 = vmatpush1.bf16.msra.mxu0 %v1842_v2 }
  0x3e   : > { %872 = vmatprep.subr.bf16.mxu0 %v1994_v60 }
  0xf7   : > { %v546_v10 = vpop.f32.mrb[0].mxu0 }
  0xf8   : > { %v2153_v12 = vadd.f32 %v1595_v9, %v546_v10  ;;  %v1679_v13 = vpop.f32.mrb[1].mxu0  ;;  %v1843_v10 = vld [vmem:[%s2547_s5 + $0x38] sm:$0xff]  }
  0xf9   : > { %v549_v14 = vpop.f32.mrb[2].mxu0  ;;  %873 = vmatpush1.bf16.msra.mxu0 %v1843_v10 }
  0xfa   : > { %v2155_v15 = vadd.f32 %v1595_v9, %v549_v14  ;;  %v1680_v16 = vpop.f32.mrb[3].mxu0  ;;  %v577_v17 = vrot.slane %v2153_v12, 7  ;;  %554 = vst.msk [vmem:[%s2160_s28] sm:$0xff] %vm553_vm2, %v2153_v12  ;;  %v583_v19 = vrot.slane %v2153_v12, 1  ;;  %v589_v23 = vrot.slane %v2153_v12, 2  ;;  %874 = vmatprep.subr.bf16.mxu0 %v1994_v60 }
  0xfb   : > { %v570_v36 = vrot.slane %v2153_v12, 6  ;;  %v1845_v16 = vld [vmem:[%s2547_s5 + $0x48] sm:$0xff]  }
  0xfc   : > { %v584_v20 = vrot.slane %v2155_v15, 1  ;;  %v578_v21 = vrot.slane %v2155_v15, 7  ;;  %v590_v22 = vrot.slane %v2155_v15, 2  ;;  %555 = vst.msk [vmem:[%s2160_s28 + $0x8] sm:$0xff] %vm553_vm2, %v2155_v15  ;;  %v581_v27 = vsel %vm576_vm4, 0.0, %v577_v17 }
  0xfd   : > { %v1754_v33 = vpack.i.bf16 %v2155_v15, %v2153_v12  ;;  %v571_v37 = vrot.slane %v2155_v15, 6  ;;  %v575_v42 = vsel %vm569_vm6, 0.0, %v570_v36  ;;  %875 = vmatpush1.bf16.msra.mxu0 %v1844_v11 }
  0xfe   : > { %v585_v24 = vsel %vm582_vm3, %v583_v19, %v584_v20  ;;  %v587_v25 = vsel %vm582_vm3, %v584_v20, 0.0  ;;  %v579_v26 = vsel %vm576_vm4, %v577_v17, %v578_v21  ;;  %v591_v30 = vsel %vm588_vm5, %v589_v23, %v590_v22  ;;  %876 = vmatprep.subr.bf16.mxu0 %v1994_v60 }
  0xff   : > { %v1759_v28 = vpack.i.bf16 %v587_v25, %v585_v24  ;;  %v1749_v29 = vpack.i.bf16 %v579_v26, %v581_v27  ;;  %v593_v31 = vsel %vm588_vm5, %v590_v22, 0.0  ;;  %v572_v43 = vsel %vm569_vm6, %v570_v36, %v571_v37 }
 0x100   : > { %v1764_v32 = vpack.i.bf16 %v593_v31, %v591_v30 }
 0x101   : > { %1760 = vrot.lane.b32.xlu1 %v1759_v28, %s1990_s26  ;;  %1750 = vrot.lane.b32.xlu0 %v1749_v29, %s1991_s27  ;;  %s2578_s26 = smov 32   ;;  %s2562_s27 = smov 96  }
 0x102   : > { %877 = vmatpush1.bf16.msra.mxu0 %v1845_v16 }
 0x103   : > { %1228 = vmatprep.subr.bf16.mxu0 %v1994_v60 }
 0x105   : > { %1765 = vrot.lane.b32.xlu1 %v1764_v32, %s2560_s1  ;;  %1755 = vrot.lane.b32.xlu0 %v1754_v33, %s2558_s22  ;;  %s1996_s1 = smov [#allocation2]  }
 0x106   : > { %s1896_s25 = sshll.u32 %s1996_s1, 4  ;;  %s1897_s25 = int_to_ptr.vmem [resolvable:$false] %s1896_s25 }
 0x107   : > { %s1898_s22 = scalar_lea.vmem %s1897_s25, 512  ;;  %p1899_p0 = scmp.lt.s32.totalorder %s2451_s4, %s1897_s25 }
 0x108   : > { %p1900_p1 = scmp.lt.s32.totalorder %s1898_s22, %s1892_s2 }
 0x10a   : > { %p1901_p2 = por %p1900_p1, %p1899_p0 }
 0x10c   : > { %p1902_p3 = pnand %p1901_p2, %p1895_p13 }
 0x173   : > { %v1761_v34 = vpop.permute.xlu1 %1760  ;;  %v1751_v35 = vpop.permute.xlu0 %1750 }
 0x174   : > { %v1753_v38 = vunpack.i.h.bf16 %v1751_v35  ;;  %v1752_v39 = vunpack.i.l.bf16 %v1751_v35  ;;  %v1763_v46 = vunpack.i.h.bf16 %v1761_v34  ;;  %v1762_v47 = vunpack.i.l.bf16 %v1761_v34 }
 0x176   : > { %v621_v48 = vsel %vm553_vm2, %v575_v42, %v1752_v39  ;;  %v622_v49 = vsel %vm553_vm2, %v572_v43, %v1753_v38 }
 0x177   : > { %v1766_v40 = vpop.permute.xlu1 %1765  ;;  %v1756_v41 = vpop.permute.xlu0 %1755 }
 0x178   : > { %v1758_v44 = vunpack.i.h.bf16 %v1756_v41  ;;  %v1757_v45 = vunpack.i.l.bf16 %v1756_v41  ;;  %v1768_v50 = vunpack.i.h.bf16 %v1766_v40  ;;  %v1767_v51 = vunpack.i.l.bf16 %v1766_v40 }
 0x17a   : > { %v623_v52 = vsel %vm508_vm1, %v621_v48, %v1757_v45  ;;  %v624_v53 = vsel %vm508_vm1, %v622_v49, %v1758_v44 }
 0x17b   : > { %v626_v54 = vsel %vm625_vm7, %v623_v52, %v1762_v47  ;;  %v627_v55 = vsel %vm625_vm7, %v624_v53, %v1763_v46  ;;  %v1846_v53 = vld [vmem:[%s2549_s7] sm:$0xff]  }
 0x17c   : > { %v629_v56 = vsel %vm628_vm8, %v626_v54, %v1767_v51  ;;  %v630_v57 = vsel %vm628_vm8, %v627_v55, %v1768_v50  ;;  %v1847_v54 = vld [vmem:[%s2549_s7 + $0x8] sm:$0xff]   ;;  %v1848_v55 = vld [vmem:[%s2549_s7 + $0x10] sm:$0xff]  }
 0x17d   : > { %v631_v58 = vpack.c.bf16 %v630_v57, %v629_v56  ;;  %v1849_v56 = vld [vmem:[%s2549_s7 + $0x18] sm:$0xff]   ;;  %v1850_v57 = vld [vmem:[%s2549_s7 + $0x20] sm:$0xff]  }
 0x17f   : > { %1692 = vmatmul.mubr.msk.bf16.vlgmr.msra.gmra.mrb[0].mxu1 %vm668_vm9, %v631_v58  ;;  %v1851_v58 = vld [vmem:[%s2549_s7 + $0x28] sm:$0xff]  }
 0x180   : > { %1044 = vmatpush1.bf16.msra.mxu1 %v1846_v53  ;;  %v1862_v53 = vld [vmem:[%s2551_s9 + $0x30] sm:$0xff]  }
 0x181   : > { %1045 = vmatprep.subr.bf16.mxu1 %v1994_v60 }
 0x184   : > { %1046 = vmatpush1.bf16.msra.mxu1 %v1847_v54  ;;  %v1618_v54 = vld [vmem:[%s2550_s8] ss:$0 sm:$0xff] }
 0x185   : > { %1047 = vmatprep.subr.bf16.mxu1 %v1994_v60 }
 0x188   : > { %1048 = vmatpush1.bf16.msra.mxu1 %v1848_v55 }
 0x189   : > { %1049 = vmatprep.subr.bf16.mxu1 %v1994_v60 }
 0x18c   : > { %1050 = vmatpush1.bf16.msra.mxu1 %v1849_v56 }
 0x18d   : > { %1051 = vmatprep.subr.bf16.mxu1 %v1994_v60 }
 0x190   : > { %1052 = vmatpush1.bf16.msra.mxu1 %v1850_v57 }
 0x191   : > { %1053 = vmatprep.subr.bf16.mxu1 %v1994_v60 }
 0x194   : > { %1054 = vmatpush1.bf16.msra.mxu1 %v1851_v58 }
 0x195   : > { %1055 = vmatprep.subr.bf16.mxu1 %v1994_v60 }
 0x198   : > { %1056 = vmatpush1.bf16.msra.mxu1 %v1852_v59 }
 0x199   : > { %1057 = vmatprep.subr.bf16.mxu1 %v1994_v60 }
 0x252   : > { %v706_v4 = vpop.f32.mrb[0].mxu1 }
 0x253   : > { %v707_v5 = vadd.f32 %v1599_v3, %v706_v4  ;;  %v1693_v6 = vpop.f32.mrb[1].mxu1  ;;  %v1853_v4 = vld [vmem:[%s2549_s7 + $0x38] sm:$0xff]  }
 0x254   : > { %v709_v7 = vpop.f32.mrb[2].mxu1  ;;  %1058 = vmatpush1.bf16.msra.mxu1 %v1853_v4 }
 0x255   : > { %1876 = vtanh.f32 %v707_v5  ;;  %v710_v8 = vadd.f32 %v1599_v3, %v709_v7  ;;  %v1694_v9 = vpop.f32.mrb[3].mxu1  ;;  %1059 = vmatprep.subr.bf16.mxu1 %v1994_v60  ;;  %v1854_v5 = vld [vmem:[%s2549_s7 + $0x40] sm:$0xff]  }
 0x257   : > { %1878 = vtanh.f32 %v710_v8  ;;  %v1855_v8 = vld [vmem:[%s2549_s7 + $0x48] sm:$0xff]  }
 0x258   : > { %1060 = vmatpush1.bf16.msra.mxu1 %v1854_v5 }
 0x259   : > { %1061 = vmatprep.subr.bf16.mxu1 %v1994_v60 }
 0x25c   : > { %1062 = vmatpush1.bf16.msra.mxu1 %v1855_v8 }
 0x25d   : > { %1413 = vmatprep.subr.bf16.mxu1 %v1994_v60 }
 0x25f   : > { %v1877_v13 = vpop.eup %1876 }
 0x260   : > { %v744_v14 = vrot.slane %v1877_v13, 7  ;;  %v754_v19 = vrot.slane %v1877_v13, 2  ;;  %v749_v22 = vrot.slane %v1877_v13, 1  ;;  %v738_v24 = vrot.slane %v1877_v13, 6 }
 0x261   : > { %v1879_v17 = vpop.eup %1878 }
 0x262   : > { %v1769_v18 = vpack.i.bf16 %v1879_v17, %v1877_v13  ;;  %v755_v20 = vrot.slane %v1879_v17, 2  ;;  %v745_v21 = vrot.slane %v1879_v17, 7  ;;  %v750_v23 = vrot.slane %v1879_v17, 1 }
 0x263   : > { %v739_v25 = vrot.slane %v1879_v17, 6  ;;  %v748_v29 = vsel %vm576_vm4, 0.0, %v744_v14  ;;  %v743_v40 = vsel %vm569_vm6, 0.0, %v738_v24 }
 0x264   : > { %1770 = vrot.lane.b32.xlu1 %v1769_v18, %s2577_s21  ;;  %v756_v26 = vsel %vm588_vm5, %v754_v19, %v755_v20  ;;  %v759_v27 = vsel %vm588_vm5, %v755_v20, 0.0  ;;  %v746_v28 = vsel %vm576_vm4, %v744_v14, %v745_v21  ;;  %v751_v32 = vsel %vm582_vm3, %v749_v22, %v750_v23 }
 0x265   : > { %v788_v30 = vpack.c.bf16 %v759_v27, %v756_v26  ;;  %v1774_v31 = vpack.i.bf16 %v746_v28, %v748_v29  ;;  %v753_v33 = vsel %vm582_vm3, %v750_v23, 0.0  ;;  %v740_v35 = vsel %vm569_vm6, %v738_v24, %v739_v25 }
 0x266   : > { %v1779_v34 = vpack.i.bf16 %v753_v33, %v751_v32 }
 0x267   : > { %1617 = vmatprep.mubr.msk.bf16.mxu0 %vm508_vm1, %v788_v30  ;;  %1775 = vrot.lane.b32.xlu0 %v1774_v31, %s2578_s26 }
 0x26b   : > { %1780 = vrot.lane.b32.xlu0 %v1779_v34, %s2562_s27  ;;  %s1459_s27 = scalar_lea.sflag [#allocation3], %s2141_s18 }
 0x2d6   : > { %v1771_v37 = vpop.permute.xlu1 %1770 }
 0x2d7   : > { %v1773_v43 = vunpack.i.h.bf16 %v1771_v37  ;;  %v1772_v44 = vunpack.i.l.bf16 %v1771_v37 }
 0x2d9   : > { %v1776_v36 = vpop.permute.xlu0 %1775 }
 0x2da   : > { %v1778_v38 = vunpack.i.h.bf16 %v1776_v36  ;;  %v1777_v39 = vunpack.i.l.bf16 %v1776_v36 }
 0x2dc   : > { %v780_v41 = vsel %vm508_vm1, %v743_v40, %v1777_v39  ;;  %v781_v42 = vsel %vm508_vm1, %v740_v35, %v1778_v38 }
 0x2dd   : > { %v1781_v45 = vpop.permute.xlu0 %1780  ;;  %v782_v48 = vsel %vm628_vm8, %v780_v41, %v1772_v44  ;;  %v783_v49 = vsel %vm628_vm8, %v781_v42, %v1773_v43 }
 0x2de   : > { %v1783_v46 = vunpack.i.h.bf16 %v1781_v45  ;;  %v1782_v47 = vunpack.i.l.bf16 %v1781_v45 }
 0x2e0   : > { %v785_v50 = vsel %vm784_vm10, %v782_v48, %v1782_v47  ;;  %v786_v51 = vsel %vm784_vm10, %v783_v49, %v1783_v46  ;;  %v1856_v47 = vld [vmem:[%s2551_s9] sm:$0xff]   ;;  %v1857_v48 = vld [vmem:[%s2551_s9 + $0x8] sm:$0xff]   ;;  %v1858_v49 = vld [vmem:[%s2551_s9 + $0x10] sm:$0xff]  }
 0x2e1   : > { %v787_v52 = vpack.c.bf16 %v786_v51, %v785_v50  ;;  %v1859_v50 = vld [vmem:[%s2551_s9 + $0x18] sm:$0xff]   ;;  %v1860_v51 = vld [vmem:[%s2551_s9 + $0x20] sm:$0xff]  }
 0x2e3   : > { %891 = vmatmul.mubr.bf16.vlgmr.msra.gmra.mrb[4].mxu0 %v787_v52  ;;  %v1861_v52 = vld [vmem:[%s2551_s9 + $0x28] sm:$0xff]  }
 0x2e4   : > { %1229 = vmatpush1.bf16.msra.mxu0 %v1856_v47  ;;  %v1872_v47 = vld [vmem:[%s2553_s11 + $0x30] sm:$0xff]  }
 0x2e5   : > { %1230 = vmatprep.subr.bf16.mxu0 %v1994_v60 }
 0x2e8   : > { %1231 = vmatpush1.bf16.msra.mxu0 %v1857_v48  ;;  %v1630_v48 = vld [vmem:[%s2552_s10] ss:$0 sm:$0xff] }
 0x2e9   : > { %1232 = vmatprep.subr.bf16.mxu0 %v1994_v60 }
 0x2ec   : > { %1233 = vmatpush1.bf16.msra.mxu0 %v1858_v49 }
 0x2ed   : > { %1234 = vmatprep.subr.bf16.mxu0 %v1994_v60 }
 0x2f0   : > { %1235 = vmatpush1.bf16.msra.mxu0 %v1859_v50 }
 0x2f1   : > { %1236 = vmatprep.subr.bf16.mxu0 %v1994_v60 }
 0x2f4   : > { %1237 = vmatpush1.bf16.msra.mxu0 %v1860_v51 }
 0x2f5   : > { %1238 = vmatprep.subr.bf16.mxu0 %v1994_v60 }
 0x2f8   : > { %1239 = vmatpush1.bf16.msra.mxu0 %v1861_v52 }
 0x2f9   : > { %1240 = vmatprep.subr.bf16.mxu0 %v1994_v60 }
 0x2fc   : > { %1241 = vmatpush1.bf16.msra.mxu0 %v1862_v53 }
 0x2fd   : > { %1242 = vmatprep.subr.bf16.mxu0 %v1994_v60 }
 0x3b6   : > { %v892_v62 = vpop.f32.mrb[4].mxu0 }
 0x3b7   : > { %v893_v63 = vadd.f32 %v1606_v61, %v892_v62  ;;  %v894_v0 = vpop.f32.mrb[5].mxu0  ;;  %v1863_v62 = vld [vmem:[%s2551_s9 + $0x38] sm:$0xff]  }
 0x3b8   : > { %v895_v1 = vpop.f32.mrb[6].mxu0  ;;  %1243 = vmatpush1.bf16.msra.mxu0 %v1863_v62 }
 0x3b9   : > { %1880 = vtanh.f32 %v893_v63  ;;  %v896_v2 = vadd.f32 %v1606_v61, %v895_v1  ;;  %v897_v3 = vpop.f32.mrb[7].mxu0  ;;  %1244 = vmatprep.subr.bf16.mxu0 %v1994_v60  ;;  %v1864_v63 = vld [vmem:[%s2551_s9 + $0x40] sm:$0xff]  }
 0x3bb   : > { %1882 = vtanh.f32 %v896_v2  ;;  %v1865_v2 = vld [vmem:[%s2551_s9 + $0x48] sm:$0xff]  }
 0x3bc   : > { %1245 = vmatpush1.bf16.msra.mxu0 %v1864_v63 }
 0x3bd   : > { %1246 = vmatprep.subr.bf16.mxu0 %v1994_v60 }
 0x3c0   : > { %1247 = vmatpush1.bf16.msra.mxu0 %v1865_v2 }
 0x3c3   : > { %v1881_v6 = vpop.eup %1880 }
 0x3c4   : > { %v930_v7 = vrot.slane %v1881_v6, 7  ;;  %v940_v11 = vrot.slane %v1881_v6, 2  ;;  %v935_v16 = vrot.slane %v1881_v6, 1  ;;  %v924_v19 = vrot.slane %v1881_v6, 6 }
 0x3c5   : > { %v1883_v9 = vpop.eup %1882 }
 0x3c6   : > { %v1784_v10 = vpack.i.bf16 %v1883_v9, %v1881_v6  ;;  %v941_v13 = vrot.slane %v1883_v9, 2  ;;  %v931_v14 = vrot.slane %v1883_v9, 7  ;;  %v936_v17 = vrot.slane %v1883_v9, 1 }
 0x3c7   : > { %v925_v18 = vrot.slane %v1883_v9, 6  ;;  %v934_v23 = vsel %vm576_vm4, 0.0, %v930_v7  ;;  %v929_v34 = vsel %vm569_vm6, 0.0, %v924_v19 }
 0x3c8   : > { %1785 = vrot.lane.b32.xlu0 %v1784_v10, %s2577_s21  ;;  %v942_v20 = vsel %vm588_vm5, %v940_v11, %v941_v13  ;;  %v945_v21 = vsel %vm588_vm5, %v941_v13, 0.0  ;;  %v932_v22 = vsel %vm576_vm4, %v930_v7, %v931_v14  ;;  %v937_v26 = vsel %vm582_vm3, %v935_v16, %v936_v17 }
 0x3c9   : > { %v973_v24 = vpack.c.bf16 %v945_v21, %v942_v20  ;;  %v1789_v25 = vpack.i.bf16 %v932_v22, %v934_v23  ;;  %v939_v27 = vsel %vm582_vm3, %v936_v17, 0.0  ;;  %v926_v29 = vsel %vm569_vm6, %v924_v19, %v925_v18 }
 0x3ca   : > { %v1794_v28 = vpack.i.bf16 %v939_v27, %v937_v26 }
 0x3cb   : > { %1629 = vmatprep.mubr.msk.bf16.mxu1 %vm508_vm1, %v973_v24  ;;  %1790 = vrot.lane.b32.xlu1 %v1789_v25, %s2578_s26 }
 0x3cf   : > { %1795 = vrot.lane.b32.xlu1 %v1794_v28, %s2579_s3 }
 0x43a   : > { %v1786_v31 = vpop.permute.xlu0 %1785 }
 0x43b   : > { %v1788_v37 = vunpack.i.h.bf16 %v1786_v31  ;;  %v1787_v38 = vunpack.i.l.bf16 %v1786_v31 }
 0x43d   : > { %v1791_v30 = vpop.permute.xlu1 %1790 }
 0x43e   : > { %v1793_v32 = vunpack.i.h.bf16 %v1791_v30  ;;  %v1792_v33 = vunpack.i.l.bf16 %v1791_v30 }
 0x440   : > { %v966_v35 = vsel %vm508_vm1, %v929_v34, %v1792_v33  ;;  %v967_v36 = vsel %vm508_vm1, %v926_v29, %v1793_v32 }
 0x441   : > { %v1796_v39 = vpop.permute.xlu1 %1795  ;;  %v968_v42 = vsel %vm628_vm8, %v966_v35, %v1787_v38  ;;  %v969_v43 = vsel %vm628_vm8, %v967_v36, %v1788_v37 }
 0x442   : > { %v1798_v40 = vunpack.i.h.bf16 %v1796_v39  ;;  %v1797_v41 = vunpack.i.l.bf16 %v1796_v39 }
 0x444   : > { %v970_v44 = vsel %vm784_vm10, %v968_v42, %v1797_v41  ;;  %v971_v45 = vsel %vm784_vm10, %v969_v43, %v1798_v40  ;;  %v1866_v41 = vld [vmem:[%s2553_s11] sm:$0xff]   ;;  %v1867_v42 = vld [vmem:[%s2553_s11 + $0x8] sm:$0xff]   ;;  %v1868_v43 = vld [vmem:[%s2553_s11 + $0x10] sm:$0xff]  }
 0x445   : > { %v972_v46 = vpack.c.bf16 %v971_v45, %v970_v44  ;;  %v1869_v44 = vld [vmem:[%s2553_s11 + $0x18] sm:$0xff]   ;;  %v1870_v45 = vld [vmem:[%s2553_s11 + $0x20] sm:$0xff]  }
 0x447   : > { %1076 = vmatmul.mubr.bf16.vlgmr.msra.gmra.mrb[4].mxu1 %v972_v46  ;;  %v1871_v46 = vld [vmem:[%s2553_s11 + $0x28] sm:$0xff]  }
 0x448   : > { %1414 = vmatpush1.bf16.msra.mxu1 %v1866_v41 }
 0x449   : > { %1415 = vmatprep.subr.bf16.mxu1 %v1994_v60 }
 0x44c   : > { %1416 = vmatpush1.bf16.msra.mxu1 %v1867_v42 }
 0x44d   : > { %1417 = vmatprep.subr.bf16.mxu1 %v1994_v60 }
 0x450   : > { %1418 = vmatpush1.bf16.msra.mxu1 %v1868_v43 }
 0x451   : > { %1419 = vmatprep.subr.bf16.mxu1 %v1994_v60 }
 0x454   : > { %1420 = vmatpush1.bf16.msra.mxu1 %v1869_v44 }
 0x455   : > { %1421 = vmatprep.subr.bf16.mxu1 %v1994_v60 }
 0x458   : > { %1422 = vmatpush1.bf16.msra.mxu1 %v1870_v45 }
 0x459   : > { %1423 = vmatprep.subr.bf16.mxu1 %v1994_v60 }
 0x45c   : > { %1424 = vmatpush1.bf16.msra.mxu1 %v1871_v46 }
 0x45d   : > { %1425 = vmatprep.subr.bf16.mxu1 %v1994_v60 }
 0x460   : > { %1426 = vmatpush1.bf16.msra.mxu1 %v1872_v47 }
 0x461   : > { %1427 = vmatprep.subr.bf16.mxu1 %v1994_v60 }
 0x51a   : > { %v1077_v55 = vpop.f32.mrb[4].mxu1 }
 0x51b   : > { %v1078_v56 = vadd.f32 %v1618_v54, %v1077_v55  ;;  %v1079_v57 = vpop.f32.mrb[5].mxu1  ;;  %v1873_v55 = vld [vmem:[%s2553_s11 + $0x38] sm:$0xff]  }
 0x51c   : > { %v1080_v58 = vpop.f32.mrb[6].mxu1  ;;  %1428 = vmatpush1.bf16.msra.mxu1 %v1873_v55 }
 0x51d   : > { %1884 = vtanh.f32 %v1078_v56  ;;  %v1081_v59 = vadd.f32 %v1618_v54, %v1080_v58  ;;  %v1082_v61 = vpop.f32.mrb[7].mxu1  ;;  %1429 = vmatprep.subr.bf16.mxu1 %v1994_v60  ;;  %v1874_v56 = vld [vmem:[%s2553_s11 + $0x40] sm:$0xff]  }
 0x51f   : > { %1886 = vtanh.f32 %v1081_v59  ;;  %v1875_v59 = vld [vmem:[%s2553_s11 + $0x48] sm:$0xff]  }
 0x520   : > { %1430 = vmatpush1.bf16.msra.mxu1 %v1874_v56 }
 0x521   : > { %1431 = vmatprep.subr.bf16.mxu1 %v1994_v60 }
 0x524   : > { %1432 = vmatpush1.bf16.msra.mxu1 %v1875_v59 }
 0x527   : > { %v1885_v0 = vpop.eup %1884 }
 0x528   : > { %v1115_v1 = vrot.slane %v1885_v0, 7  ;;  %v1125_v5 = vrot.slane %v1885_v0, 2  ;;  %v1120_v8 = vrot.slane %v1885_v0, 1  ;;  %v1109_v11 = vrot.slane %v1885_v0, 6 }
 0x529   : > { %v1887_v3 = vpop.eup %1886 }
 0x52a   : > { %v1799_v4 = vpack.i.bf16 %v1887_v3, %v1885_v0  ;;  %v1126_v6 = vrot.slane %v1887_v3, 2  ;;  %v1116_v7 = vrot.slane %v1887_v3, 7  ;;  %v1121_v9 = vrot.slane %v1887_v3, 1 }
 0x52b   : > { %v1110_v10 = vrot.slane %v1887_v3, 6  ;;  %v1119_v17 = vsel %vm576_vm4, 0.0, %v1115_v1  ;;  %v1114_v28 = vsel %vm569_vm6, 0.0, %v1109_v11 }
 0x52c   : > { %1800 = vrot.lane.b32.xlu1 %v1799_v4, %s2577_s21  ;;  %v1127_v13 = vsel %vm588_vm5, %v1125_v5, %v1126_v6  ;;  %v1130_v14 = vsel %vm588_vm5, %v1126_v6, 0.0  ;;  %v1117_v16 = vsel %vm576_vm4, %v1115_v1, %v1116_v7  ;;  %v1122_v20 = vsel %vm582_vm3, %v1120_v8, %v1121_v9 }
 0x52d   : > { %v1158_v18 = vpack.c.bf16 %v1130_v14, %v1127_v13  ;;  %v1804_v19 = vpack.i.bf16 %v1117_v16, %v1119_v17  ;;  %v1124_v21 = vsel %vm582_vm3, %v1121_v9, 0.0  ;;  %v1111_v23 = vsel %vm569_vm6, %v1109_v11, %v1110_v10 }
 0x52e   : > { %v1809_v22 = vpack.i.bf16 %v1124_v21, %v1122_v20 }
 0x52f   : > { %1641 = vmatprep.mubr.msk.bf16.mxu0 %vm508_vm1, %v1158_v18  ;;  %1805 = vrot.lane.b32.xlu0 %v1804_v19, %s2578_s26 }
 0x533   : > { %1810 = vrot.lane.b32.xlu0 %v1809_v22, %s2579_s3 }
 0x59e   : > { %v1801_v25 = vpop.permute.xlu1 %1800 }
 0x59f   : > { %v1803_v31 = vunpack.i.h.bf16 %v1801_v25  ;;  %v1802_v32 = vunpack.i.l.bf16 %v1801_v25 }
 0x5a1   : > { %v1806_v24 = vpop.permute.xlu0 %1805 }
 0x5a2   : > { %v1808_v26 = vunpack.i.h.bf16 %v1806_v24  ;;  %v1807_v27 = vunpack.i.l.bf16 %v1806_v24 }
 0x5a4   : > { %v1151_v29 = vsel %vm508_vm1, %v1114_v28, %v1807_v27  ;;  %v1152_v30 = vsel %vm508_vm1, %v1111_v23, %v1808_v26 }
 0x5a5   : > { %v1811_v33 = vpop.permute.xlu0 %1810  ;;  %v1153_v36 = vsel %vm628_vm8, %v1151_v29, %v1802_v32  ;;  %v1154_v37 = vsel %vm628_vm8, %v1152_v30, %v1803_v31 }
 0x5a6   : > { %v1813_v34 = vunpack.i.h.bf16 %v1811_v33  ;;  %v1812_v35 = vunpack.i.l.bf16 %v1811_v33 }
 0x5a8   : > { %v1155_v38 = vsel %vm784_vm10, %v1153_v36, %v1812_v35  ;;  %v1156_v39 = vsel %vm784_vm10, %v1154_v37, %v1813_v34 }
 0x5a9   : > { %v1157_v40 = vpack.c.bf16 %v1156_v39, %v1155_v38 }
 0x5ab   : > { %1261 = vmatmul.mubr.bf16.vlgmr.msra.gmra.mrb[8].mxu0 %v1157_v40 }
 0x67e   : > { %v1262_v49 = vpop.f32.mrb[8].mxu0 }
 0x67f   : > { %v1263_v50 = vadd.f32 %v1630_v48, %v1262_v49  ;;  %v1264_v51 = vpop.f32.mrb[9].mxu0 }
 0x680   : > { %v1265_v52 = vpop.f32.mrb[10].mxu0 }
 0x681   : > { %1888 = vtanh.f32 %v1263_v50  ;;  %v1266_v53 = vadd.f32 %v1630_v48, %v1265_v52  ;;  %v1267_v54 = vpop.f32.mrb[11].mxu0 }
 0x683   : > { %1890 = vtanh.f32 %v1266_v53 }
 0x68b   : > { %v1889_v57 = vpop.eup %1888 }
 0x68c   : > { %v1300_v58 = vrot.slane %v1889_v57, 7  ;;  %v1310_v63 = vrot.slane %v1889_v57, 2  ;;  %v1305_v2 = vrot.slane %v1889_v57, 1  ;;  %v1294_v5 = vrot.slane %v1889_v57, 6 }
 0x68d   : > { %v1891_v61 = vpop.eup %1890 }
 0x68e   : > { %v1819_v62 = vpack.i.bf16 %v1891_v61, %v1889_v57  ;;  %v1311_v0 = vrot.slane %v1891_v61, 2  ;;  %v1301_v1 = vrot.slane %v1891_v61, 7  ;;  %v1306_v3 = vrot.slane %v1891_v61, 1 }
 0x68f   : > { %v1295_v4 = vrot.slane %v1891_v61, 6  ;;  %v1304_v8 = vsel %vm576_vm4, 0.0, %v1300_v58  ;;  %v1299_v21 = vsel %vm569_vm6, 0.0, %v1294_v5 }
 0x690   : > { %1820 = vrot.lane.b32.xlu0 %v1819_v62, %s2577_s21  ;;  %v1312_v6 = vsel %vm588_vm5, %v1310_v63, %v1311_v0  ;;  %v1315_v60 = vsel %vm588_vm5, %v1311_v0, 0.0  ;;  %v1302_v7 = vsel %vm576_vm4, %v1300_v58, %v1301_v1  ;;  %v1307_v11 = vsel %vm582_vm3, %v1305_v2, %v1306_v3  ;;  %s1662_s21 = sshll.u32 %s2096_s17, 8 }
 0x691   : > { %v1343_v9 = vpack.c.bf16 %v1315_v60, %v1312_v6  ;;  %v1814_v10 = vpack.i.bf16 %v1302_v7, %v1304_v8  ;;  %v1309_v13 = vsel %vm582_vm3, %v1306_v3, 0.0  ;;  %v1296_v16 = vsel %vm569_vm6, %v1294_v5, %v1295_v4  ;;  %s2448_s0 = scalar_lea.hbm %s2555_s13, %s1662_s21 }
 0x692   : > { %v1824_v14 = vpack.i.bf16 %v1309_v13, %v1307_v11 }
 0x693   : > { %1653 = vmatprep.mubr.msk.bf16.mxu1 %vm508_vm1, %v1343_v9  ;;  %1815 = vrot.lane.b32.xlu1 %v1814_v10, %s2578_s26 }
 0x697   : > { %1825 = vrot.lane.b32.xlu1 %v1824_v14, %s2579_s3 }
 0x702   : > { %v1821_v18 = vpop.permute.xlu0 %1820 }
 0x703   : > { %v1823_v24 = vunpack.i.h.bf16 %v1821_v18  ;;  %v1822_v25 = vunpack.i.l.bf16 %v1821_v18 }
 0x705   : > { %v1816_v17 = vpop.permute.xlu1 %1815 }
 0x706   : > { %v1818_v19 = vunpack.i.h.bf16 %v1816_v17  ;;  %v1817_v20 = vunpack.i.l.bf16 %v1816_v17 }
 0x708   : > { %v1336_v22 = vsel %vm508_vm1, %v1299_v21, %v1817_v20  ;;  %v1337_v23 = vsel %vm508_vm1, %v1296_v16, %v1818_v19 }
 0x709   : > { %v1826_v26 = vpop.permute.xlu1 %1825  ;;  %v1338_v29 = vsel %vm628_vm8, %v1336_v22, %v1822_v25  ;;  %v1339_v30 = vsel %vm628_vm8, %v1337_v23, %v1823_v24 }
 0x70a   : > { %v1828_v27 = vunpack.i.h.bf16 %v1826_v26  ;;  %v1827_v28 = vunpack.i.l.bf16 %v1826_v26 }
 0x70c   : > { %v1340_v31 = vsel %vm784_vm10, %v1338_v29, %v1827_v28  ;;  %v1341_v32 = vsel %vm784_vm10, %v1339_v30, %v1828_v27 }
 0x70d   : > { %v1342_v33 = vpack.c.bf16 %v1341_v32, %v1340_v31 }
 0x70f   : > { %1446 = vmatmul.mubr.bf16.vlgmr.msra.gmra.mrb[8].mxu1 %v1342_v33 }
 0x710   : > { %1905 = shalt.err (!%p1902_p3)
}
 0x711   : > { %s1906_s28 = scalar_lea.hbm %s2448_s0, 256  ;;  %s1910_s3 = scalar_lea.hbm %s2555_s13, 512 }
 0x712   : > { %p1907_p4 = scmp.ne.s32.totalorder %s2448_s0, %s1906_s28  ;;  %p1911_p9 = scmp.lt.u32.totalorder %s2448_s0, %s2555_s13 }
 0x713   : > { %p1912_p10 = scmp.lt.u32.totalorder %s1910_s3, %s1906_s28  ;;  %p1914_p12 = scmp.lt.u32.totalorder %s1906_s28, %s2448_s0 }
 0x714   : > { %p1908_p7 = pnand %p1907_p4, %p2113_p5 }
 0x715   : > { %p1913_p11 = por %p1912_p10, %p1911_p9 }
 0x716   : > { %p1909_p8 = pneg %p1908_p7 }
 0x717   : > { %p1915_p13 = por %p1914_p12, %p1913_p11 }
 0x719   : > { %p1916_p0 = pnand %p1915_p13, %p1909_p8 }
 0x71b   : > { %1919 = shalt.err (!%p1916_p0)
}
 0x71c   : > { %s1997_s2 = smov 128   ;;  %s1998_s22 = smov 8   ;;  %v1642_v34 = vld [vmem:[%s2554_s12] ss:$0 sm:$0xff] }
 0x71d   : > { %1695 = dma.vmem_to_hbm [thread:$0]  (%p2113_p5), %s2451_s4, 256, %s2448_s0, %s1459_s27, %s1997_s2, %s1997_s2, %s1998_s22  }
 0x71e   : > { %s2580_s28 = sshll.u32 %s2141_s18, 4  ;;  %s2493_s27 = scalar_lea.hbm %s2556_s14, %s1662_s21 }
 0x71f   : > { %s472_s3 = scalar_lea.vmem [#allocation4], %s2580_s28  ;;  %s1464_s25 = scalar_lea.sflag [#allocation5], %s2141_s18 }
 0x720   : > { %s1493_s1 = sshll.u32 %s472_s3, 4  ;;  %s1999_s26 = smov [#allocation4]   ;;  %s2495_s1 = int_to_ptr.vmem [resolvable:$true] %s1493_s1 }
 0x721   : > { %s1920_s20 = scalar_lea.vmem %s2495_s1, 256  ;;  %s1924_s17 = sshll.u32 %s1999_s26, 4  ;;  %s1925_s17 = int_to_ptr.vmem [resolvable:$false] %s1924_s17 }
 0x722   : > { %p1921_p1 = scmp.ne.s32.totalorder %s2495_s1, %s1920_s20  ;;  %s1926_s28 = scalar_lea.vmem %s1925_s17, 512 }
 0x723   : > { %p1927_p4 = scmp.lt.s32.totalorder %s2495_s1, %s1925_s17  ;;  %p1928_p7 = scmp.lt.s32.totalorder %s1926_s28, %s1920_s20 }
 0x724   : > { %p1922_p2 = pnand %p1921_p1, %p2113_p5 }
 0x725   : > { %p1929_p8 = por %p1928_p7, %p1927_p4 }
 0x726   : > { %p1923_p3 = pneg %p1922_p2 }
 0x728   : > { %p1930_p9 = pnand %p1929_p8, %p1923_p3 }
 0x7e2   : > { %v1447_v35 = vpop.f32.mrb[8].mxu1 }
 0x7e3   : > { %v1448_v36 = vadd.f32 %v1642_v34, %v1447_v35  ;;  %v1449_v37 = vpop.f32.mrb[9].mxu1 }
 0x7e4   : > { %v1450_v38 = vpop.f32.mrb[10].mxu1 }
 0x7e5   : > { %v1454_v39 = vadd.f32 %v1448_v36, %v2153_v12  ;;  %v1451_v40 = vadd.f32 %v1642_v34, %v1450_v38  ;;  %v1452_v41 = vpop.f32.mrb[11].mxu1 }
 0x7e7   : > { %1456 = vst.msk [vmem:[%s472_s3] sm:$0xff] %vm553_vm2, %v1454_v39  ;;  %v1455_v42 = vadd.f32 %v1451_v40, %v2155_v15 }
 0x7e9   : > { %1457 = vst.msk [vmem:[%s472_s3 + $0x8] sm:$0xff] %vm553_vm2, %v1455_v42 }
 0x7ea   : > { %1933 = shalt.err (!%p1930_p9)
}
 0x7eb   : > { %s1934_s21 = scalar_lea.hbm %s2493_s27, 256  ;;  %s1938_s4 = scalar_lea.hbm %s2556_s14, 512 }
 0x7ec   : > { %p1935_p10 = scmp.ne.s32.totalorder %s2493_s27, %s1934_s21  ;;  %p1939_p13 = scmp.lt.u32.totalorder %s2493_s27, %s2556_s14 }
 0x7ed   : > { %p1940_p0 = scmp.lt.u32.totalorder %s1938_s4, %s1934_s21  ;;  %p1942_p2 = scmp.lt.u32.totalorder %s1934_s21, %s2493_s27 }
 0x7ee   : > { %p1936_p11 = pnand %p1935_p10, %p2113_p5 }
 0x7ef   : > { %p1941_p1 = por %p1940_p0, %p1939_p13 }
 0x7f0   : > { %p1937_p12 = pneg %p1936_p11 }
 0x7f1   : > { %p1943_p3 = por %p1942_p2, %p1941_p1 }
 0x7f3   : > { %p1944_p4 = pnand %p1943_p3, %p1937_p12 }
 0x7f5   : > { %1947 = shalt.err (!%p1944_p4)
}
 0x7f6   : > { %1696 = dma.vmem_to_hbm [thread:$0]  (%p2113_p5), %s2495_s1, 256, %s2493_s27, %s1464_s25, %s1997_s2, %s1997_s2, %s1998_s22  }
 0x7f7 PF: > { %p1706_p7 = scmp.ge.s32.totalorder %s1986_s16, 2  ;;  %s1508_s20 = sand.u32 1, %s1974_s29  }
 0x7f8   : > { %s1509_s28 = scalar_lea.sflag [#allocation3], %s1508_s20 }
 0x7f9   : > { %p1700_p8 = pnand %p1706_p7, %p2117_p6 }
 0x7fb   : > { %1965 = dma.done.wait (!%p1700_p8), %s1509_s28, 256  }
 0x7fc   : > { %1967 = vsyncadd (!%p1700_p8), %s1509_s28, 4294967040  ;;  %s1518_s23 = scalar_lea.sflag [#allocation5], %s1508_s20 }
 0x7fd   : > { %1969 = dma.done.wait (!%p1700_p8), %s1518_s23, 256  }
 0x7fe   : > { %1971 = vsyncadd (!%p1700_p8), %s1518_s23, 4294967040  ;;  %s2581_s18 = sld [smem:[#allocation8_spill]]  ;;  %p28_p5 = scmp.ge.s32.totalorder %s2100_s19, 4  }
 0x7ff   : > { %s2582_s29 = smov %s1978_s30  ;;  %s2583_s30 = smov %s1982_s15 }
 0x800   : > { %s2585_s16 = smov %s2100_s19  ;;  %30 = sbr.rel (!%p28_p5) target bundleno = 11 (0xb), region = 124 }
 0x804   : > { %s2584_s15 = smov %s2581_s18 }
 0x807   :  { %1523 = vsyncpa [#allocation3], 1 }
 0x808   :  { %1525 = vsyncpa [#allocation3 + $0x1], 1 }
 0x809   :  { %1526 = vsyncpa [#allocation5], 1 }
 0x80a   :  { %1528 = vsyncpa [#allocation5 + $0x1], 1 }

</bundles_post_ra>
